<compile_context>
chip_gen: v7x
topology: tpu7x:2x2x1
jax: 0.10.0
libtpu: 0.0.40
codegen_flags: <defaults>
</compile_context>

<pallas_src>
import jax
import jax.numpy as jnp
from jax.experimental import pallas as pl
from jax.experimental.pallas import tpu as pltpu

HIDDEN = 768          # BERT hidden size
FC1_OUT = 2742        # text_fc1_out
FC1_PAD = 2816        # 22 * 128, lane aligned
FC2_OUT = 32          # text_fc2_out
FC2_PAD = 128         # lane-dense output slab; sliced to 32 in the wrapper
DROPOUT_P = 0.4
KEEP_P = 1.0 - DROPOUT_P
VOCAB = 1000


def text_encoder_kernel(emb_ref, maskw_ref, wp_ref, bp_ref, w1_ref, b1_ref,
                        w2_ref, b2_ref, d1_ref, d2_ref, out_ref):
    # ---- stand-in "BERT" pooler_output -----------------------------------
    # TODO(synk): the real pretrained 12-layer BERT encoder is not
    # reproducible without a checkpoint; replaced by masked-mean + tanh pooler.
    # maskw is pre-scaled (mask / valid_len) and shaped (bm, S, 1), so this is
    # a plain sublane reduction: no cross-lane relayout, no divide in-kernel.
    pooled_in = jnp.sum(emb_ref[...] * maskw_ref[...], axis=1)      # (bm, 768)
    pooled = jnp.tanh(
        jnp.dot(pooled_in.astype(jnp.bfloat16), wp_ref[...],
                preferred_element_type=jnp.float32) + bp_ref[...])  # (bm, 768)

    # ---- x = dropout(relu(text_enc_fc1(pooled))) --------------------------
    h1 = jnp.dot(pooled.astype(jnp.bfloat16), w1_ref[...],
                 preferred_element_type=jnp.float32) + b1_ref[...]
    h1 = jnp.maximum(h1, 0.0) * d1_ref[...]     # dropout mask in {0, 1/keep_p}

    # ---- x = dropout(relu(text_enc_fc2(x))) --------------------------------
    h2 = jnp.dot(h1.astype(jnp.bfloat16), w2_ref[...],
                 preferred_element_type=jnp.float32) + b2_ref[...]
    out_ref[...] = jnp.maximum(h2, 0.0) * d2_ref[...]               # (bm, 128)


def text_encoder(input_ids, attention_mask, params, dropout_key, train=True):
    """input_ids, attention_mask: (B, S) int32. Returns (B, 32) f32."""
    B, S = input_ids.shape

    # --- plain-JAX glue: embedding gather, mask pre-scale, dropout masks ----
    emb = params["emb_table"][input_ids]                    # (B, S, 768) f32
    mask = attention_mask.astype(jnp.float32)
    denom = jnp.maximum(jnp.sum(mask, axis=1, keepdims=True), 1.0)  # 0-pad guard
    maskw = (mask / denom)[:, :, None]                      # (B, S, 1)

    if train:
        # TODO(synk): pltpu.prng_seed has no CPU/interpret lowering, so the
        # Bernoulli masks are drawn with jax.random here and applied in-kernel.
        k1, k2 = jax.random.split(dropout_key)
        d1 = jax.random.bernoulli(k1, KEEP_P, (B, FC1_PAD)).astype(jnp.float32) / KEEP_P
        d2 = jax.random.bernoulli(k2, KEEP_P, (B, FC2_PAD)).astype(jnp.float32) / KEEP_P
    else:
        d1 = jnp.ones((B, FC1_PAD), jnp.float32)
        d2 = jnp.ones((B, FC2_PAD), jnp.float32)

    # --- batch grid: weights resident (constant block index), rows tiled ----
    bm = B if B <= 128 else 128
    assert B % bm == 0, "pad the batch to a multiple of 128 for large batches"
    grid = (B // bm,)

    row_map = lambda i: (i, 0)
    row3_map = lambda i: (i, 0, 0)
    const_map = lambda i: (0, 0)

    out = pl.pallas_call(
        text_encoder_kernel,
        out_shape=jax.ShapeDtypeStruct((B, FC2_PAD), jnp.float32),
        grid=grid,
        in_specs=[
            pl.BlockSpec((bm, S, HIDDEN), row3_map),      # emb
            pl.BlockSpec((bm, S, 1), row3_map),           # pre-scaled mask
            pl.BlockSpec((HIDDEN, HIDDEN), const_map),    # wp  (bf16, resident)
            pl.BlockSpec((1, HIDDEN), const_map),         # bp
            pl.BlockSpec((HIDDEN, FC1_PAD), const_map),   # w1  (bf16, resident)
            pl.BlockSpec((1, FC1_PAD), const_map),        # b1
            pl.BlockSpec((FC1_PAD, FC2_PAD), const_map),  # w2  (bf16, resident)
            pl.BlockSpec((1, FC2_PAD), const_map),        # b2
            pl.BlockSpec((bm, FC1_PAD), row_map),         # dropout mask 1
            pl.BlockSpec((bm, FC2_PAD), row_map),         # dropout mask 2
        ],
        out_specs=pl.BlockSpec((bm, FC2_PAD), row_map),
        compiler_params=pltpu.CompilerParams(
            dimension_semantics=("parallel",),
            vmem_limit_bytes=32 << 20,                    # fits v7x's 64 MiB VMEM
        ),
    )(emb, maskw,
      params["wp"], params["bp"],
      params["w1"], params["b1"],
      params["w2"], params["b2"],
      d1, d2)

    return out[:, :FC2_OUT]


def init_params(key):
    ks = jax.random.split(key, 6)
    scale = 0.02

    wp = scale * jax.random.normal(ks[0], (HIDDEN, HIDDEN), jnp.float32)
    w1 = scale * jax.random.normal(ks[1], (HIDDEN, FC1_OUT), jnp.float32)
    b1 = scale * jax.random.normal(ks[2], (FC1_OUT,), jnp.float32)
    w2 = scale * jax.random.normal(ks[3], (FC1_OUT, FC2_OUT), jnp.float32)
    b2 = scale * jax.random.normal(ks[4], (FC2_OUT,), jnp.float32)

    # Zero-pad FC1 -> 2816 and FC2 -> 128 (inert padding; sliced in wrapper).
    w1p = jnp.zeros((HIDDEN, FC1_PAD), jnp.float32).at[:, :FC1_OUT].set(w1)
    b1p = jnp.zeros((1, FC1_PAD), jnp.float32).at[0, :FC1_OUT].set(b1)
    w2p = jnp.zeros((FC1_PAD, FC2_PAD), jnp.float32).at[:FC1_OUT, :FC2_OUT].set(w2)
    b2p = jnp.zeros((1, FC2_PAD), jnp.float32).at[0, :FC2_OUT].set(b2)

    return {
        # pooler dense (768 -> 768), stored (in, out), bf16 weights / f32 bias
        "wp": wp.astype(jnp.bfloat16),
        "bp": jnp.zeros((1, HIDDEN), jnp.float32),
        # text_enc_fc1 (768 -> 2742 padded to 2816), stored (in, out)
        "w1": w1p.astype(jnp.bfloat16),
        "b1": b1p,
        # text_enc_fc2 (2742 -> 32, padded to 2816 -> 128), stored (in, out)
        "w2": w2p.astype(jnp.bfloat16),
        "b2": b2p,
        # synthetic token-embedding table (stand-in for BERT embeddings)
        "emb_table": scale * jax.random.normal(ks[5], (VOCAB, HIDDEN), jnp.float32),
    }


if __name__ == "__main__":
    key = jax.random.PRNGKey(0)
    pkey, idkey, dkey = jax.random.split(key, 3)

    B, S = 4, 16
    params = init_params(pkey)

    # (batch_size, max_length) int token ids + attention mask with padding
    input_ids = jax.random.randint(idkey, (B, S), 0, VOCAB, dtype=jnp.int32)
    attention_mask = jnp.concatenate(
        [jnp.ones((B, S - 4), jnp.int32), jnp.zeros((B, 4), jnp.int32)], axis=1)

    out = text_encoder(input_ids, attention_mask, params, dkey, train=True)
    out = jax.block_until_ready(out)
    assert out.shape == (B, FC2_OUT) and out.dtype == jnp.float32
    assert bool(jnp.all(jnp.isfinite(out))) and bool(jnp.all(out >= 0.0))
    print("KERNEL_OK")
</pallas_src>

<mosaic_0001>
module attributes {stable_mosaic.version = 11 : i64} {
  func.func @text_encoder_kernel(%arg0: i32, %arg1: memref<4x16x768xf32, #tpu.memory_space<vmem>>, %arg2: memref<4x16x1xf32, #tpu.memory_space<vmem>>, %arg3: memref<768x768xbf16, #tpu.memory_space<vmem>>, %arg4: memref<1x768xf32, #tpu.memory_space<vmem>>, %arg5: memref<768x2816xbf16, #tpu.memory_space<vmem>>, %arg6: memref<1x2816xf32, #tpu.memory_space<vmem>>, %arg7: memref<2816x128xbf16, #tpu.memory_space<vmem>>, %arg8: memref<1x128xf32, #tpu.memory_space<vmem>>, %arg9: memref<4x2816xf32, #tpu.memory_space<vmem>>, %arg10: memref<4x128xf32, #tpu.memory_space<vmem>>, %arg11: memref<4x128xf32, #tpu.memory_space<vmem>>) attributes {dimension_semantics = [#tpu.dimension_semantics<parallel>], iteration_bounds = array<i64: 1>, scalar_prefetch = 0 : i64, scratch_operands = 0 : i64, tpu.core_type = #tpu.core_type<tc>, window_params = [{transform_indices = @transform_0, window_bounds = array<i64: 4, 16, 768>}, {transform_indices = @transform_1, window_bounds = array<i64: 4, 16, 1>}, {pipeline_mode = #tpu.pipeline_mode<synchronous>, transform_indices = @transform_2, window_bounds = array<i64: 768, 768>}, {pipeline_mode = #tpu.pipeline_mode<synchronous>, transform_indices = @transform_3, window_bounds = array<i64: 1, 768>}, {pipeline_mode = #tpu.pipeline_mode<synchronous>, transform_indices = @transform_4, window_bounds = array<i64: 768, 2816>}, {pipeline_mode = #tpu.pipeline_mode<synchronous>, transform_indices = @transform_5, window_bounds = array<i64: 1, 2816>}, {pipeline_mode = #tpu.pipeline_mode<synchronous>, transform_indices = @transform_6, window_bounds = array<i64: 2816, 128>}, {pipeline_mode = #tpu.pipeline_mode<synchronous>, transform_indices = @transform_7, window_bounds = array<i64: 1, 128>}, {transform_indices = @transform_8, window_bounds = array<i64: 4, 2816>}, {transform_indices = @transform_9, window_bounds = array<i64: 4, 128>}, {transform_indices = @transform_10, window_bounds = array<i64: 4, 128>}]} {
    %c0 = arith.constant 0 : index
    %c0_0 = arith.constant 0 : index
    %c0_1 = arith.constant 0 : index
    %0 = vector.load %arg1[%c0, %c0_0, %c0_1] : memref<4x16x768xf32, #tpu.memory_space<vmem>>, vector<4x16x768xf32>
    %c0_2 = arith.constant 0 : index
    %c0_3 = arith.constant 0 : index
    %c0_4 = arith.constant 0 : index
    %1 = vector.load %arg2[%c0_2, %c0_3, %c0_4] : memref<4x16x1xf32, #tpu.memory_space<vmem>>, vector<4x16x1xf32>
    %2 = vector.broadcast %1 : vector<4x16x1xf32> to vector<4x16x768xf32>
    %3 = arith.mulf %0, %2 : vector<4x16x768xf32>
    %cst = arith.constant dense<0.000000e+00> : vector<4x768xf32>
    %4 = vector.multi_reduction <add>, %3, %cst [1] : vector<4x16x768xf32> to vector<4x768xf32>
    %5 = arith.truncf %4 : vector<4x768xf32> to vector<4x768xbf16>
    %c0_5 = arith.constant 0 : index
    %c0_6 = arith.constant 0 : index
    %6 = vector.load %arg3[%c0_5, %c0_6] : memref<768x768xbf16, #tpu.memory_space<vmem>>, vector<768x768xbf16>
    %cst_7 = arith.constant dense<0.000000e+00> : vector<4x768xf32>
    %7 = tpu.matmul %5, %6, %cst_7 {dimension_numbers = #tpu.dot_dimension_numbers<[1], [0], [0], [1], [0, 0, 1, 1], [], []>} : vector<4x768xbf16>, vector<768x768xbf16>, vector<4x768xf32> -> vector<4x768xf32>
    %c0_8 = arith.constant 0 : index
    %c0_9 = arith.constant 0 : index
    %8 = vector.load %arg4[%c0_8, %c0_9] : memref<1x768xf32, #tpu.memory_space<vmem>>, vector<1x768xf32>
    %9 = vector.broadcast %8 : vector<1x768xf32> to vector<4x768xf32>
    %10 = arith.addf %7, %9 : vector<4x768xf32>
    %11 = math.tanh %10 : vector<4x768xf32>
    %12 = arith.truncf %11 : vector<4x768xf32> to vector<4x768xbf16>
    %c0_10 = arith.constant 0 : index
    %c0_11 = arith.constant 0 : index
    %13 = vector.load %arg5[%c0_10, %c0_11] : memref<768x2816xbf16, #tpu.memory_space<vmem>>, vector<768x2816xbf16>
    %cst_12 = arith.constant dense<0.000000e+00> : vector<4x2816xf32>
    %14 = tpu.matmul %12, %13, %cst_12 {dimension_numbers = #tpu.dot_dimension_numbers<[1], [0], [0], [1], [0, 0, 1, 1], [], []>} : vector<4x768xbf16>, vector<768x2816xbf16>, vector<4x2816xf32> -> vector<4x2816xf32>
    %c0_13 = arith.constant 0 : index
    %c0_14 = arith.constant 0 : index
    %15 = vector.load %arg6[%c0_13, %c0_14] : memref<1x2816xf32, #tpu.memory_space<vmem>>, vector<1x2816xf32>
    %16 = vector.broadcast %15 : vector<1x2816xf32> to vector<4x2816xf32>
    %17 = arith.addf %14, %16 : vector<4x2816xf32>
    %cst_15 = arith.constant 0.000000e+00 : f32
    %18 = vector.broadcast %cst_15 : f32 to vector<4x2816xf32>
    %19 = arith.maximumf %17, %18 : vector<4x2816xf32>
    %c0_16 = arith.constant 0 : index
    %c0_17 = arith.constant 0 : index
    %20 = vector.load %arg9[%c0_16, %c0_17] : memref<4x2816xf32, #tpu.memory_space<vmem>>, vector<4x2816xf32>
    %21 = arith.mulf %19, %20 : vector<4x2816xf32>
    %22 = arith.truncf %21 : vector<4x2816xf32> to vector<4x2816xbf16>
    %c0_18 = arith.constant 0 : index
    %c0_19 = arith.constant 0 : index
    %23 = vector.load %arg7[%c0_18, %c0_19] : memref<2816x128xbf16, #tpu.memory_space<vmem>>, vector<2816x128xbf16>
    %cst_20 = arith.constant dense<0.000000e+00> : vector<4x128xf32>
    %24 = tpu.matmul %22, %23, %cst_20 {dimension_numbers = #tpu.dot_dimension_numbers<[1], [0], [0], [1], [0, 0, 1, 1], [], []>} : vector<4x2816xbf16>, vector<2816x128xbf16>, vector<4x128xf32> -> vector<4x128xf32>
    %c0_21 = arith.constant 0 : index
    %c0_22 = arith.constant 0 : index
    %25 = vector.load %arg8[%c0_21, %c0_22] : memref<1x128xf32, #tpu.memory_space<vmem>>, vector<1x128xf32>
    %26 = vector.broadcast %25 : vector<1x128xf32> to vector<4x128xf32>
    %27 = arith.addf %24, %26 : vector<4x128xf32>
    %cst_23 = arith.constant 0.000000e+00 : f32
    %28 = vector.broadcast %cst_23 : f32 to vector<4x128xf32>
    %29 = arith.maximumf %27, %28 : vector<4x128xf32>
    %c0_24 = arith.constant 0 : index
    %c0_25 = arith.constant 0 : index
    %30 = vector.load %arg10[%c0_24, %c0_25] : memref<4x128xf32, #tpu.memory_space<vmem>>, vector<4x128xf32>
    %31 = arith.mulf %29, %30 : vector<4x128xf32>
    %c0_26 = arith.constant 0 : index
    %c0_27 = arith.constant 0 : index
    %32 = vector.load %arg11[%c0_26, %c0_27] : memref<4x128xf32, #tpu.memory_space<vmem>>, vector<4x128xf32>
    tpu.vector_store %arg11[%c0_26, %c0_27], %31 {strides = array<i32>} : memref<4x128xf32, #tpu.memory_space<vmem>>, vector<4x128xf32>,
    return
  }
  func.func @transform_0(%arg0: i32) -> (i32, i32, i32) {
    %c0_i32 = arith.constant 0 : i32
    %c0_i32_0 = arith.constant 0 : i32
    %c0_i32_1 = arith.constant 0 : i32
    return %arg0, %c0_i32, %c0_i32_0 : i32, i32, i32
  }
  func.func @transform_1(%arg0: i32) -> (i32, i32, i32) {
    %c0_i32 = arith.constant 0 : i32
    %c0_i32_0 = arith.constant 0 : i32
    %c0_i32_1 = arith.constant 0 : i32
    return %arg0, %c0_i32, %c0_i32_0 : i32, i32, i32
  }
  func.func @transform_2(%arg0: i32) -> (i32, i32) {
    %c0_i32 = arith.constant 0 : i32
    %c0_i32_0 = arith.constant 0 : i32
    %c0_i32_1 = arith.constant 0 : i32
    return %c0_i32, %c0_i32_0 : i32, i32
  }
  func.func @transform_3(%arg0: i32) -> (i32, i32) {
    %c0_i32 = arith.constant 0 : i32
    %c0_i32_0 = arith.constant 0 : i32
    %c0_i32_1 = arith.constant 0 : i32
    return %c0_i32, %c0_i32_0 : i32, i32
  }
  func.func @transform_4(%arg0: i32) -> (i32, i32) {
    %c0_i32 = arith.constant 0 : i32
    %c0_i32_0 = arith.constant 0 : i32
    %c0_i32_1 = arith.constant 0 : i32
    return %c0_i32, %c0_i32_0 : i32, i32
  }
  func.func @transform_5(%arg0: i32) -> (i32, i32) {
    %c0_i32 = arith.constant 0 : i32
    %c0_i32_0 = arith.constant 0 : i32
    %c0_i32_1 = arith.constant 0 : i32
    return %c0_i32, %c0_i32_0 : i32, i32
  }
  func.func @transform_6(%arg0: i32) -> (i32, i32) {
    %c0_i32 = arith.constant 0 : i32
    %c0_i32_0 = arith.constant 0 : i32
    %c0_i32_1 = arith.constant 0 : i32
    return %c0_i32, %c0_i32_0 : i32, i32
  }
  func.func @transform_7(%arg0: i32) -> (i32, i32) {
    %c0_i32 = arith.constant 0 : i32
    %c0_i32_0 = arith.constant 0 : i32
    %c0_i32_1 = arith.constant 0 : i32
    return %c0_i32, %c0_i32_0 : i32, i32
  }
  func.func @transform_8(%arg0: i32) -> (i32, i32) {
    %c0_i32 = arith.constant 0 : i32
    %c0_i32_0 = arith.constant 0 : i32
    return %arg0, %c0_i32 : i32, i32
  }
  func.func @transform_9(%arg0: i32) -> (i32, i32) {
    %c0_i32 = arith.constant 0 : i32
    %c0_i32_0 = arith.constant 0 : i32
    return %arg0, %c0_i32 : i32, i32
  }
  func.func @transform_10(%arg0: i32) -> (i32, i32) {
    %c0_i32 = arith.constant 0 : i32
    %c0_i32_0 = arith.constant 0 : i32
    return %arg0, %c0_i32 : i32, i32
  }
}

</mosaic_0001>

<bundles_post_ra>
// kernel: tpu_custom_call.1
= control target key start
LH: loop header
LB: loop body
LE: loop exit
PB: predicated region body
PF: predicated region fallthrough
CT: control target
= control target key end

     0   :  { %15 = vsyncpa [#allocation3], 0  ;;  %s17522_s0 = inlined_call_operand.hbm [shape: f32[4,16,768], index: 0, kind: input, shape index: {}]   ;;  %s17523_s1 = inlined_call_operand.vmem [shape: f32[4,16,1], index: 1, kind: input, shape index: {}]   ;;  %s17524_s2 = inlined_call_operand.hbm [shape: bf16[768,768], index: 2, kind: input, shape index: {}]   ;;  %s17525_s3 = inlined_call_operand.hbm [shape: f32[1,768], index: 3, kind: input, shape index: {}]   ;;  %s17526_s4 = inlined_call_operand.hbm [shape: bf16[768,2816], index: 4, kind: input, shape index: {}]   ;;  %s17527_s5 = inlined_call_operand.hbm [shape: f32[1,2816], index: 5, kind: input, shape index: {}]   ;;  %s17528_s6 = inlined_call_operand.hbm [shape: bf16[2816,128], index: 6, kind: input, shape index: {}]   ;;  %s17529_s7 = inlined_call_operand.hbm [shape: f32[1,128], index: 7, kind: input, shape index: {}]   ;;  %s17530_s8 = inlined_call_operand.hbm [shape: f32[4,2816], index: 8, kind: input, shape index: {}]   ;;  %s17531_s9 = inlined_call_operand.hbm [shape: f32[4,128], index: 9, kind: input, shape index: {}]   ;;  %s17532_s10 = inlined_call_operand.hbm [shape: f32[4,128], index: 10, kind: output, shape index: {}]  }
   0x1   :  { %16 = vsyncpa [#allocation6], 0 }
   0x2   :  { %17 = vsyncpa [#allocation9], 0 }
   0x3   :  { %18 = vsyncpa [#allocation12], 0 }
   0x4   :  { %19 = vsyncpa [#allocation15], 0 }
   0x5   :  { %20 = vsyncpa [#allocation4], 0  ;;  %s16874_s13 = smov [#allocation5]   ;;  %s16642_s17 = scalar_lea.hbm %s17524_s2, 36864 }
   0x6   :  { %s40_s14 = sshll.u32 %s16874_s13, 4  ;;  %p16643_p0 = scmp.ne.s32.totalorder %s17524_s2, %s16642_s17  ;;  %s41_s14 = int_to_ptr.vmem [resolvable:$true] %s40_s14 }
   0x7   :  { %p16646_p1 = scmp.lt.u32.totalorder %s16642_s17, %s17524_s2 }
   0x9   :  { %p16648_p2 = pnand %p16646_p1, %p16643_p0 }
   0xb   :  { %16651 = shalt.err (!%p16648_p2)
}
   0xc   :  { %s16652_s22 = scalar_lea.vmem %s41_s14, 36864  ;;  %p16657_p4 = scmp.lt.s32.totalorder %s41_s14, %s41_s14 }
   0xd   :  { %p16653_p3 = scmp.ne.s32.totalorder %s41_s14, %s16652_s22  ;;  %p16658_p5 = scmp.lt.s32.totalorder %s16652_s22, %s16652_s22 }
   0xf   :  { %p16659_p6 = por %p16658_p5, %p16657_p4 }
  0x11   :  { %p16660_p7 = pnand %p16659_p6, %p16653_p3 }
  0x13   :  { %16663 = shalt.err (!%p16660_p7)
}
  0x14   :  { %s16875_s23 = smov 384   ;;  %s16876_s24 = smov 24  }
  0x15   :  { %46 = dma.hbm_to_vmem [thread:$0]  %s17524_s2, 36864, %s41_s14, [#allocation6], %s16875_s23, %s16875_s23, %s16876_s24  }
  0x16   :  { %s16877_s27 = smov [#allocation8]   ;;  %s16664_s11 = scalar_lea.hbm %s17526_s4, 135168 }
  0x17   :  { %s62_s28 = sshll.u32 %s16877_s27, 4  ;;  %p16665_p8 = scmp.ne.s32.totalorder %s17526_s4, %s16664_s11  ;;  %s63_s28 = int_to_ptr.vmem [resolvable:$true] %s62_s28 }
  0x18   :  { %p16668_p9 = scmp.lt.u32.totalorder %s16664_s11, %s17526_s4 }
  0x1a   :  { %p16670_p10 = pnand %p16668_p9, %p16665_p8 }
  0x1c   :  { %16673 = shalt.err (!%p16670_p10)
}
  0x1d   :  { %s16674_s17 = scalar_lea.vmem %s63_s28, 135168  ;;  %p16679_p12 = scmp.lt.s32.totalorder %s63_s28, %s63_s28 }
  0x1e   :  { %p16675_p11 = scmp.ne.s32.totalorder %s63_s28, %s16674_s17  ;;  %p16680_p13 = scmp.lt.s32.totalorder %s16674_s17, %s16674_s17 }
  0x20   :  { %p16681_p0 = por %p16680_p13, %p16679_p12 }
  0x22   :  { %p16682_p1 = pnand %p16681_p0, %p16675_p11 }
  0x24   :  { %16685 = shalt.err (!%p16682_p1)
}
  0x25   :  { %s16878_s2 = smov 1408   ;;  %s16879_s14 = smov 88  }
  0x26   :  { %68 = dma.hbm_to_vmem [thread:$0]  %s17526_s4, 135168, %s63_s28, [#allocation9], %s16878_s2, %s16878_s2, %s16879_s14  }
  0x27   :  { %s16880_s20 = smov [#allocation11]   ;;  %s16686_s24 = scalar_lea.hbm %s17528_s6, 22528 }
  0x28   :  { %s84_s21 = sshll.u32 %s16880_s20, 4  ;;  %p16687_p2 = scmp.ne.s32.totalorder %s17528_s6, %s16686_s24  ;;  %s85_s21 = int_to_ptr.vmem [resolvable:$true] %s84_s21 }
  0x29   :  { %p16690_p3 = scmp.lt.u32.totalorder %s16686_s24, %s17528_s6 }
  0x2b   :  { %p16692_p4 = pnand %p16690_p3, %p16687_p2 }
  0x2d   :  { %16695 = shalt.err (!%p16692_p4)
}
  0x2e   :  { %s16696_s30 = scalar_lea.vmem %s85_s21, 22528  ;;  %p16701_p6 = scmp.lt.s32.totalorder %s85_s21, %s85_s21 }
  0x2f   :  { %p16697_p5 = scmp.ne.s32.totalorder %s85_s21, %s16696_s30  ;;  %p16702_p7 = scmp.lt.s32.totalorder %s16696_s30, %s16696_s30 }
  0x31   :  { %p16703_p8 = por %p16702_p7, %p16701_p6 }
  0x33   :  { %p16704_p9 = pnand %p16703_p8, %p16697_p5 }
  0x35   :  { %16707 = shalt.err (!%p16704_p9)
}
  0x36   :  { %s16881_s4 = smov 64   ;;  %s16882_s28 = smov 4  }
  0x37   :  { %90 = dma.hbm_to_vmem [thread:$0]  %s17528_s6, 22528, %s85_s21, [#allocation12], %s16881_s4, %s16881_s4, %s16882_s28  }
  0x38   :  { %s16883_s13 = smov [#allocation14]   ;;  %s16884_s16 = smov [#allocation2]  }
  0x39   :  { %s107_s15 = sshll.u32 %s16883_s13, 4  ;;  %s26_s17 = sshll.u32 %s16884_s16, 4  ;;  %s108_s15 = int_to_ptr.vmem [resolvable:$true] %s107_s15  ;;  %s27_s17 = int_to_ptr.vmem [resolvable:$true] %s26_s17 }
  0x3a   :  { %s16708_s18 = scalar_lea.hbm %s17530_s8, 1408 }
  0x3b   :  { %p16709_p10 = scmp.ne.s32.totalorder %s17530_s8, %s16708_s18  ;;  %p16712_p11 = scmp.lt.u32.totalorder %s16708_s18, %s17530_s8 }
  0x3d   :  { %p16714_p12 = pnand %p16712_p11, %p16709_p10 }
  0x3f   :  { %16717 = shalt.err (!%p16714_p12)
}
  0x40   :  { %s16718_s6 = scalar_lea.vmem %s108_s15, 1408  ;;  %p16723_p0 = scmp.lt.s32.totalorder %s108_s15, %s108_s15 }
  0x41   :  { %p16719_p13 = scmp.ne.s32.totalorder %s108_s15, %s16718_s6  ;;  %p16724_p1 = scmp.lt.s32.totalorder %s16718_s6, %s16718_s6 }
  0x43   :  { %p16725_p2 = por %p16724_p1, %p16723_p0 }
  0x45   :  { %p16726_p3 = pnand %p16725_p2, %p16719_p13 }
  0x47   :  { %16729 = shalt.err (!%p16726_p3)
}
  0x48   :  { %110 = dma.hbm_to_vmem [thread:$0]  %s17530_s8, 1408, %s108_s15, [#allocation15]  }
  0x49   :  { %s16730_s27 = scalar_lea.hbm %s17522_s0, 6144 }
  0x4a   :  { %p16731_p4 = scmp.ne.s32.totalorder %s17522_s0, %s16730_s27  ;;  %p16734_p5 = scmp.lt.u32.totalorder %s16730_s27, %s17522_s0 }
  0x4c   :  { %p16736_p6 = pnand %p16734_p5, %p16731_p4 }
  0x4e   :  { %16739 = shalt.err (!%p16736_p6)
}
  0x4f   :  { %s16740_s11 = scalar_lea.vmem %s27_s17, 6144  ;;  %p16745_p8 = scmp.lt.s32.totalorder %s27_s17, %s27_s17 }
  0x50   :  { %p16741_p7 = scmp.ne.s32.totalorder %s27_s17, %s16740_s11  ;;  %p16746_p9 = scmp.lt.s32.totalorder %s16740_s11, %s16740_s11 }
  0x52   :  { %p16747_p10 = por %p16746_p9, %p16745_p8 }
  0x54   :  { %p16748_p11 = pnand %p16747_p10, %p16741_p7 }
  0x56   :  { %16751 = shalt.err (!%p16748_p11)
}
  0x57   :  { %s16885_s8 = smov 768   ;;  %s16886_s12 = smov 48  }
  0x58   :  { %32 = dma.hbm_to_vmem [thread:$0]  %s17522_s0, 6144, %s27_s17, [#allocation3], %s16885_s8, %s16885_s8, %s16886_s12  }
  0x59   :  { %s16887_s16 = smov [#allocation7]   ;;  %s16888_s14 = smov [#allocation10]  }
  0x5a   :  { %s53_s2 = sshll.u32 %s16887_s16, 4  ;;  %s75_s18 = sshll.u32 %s16888_s14, 4  ;;  %s54_s2 = int_to_ptr.vmem [resolvable:$true] %s53_s2  ;;  %s76_s18 = int_to_ptr.vmem [resolvable:$true] %s75_s18 }
  0x5b   :  { %s16752_s22 = scalar_lea.hbm %s17525_s3, 96 }
  0x5c   :  { %p16753_p12 = scmp.ne.s32.totalorder %s17525_s3, %s16752_s22  ;;  %p16756_p13 = scmp.lt.u32.totalorder %s16752_s22, %s17525_s3 }
  0x5e   :  { %p16758_p0 = pnand %p16756_p13, %p16753_p12 }
  0x60   :  { %16761 = shalt.err (!%p16758_p0)
}
  0x61   :  { %s16762_s0 = scalar_lea.vmem %s54_s2, 96  ;;  %p16767_p2 = scmp.lt.s32.totalorder %s54_s2, %s54_s2 }
  0x62   :  { %p16763_p1 = scmp.ne.s32.totalorder %s54_s2, %s16762_s0  ;;  %p16768_p3 = scmp.lt.s32.totalorder %s16762_s0, %s16762_s0 }
  0x64   :  { %p16769_p4 = por %p16768_p3, %p16767_p2 }
  0x66   :  { %p16770_p5 = pnand %p16769_p4, %p16763_p1 }
  0x68   :  { %16773 = shalt.err (!%p16770_p5)
}
  0x69   :  { %56 = dma.hbm_to_vmem [thread:$0]  %s17525_s3, 96, %s54_s2, [#allocation6]  }
  0x6a   :  { %s16774_s29 = scalar_lea.hbm %s17527_s5, 352 }
  0x6b   :  { %p16775_p6 = scmp.ne.s32.totalorder %s17527_s5, %s16774_s29  ;;  %p16778_p7 = scmp.lt.u32.totalorder %s16774_s29, %s17527_s5 }
  0x6d   :  { %p16780_p8 = pnand %p16778_p7, %p16775_p6 }
  0x6f   :  { %16783 = shalt.err (!%p16780_p8)
}
  0x70   :  { %s16784_s8 = scalar_lea.vmem %s76_s18, 352  ;;  %p16789_p10 = scmp.lt.s32.totalorder %s76_s18, %s76_s18 }
  0x71   :  { %p16785_p9 = scmp.ne.s32.totalorder %s76_s18, %s16784_s8  ;;  %p16790_p11 = scmp.lt.s32.totalorder %s16784_s8, %s16784_s8 }
  0x73   :  { %p16791_p12 = por %p16790_p11, %p16789_p10 }
  0x75   :  { %p16792_p13 = pnand %p16791_p12, %p16785_p9 }
  0x77   :  { %16795 = shalt.err (!%p16792_p13)
}
  0x78   :  { %78 = dma.hbm_to_vmem [thread:$0]  %s17527_s5, 352, %s76_s18, [#allocation9]  }
  0x79   :  { %s16889_s13 = smov [#allocation13]   ;;  %s16890_s16 = smov [#allocation16]  }
  0x7a   :  { %s97_s15 = sshll.u32 %s16889_s13, 4  ;;  %s117_s2 = sshll.u32 %s16890_s16, 4  ;;  %s98_s15 = int_to_ptr.vmem [resolvable:$true] %s97_s15  ;;  %s118_s2 = int_to_ptr.vmem [resolvable:$true] %s117_s2 }
  0x7b   :  { %s16796_s20 = scalar_lea.hbm %s17529_s7, 16 }
  0x7c   :  { %p16797_p0 = scmp.ne.s32.totalorder %s17529_s7, %s16796_s20  ;;  %p16800_p1 = scmp.lt.u32.totalorder %s16796_s20, %s17529_s7 }
  0x7e   :  { %p16802_p2 = pnand %p16800_p1, %p16797_p0 }
  0x80   :  { %16805 = shalt.err (!%p16802_p2)
}
  0x81   :  { %s16806_s5 = scalar_lea.vmem %s98_s15, 16  ;;  %s16810_s18 = scalar_lea.vmem %s98_s15, 32 }
  0x82   :  { %p16807_p3 = scmp.ne.s32.totalorder %s98_s15, %s16806_s5  ;;  %p16811_p4 = scmp.lt.s32.totalorder %s98_s15, %s98_s15 }
  0x83   :  { %p16812_p5 = scmp.lt.s32.totalorder %s16810_s18, %s16806_s5 }
  0x85   :  { %p16813_p6 = por %p16812_p5, %p16811_p4 }
  0x87   :  { %p16814_p7 = pnand %p16813_p6, %p16807_p3 }
  0x89   :  { %16817 = shalt.err (!%p16814_p7)
}
  0x8a   :  { %100 = dma.hbm_to_vmem [thread:$0]  %s17529_s7, 16, %s98_s15, [#allocation12]  }
  0x8b   :  { %s16818_s26 = scalar_lea.hbm %s17531_s9, 64 }
  0x8c   :  { %p16819_p8 = scmp.ne.s32.totalorder %s17531_s9, %s16818_s26  ;;  %p16822_p9 = scmp.lt.u32.totalorder %s16818_s26, %s17531_s9 }
  0x8e   :  { %p16824_p10 = pnand %p16822_p9, %p16819_p8 }
  0x90   :  { %16827 = shalt.err (!%p16824_p10)
}
  0x91   :  { %s16828_s28 = scalar_lea.vmem %s118_s2, 64  ;;  %p16833_p12 = scmp.lt.s32.totalorder %s118_s2, %s118_s2 }
  0x92   :  { %p16829_p11 = scmp.ne.s32.totalorder %s118_s2, %s16828_s28  ;;  %p16834_p13 = scmp.lt.s32.totalorder %s16828_s28, %s16828_s28 }
  0x94   :  { %p16835_p0 = por %p16834_p13, %p16833_p12 }
  0x96   :  { %p16836_p1 = pnand %p16835_p0, %p16829_p11 }
  0x98   :  { %16839 = shalt.err (!%p16836_p1)
}
  0x99   :  { %120 = dma.hbm_to_vmem [thread:$0]  %s17531_s9, 64, %s118_s2, [#allocation15]  }
  0x9a   :  { %16862 = dma.done.wait [#allocation3], 6144  }
  0x9b   :  { %16863 = vsyncadd [#allocation3], 4294961152 }
  0x9c   :  { %16864 = dma.done.wait [#allocation6], 36960  }
  0x9d   :  { %16865 = vsyncadd [#allocation6], 4294930336 }
  0x9e   :  { %16866 = dma.done.wait [#allocation9], 135520  }
  0x9f   :  { %16867 = vsyncadd [#allocation9], 4294831776 }
  0xa0   :  { %16868 = dma.done.wait [#allocation12], 22544  }
  0xa1   :  { %16869 = vsyncadd [#allocation12], 4294944752 }
  0xa2   :  { %16870 = dma.done.wait [#allocation15], 1472  }
  0xa3   :  { %16871 = vsyncadd [#allocation15], 4294965824  ;;  %v16891_v0 = vmov 0   ;;  %v199_v1 = vld [vmem:[%s17523_s1 + $0x10] sm:$0xff]  ;;  %v197_v2 = vld [vmem:[%s17523_s1] sm:$0xff]  ;;  %vm853_vm0 = vcmask 1041409  }
  0xa4   :  { %14423 = vset.pattern.permute.xlu1 %v16891_v0  ;;  %14422 = vset.pattern.permute.xlu0 %v16891_v0  ;;  %v200_v3 = vld [vmem:[%s17523_s1 + $0x18] sm:$0xff]  ;;  %v198_v4 = vld [vmem:[%s17523_s1 + $0x8] sm:$0xff]  ;;  %v201_v7 = vld [vmem:[%s17523_s1 + $0x20] sm:$0xff]  ;;  %vm855_vm1 = vcmask 1042434   ;;  %vm857_vm2 = vcmask 1043459  }
  0xa5   :  { %217 = vperm.xlu1 %14423, %v199_v1   ;;  %207 = vperm.xlu0 %14422, %v197_v2   ;;  %v14424_v5 = vld [vmem:[#allocation5 + $0x4] ss:$24 sps:$4 sm:$0xff]   ;;  %v202_v6 = vld [vmem:[%s17523_s1 + $0x28] sm:$0xff]  ;;  %v14428_v9 = vld [vmem:[#allocation5] ss:$24 sps:$4 sm:$0xff]  }
  0xa6   :  { %v14426_v8 = vld [vmem:[#allocation5 + $0xc] ss:$24 sps:$4 sm:$0xff]   ;;  %v14429_v10 = vld [vmem:[#allocation5 + $0x8] ss:$24 sps:$4 sm:$0xff]   ;;  %2326 = vmatprep.subr.bf16.mxu0 %v14424_v5  ;;  %v14432_v12 = vld [vmem:[#allocation5 + $0x3c] ss:$24 sps:$4 sm:$0xff]  }
  0xa7   :  { %2449 = vmatprep.subr.bf16.mxu1 %v14426_v8  ;;  %v14430_v11 = vld [vmem:[#allocation5 + $0x34] ss:$24 sps:$4 sm:$0xff]   ;;  %2327 = vmatpush1.bf16.msra.mxu0 %v14428_v9  ;;  %v14434_v13 = vld [vmem:[#allocation5 + $0x30] ss:$24 sps:$4 sm:$0xff]   ;;  %v204_v15 = vld [vmem:[%s17523_s1 + $0x38] sm:$0xff] }
  0xa8   :  { %2450 = vmatpush1.bf16.msra.mxu1 %v14429_v10  ;;  %v14435_v14 = vld [vmem:[#allocation5 + $0x38] ss:$24 sps:$4 sm:$0xff]   ;;  %2328 = vmatprep.subr.bf16.mxu0 %v14430_v11  ;;  %v14436_v16 = vld [vmem:[#allocation5 + $0x64] ss:$24 sps:$4 sm:$0xff]   ;;  %v14441_v20 = vld [vmem:[#allocation5 + $0x68] ss:$24 sps:$4 sm:$0xff]  }
  0xa9   :  { %222 = vperm.xlu1 %14423, %v200_v3   ;;  %212 = vperm.xlu0 %14422, %v198_v4   ;;  %v14438_v17 = vld [vmem:[#allocation5 + $0x6c] ss:$24 sps:$4 sm:$0xff]   ;;  %v203_v18 = vld [vmem:[%s17523_s1 + $0x30] sm:$0xff]  ;;  %v14440_v19 = vld [vmem:[#allocation5 + $0x60] ss:$24 sps:$4 sm:$0xff]   ;;  %s16892_s1 = smov [#allocation17]  }
  0xaa   :  { %2451 = vmatprep.subr.bf16.mxu1 %v14432_v12  ;;  %v14442_v21 = vld [vmem:[#allocation5 + $0x94] ss:$24 sps:$4 sm:$0xff]   ;;  %v14446_v23 = vld [vmem:[#allocation5 + $0x90] ss:$24 sps:$4 sm:$0xff]   ;;  %v14448_v25 = vld [vmem:[#allocation5 + $0xc4] ss:$24 sps:$4 sm:$0xff]  }
  0xab   :  { %2329 = vmatpush1.bf16.msra.mxu0 %v14434_v13  ;;  %v14444_v22 = vld [vmem:[#allocation5 + $0x9c] ss:$24 sps:$4 sm:$0xff]   ;;  %v14447_v24 = vld [vmem:[#allocation5 + $0x98] ss:$24 sps:$4 sm:$0xff]   ;;  %v14450_v26 = vld [vmem:[#allocation5 + $0xcc] ss:$24 sps:$4 sm:$0xff]  }
  0xac   :  { %2452 = vmatpush1.bf16.msra.mxu1 %v14435_v14  ;;  %2330 = vmatprep.subr.bf16.mxu0 %v14436_v16  ;;  %v14452_v27 = vld [vmem:[#allocation5 + $0xc0] ss:$24 sps:$4 sm:$0xff]   ;;  %v14454_v29 = vld [vmem:[#allocation5 + $0xf4] ss:$24 sps:$4 sm:$0xff]   ;;  %v14458_v31 = vld [vmem:[#allocation5 + $0xf0] ss:$24 sps:$4 sm:$0xff]  }
  0xad   :  { %232 = vperm.xlu1 %14423, %v202_v6   ;;  %227 = vperm.xlu0 %14422, %v201_v7   ;;  %v14453_v28 = vld [vmem:[#allocation5 + $0xc8] ss:$24 sps:$4 sm:$0xff]   ;;  %v14456_v30 = vld [vmem:[#allocation5 + $0xfc] ss:$24 sps:$4 sm:$0xff]   ;;  %v14459_v32 = vld [vmem:[#allocation5 + $0xf8] ss:$24 sps:$4 sm:$0xff]  }
  0xae   :  { %2453 = vmatprep.subr.bf16.mxu1 %v14438_v17  ;;  %v14460_v33 = vld [vmem:[#allocation5 + $0x124] ss:$24 sps:$4 sm:$0xff]   ;;  %v14464_v35 = vld [vmem:[#allocation5 + $0x120] ss:$24 sps:$4 sm:$0xff]   ;;  %v14466_v37 = vld [vmem:[#allocation5 + $0x154] ss:$24 sps:$4 sm:$0xff]  }
  0xaf   :  { %2331 = vmatpush1.bf16.msra.mxu0 %v14440_v19  ;;  %v14462_v34 = vld [vmem:[#allocation5 + $0x12c] ss:$24 sps:$4 sm:$0xff]   ;;  %v14465_v36 = vld [vmem:[#allocation5 + $0x128] ss:$24 sps:$4 sm:$0xff]   ;;  %v14468_v38 = vld [vmem:[#allocation5 + $0x15c] ss:$24 sps:$4 sm:$0xff]  }
  0xb0   :  { %2454 = vmatpush1.bf16.msra.mxu1 %v14441_v20  ;;  %2332 = vmatprep.subr.bf16.mxu0 %v14442_v21  ;;  %v14470_v39 = vld [vmem:[#allocation5 + $0x150] ss:$24 sps:$4 sm:$0xff]   ;;  %v14472_v41 = vld [vmem:[#allocation5 + $0x184] ss:$24 sps:$4 sm:$0xff]   ;;  %v14476_v43 = vld [vmem:[#allocation5 + $0x180] ss:$24 sps:$4 sm:$0xff]  }
  0xb1   :  { %242 = vperm.xlu1 %14423, %v204_v15   ;;  %237 = vperm.xlu0 %14422, %v203_v18   ;;  %v14471_v40 = vld [vmem:[#allocation5 + $0x158] ss:$24 sps:$4 sm:$0xff]   ;;  %v14474_v42 = vld [vmem:[#allocation5 + $0x18c] ss:$24 sps:$4 sm:$0xff]   ;;  %v14477_v44 = vld [vmem:[#allocation5 + $0x188] ss:$24 sps:$4 sm:$0xff]  }
  0xb2   :  { %2455 = vmatprep.subr.bf16.mxu1 %v14444_v22  ;;  %v14478_v45 = vld [vmem:[#allocation5 + $0x1b4] ss:$24 sps:$4 sm:$0xff]   ;;  %v14482_v47 = vld [vmem:[#allocation5 + $0x1b0] ss:$24 sps:$4 sm:$0xff]   ;;  %v14484_v49 = vld [vmem:[#allocation5 + $0x1e4] ss:$24 sps:$4 sm:$0xff]  }
  0xb3   :  { %2333 = vmatpush1.bf16.msra.mxu0 %v14446_v23  ;;  %v14480_v46 = vld [vmem:[#allocation5 + $0x1bc] ss:$24 sps:$4 sm:$0xff]   ;;  %v14483_v48 = vld [vmem:[#allocation5 + $0x1b8] ss:$24 sps:$4 sm:$0xff]   ;;  %v14486_v50 = vld [vmem:[#allocation5 + $0x1ec] ss:$24 sps:$4 sm:$0xff]  }
  0xb4   :  { %2456 = vmatpush1.bf16.msra.mxu1 %v14447_v24  ;;  %2334 = vmatprep.subr.bf16.mxu0 %v14448_v25  ;;  %v14488_v51 = vld [vmem:[#allocation5 + $0x1e0] ss:$24 sps:$4 sm:$0xff]   ;;  %v14490_v53 = vld [vmem:[#allocation5 + $0x214] ss:$24 sps:$4 sm:$0xff]   ;;  %v14494_v55 = vld [vmem:[#allocation5 + $0x210] ss:$24 sps:$4 sm:$0xff]  }
  0xb5   :  { %2457 = vmatprep.subr.bf16.mxu1 %v14450_v26  ;;  %v14489_v52 = vld [vmem:[#allocation5 + $0x1e8] ss:$24 sps:$4 sm:$0xff]   ;;  %v14492_v54 = vld [vmem:[#allocation5 + $0x21c] ss:$24 sps:$4 sm:$0xff]   ;;  %v14495_v56 = vld [vmem:[#allocation5 + $0x218] ss:$24 sps:$4 sm:$0xff]  }
  0xb6   :  { %v14496_v57 = vld [vmem:[#allocation5 + $0x244] ss:$24 sps:$4 sm:$0xff]   ;;  %v14500_v59 = vld [vmem:[#allocation5 + $0x240] ss:$24 sps:$4 sm:$0xff]   ;;  %v14502_v61 = vld [vmem:[#allocation5 + $0x274] ss:$24 sps:$4 sm:$0xff]  }
  0xb7   :  { %2335 = vmatpush1.bf16.msra.mxu0 %v14452_v27  ;;  %v14498_v58 = vld [vmem:[#allocation5 + $0x24c] ss:$24 sps:$4 sm:$0xff]   ;;  %v14501_v60 = vld [vmem:[#allocation5 + $0x248] ss:$24 sps:$4 sm:$0xff]   ;;  %v14504_v62 = vld [vmem:[#allocation5 + $0x27c] ss:$24 sps:$4 sm:$0xff]  }
  0xb8   :  { %2458 = vmatpush1.bf16.msra.mxu1 %v14453_v28  ;;  %2336 = vmatprep.subr.bf16.mxu0 %v14454_v29  ;;  %v14506_v63 = vld [vmem:[#allocation5 + $0x270] ss:$24 sps:$4 sm:$0xff]   ;;  %v14508_v1 = vld [vmem:[#allocation5 + $0x2a4] ss:$24 sps:$4 sm:$0xff]   ;;  %v14512_v3 = vld [vmem:[#allocation5 + $0x2a0] ss:$24 sps:$4 sm:$0xff]  }
  0xb9   :  { %2459 = vmatprep.subr.bf16.mxu1 %v14456_v30  ;;  %v14507_v0 = vld [vmem:[#allocation5 + $0x278] ss:$24 sps:$4 sm:$0xff]   ;;  %v14510_v2 = vld [vmem:[#allocation5 + $0x2ac] ss:$24 sps:$4 sm:$0xff]   ;;  %v14513_v4 = vld [vmem:[#allocation5 + $0x2a8] ss:$24 sps:$4 sm:$0xff]  }
  0xba   :  { %v14514_v5 = vld [vmem:[#allocation5 + $0x2d4] ss:$24 sps:$4 sm:$0xff]   ;;  %v14518_v7 = vld [vmem:[#allocation5 + $0x2d0] ss:$24 sps:$4 sm:$0xff]   ;;  %v14522_v9 = vld [vmem:[#allocation5 + $0x304] ss:$24 sps:$4 sm:$0xff]  }
  0xbb   :  { %2337 = vmatpush1.bf16.msra.mxu0 %v14458_v31  ;;  %v14516_v6 = vld [vmem:[#allocation5 + $0x2dc] ss:$24 sps:$4 sm:$0xff]   ;;  %v14519_v8 = vld [vmem:[#allocation5 + $0x2d8] ss:$24 sps:$4 sm:$0xff]   ;;  %v14525_v10 = vld [vmem:[#allocation5 + $0x30c] ss:$24 sps:$4 sm:$0xff]  }
  0xbc   :  { %2460 = vmatpush1.bf16.msra.mxu1 %v14459_v32  ;;  %2338 = vmatprep.subr.bf16.mxu0 %v14460_v33  ;;  %v161_v11 = vld [vmem:[#allocation2 + $0x60] sm:$0xff]  ;;  %v162_v12 = vld [vmem:[#allocation2 + $0x68] sm:$0xff]  ;;  %v163_v13 = vld [vmem:[#allocation2 + $0x70] sm:$0xff]  ;;  %s12487_s18 = sshll.u32 %s16892_s1, 4  ;;  %s12488_s18 = int_to_ptr.vmem [resolvable:$true] %s12487_s18 }
  0xbd   :  { %2461 = vmatprep.subr.bf16.mxu1 %v14462_v34  ;;  %v164_v14 = vld [vmem:[#allocation2 + $0x78] sm:$0xff]  ;;  %v165_v15 = vld [vmem:[#allocation2 + $0x80] sm:$0xff]  ;;  %v166_v16 = vld [vmem:[#allocation2 + $0x88] sm:$0xff]  ;;  %s16840_s24 = scalar_lea.vmem %s12488_s18, 64  ;;  %p16845_p3 = scmp.lt.s32.totalorder %s12488_s18, %s12488_s18 }
  0xbe   :  { %v149_v17 = vld [vmem:[#allocation2] sm:$0xff]  ;;  %v150_v18 = vld [vmem:[#allocation2 + $0x8] sm:$0xff]  ;;  %v151_v19 = vld [vmem:[#allocation2 + $0x10] sm:$0xff]  ;;  %p16841_p2 = scmp.ne.s32.totalorder %s12488_s18, %s16840_s24  ;;  %p16846_p4 = scmp.lt.s32.totalorder %s16840_s24, %s16840_s24 }
  0xbf   :  { %2339 = vmatpush1.bf16.msra.mxu0 %v14464_v35  ;;  %v152_v20 = vld [vmem:[#allocation2 + $0x18] sm:$0xff]  ;;  %v153_v21 = vld [vmem:[#allocation2 + $0x20] sm:$0xff]  ;;  %v154_v22 = vld [vmem:[#allocation2 + $0x28] sm:$0xff] }
  0xc0   :  { %2462 = vmatpush1.bf16.msra.mxu1 %v14465_v36  ;;  %2340 = vmatprep.subr.bf16.mxu0 %v14466_v37  ;;  %v167_v25 = vld [vmem:[#allocation2 + $0x90] sm:$0xff]  ;;  %v168_v26 = vld [vmem:[#allocation2 + $0x98] sm:$0xff]  ;;  %v169_v27 = vld [vmem:[#allocation2 + $0xa0] sm:$0xff]  ;;  %p16847_p5 = por %p16846_p4, %p16845_p3 }
  0xc1   :  { %2463 = vmatprep.subr.bf16.mxu1 %v14468_v38  ;;  %v170_v28 = vld [vmem:[#allocation2 + $0xa8] sm:$0xff]  ;;  %v171_v29 = vld [vmem:[#allocation2 + $0xb0] sm:$0xff]  ;;  %v172_v30 = vld [vmem:[#allocation2 + $0xb8] sm:$0xff] }
  0xc2   :  { %v155_v31 = vld [vmem:[#allocation2 + $0x30] sm:$0xff]  ;;  %v156_v32 = vld [vmem:[#allocation2 + $0x38] sm:$0xff]  ;;  %p16848_p6 = pnand %p16847_p5, %p16841_p2 }
  0xc3   :  { %2341 = vmatpush1.bf16.msra.mxu0 %v14470_v39 }
  0xc4   :  { %2464 = vmatpush1.bf16.msra.mxu1 %v14471_v40  ;;  %2342 = vmatprep.subr.bf16.mxu0 %v14472_v41 }
  0xc5   :  { %2465 = vmatprep.subr.bf16.mxu1 %v14474_v42 }
  0xc7   :  { %2343 = vmatpush1.bf16.msra.mxu0 %v14476_v43 }
  0xc8   :  { %2466 = vmatpush1.bf16.msra.mxu1 %v14477_v44  ;;  %2344 = vmatprep.subr.bf16.mxu0 %v14478_v45 }
  0xc9   :  { %2467 = vmatprep.subr.bf16.mxu1 %v14480_v46 }
  0xcb   :  { %2345 = vmatpush1.bf16.msra.mxu0 %v14482_v47  ;;  %v157_v47 = vld [vmem:[#allocation2 + $0x40] sm:$0xff] }
  0xcc   :  { %2468 = vmatpush1.bf16.msra.mxu1 %v14483_v48  ;;  %2346 = vmatprep.subr.bf16.mxu0 %v14484_v49  ;;  %v158_v48 = vld [vmem:[#allocation2 + $0x48] sm:$0xff] }
  0xcd   :  { %2469 = vmatprep.subr.bf16.mxu1 %v14486_v50 }
  0xcf   :  { %2347 = vmatpush1.bf16.msra.mxu0 %v14488_v51 }
  0xd0   :  { %2470 = vmatpush1.bf16.msra.mxu1 %v14489_v52  ;;  %2348 = vmatprep.subr.bf16.mxu0 %v14490_v53  ;;  %v159_v53 = vld [vmem:[#allocation2 + $0x50] sm:$0xff] }
  0xd1   :  { %2471 = vmatprep.subr.bf16.mxu1 %v14492_v54  ;;  %v160_v54 = vld [vmem:[#allocation2 + $0x58] sm:$0xff] }
  0xd3   :  { %2349 = vmatpush1.bf16.msra.mxu0 %v14494_v55 }
  0xd4   :  { %2472 = vmatpush1.bf16.msra.mxu1 %v14495_v56  ;;  %2350 = vmatprep.subr.bf16.mxu0 %v14496_v57 }
  0xd5   :  { %2473 = vmatprep.subr.bf16.mxu1 %v14498_v58 }
  0xd7   :  { %2351 = vmatpush1.bf16.msra.mxu0 %v14500_v59 }
  0xd8   :  { %2474 = vmatpush1.bf16.msra.mxu1 %v14501_v60  ;;  %2352 = vmatprep.subr.bf16.mxu0 %v14502_v61 }
  0xd9   :  { %2475 = vmatprep.subr.bf16.mxu1 %v14504_v62 }
  0xdb   :  { %2353 = vmatpush1.bf16.msra.mxu0 %v14506_v63 }
  0xdc   :  { %2476 = vmatpush1.bf16.msra.mxu1 %v14507_v0  ;;  %2354 = vmatprep.subr.bf16.mxu0 %v14508_v1 }
  0xdd   :  { %2477 = vmatprep.subr.bf16.mxu1 %v14510_v2 }
  0xdf   :  { %2355 = vmatpush1.bf16.msra.mxu0 %v14512_v3 }
  0xe0   :  { %2478 = vmatpush1.bf16.msra.mxu1 %v14513_v4  ;;  %2356 = vmatprep.subr.bf16.mxu0 %v14514_v5 }
  0xe1   :  { %2479 = vmatprep.subr.bf16.mxu1 %v14516_v6 }
  0xe3   :  { %2357 = vmatpush1.bf16.msra.mxu0 %v14518_v7 }
  0xe4   :  { %2480 = vmatpush1.bf16.msra.mxu1 %v14519_v8  ;;  %2367 = vmatprep.subr.bf16.mxu0 %v14522_v9 }
  0xe5   :  { %2490 = vmatprep.subr.bf16.mxu1 %v14525_v10 }
 0x124   :  { %v218_v23 = vpop.permute.xlu1 %217  ;;  %v208_v24 = vpop.permute.xlu0 %207 }
 0x125   :  { %v257_v33 = vmul.f32 %v218_v23, %v161_v11  ;;  %v258_v34 = vmul.f32 %v218_v23, %v162_v12  ;;  %v259_v35 = vmul.f32 %v218_v23, %v163_v13  ;;  %v260_v36 = vmul.f32 %v218_v23, %v164_v14 }
 0x126   :  { %v261_v37 = vmul.f32 %v218_v23, %v165_v15  ;;  %v262_v38 = vmul.f32 %v218_v23, %v166_v16  ;;  %v245_v39 = vmul.f32 %v208_v24, %v149_v17  ;;  %v246_v40 = vmul.f32 %v208_v24, %v150_v18  ;;  %v179_v23 = vld [vmem:[#allocation2 + $0xf0] sm:$0xff] }
 0x127   :  { %v247_v41 = vmul.f32 %v208_v24, %v151_v19  ;;  %v248_v42 = vmul.f32 %v208_v24, %v152_v20  ;;  %v249_v43 = vmul.f32 %v208_v24, %v153_v21  ;;  %v250_v44 = vmul.f32 %v208_v24, %v154_v22  ;;  %v180_v24 = vld [vmem:[#allocation2 + $0xf8] sm:$0xff] }
 0x128   :  { %v223_v45 = vpop.permute.xlu1 %222  ;;  %v213_v46 = vpop.permute.xlu0 %212 }
 0x129   :  { %v263_v49 = vmul.f32 %v223_v45, %v167_v25  ;;  %v264_v50 = vmul.f32 %v223_v45, %v168_v26  ;;  %v265_v51 = vmul.f32 %v223_v45, %v169_v27  ;;  %v266_v52 = vmul.f32 %v223_v45, %v170_v28 }
 0x12a   :  { %v267_v55 = vmul.f32 %v223_v45, %v171_v29  ;;  %v268_v56 = vmul.f32 %v223_v45, %v172_v30  ;;  %v251_v57 = vmul.f32 %v213_v46, %v155_v31  ;;  %v252_v58 = vmul.f32 %v213_v46, %v156_v32  ;;  %v181_v30 = vld [vmem:[#allocation2 + $0x100] sm:$0xff]  ;;  %v184_v45 = vld [vmem:[#allocation2 + $0x118] sm:$0xff] }
 0x12b   :  { %v335_v59 = vadd.f32 %v263_v49, %v257_v33  ;;  %v342_v60 = vadd.f32 %v264_v50, %v258_v34  ;;  %v349_v61 = vadd.f32 %v265_v51, %v259_v35  ;;  %v356_v62 = vadd.f32 %v266_v52, %v260_v36  ;;  %v182_v35 = vld [vmem:[#allocation2 + $0x108] sm:$0xff]  ;;  %v175_v52 = vld [vmem:[#allocation2 + $0xd0] sm:$0xff] }
 0x12c   :  { %v363_v63 = vadd.f32 %v267_v55, %v261_v37  ;;  %v370_v0 = vadd.f32 %v268_v56, %v262_v38  ;;  %v253_v1 = vmul.f32 %v213_v46, %v157_v47  ;;  %v254_v2 = vmul.f32 %v213_v46, %v158_v48  ;;  %v233_v29 = vpop.permute.xlu1 %232  ;;  %v174_v51 = vld [vmem:[#allocation2 + $0xc8] sm:$0xff]  ;;  %v228_v55 = vpop.permute.xlu0 %227 }
 0x12d   :  { %v336_v3 = vrot.slane %v335_v59, 4  ;;  %v343_v4 = vrot.slane %v342_v60, 4  ;;  %v350_v5 = vrot.slane %v349_v61, 4  ;;  %v357_v6 = vrot.slane %v356_v62, 4 }
 0x12e   :  { %v364_v7 = vrot.slane %v363_v63, 4  ;;  %v371_v8 = vrot.slane %v370_v0, 4  ;;  %v255_v9 = vmul.f32 %v213_v46, %v159_v53  ;;  %v256_v10 = vmul.f32 %v213_v46, %v160_v54  ;;  %v173_v46 = vld [vmem:[#allocation2 + $0xc0] sm:$0xff] }
 0x12f   :  { %v17080_v11 = vadd.f32 %v336_v3, %v335_v59  ;;  %v17082_v12 = vadd.f32 %v343_v4, %v342_v60  ;;  %v351_v13 = vadd.f32 %v350_v5, %v349_v61  ;;  %v17084_v14 = vadd.f32 %v357_v6, %v356_v62  ;;  %v191_v5 = vld [vmem:[#allocation2 + $0x150] sm:$0xff]  ;;  %v192_v6 = vld [vmem:[#allocation2 + $0x158] sm:$0xff] }
 0x130   :  { %v365_v15 = vadd.f32 %v364_v7, %v363_v63  ;;  %v17086_v16 = vadd.f32 %v371_v8, %v370_v0  ;;  %v293_v17 = vadd.f32 %v251_v57, %v245_v39  ;;  %v300_v18 = vadd.f32 %v252_v58, %v246_v40  ;;  %v183_v40 = vld [vmem:[#allocation2 + $0x110] sm:$0xff]  ;;  %v177_v63 = vld [vmem:[#allocation2 + $0xe0] sm:$0xff]  ;;  %v178_v0 = vld [vmem:[#allocation2 + $0xe8] sm:$0xff] }
 0x131   :  { %v338_v19 = vrot.slane %v17080_v11, 2  ;;  %v345_v20 = vrot.slane %v17082_v12, 2  ;;  %v352_v21 = vrot.slane %v351_v13, 2  ;;  %v359_v22 = vrot.slane %v17084_v14, 2 }
 0x132   :  { %v366_v25 = vrot.slane %v365_v15, 2  ;;  %v373_v26 = vrot.slane %v17086_v16, 2  ;;  %v294_v27 = vrot.slane %v293_v17, 4  ;;  %v301_v28 = vrot.slane %v300_v18, 4 }
 0x133   :  { %v17092_v31 = vadd.f32 %v352_v21, %v351_v13  ;;  %v307_v32 = vadd.f32 %v253_v1, %v247_v41  ;;  %v314_v33 = vadd.f32 %v254_v2, %v248_v42  ;;  %v321_v34 = vadd.f32 %v255_v9, %v249_v43  ;;  %v176_v41 = vld [vmem:[#allocation2 + $0xd8] sm:$0xff]  ;;  %v243_v13 = vpop.permute.xlu1 %242 }
 0x134   :  { %v17094_v36 = vadd.f32 %v366_v25, %v365_v15  ;;  %v17096_v37 = vadd.f32 %v294_v27, %v293_v17  ;;  %v17098_v38 = vadd.f32 %v301_v28, %v300_v18  ;;  %v328_v39 = vadd.f32 %v256_v10, %v250_v44  ;;  %v193_v15 = vld [vmem:[#allocation2 + $0x160] sm:$0xff] }
 0x135   :  { %v308_v47 = vrot.slane %v307_v32, 4  ;;  %v315_v48 = vrot.slane %v314_v33, 4  ;;  %v322_v49 = vrot.slane %v321_v34, 4  ;;  %v275_v50 = vmul.f32 %v233_v29, %v179_v23 }
 0x136   :  { %v296_v42 = vrot.slane %v17096_v37, 2  ;;  %v303_v43 = vrot.slane %v17098_v38, 2  ;;  %v329_v53 = vrot.slane %v328_v39, 4  ;;  %v276_v54 = vmul.f32 %v233_v29, %v180_v24 }
 0x137   :  { %v309_v56 = vadd.f32 %v308_v47, %v307_v32  ;;  %v17102_v57 = vadd.f32 %v315_v48, %v314_v33  ;;  %v323_v44 = vadd.f32 %v322_v49, %v321_v34  ;;  %v277_v58 = vmul.f32 %v233_v29, %v181_v30  ;;  %v195_v30 = vld [vmem:[#allocation2 + $0x170] sm:$0xff]  ;;  %v196_v32 = vld [vmem:[#allocation2 + $0x178] sm:$0xff] }
 0x138   :  { %v17104_v59 = vadd.f32 %v329_v53, %v328_v39  ;;  %v278_v60 = vmul.f32 %v233_v29, %v182_v35  ;;  %v279_v61 = vmul.f32 %v233_v29, %v183_v40  ;;  %v280_v62 = vmul.f32 %v233_v29, %v184_v45  ;;  %v194_v29 = vld [vmem:[#allocation2 + $0x168] sm:$0xff]  ;;  %v185_v40 = vld [vmem:[#allocation2 + $0x120] sm:$0xff] }
 0x139   :  { %v310_v1 = vrot.slane %v309_v56, 2  ;;  %v317_v2 = vrot.slane %v17102_v57, 2  ;;  %v324_v3 = vrot.slane %v323_v44, 2  ;;  %v269_v4 = vmul.f32 %v228_v55, %v173_v46  ;;  %v186_v45 = vld [vmem:[#allocation2 + $0x128] sm:$0xff]  ;;  %v187_v46 = vld [vmem:[#allocation2 + $0x130] sm:$0xff] }
 0x13a   :  { %v331_v7 = vrot.slane %v17104_v59, 2  ;;  %v270_v8 = vmul.f32 %v228_v55, %v174_v51  ;;  %v271_v9 = vmul.f32 %v228_v55, %v175_v52  ;;  %v272_v10 = vmul.f32 %v228_v55, %v176_v41 }
 0x13b   :  { %v17108_v17 = vadd.f32 %v310_v1, %v309_v56  ;;  %v17110_v18 = vadd.f32 %v324_v3, %v323_v44  ;;  %v273_v21 = vmul.f32 %v228_v55, %v177_v63  ;;  %v274_v23 = vmul.f32 %v228_v55, %v178_v0 }
 0x13c   :  { %v377_v24 = vadd.f32 %v275_v50, %v269_v4  ;;  %v384_v25 = vadd.f32 %v276_v54, %v270_v8  ;;  %v391_v27 = vadd.f32 %v277_v58, %v271_v9  ;;  %v398_v28 = vadd.f32 %v278_v60, %v272_v10  ;;  %v238_v54 = vpop.permute.xlu0 %237  ;;  %v188_v60 = vld [vmem:[#allocation2 + $0x138] sm:$0xff] }
 0x13d   :  { %v405_v33 = vadd.f32 %v279_v61, %v273_v21  ;;  %v412_v34 = vadd.f32 %v280_v62, %v274_v23  ;;  %v287_v35 = vmul.f32 %v243_v13, %v191_v5  ;;  %v288_v39 = vmul.f32 %v243_v13, %v192_v6  ;;  %v189_v61 = vld [vmem:[#allocation2 + $0x140] sm:$0xff]  ;;  %v190_v62 = vld [vmem:[#allocation2 + $0x148] sm:$0xff] }
 0x13e   :  { %v378_v47 = vrot.slane %v377_v24, 4  ;;  %v385_v48 = vrot.slane %v384_v25, 4  ;;  %v392_v49 = vrot.slane %v391_v27, 4  ;;  %v399_v51 = vrot.slane %v398_v28, 4 }
 0x13f   :  { %v406_v52 = vrot.slane %v405_v33, 4  ;;  %v413_v41 = vrot.slane %v412_v34, 4  ;;  %v289_v50 = vmul.f32 %v243_v13, %v193_v15  ;;  %v290_v53 = vmul.f32 %v243_v13, %v194_v29 }
 0x140   :  { %v17112_v55 = vadd.f32 %v378_v47, %v377_v24  ;;  %v386_v56 = vadd.f32 %v385_v48, %v384_v25  ;;  %v17114_v44 = vadd.f32 %v392_v49, %v391_v27  ;;  %v17116_v58 = vadd.f32 %v399_v51, %v398_v28 }
 0x141   :  { %v17118_v63 = vadd.f32 %v406_v52, %v405_v33  ;;  %v17120_v0 = vadd.f32 %v413_v41, %v412_v34  ;;  %v291_v1 = vmul.f32 %v243_v13, %v195_v30  ;;  %v292_v3 = vmul.f32 %v243_v13, %v196_v32 }
 0x142   :  { %v394_v4 = vrot.slane %v17114_v44, 2  ;;  %v281_v5 = vmul.f32 %v238_v54, %v185_v40  ;;  %v282_v6 = vmul.f32 %v238_v54, %v186_v45  ;;  %v283_v8 = vmul.f32 %v238_v54, %v187_v46 }
 0x143   :  { %v408_v9 = vrot.slane %v17118_v63, 2  ;;  %v284_v10 = vmul.f32 %v238_v54, %v188_v60  ;;  %v285_v15 = vmul.f32 %v238_v54, %v189_v61  ;;  %v286_v21 = vmul.f32 %v238_v54, %v190_v62 }
 0x144   :  { %v419_v23 = vadd.f32 %v287_v35, %v281_v5  ;;  %v426_v24 = vadd.f32 %v288_v39, %v282_v6  ;;  %v433_v25 = vadd.f32 %v289_v50, %v283_v8  ;;  %v304_v27 = vadd.f32 %v303_v43, %v17098_v38 }
 0x145   :  { %v440_v28 = vadd.f32 %v290_v53, %v284_v10  ;;  %v447_v13 = vadd.f32 %v291_v1, %v285_v15  ;;  %v454_v29 = vadd.f32 %v292_v3, %v286_v21  ;;  %v346_v30 = vadd.f32 %v345_v20, %v17082_v12 }
 0x146   :  { %v420_v32 = vrot.slane %v419_v23, 4  ;;  %v427_v33 = vrot.slane %v426_v24, 4  ;;  %v434_v34 = vrot.slane %v433_v25, 4  ;;  %v305_v40 = vrot.slane %v304_v27, 1 }
 0x147   :  { %v441_v45 = vrot.slane %v440_v28, 4  ;;  %v448_v35 = vrot.slane %v447_v13, 4  ;;  %v455_v39 = vrot.slane %v454_v29, 4  ;;  %v347_v46 = vrot.slane %v346_v30, 1 }
 0x148   :  { %v421_v47 = vadd.f32 %v420_v32, %v419_v23  ;;  %v428_v48 = vadd.f32 %v427_v33, %v426_v24  ;;  %v435_v49 = vadd.f32 %v434_v34, %v433_v25  ;;  %v306_v38 = vadd.f32 %v305_v40, %v304_v27 }
 0x149   :  { %v442_v43 = vadd.f32 %v441_v45, %v440_v28  ;;  %v449_v51 = vadd.f32 %v448_v35, %v447_v13  ;;  %v17130_v52 = vadd.f32 %v455_v39, %v454_v29  ;;  %v348_v41 = vadd.f32 %v347_v46, %v346_v30 }
 0x14a   :  { %v436_v50 = vrot.slane %v435_v49, 2  ;;  %v387_v53 = vrot.slane %v386_v56, 2  ;;  %v429_v12 = vrot.slane %v428_v48, 2  ;;  %v462_v20 = vpack.c.bf16 %v306_v38, %v306_v38 }
 0x14b   :  { %v450_v54 = vrot.slane %v449_v51, 2  ;;  %v468_v60 = vpack.c.bf16 %v348_v41, %v348_v41  ;;  %v297_v61 = vadd.f32 %v296_v42, %v17096_v37  ;;  %v339_v62 = vadd.f32 %v338_v19, %v17080_v11 }
 0x14c   :  { %v17138_v1 = vadd.f32 %v436_v50, %v435_v49  ;;  %v388_v3 = vadd.f32 %v387_v53, %v386_v56  ;;  %v430_v5 = vadd.f32 %v429_v12, %v428_v48  ;;  %v830_v6 = vunpack.c.l.b16 %v462_v20 }
 0x14d   :  { %v17140_v8 = vadd.f32 %v450_v54, %v449_v51  ;;  %v836_v10 = vunpack.c.l.b16 %v468_v60  ;;  %v298_v15 = vrot.slane %v297_v61, 1  ;;  %v340_v21 = vrot.slane %v339_v62, 1 }
 0x14e   :  { %v389_v23 = vrot.slane %v388_v3, 1  ;;  %v431_v24 = vrot.slane %v430_v5, 1  ;;  %v380_v25 = vrot.slane %v17112_v55, 2  ;;  %v422_v37 = vrot.slane %v421_v47, 2 }
 0x14f   :  { %v859_v42 = vsel %vm853_vm0, %v836_v10, %v830_v6  ;;  %v299_v27 = vadd.f32 %v298_v15, %v297_v61  ;;  %v341_v11 = vadd.f32 %v340_v21, %v339_v62  ;;  %v318_v19 = vadd.f32 %v317_v2, %v17102_v57  ;;  %v14520_v15 = vld [vmem:[#allocation5 + $0x300] ss:$24 sps:$4 sm:$0xff]  }
 0x150   :  { %v390_v56 = vadd.f32 %v389_v23, %v388_v3  ;;  %v432_v28 = vadd.f32 %v431_v24, %v430_v5  ;;  %v381_v13 = vadd.f32 %v380_v25, %v17112_v55  ;;  %v423_v29 = vadd.f32 %v422_v37, %v421_v47  ;;  %v14523_v21 = vld [vmem:[#allocation5 + $0x308] ss:$24 sps:$4 sm:$0xff]  }
 0x151   :  { %v461_v30 = vpack.c.bf16 %v299_v27, %v299_v27  ;;  %v467_v32 = vpack.c.bf16 %v341_v11, %v341_v11  ;;  %v319_v33 = vrot.slane %v318_v19, 1  ;;  %v360_v34 = vadd.f32 %v359_v22, %v17084_v14 }
 0x152   :  { %v474_v40 = vpack.c.bf16 %v390_v56, %v390_v56  ;;  %v480_v45 = vpack.c.bf16 %v432_v28, %v432_v28  ;;  %v382_v35 = vrot.slane %v381_v13, 1  ;;  %v424_v39 = vrot.slane %v423_v29, 1 }
 0x153   :  { %v829_v46 = vunpack.c.l.b16 %v461_v30  ;;  %v835_v48 = vunpack.c.l.b16 %v467_v32  ;;  %v320_v49 = vadd.f32 %v319_v33, %v318_v19  ;;  %v361_v57 = vrot.slane %v360_v34, 1 }
 0x154   :  { %v842_v2 = vunpack.c.l.b16 %v474_v40  ;;  %v848_v38 = vunpack.c.l.b16 %v480_v45  ;;  %v383_v51 = vadd.f32 %v382_v35, %v381_v13  ;;  %v425_v55 = vadd.f32 %v424_v39, %v423_v29 }
 0x155   :  { %v854_v47 = vsel %vm853_vm0, %v835_v48, %v829_v46  ;;  %v362_v41 = vadd.f32 %v361_v57, %v360_v34  ;;  %v401_v50 = vrot.slane %v17116_v58, 2  ;;  %v443_v53 = vrot.slane %v442_v43, 2  ;;  %v14529_v57 = vld [vmem:[#allocation5 + $0x338] ss:$24 sps:$4 sm:$0xff]  }
 0x156   :  { %v860_v14 = vsel %vm855_vm1, %v842_v2, %v859_v42  ;;  %v473_v22 = vpack.c.bf16 %v383_v51, %v383_v51  ;;  %v479_v12 = vpack.c.bf16 %v425_v55, %v425_v55  ;;  %v464_v20 = vpack.c.bf16 %v320_v49, %v320_v49  ;;  %v14531_v42 = vld [vmem:[#allocation5 + $0x33c] ss:$24 sps:$4 sm:$0xff]   ;;  %v14526_v49 = vld [vmem:[#allocation5 + $0x330] ss:$24 sps:$4 sm:$0xff]  }
 0x157   :  { %v861_v54 = vsel %vm857_vm2, %v848_v38, %v860_v14  ;;  %v402_v60 = vadd.f32 %v401_v50, %v17116_v58  ;;  %v444_v61 = vadd.f32 %v443_v53, %v442_v43  ;;  %v470_v62 = vpack.c.bf16 %v362_v41, %v362_v41  ;;  %v14528_v43 = vld [vmem:[#allocation5 + $0x334] ss:$24 sps:$4 sm:$0xff]   ;;  %v14532_v50 = vld [vmem:[#allocation5 + $0x360] ss:$24 sps:$4 sm:$0xff]  }
 0x158   :  { %v17156_v3 = vpack.c.b16 %v861_v54, %v861_v54  ;;  %v841_v5 = vunpack.c.l.b16 %v473_v22  ;;  %v847_v6 = vunpack.c.l.b16 %v479_v12  ;;  %v832_v10 = vunpack.c.l.b16 %v464_v20  ;;  %v14535_v53 = vld [vmem:[#allocation5 + $0x368] ss:$24 sps:$4 sm:$0xff]  }
 0x159   :  { %v403_v23 = vrot.slane %v402_v60, 1  ;;  %v445_v24 = vrot.slane %v444_v61, 1  ;;  %v838_v25 = vunpack.c.l.b16 %v470_v62  ;;  %v312_v37 = vrot.slane %v17108_v17, 1 }
 0x15a   :  { %2358 = vmatprep.mubr.bf16.mxu0 %v17156_v3  ;;  %2481 = vmatprep.mubr.bf16.mxu1 %v17156_v3  ;;  %v856_v58 = vsel %vm855_vm1, %v841_v5, %v854_v47  ;;  %v354_v27 = vrot.slane %v17092_v31, 1  ;;  %v395_v11 = vadd.f32 %v394_v4, %v17114_v44  ;;  %v438_v19 = vrot.slane %v17138_v1, 1  ;;  %v14540_v5 = vld [vmem:[#allocation5 + $0x394] ss:$24 sps:$4 sm:$0xff]  }
 0x15b   :  { %v858_v56 = vsel %vm857_vm2, %v847_v6, %v856_v58  ;;  %v404_v28 = vadd.f32 %v403_v23, %v402_v60  ;;  %v446_v13 = vadd.f32 %v445_v24, %v444_v61  ;;  %v865_v29 = vsel %vm853_vm0, %v838_v25, %v832_v10  ;;  %v14538_v24 = vld [vmem:[#allocation5 + $0x390] ss:$24 sps:$4 sm:$0xff]  }
 0x15c   :  { %v17169_v30 = vpack.c.b16 %v858_v56, %v858_v56  ;;  %v313_v32 = vadd.f32 %v312_v37, %v17108_v17  ;;  %v355_v33 = vadd.f32 %v354_v27, %v17092_v31  ;;  %v396_v34 = vrot.slane %v395_v11, 1  ;;  %v14541_v25 = vld [vmem:[#allocation5 + $0x398] ss:$24 sps:$4 sm:$0xff]   ;;  %v14546_v56 = vld [vmem:[#allocation5 + $0x3c4] ss:$24 sps:$4 sm:$0xff]  }
 0x15d   :  { %v476_v40 = vpack.c.bf16 %v404_v28, %v404_v28  ;;  %v482_v45 = vpack.c.bf16 %v446_v13, %v446_v13  ;;  %v439_v35 = vadd.f32 %v438_v19, %v17138_v1  ;;  %v332_v44 = vadd.f32 %v331_v7, %v17104_v59  ;;  %v14534_v59 = vld [vmem:[#allocation5 + $0x364] ss:$24 sps:$4 sm:$0xff]  }
 0x15e   :  { %2359 = vmatmul.mubr.bf16.vlgmr.msra.gmra.mrb[0].mxu0 %v17169_v30  ;;  %2482 = vmatmul.mubr.bf16.vlgmr.msra.gmra.mrb[0].mxu1 %v17169_v30  ;;  %v397_v4 = vadd.f32 %v396_v34, %v395_v11  ;;  %v463_v39 = vpack.c.bf16 %v313_v32, %v313_v32  ;;  %v469_v46 = vpack.c.bf16 %v355_v33, %v355_v33  ;;  %v415_v17 = vrot.slane %v17120_v0, 2  ;;  %v14537_v7 = vld [vmem:[#allocation5 + $0x36c] ss:$24 sps:$4 sm:$0xff]  }
 0x15f   :  { %2368 = vmatpush1.bf16.msra.mxu0 %v14520_v15  ;;  %2491 = vmatpush1.bf16.msra.mxu1 %v14523_v21  ;;  %v844_v31 = vunpack.c.l.b16 %v476_v40  ;;  %v850_v48 = vunpack.c.l.b16 %v482_v45  ;;  %v481_v1 = vpack.c.bf16 %v439_v35, %v439_v35  ;;  %v333_v2 = vrot.slane %v332_v44, 1  ;;  %v14549_v28 = vld [vmem:[#allocation5 + $0x3cc] ss:$24 sps:$4 sm:$0xff]   ;;  %v14547_v45 = vld [vmem:[#allocation5 + $0x3c8] ss:$24 sps:$4 sm:$0xff]  }
 0x160   :  { %2369 = vmatprep.subr.bf16.mxu0 %v14528_v43  ;;  %2492 = vmatprep.subr.bf16.mxu1 %v14531_v42  ;;  %v475_v38 = vpack.c.bf16 %v397_v4, %v397_v4  ;;  %v831_v51 = vunpack.c.l.b16 %v463_v39  ;;  %v837_v55 = vunpack.c.l.b16 %v469_v46  ;;  %v374_v47 = vadd.f32 %v373_v26, %v17086_v16  ;;  %v14543_v16 = vld [vmem:[#allocation5 + $0x39c] ss:$24 sps:$4 sm:$0xff]  }
 0x161   :  { %v866_v41 = vsel %vm855_vm1, %v844_v31, %v865_v29  ;;  %v849_v14 = vunpack.c.l.b16 %v481_v1  ;;  %v334_v22 = vadd.f32 %v333_v2, %v332_v44  ;;  %v416_v12 = vadd.f32 %v415_v17, %v17120_v0  ;;  %v14550_v2 = vld [vmem:[#allocation5 + $0x3f0] ss:$24 sps:$4 sm:$0xff]  }
 0x162   :  { %v867_v20 = vsel %vm857_vm2, %v850_v48, %v866_v41  ;;  %v843_v54 = vunpack.c.l.b16 %v475_v38  ;;  %v862_v60 = vsel %vm853_vm0, %v837_v55, %v831_v51  ;;  %v375_v61 = vrot.slane %v374_v47, 1  ;;  %v14558_v51 = vld [vmem:[#allocation5 + $0x424] ss:$24 sps:$4 sm:$0xff]  }
 0x163   :  { %v17187_v62 = vpack.c.b16 %v867_v20, %v867_v20  ;;  %2370 = vmatpush1.bf16.msra.mxu0 %v14526_v49  ;;  %2493 = vmatpush1.bf16.msra.mxu1 %v14529_v57  ;;  %v417_v26 = vrot.slane %v416_v12, 1  ;;  %v457_v6 = vrot.slane %v17130_v52, 2  ;;  %v466_v10 = vpack.c.bf16 %v334_v22, %v334_v22  ;;  %v14561_v55 = vld [vmem:[#allocation5 + $0x42c] ss:$24 sps:$4 sm:$0xff]   ;;  %v14567_v20 = vld [vmem:[#allocation5 + $0x45c] ss:$24 sps:$4 sm:$0xff]  }
 0x164   :  { %2371 = vmatprep.subr.bf16.mxu0 %v14534_v59  ;;  %2494 = vmatprep.subr.bf16.mxu1 %v14537_v7  ;;  %v863_v0 = vsel %vm855_vm1, %v843_v54, %v862_v60  ;;  %v376_v15 = vadd.f32 %v375_v61, %v374_v47  ;;  %v326_v21 = vrot.slane %v17110_v18, 1  ;;  %v368_v23 = vrot.slane %v17094_v36, 1  ;;  %v14553_v59 = vld [vmem:[#allocation5 + $0x3f8] ss:$24 sps:$4 sm:$0xff]   ;;  %v14570_v61 = vld [vmem:[#allocation5 + $0x484] ss:$24 sps:$4 sm:$0xff]  }
 0x165   :  { %2399 = vmatprep.mubr.bf16.mxu0 %v17187_v62  ;;  %2522 = vmatprep.mubr.bf16.mxu1 %v17187_v62  ;;  %v17196_v37 = vsel %vm857_vm2, %v849_v14, %v863_v0  ;;  %v418_v58 = vadd.f32 %v417_v26, %v416_v12  ;;  %v458_v43 = vadd.f32 %v457_v6, %v17130_v52  ;;  %v834_v27 = vunpack.c.l.b16 %v466_v10  ;;  %v14564_v12 = vld [vmem:[#allocation5 + $0x454] ss:$24 sps:$4 sm:$0xff]   ;;  %v14562_v54 = vld [vmem:[#allocation5 + $0x450] ss:$24 sps:$4 sm:$0xff]  }
 0x166   :  { %v472_v42 = vpack.c.bf16 %v376_v15, %v376_v15  ;;  %v327_v11 = vadd.f32 %v326_v21, %v17110_v18  ;;  %v369_v19 = vadd.f32 %v368_v23, %v17094_v36  ;;  %v409_v32 = vadd.f32 %v408_v9, %v17118_v63  ;;  %v14544_v18 = vld [vmem:[#allocation5 + $0x3c0] ss:$24 sps:$4 sm:$0xff]   ;;  %v14552_v63 = vld [vmem:[#allocation5 + $0x3f4] ss:$24 sps:$4 sm:$0xff]   ;;  %v14574_v0 = vld [vmem:[#allocation5 + $0x4b0] ss:$24 sps:$4 sm:$0xff]  }
 0x167   :  { %2372 = vmatpush1.bf16.msra.mxu0 %v14532_v50  ;;  %2495 = vmatpush1.bf16.msra.mxu1 %v14535_v53  ;;  %v459_v13 = vrot.slane %v458_v43, 1  ;;  %v478_v29 = vpack.c.bf16 %v418_v58, %v418_v58  ;;  %v452_v33 = vrot.slane %v17140_v8, 1  ;;  %v14555_v9 = vld [vmem:[#allocation5 + $0x3fc] ss:$24 sps:$4 sm:$0xff]   ;;  %v14556_v50 = vld [vmem:[#allocation5 + $0x420] ss:$24 sps:$4 sm:$0xff]  }
 0x168   :  { %2373 = vmatprep.subr.bf16.mxu0 %v14540_v5  ;;  %2496 = vmatprep.subr.bf16.mxu1 %v14543_v16  ;;  %v840_v52 = vunpack.c.l.b16 %v472_v42  ;;  %v465_v34 = vpack.c.bf16 %v327_v11, %v327_v11  ;;  %v471_v40 = vpack.c.bf16 %v369_v19, %v369_v19  ;;  %v410_v44 = vrot.slane %v409_v32, 1  ;;  %v14559_v53 = vld [vmem:[#allocation5 + $0x428] ss:$24 sps:$4 sm:$0xff]   ;;  %v14565_v60 = vld [vmem:[#allocation5 + $0x458] ss:$24 sps:$4 sm:$0xff]  }
 0x169   :  { %v460_v36 = vadd.f32 %v459_v13, %v458_v43  ;;  %v846_v35 = vunpack.c.l.b16 %v478_v29  ;;  %v453_v4 = vadd.f32 %v452_v33, %v17140_v8  ;;  %v14573_v5 = vld [vmem:[#allocation5 + $0x48c] ss:$24 sps:$4 sm:$0xff]   ;;  %v14568_v16 = vld [vmem:[#allocation5 + $0x480] ss:$24 sps:$4 sm:$0xff]   ;;  %v14579_v10 = vld [vmem:[#allocation5 + $0x4bc] ss:$24 sps:$4 sm:$0xff]  }
 0x16a   :  { %v871_v39 = vsel %vm853_vm0, %v840_v52, %v834_v27  ;;  %v833_v46 = vunpack.c.l.b16 %v465_v34  ;;  %v839_v17 = vunpack.c.l.b16 %v471_v40  ;;  %v411_v49 = vadd.f32 %v410_v44, %v409_v32  ;;  %v14571_v26 = vld [vmem:[#allocation5 + $0x488] ss:$24 sps:$4 sm:$0xff]   ;;  %v14576_v6 = vld [vmem:[#allocation5 + $0x4b4] ss:$24 sps:$4 sm:$0xff]   ;;  %v14577_v15 = vld [vmem:[#allocation5 + $0x4b8] ss:$24 sps:$4 sm:$0xff]  }
 0x16b   :  { %2374 = vmatpush1.bf16.msra.mxu0 %v14538_v24  ;;  %2497 = vmatpush1.bf16.msra.mxu1 %v14541_v25  ;;  %v484_v31 = vpack.c.bf16 %v460_v36, %v460_v36  ;;  %v872_v48 = vsel %vm855_vm1, %v846_v35, %v871_v39  ;;  %v483_v57 = vpack.c.bf16 %v453_v4, %v453_v4  ;;  %v14582_v21 = vld [vmem:[#allocation5 + $0x4e4] ss:$24 sps:$4 sm:$0xff]   ;;  %v14580_v24 = vld [vmem:[#allocation5 + $0x4e0] ss:$24 sps:$4 sm:$0xff]   ;;  %v14588_v58 = vld [vmem:[#allocation5 + $0x514] ss:$24 sps:$4 sm:$0xff]  }
 0x16c   :  { %2375 = vmatprep.subr.bf16.mxu0 %v14546_v56  ;;  %2498 = vmatprep.subr.bf16.mxu1 %v14549_v28  ;;  %v868_v1 = vsel %vm853_vm0, %v839_v17, %v833_v46  ;;  %v477_v7 = vpack.c.bf16 %v411_v49, %v411_v49  ;;  %v14585_v23 = vld [vmem:[#allocation5 + $0x4ec] ss:$24 sps:$4 sm:$0xff]   ;;  %v14583_v25 = vld [vmem:[#allocation5 + $0x4e8] ss:$24 sps:$4 sm:$0xff]   ;;  %v14591_v43 = vld [vmem:[#allocation5 + $0x51c] ss:$24 sps:$4 sm:$0xff]  }
 0x16d   :  { %v852_v8 = vunpack.c.l.b16 %v484_v31  ;;  %v851_v38 = vunpack.c.l.b16 %v483_v57  ;;  %v14586_v42 = vld [vmem:[#allocation5 + $0x510] ss:$24 sps:$4 sm:$0xff]   ;;  %v14594_v11 = vld [vmem:[#allocation5 + $0x544] ss:$24 sps:$4 sm:$0xff]   ;;  %v14592_v56 = vld [vmem:[#allocation5 + $0x540] ss:$24 sps:$4 sm:$0xff]   ;;  %v17218_v31 = vpack.c.b16 %v17196_v37, %v17196_v37 }
 0x16e   :  { %v845_v41 = vunpack.c.l.b16 %v477_v7  ;;  %v14589_v27 = vld [vmem:[#allocation5 + $0x518] ss:$24 sps:$4 sm:$0xff]   ;;  %v14597_v19 = vld [vmem:[#allocation5 + $0x54c] ss:$24 sps:$4 sm:$0xff]   ;;  %v14595_v28 = vld [vmem:[#allocation5 + $0x548] ss:$24 sps:$4 sm:$0xff]  }
 0x16f   :  { %2376 = vmatpush1.bf16.msra.mxu0 %v14544_v18  ;;  %2499 = vmatpush1.bf16.msra.mxu1 %v14547_v45  ;;  %v17210_v47 = vsel %vm857_vm2, %v852_v8, %v872_v48  ;;  %v14600_v13 = vld [vmem:[#allocation5 + $0x574] ss:$24 sps:$4 sm:$0xff]   ;;  %v14598_v32 = vld [vmem:[#allocation5 + $0x570] ss:$24 sps:$4 sm:$0xff]   ;;  %v14606_v52 = vld [vmem:[#allocation5 + $0x5a4] ss:$24 sps:$4 sm:$0xff]  }
 0x170   :  { %2377 = vmatprep.subr.bf16.mxu0 %v14552_v63  ;;  %2500 = vmatprep.subr.bf16.mxu1 %v14555_v9  ;;  %v869_v14 = vsel %vm855_vm1, %v845_v41, %v868_v1  ;;  %v14603_v29 = vld [vmem:[#allocation5 + $0x57c] ss:$24 sps:$4 sm:$0xff]   ;;  %v14601_v33 = vld [vmem:[#allocation5 + $0x578] ss:$24 sps:$4 sm:$0xff]   ;;  %v14609_v34 = vld [vmem:[#allocation5 + $0x5ac] ss:$24 sps:$4 sm:$0xff]   ;;  %v17222_v48 = vpack.c.b16 %v17210_v47, %v17210_v47 }
 0x171   :  { %v17214_v22 = vsel %vm857_vm2, %v851_v38, %v869_v14  ;;  %v14604_v40 = vld [vmem:[#allocation5 + $0x5a0] ss:$24 sps:$4 sm:$0xff]   ;;  %v14612_v45 = vld [vmem:[#allocation5 + $0x5d4] ss:$24 sps:$4 sm:$0xff]   ;;  %v14610_v35 = vld [vmem:[#allocation5 + $0x5d0] ss:$24 sps:$4 sm:$0xff]  }
 0x172   :  { %v14607_v18 = vld [vmem:[#allocation5 + $0x5a8] ss:$24 sps:$4 sm:$0xff]   ;;  %v14615_v36 = vld [vmem:[#allocation5 + $0x5dc] ss:$24 sps:$4 sm:$0xff]   ;;  %v14613_v44 = vld [vmem:[#allocation5 + $0x5d8] ss:$24 sps:$4 sm:$0xff]  }
 0x173   :  { %2378 = vmatpush1.bf16.msra.mxu0 %v14550_v2  ;;  %2501 = vmatpush1.bf16.msra.mxu1 %v14553_v59  ;;  %v14618_v4 = vld [vmem:[#allocation5 + $0x604] ss:$24 sps:$4 sm:$0xff]   ;;  %v14616_v46 = vld [vmem:[#allocation5 + $0x600] ss:$24 sps:$4 sm:$0xff]   ;;  %v14624_v63 = vld [vmem:[#allocation5 + $0x634] ss:$24 sps:$4 sm:$0xff]  }
 0x174   :  { %2379 = vmatprep.subr.bf16.mxu0 %v14558_v51  ;;  %2502 = vmatprep.subr.bf16.mxu1 %v14561_v55  ;;  %v14621_v39 = vld [vmem:[#allocation5 + $0x60c] ss:$24 sps:$4 sm:$0xff]   ;;  %v14619_v17 = vld [vmem:[#allocation5 + $0x608] ss:$24 sps:$4 sm:$0xff]   ;;  %v14627_v9 = vld [vmem:[#allocation5 + $0x63c] ss:$24 sps:$4 sm:$0xff]  }
 0x175   :  { %v14622_v49 = vld [vmem:[#allocation5 + $0x630] ss:$24 sps:$4 sm:$0xff]   ;;  %v14630_v1 = vld [vmem:[#allocation5 + $0x664] ss:$24 sps:$4 sm:$0xff]   ;;  %v14628_v37 = vld [vmem:[#allocation5 + $0x660] ss:$24 sps:$4 sm:$0xff]  }
 0x176   :  { %v14625_v57 = vld [vmem:[#allocation5 + $0x638] ss:$24 sps:$4 sm:$0xff]   ;;  %v14633_v2 = vld [vmem:[#allocation5 + $0x66c] ss:$24 sps:$4 sm:$0xff]   ;;  %v14631_v59 = vld [vmem:[#allocation5 + $0x668] ss:$24 sps:$4 sm:$0xff]  }
 0x177   :  { %2380 = vmatpush1.bf16.msra.mxu0 %v14556_v50  ;;  %2503 = vmatpush1.bf16.msra.mxu1 %v14559_v53  ;;  %v14636_v8 = vld [vmem:[#allocation5 + $0x694] ss:$24 sps:$4 sm:$0xff]   ;;  %v14634_v38 = vld [vmem:[#allocation5 + $0x690] ss:$24 sps:$4 sm:$0xff]   ;;  %v14642_v55 = vld [vmem:[#allocation5 + $0x6c4] ss:$24 sps:$4 sm:$0xff]  }
 0x178   :  { %2381 = vmatprep.subr.bf16.mxu0 %v14564_v12  ;;  %2504 = vmatprep.subr.bf16.mxu1 %v14567_v20  ;;  %v14639_v7 = vld [vmem:[#allocation5 + $0x69c] ss:$24 sps:$4 sm:$0xff]   ;;  %v14637_v51 = vld [vmem:[#allocation5 + $0x698] ss:$24 sps:$4 sm:$0xff]   ;;  %v14645_v47 = vld [vmem:[#allocation5 + $0x6cc] ss:$24 sps:$4 sm:$0xff]  }
 0x179   :  { %v14640_v41 = vld [vmem:[#allocation5 + $0x6c0] ss:$24 sps:$4 sm:$0xff]   ;;  %v14648_v53 = vld [vmem:[#allocation5 + $0x6f4] ss:$24 sps:$4 sm:$0xff]   ;;  %v14646_v12 = vld [vmem:[#allocation5 + $0x6f0] ss:$24 sps:$4 sm:$0xff]  }
 0x17a   :  { %v14643_v50 = vld [vmem:[#allocation5 + $0x6c8] ss:$24 sps:$4 sm:$0xff]   ;;  %v14651_v14 = vld [vmem:[#allocation5 + $0x6fc] ss:$24 sps:$4 sm:$0xff]   ;;  %v14649_v20 = vld [vmem:[#allocation5 + $0x6f8] ss:$24 sps:$4 sm:$0xff]  }
 0x17b   :  { %2382 = vmatpush1.bf16.msra.mxu0 %v14562_v54  ;;  %2505 = vmatpush1.bf16.msra.mxu1 %v14565_v60  ;;  %v14654_v54 = vld [vmem:[#allocation5 + $0x724] ss:$24 sps:$4 sm:$0xff]  }
 0x17c   :  { %2383 = vmatprep.subr.bf16.mxu0 %v14570_v61  ;;  %2506 = vmatprep.subr.bf16.mxu1 %v14573_v5  ;;  %v14657_v60 = vld [vmem:[#allocation5 + $0x72c] ss:$24 sps:$4 sm:$0xff]   ;;  %v14652_v61 = vld [vmem:[#allocation5 + $0x720] ss:$24 sps:$4 sm:$0xff]  }
 0x17d   :  { %v14655_v5 = vld [vmem:[#allocation5 + $0x728] ss:$24 sps:$4 sm:$0xff]  }
 0x17f   :  { %2384 = vmatpush1.bf16.msra.mxu0 %v14568_v16  ;;  %2507 = vmatpush1.bf16.msra.mxu1 %v14571_v26  ;;  %v14660_v16 = vld [vmem:[#allocation5 + $0x754] ss:$24 sps:$4 sm:$0xff]  }
 0x180   :  { %2385 = vmatprep.subr.bf16.mxu0 %v14576_v6  ;;  %2508 = vmatprep.subr.bf16.mxu1 %v14579_v10  ;;  %v14663_v26 = vld [vmem:[#allocation5 + $0x75c] ss:$24 sps:$4 sm:$0xff]   ;;  %v14658_v6 = vld [vmem:[#allocation5 + $0x750] ss:$24 sps:$4 sm:$0xff]  }
 0x181   :  { %v14661_v10 = vld [vmem:[#allocation5 + $0x758] ss:$24 sps:$4 sm:$0xff]  }
 0x183   :  { %2386 = vmatpush1.bf16.msra.mxu0 %v14574_v0  ;;  %2509 = vmatpush1.bf16.msra.mxu1 %v14577_v15  ;;  %v14666_v0 = vld [vmem:[#allocation5 + $0x784] ss:$24 sps:$4 sm:$0xff]  }
 0x184   :  { %2387 = vmatprep.subr.bf16.mxu0 %v14582_v21  ;;  %2510 = vmatprep.subr.bf16.mxu1 %v14585_v23  ;;  %v14669_v15 = vld [vmem:[#allocation5 + $0x78c] ss:$24 sps:$4 sm:$0xff]   ;;  %v14664_v21 = vld [vmem:[#allocation5 + $0x780] ss:$24 sps:$4 sm:$0xff]  }
 0x185   :  { %v14667_v23 = vld [vmem:[#allocation5 + $0x788] ss:$24 sps:$4 sm:$0xff]  }
 0x187   :  { %2388 = vmatpush1.bf16.msra.mxu0 %v14580_v24  ;;  %2511 = vmatpush1.bf16.msra.mxu1 %v14583_v25  ;;  %v14672_v24 = vld [vmem:[#allocation5 + $0x7b4] ss:$24 sps:$4 sm:$0xff]  }
 0x188   :  { %2389 = vmatprep.subr.bf16.mxu0 %v14588_v58  ;;  %2512 = vmatprep.subr.bf16.mxu1 %v14591_v43  ;;  %v14675_v25 = vld [vmem:[#allocation5 + $0x7bc] ss:$24 sps:$4 sm:$0xff]   ;;  %v14670_v58 = vld [vmem:[#allocation5 + $0x7b0] ss:$24 sps:$4 sm:$0xff]  }
 0x189   :  { %v14673_v43 = vld [vmem:[#allocation5 + $0x7b8] ss:$24 sps:$4 sm:$0xff]  }
 0x18b   :  { %2390 = vmatpush1.bf16.msra.mxu0 %v14586_v42  ;;  %2513 = vmatpush1.bf16.msra.mxu1 %v14589_v27  ;;  %v14678_v42 = vld [vmem:[#allocation5 + $0x7e4] ss:$24 sps:$4 sm:$0xff]  }
 0x18c   :  { %2391 = vmatprep.subr.bf16.mxu0 %v14594_v11  ;;  %2514 = vmatprep.subr.bf16.mxu1 %v14597_v19  ;;  %v14681_v27 = vld [vmem:[#allocation5 + $0x7ec] ss:$24 sps:$4 sm:$0xff]   ;;  %v14676_v11 = vld [vmem:[#allocation5 + $0x7e0] ss:$24 sps:$4 sm:$0xff]  }
 0x18d   :  { %v14679_v19 = vld [vmem:[#allocation5 + $0x7e8] ss:$24 sps:$4 sm:$0xff]  }
 0x18f   :  { %2392 = vmatpush1.bf16.msra.mxu0 %v14592_v56  ;;  %2515 = vmatpush1.bf16.msra.mxu1 %v14595_v28  ;;  %v14684_v56 = vld [vmem:[#allocation5 + $0x814] ss:$24 sps:$4 sm:$0xff]  }
 0x190   :  { %2393 = vmatprep.subr.bf16.mxu0 %v14600_v13  ;;  %2516 = vmatprep.subr.bf16.mxu1 %v14603_v29  ;;  %v14687_v28 = vld [vmem:[#allocation5 + $0x81c] ss:$24 sps:$4 sm:$0xff]   ;;  %v14682_v13 = vld [vmem:[#allocation5 + $0x810] ss:$24 sps:$4 sm:$0xff]  }
 0x191   :  { %v14685_v29 = vld [vmem:[#allocation5 + $0x818] ss:$24 sps:$4 sm:$0xff]  }
 0x193   :  { %2394 = vmatpush1.bf16.msra.mxu0 %v14598_v32  ;;  %2517 = vmatpush1.bf16.msra.mxu1 %v14601_v33  ;;  %v14690_v32 = vld [vmem:[#allocation5 + $0x844] ss:$24 sps:$4 sm:$0xff]  }
 0x194   :  { %2395 = vmatprep.subr.bf16.mxu0 %v14606_v52  ;;  %2518 = vmatprep.subr.bf16.mxu1 %v14609_v34  ;;  %v14693_v33 = vld [vmem:[#allocation5 + $0x84c] ss:$24 sps:$4 sm:$0xff]   ;;  %v14688_v52 = vld [vmem:[#allocation5 + $0x840] ss:$24 sps:$4 sm:$0xff]  }
 0x195   :  { %v14691_v34 = vld [vmem:[#allocation5 + $0x848] ss:$24 sps:$4 sm:$0xff]  }
 0x197   :  { %2396 = vmatpush1.bf16.msra.mxu0 %v14604_v40  ;;  %2519 = vmatpush1.bf16.msra.mxu1 %v14607_v18  ;;  %v14696_v40 = vld [vmem:[#allocation5 + $0x874] ss:$24 sps:$4 sm:$0xff]  }
 0x198   :  { %2397 = vmatprep.subr.bf16.mxu0 %v14612_v45  ;;  %2520 = vmatprep.subr.bf16.mxu1 %v14615_v36  ;;  %v14699_v18 = vld [vmem:[#allocation5 + $0x87c] ss:$24 sps:$4 sm:$0xff]   ;;  %v14694_v45 = vld [vmem:[#allocation5 + $0x870] ss:$24 sps:$4 sm:$0xff]  }
 0x199   :  { %v14697_v36 = vld [vmem:[#allocation5 + $0x878] ss:$24 sps:$4 sm:$0xff]  }
 0x19b   :  { %2398 = vmatpush1.bf16.msra.mxu0 %v14610_v35  ;;  %2521 = vmatpush1.bf16.msra.mxu1 %v14613_v44  ;;  %v14702_v35 = vld [vmem:[#allocation5 + $0x8a4] ss:$24 sps:$4 sm:$0xff]  }
 0x19c   :  { %2408 = vmatprep.subr.bf16.mxu0 %v14618_v4  ;;  %2531 = vmatprep.subr.bf16.mxu1 %v14621_v39  ;;  %v14705_v44 = vld [vmem:[#allocation5 + $0x8ac] ss:$24 sps:$4 sm:$0xff]   ;;  %v14700_v4 = vld [vmem:[#allocation5 + $0x8a0] ss:$24 sps:$4 sm:$0xff]  }
 0x19d   :  { %v14703_v39 = vld [vmem:[#allocation5 + $0x8a8] ss:$24 sps:$4 sm:$0xff]  }
 0x19e   :  { %2400 = vmatmul.mubr.bf16.vlgmr.msra.gmra.mrb[0].mxu0 %v17218_v31  ;;  %2523 = vmatmul.mubr.bf16.vlgmr.msra.gmra.mrb[0].mxu1 %v17218_v31 }
 0x19f   :  { %2409 = vmatpush1.bf16.msra.mxu0 %v14616_v46  ;;  %2440 = vmatprep.mubr.bf16.mxu0 %v17222_v48  ;;  %v14708_v46 = vld [vmem:[#allocation5 + $0x8d4] ss:$24 sps:$4 sm:$0xff]  }
 0x1a0   :  { %2532 = vmatpush1.bf16.msra.mxu1 %v14619_v17  ;;  %2563 = vmatprep.mubr.bf16.mxu1 %v17222_v48  ;;  %v14711_v17 = vld [vmem:[#allocation5 + $0x8dc] ss:$24 sps:$4 sm:$0xff]  }
 0x1a1   :  { %2410 = vmatprep.subr.bf16.mxu0 %v14624_v63  ;;  %2533 = vmatprep.subr.bf16.mxu1 %v14627_v9  ;;  %v14706_v63 = vld [vmem:[#allocation5 + $0x8d0] ss:$24 sps:$4 sm:$0xff]  }
 0x1a2   :  { %v14709_v9 = vld [vmem:[#allocation5 + $0x8d8] ss:$24 sps:$4 sm:$0xff]  }
 0x1a3   :  { %2411 = vmatpush1.bf16.msra.mxu0 %v14622_v49  ;;  %v14714_v49 = vld [vmem:[#allocation5 + $0x14] ss:$24 sps:$4 sm:$0xff]  }
 0x1a4   :  { %2534 = vmatpush1.bf16.msra.mxu1 %v14625_v57  ;;  %2412 = vmatprep.subr.bf16.mxu0 %v14630_v1  ;;  %v14712_v57 = vld [vmem:[#allocation5 + $0x10] ss:$24 sps:$4 sm:$0xff]   ;;  %v14717_v1 = vld [vmem:[#allocation5 + $0x44] ss:$24 sps:$4 sm:$0xff]  }
 0x1a5   :  { %2535 = vmatprep.subr.bf16.mxu1 %v14633_v2  ;;  %v17230_v2 = vpack.c.b16 %v17214_v22, %v17214_v22  ;;  %v14724_v22 = vld [vmem:[#allocation5 + $0xd0] ss:$24 sps:$4 sm:$0xff]  }
 0x1a7   :  { %2413 = vmatpush1.bf16.msra.mxu0 %v14628_v37  ;;  %v14715_v37 = vld [vmem:[#allocation5 + $0x40] ss:$24 sps:$4 sm:$0xff]  }
 0x1a8   :  { %2536 = vmatpush1.bf16.msra.mxu1 %v14631_v59  ;;  %2414 = vmatprep.subr.bf16.mxu0 %v14636_v8  ;;  %v14720_v59 = vld [vmem:[#allocation5 + $0x74] ss:$24 sps:$4 sm:$0xff]   ;;  %v14718_v8 = vld [vmem:[#allocation5 + $0x70] ss:$24 sps:$4 sm:$0xff]  }
 0x1a9   :  { %2537 = vmatprep.subr.bf16.mxu1 %v14639_v7  ;;  %v14723_v7 = vld [vmem:[#allocation5 + $0xa4] ss:$24 sps:$4 sm:$0xff]  }
 0x1ab   :  { %2415 = vmatpush1.bf16.msra.mxu0 %v14634_v38  ;;  %v14721_v38 = vld [vmem:[#allocation5 + $0xa0] ss:$24 sps:$4 sm:$0xff]  }
 0x1ac   :  { %2538 = vmatpush1.bf16.msra.mxu1 %v14637_v51  ;;  %2416 = vmatprep.subr.bf16.mxu0 %v14642_v55  ;;  %v14726_v51 = vld [vmem:[#allocation5 + $0xd4] ss:$24 sps:$4 sm:$0xff]   ;;  %v14729_v55 = vld [vmem:[#allocation5 + $0x104] ss:$24 sps:$4 sm:$0xff]  }
 0x1ad   :  { %2539 = vmatprep.subr.bf16.mxu1 %v14645_v47  ;;  %v14727_v47 = vld [vmem:[#allocation5 + $0x100] ss:$24 sps:$4 sm:$0xff]  }
 0x1af   :  { %2417 = vmatpush1.bf16.msra.mxu0 %v14640_v41  ;;  %v14732_v41 = vld [vmem:[#allocation5 + $0x134] ss:$24 sps:$4 sm:$0xff]  }
 0x1b0   :  { %2540 = vmatpush1.bf16.msra.mxu1 %v14643_v50  ;;  %2418 = vmatprep.subr.bf16.mxu0 %v14648_v53  ;;  %v14730_v50 = vld [vmem:[#allocation5 + $0x130] ss:$24 sps:$4 sm:$0xff]   ;;  %v14733_v53 = vld [vmem:[#allocation5 + $0x160] ss:$24 sps:$4 sm:$0xff]  }
 0x1b1   :  { %2541 = vmatprep.subr.bf16.mxu1 %v14651_v14  ;;  %v14738_v14 = vld [vmem:[#allocation5 + $0x194] ss:$24 sps:$4 sm:$0xff]  }
 0x1b3   :  { %2419 = vmatpush1.bf16.msra.mxu0 %v14646_v12  ;;  %v14736_v12 = vld [vmem:[#allocation5 + $0x190] ss:$24 sps:$4 sm:$0xff]  }
 0x1b4   :  { %2542 = vmatpush1.bf16.msra.mxu1 %v14649_v20  ;;  %2420 = vmatprep.subr.bf16.mxu0 %v14654_v54  ;;  %v14741_v20 = vld [vmem:[#allocation5 + $0x1c4] ss:$24 sps:$4 sm:$0xff]   ;;  %v14739_v54 = vld [vmem:[#allocation5 + $0x1c0] ss:$24 sps:$4 sm:$0xff]  }
 0x1b5   :  { %2543 = vmatprep.subr.bf16.mxu1 %v14657_v60  ;;  %v14744_v60 = vld [vmem:[#allocation5 + $0x1f4] ss:$24 sps:$4 sm:$0xff]  }
 0x1b7   :  { %2421 = vmatpush1.bf16.msra.mxu0 %v14652_v61  ;;  %v14838_v61 = vld [vmem:[#allocation8] ss:$88 sps:$4 sm:$0xff]  }
 0x1b8   :  { %2544 = vmatpush1.bf16.msra.mxu1 %v14655_v5  ;;  %2422 = vmatprep.subr.bf16.mxu0 %v14660_v16  ;;  %v14840_v5 = vld [vmem:[#allocation8 + $0x4] ss:$88 sps:$4 sm:$0xff]  }
 0x1b9   :  { %2545 = vmatprep.subr.bf16.mxu1 %v14663_v26  ;;  %v14742_v16 = vld [vmem:[#allocation5 + $0x1f0] ss:$24 sps:$4 sm:$0xff]   ;;  %v14747_v26 = vld [vmem:[#allocation5 + $0x224] ss:$24 sps:$4 sm:$0xff]  }
 0x1bb   :  { %2423 = vmatpush1.bf16.msra.mxu0 %v14658_v6  ;;  %v14844_v6 = vld [vmem:[#allocation8 + $0xb0] ss:$88 sps:$4 sm:$0xff]  }
 0x1bc   :  { %2546 = vmatpush1.bf16.msra.mxu1 %v14661_v10  ;;  %2424 = vmatprep.subr.bf16.mxu0 %v14666_v0  ;;  %v14846_v10 = vld [vmem:[#allocation8 + $0xb4] ss:$88 sps:$4 sm:$0xff]  }
 0x1bd   :  { %2547 = vmatprep.subr.bf16.mxu1 %v14669_v15  ;;  %v14745_v0 = vld [vmem:[#allocation5 + $0x220] ss:$24 sps:$4 sm:$0xff]   ;;  %v14750_v15 = vld [vmem:[#allocation5 + $0x254] ss:$24 sps:$4 sm:$0xff]  }
 0x1bf   :  { %2425 = vmatpush1.bf16.msra.mxu0 %v14664_v21  ;;  %v14850_v21 = vld [vmem:[#allocation8 + $0x160] ss:$88 sps:$4 sm:$0xff]  }
 0x1c0   :  { %2548 = vmatpush1.bf16.msra.mxu1 %v14667_v23  ;;  %2426 = vmatprep.subr.bf16.mxu0 %v14672_v24  ;;  %v14852_v23 = vld [vmem:[#allocation8 + $0x164] ss:$88 sps:$4 sm:$0xff]  }
 0x1c1   :  { %2549 = vmatprep.subr.bf16.mxu1 %v14675_v25  ;;  %v14748_v24 = vld [vmem:[#allocation5 + $0x250] ss:$24 sps:$4 sm:$0xff]   ;;  %v14753_v25 = vld [vmem:[#allocation5 + $0x284] ss:$24 sps:$4 sm:$0xff]  }
 0x1c3   :  { %2427 = vmatpush1.bf16.msra.mxu0 %v14670_v58  ;;  %v14856_v58 = vld [vmem:[#allocation8 + $0x210] ss:$88 sps:$4 sm:$0xff]  }
 0x1c4   :  { %2550 = vmatpush1.bf16.msra.mxu1 %v14673_v43  ;;  %2428 = vmatprep.subr.bf16.mxu0 %v14678_v42  ;;  %v14858_v43 = vld [vmem:[#allocation8 + $0x214] ss:$88 sps:$4 sm:$0xff]  }
 0x1c5   :  { %2551 = vmatprep.subr.bf16.mxu1 %v14681_v27  ;;  %v14751_v42 = vld [vmem:[#allocation5 + $0x280] ss:$24 sps:$4 sm:$0xff]   ;;  %v14756_v27 = vld [vmem:[#allocation5 + $0x2b4] ss:$24 sps:$4 sm:$0xff]  }
 0x1c7   :  { %2429 = vmatpush1.bf16.msra.mxu0 %v14676_v11  ;;  %v14862_v11 = vld [vmem:[#allocation8 + $0x2c0] ss:$88 sps:$4 sm:$0xff]  }
 0x1c8   :  { %2552 = vmatpush1.bf16.msra.mxu1 %v14679_v19  ;;  %2430 = vmatprep.subr.bf16.mxu0 %v14684_v56  ;;  %v14864_v19 = vld [vmem:[#allocation8 + $0x2c4] ss:$88 sps:$4 sm:$0xff]  }
 0x1c9   :  { %2553 = vmatprep.subr.bf16.mxu1 %v14687_v28  ;;  %v14754_v56 = vld [vmem:[#allocation5 + $0x2b0] ss:$24 sps:$4 sm:$0xff]   ;;  %v14759_v28 = vld [vmem:[#allocation5 + $0x2e4] ss:$24 sps:$4 sm:$0xff]  }
 0x1cb   :  { %2431 = vmatpush1.bf16.msra.mxu0 %v14682_v13  ;;  %v14868_v13 = vld [vmem:[#allocation8 + $0x370] ss:$88 sps:$4 sm:$0xff]  }
 0x1cc   :  { %2554 = vmatpush1.bf16.msra.mxu1 %v14685_v29  ;;  %2432 = vmatprep.subr.bf16.mxu0 %v14690_v32  ;;  %v14870_v29 = vld [vmem:[#allocation8 + $0x374] ss:$88 sps:$4 sm:$0xff]  }
 0x1cd   :  { %2555 = vmatprep.subr.bf16.mxu1 %v14693_v33  ;;  %v14757_v32 = vld [vmem:[#allocation5 + $0x2e0] ss:$24 sps:$4 sm:$0xff]   ;;  %v14762_v33 = vld [vmem:[#allocation5 + $0x314] ss:$24 sps:$4 sm:$0xff]  }
 0x1cf   :  { %2433 = vmatpush1.bf16.msra.mxu0 %v14688_v52  ;;  %v14874_v52 = vld [vmem:[#allocation8 + $0x420] ss:$88 sps:$4 sm:$0xff]  }
 0x1d0   :  { %2556 = vmatpush1.bf16.msra.mxu1 %v14691_v34  ;;  %2434 = vmatprep.subr.bf16.mxu0 %v14696_v40  ;;  %v14876_v34 = vld [vmem:[#allocation8 + $0x424] ss:$88 sps:$4 sm:$0xff]  }
 0x1d1   :  { %2557 = vmatprep.subr.bf16.mxu1 %v14699_v18  ;;  %v14760_v40 = vld [vmem:[#allocation5 + $0x310] ss:$24 sps:$4 sm:$0xff]   ;;  %v14765_v18 = vld [vmem:[#allocation5 + $0x344] ss:$24 sps:$4 sm:$0xff]  }
 0x1d3   :  { %2435 = vmatpush1.bf16.msra.mxu0 %v14694_v45  ;;  %v14877_v45 = vld [vmem:[#allocation8 + $0x4d0] ss:$88 sps:$4 sm:$0xff]  }
 0x1d4   :  { %2558 = vmatpush1.bf16.msra.mxu1 %v14697_v36  ;;  %2436 = vmatprep.subr.bf16.mxu0 %v14702_v35  ;;  %v14879_v36 = vld [vmem:[#allocation8 + $0x4d4] ss:$88 sps:$4 sm:$0xff]  }
 0x1d5   :  { %2559 = vmatprep.subr.bf16.mxu1 %v14705_v44  ;;  %v14763_v35 = vld [vmem:[#allocation5 + $0x340] ss:$24 sps:$4 sm:$0xff]  }
 0x1d6   :  { %v14885_v44 = vld [vmem:[#allocation8 + $0x584] ss:$88 sps:$4 sm:$0xff]  }
 0x1d7   :  { %2437 = vmatpush1.bf16.msra.mxu0 %v14700_v4  ;;  %v14768_v4 = vld [vmem:[#allocation5 + $0x374] ss:$24 sps:$4 sm:$0xff]  }
 0x1d8   :  { %2560 = vmatpush1.bf16.msra.mxu1 %v14703_v39  ;;  %2438 = vmatprep.subr.bf16.mxu0 %v14708_v46  ;;  %v14883_v39 = vld [vmem:[#allocation8 + $0x580] ss:$88 sps:$4 sm:$0xff]  }
 0x1d9   :  { %2561 = vmatprep.subr.bf16.mxu1 %v14711_v17  ;;  %v14766_v46 = vld [vmem:[#allocation5 + $0x370] ss:$24 sps:$4 sm:$0xff]   ;;  %v14771_v17 = vld [vmem:[#allocation5 + $0x3a4] ss:$24 sps:$4 sm:$0xff]  }
 0x1db   :  { %2439 = vmatpush1.bf16.msra.mxu0 %v14706_v63  ;;  %v14891_v63 = vld [vmem:[#allocation8 + $0x634] ss:$88 sps:$4 sm:$0xff]  }
 0x1dc   :  { %2562 = vmatpush1.bf16.msra.mxu1 %v14709_v9  ;;  %2572 = vmatprep.subr.bf16.mxu0 %v14714_v49  ;;  %v14889_v9 = vld [vmem:[#allocation8 + $0x630] ss:$88 sps:$4 sm:$0xff]  }
 0x1dd   :  { %9159 = vmatprep.subr.bf16.mxu1 %v14840_v5  ;;  %v14774_v49 = vld [vmem:[#allocation5 + $0x3d4] ss:$24 sps:$4 sm:$0xff]  }
 0x1de   :  { %2441 = vmatmul.mubr.bf16.vlgmr.msra.gmra.mrb[0].mxu0 %v17230_v2  ;;  %v14921_v5 = vld [vmem:[#allocation8 + $0x9a4] ss:$88 sps:$4 sm:$0xff]  }
 0x1df   :  { %2564 = vmatmul.mubr.bf16.vlgmr.msra.gmra.mrb[0].mxu1 %v17230_v2  ;;  %2573 = vmatpush1.bf16.msra.mxu0 %v14712_v57  ;;  %v14895_v57 = vld [vmem:[#allocation8 + $0x6e0] ss:$88 sps:$4 sm:$0xff]  }
 0x1e0   :  { %2604 = vmatprep.mubr.bf16.mxu0 %v17156_v3  ;;  %2574 = vmatprep.subr.bf16.mxu0 %v14717_v1  ;;  %v14735_v3 = vld [vmem:[#allocation5 + $0x164] ss:$24 sps:$4 sm:$0xff]   ;;  %v14772_v1 = vld [vmem:[#allocation5 + $0x3d0] ss:$24 sps:$4 sm:$0xff]  }
 0x1e1   :  { %9160 = vmatpush1.bf16.msra.mxu1 %v14838_v61  ;;  %v14913_v61 = vld [vmem:[#allocation8 + $0x8f0] ss:$88 sps:$4 sm:$0xff]  }
 0x1e2   :  { %9161 = vmatprep.subr.bf16.mxu1 %v14846_v10  ;;  %v14796_v10 = vld [vmem:[#allocation5 + $0x550] ss:$24 sps:$4 sm:$0xff]  }
 0x1e3   :  { %2575 = vmatpush1.bf16.msra.mxu0 %v14715_v37  ;;  %v14777_v37 = vld [vmem:[#allocation5 + $0x404] ss:$24 sps:$4 sm:$0xff]  }
 0x1e4   :  { %2576 = vmatprep.subr.bf16.mxu0 %v14720_v59  ;;  %v14903_v59 = vld [vmem:[#allocation8 + $0x794] ss:$88 sps:$4 sm:$0xff]  }
 0x1e5   :  { %9162 = vmatpush1.bf16.msra.mxu1 %v14844_v6  ;;  %v14919_v6 = vld [vmem:[#allocation8 + $0x9a0] ss:$88 sps:$4 sm:$0xff]  }
 0x1e6   :  { %9163 = vmatprep.subr.bf16.mxu1 %v14852_v23  ;;  %v14925_v23 = vld [vmem:[#allocation8 + $0xa50] ss:$88 sps:$4 sm:$0xff]  }
 0x1e7   :  { %2577 = vmatpush1.bf16.msra.mxu0 %v14718_v8  ;;  %v14901_v8 = vld [vmem:[#allocation8 + $0x790] ss:$88 sps:$4 sm:$0xff]  }
 0x1e8   :  { %2578 = vmatprep.subr.bf16.mxu0 %v14723_v7  ;;  %v14775_v7 = vld [vmem:[#allocation5 + $0x400] ss:$24 sps:$4 sm:$0xff]  }
 0x1e9   :  { %9164 = vmatpush1.bf16.msra.mxu1 %v14850_v21  ;;  %v14799_v21 = vld [vmem:[#allocation5 + $0x580] ss:$24 sps:$4 sm:$0xff]  }
 0x1ea   :  { %9165 = vmatprep.subr.bf16.mxu1 %v14858_v43  ;;  %v14807_v43 = vld [vmem:[#allocation5 + $0x5e4] ss:$24 sps:$4 sm:$0xff]  }
 0x1eb   :  { %2579 = vmatpush1.bf16.msra.mxu0 %v14721_v38  ;;  %v14780_v38 = vld [vmem:[#allocation5 + $0x434] ss:$24 sps:$4 sm:$0xff]  }
 0x1ec   :  { %2580 = vmatprep.subr.bf16.mxu0 %v14726_v51  ;;  %v14778_v51 = vld [vmem:[#allocation5 + $0x430] ss:$24 sps:$4 sm:$0xff]  }
 0x1ed   :  { %9166 = vmatpush1.bf16.msra.mxu1 %v14856_v58  ;;  %v14802_v58 = vld [vmem:[#allocation5 + $0x5b0] ss:$24 sps:$4 sm:$0xff]  }
 0x1ee   :  { %9167 = vmatprep.subr.bf16.mxu1 %v14864_v19  ;;  %v14813_v19 = vld [vmem:[#allocation5 + $0x644] ss:$24 sps:$4 sm:$0xff]  }
 0x1ef   :  { %2581 = vmatpush1.bf16.msra.mxu0 %v14724_v22  ;;  %v14783_v22 = vld [vmem:[#allocation5 + $0x464] ss:$24 sps:$4 sm:$0xff]  }
 0x1f0   :  { %2582 = vmatprep.subr.bf16.mxu0 %v14729_v55  ;;  %v14781_v55 = vld [vmem:[#allocation5 + $0x460] ss:$24 sps:$4 sm:$0xff]  }
 0x1f1   :  { %9168 = vmatpush1.bf16.msra.mxu1 %v14862_v11  ;;  %v14808_v11 = vld [vmem:[#allocation5 + $0x610] ss:$24 sps:$4 sm:$0xff]  }
 0x1f2   :  { %9169 = vmatprep.subr.bf16.mxu1 %v14870_v29  ;;  %v14819_v29 = vld [vmem:[#allocation5 + $0x6a4] ss:$24 sps:$4 sm:$0xff]  }
 0x1f3   :  { %2583 = vmatpush1.bf16.msra.mxu0 %v14727_v47  ;;  %v14786_v47 = vld [vmem:[#allocation5 + $0x494] ss:$24 sps:$4 sm:$0xff]  }
 0x1f4   :  { %2584 = vmatprep.subr.bf16.mxu0 %v14732_v41  ;;  %v14784_v41 = vld [vmem:[#allocation5 + $0x490] ss:$24 sps:$4 sm:$0xff]  }
 0x1f5   :  { %9170 = vmatpush1.bf16.msra.mxu1 %v14868_v13  ;;  %v14814_v13 = vld [vmem:[#allocation5 + $0x670] ss:$24 sps:$4 sm:$0xff]  }
 0x1f6   :  { %9171 = vmatprep.subr.bf16.mxu1 %v14876_v34  ;;  %v14825_v34 = vld [vmem:[#allocation5 + $0x704] ss:$24 sps:$4 sm:$0xff]  }
 0x1f7   :  { %2585 = vmatpush1.bf16.msra.mxu0 %v14730_v50  ;;  %v14789_v50 = vld [vmem:[#allocation5 + $0x4c4] ss:$24 sps:$4 sm:$0xff]  }
 0x1f8   :  { %2586 = vmatprep.subr.bf16.mxu0 %v14735_v3  ;;  %v14787_v3 = vld [vmem:[#allocation5 + $0x4c0] ss:$24 sps:$4 sm:$0xff]  }
 0x1f9   :  { %9172 = vmatpush1.bf16.msra.mxu1 %v14874_v52  ;;  %v14820_v52 = vld [vmem:[#allocation5 + $0x6d0] ss:$24 sps:$4 sm:$0xff]  }
 0x1fa   :  { %9173 = vmatprep.subr.bf16.mxu1 %v14879_v36  ;;  %v14834_v36 = vld [vmem:[#allocation5 + $0x794] ss:$24 sps:$4 sm:$0xff]  }
 0x1fb   :  { %2587 = vmatpush1.bf16.msra.mxu0 %v14733_v53  ;;  %v14792_v53 = vld [vmem:[#allocation5 + $0x4f4] ss:$24 sps:$4 sm:$0xff]  }
 0x1fc   :  { %2588 = vmatprep.subr.bf16.mxu0 %v14738_v14  ;;  %v14907_v14 = vld [vmem:[#allocation8 + $0x840] ss:$88 sps:$4 sm:$0xff]  }
 0x1fd   :  { %9174 = vmatpush1.bf16.msra.mxu1 %v14877_v45  ;;  %v14829_v45 = vld [vmem:[#allocation5 + $0x760] ss:$24 sps:$4 sm:$0xff]  }
 0x1fe   :  { %9175 = vmatprep.subr.bf16.mxu1 %v14885_v44  ;;  %v14837_v44 = vld [vmem:[#allocation5 + $0x7c4] ss:$24 sps:$4 sm:$0xff]  }
 0x1ff   :  { %2589 = vmatpush1.bf16.msra.mxu0 %v14736_v12  ;;  %v14909_v12 = vld [vmem:[#allocation8 + $0x844] ss:$88 sps:$4 sm:$0xff]  }
 0x200   :  { %2590 = vmatprep.subr.bf16.mxu0 %v14741_v20  ;;  %v14790_v20 = vld [vmem:[#allocation5 + $0x4f0] ss:$24 sps:$4 sm:$0xff]  }
 0x201   :  { %9176 = vmatpush1.bf16.msra.mxu1 %v14883_v39  ;;  %v14843_v39 = vld [vmem:[#allocation5 + $0x7f4] ss:$24 sps:$4 sm:$0xff]  }
 0x202   :  { %9177 = vmatprep.subr.bf16.mxu1 %v14891_v63  ;;  %v14847_v63 = vld [vmem:[#allocation5 + $0x820] ss:$24 sps:$4 sm:$0xff]  }
 0x203   :  { %2591 = vmatpush1.bf16.msra.mxu0 %v14739_v54  ;;  %v14915_v54 = vld [vmem:[#allocation8 + $0x8f4] ss:$88 sps:$4 sm:$0xff]  }
 0x204   :  { %2592 = vmatprep.subr.bf16.mxu0 %v14744_v60  ;;  %v14795_v60 = vld [vmem:[#allocation5 + $0x524] ss:$24 sps:$4 sm:$0xff]  }
 0x205   :  { %9178 = vmatpush1.bf16.msra.mxu1 %v14889_v9  ;;  %v14855_v9 = vld [vmem:[#allocation5 + $0x854] ss:$24 sps:$4 sm:$0xff]  }
 0x207   :  { %2593 = vmatpush1.bf16.msra.mxu0 %v14742_v16  ;;  %v14793_v16 = vld [vmem:[#allocation5 + $0x520] ss:$24 sps:$4 sm:$0xff]  }
 0x208   :  { %2594 = vmatprep.subr.bf16.mxu0 %v14747_v26  ;;  %v14798_v26 = vld [vmem:[#allocation5 + $0x554] ss:$24 sps:$4 sm:$0xff]  }
 0x20b   :  { %2595 = vmatpush1.bf16.msra.mxu0 %v14745_v0  ;;  %v14927_v0 = vld [vmem:[#allocation8 + $0xa54] ss:$88 sps:$4 sm:$0xff]  }
 0x20c   :  { %2596 = vmatprep.subr.bf16.mxu0 %v14750_v15  ;;  %v14801_v15 = vld [vmem:[#allocation5 + $0x584] ss:$24 sps:$4 sm:$0xff]  }
 0x20f   :  { %2597 = vmatpush1.bf16.msra.mxu0 %v14748_v24  ;;  %v14804_v24 = vld [vmem:[#allocation5 + $0x5b4] ss:$24 sps:$4 sm:$0xff]  }
 0x210   :  { %2598 = vmatprep.subr.bf16.mxu0 %v14753_v25  ;;  %v14933_v25 = vld [vmem:[#allocation8 + $0xb04] ss:$88 sps:$4 sm:$0xff]  }
 0x213   :  { %2599 = vmatpush1.bf16.msra.mxu0 %v14751_v42  ;;  %v14805_v42 = vld [vmem:[#allocation5 + $0x5e0] ss:$24 sps:$4 sm:$0xff]  }
 0x214   :  { %2600 = vmatprep.subr.bf16.mxu0 %v14756_v27  ;;  %v14810_v27 = vld [vmem:[#allocation5 + $0x614] ss:$24 sps:$4 sm:$0xff]  }
 0x217   :  { %2601 = vmatpush1.bf16.msra.mxu0 %v14754_v56  ;;  %v14811_v56 = vld [vmem:[#allocation5 + $0x640] ss:$24 sps:$4 sm:$0xff]  }
 0x218   :  { %2602 = vmatprep.subr.bf16.mxu0 %v14759_v28  ;;  %v14816_v28 = vld [vmem:[#allocation5 + $0x674] ss:$24 sps:$4 sm:$0xff]  }
 0x21b   :  { %2603 = vmatpush1.bf16.msra.mxu0 %v14757_v32  ;;  %v14817_v32 = vld [vmem:[#allocation5 + $0x6a0] ss:$24 sps:$4 sm:$0xff]  }
 0x21c   :  { %2613 = vmatprep.subr.bf16.mxu0 %v14762_v33  ;;  %v14822_v33 = vld [vmem:[#allocation5 + $0x6d4] ss:$24 sps:$4 sm:$0xff]  }
 0x21e   :  { %2605 = vmatmul.mubr.bf16.vlgmr.msra.gmra.mrb[4].mxu0 %v17169_v30  ;;  %v14769_v30 = vld [vmem:[#allocation5 + $0x3a0] ss:$24 sps:$4 sm:$0xff]  }
 0x21f   :  { %2614 = vmatpush1.bf16.msra.mxu0 %v14760_v40  ;;  %2645 = vmatprep.mubr.bf16.mxu0 %v17187_v62  ;;  %v14897_v62 = vld [vmem:[#allocation8 + $0x6e4] ss:$88 sps:$4 sm:$0xff]  }
 0x220   :  { %2615 = vmatprep.subr.bf16.mxu0 %v14765_v18  ;;  %9179 = vmatprep.subr.bf16.mxu1 %v14897_v62  ;;  %v14823_v40 = vld [vmem:[#allocation5 + $0x700] ss:$24 sps:$4 sm:$0xff]   ;;  %v14831_v18 = vld [vmem:[#allocation5 + $0x764] ss:$24 sps:$4 sm:$0xff]  }
 0x221   :  { %9180 = vmatpush1.bf16.msra.mxu1 %v14895_v57  ;;  %v14859_v62 = vld [vmem:[#allocation5 + $0x880] ss:$24 sps:$4 sm:$0xff]   ;;  %v14867_v57 = vld [vmem:[#allocation5 + $0x8b4] ss:$24 sps:$4 sm:$0xff]  }
 0x222   :  { %9181 = vmatprep.subr.bf16.mxu1 %v14903_v59  ;;  %v14871_v59 = vld [vmem:[#allocation5 + $0x8e0] ss:$24 sps:$4 sm:$0xff]  }
 0x223   :  { %2616 = vmatpush1.bf16.msra.mxu0 %v14763_v35  ;;  %v14832_v35 = vld [vmem:[#allocation5 + $0x790] ss:$24 sps:$4 sm:$0xff]  }
 0x224   :  { %2617 = vmatprep.subr.bf16.mxu0 %v14768_v4  ;;  %v14835_v4 = vld [vmem:[#allocation5 + $0x7c0] ss:$24 sps:$4 sm:$0xff]  }
 0x225   :  { %9182 = vmatpush1.bf16.msra.mxu1 %v14901_v8  ;;  %v14882_v8 = vld [vmem:[#allocation8 + $0xc] ss:$88 sps:$4 sm:$0xff]  }
 0x226   :  { %9183 = vmatprep.subr.bf16.mxu1 %v14909_v12  ;;  %v17242_v12 = vld [vmem:[#allocation7] sm:$0x3f] }
 0x227   :  { %2618 = vmatpush1.bf16.msra.mxu0 %v14766_v46  ;;  %v14841_v46 = vld [vmem:[#allocation5 + $0x7f0] ss:$24 sps:$4 sm:$0xff]  }
 0x228   :  { %2619 = vmatprep.subr.bf16.mxu0 %v14771_v17  ;;  %v14849_v17 = vld [vmem:[#allocation5 + $0x824] ss:$24 sps:$4 sm:$0xff]  }
 0x229   :  { %9184 = vmatpush1.bf16.msra.mxu1 %v14907_v14  ;;  %v14904_v14 = vld [vmem:[#allocation8 + $0x2c8] ss:$88 sps:$4 sm:$0xff]  }
 0x22a   :  { %9185 = vmatprep.subr.bf16.mxu1 %v14915_v54 }
 0x22b   :  { %2620 = vmatpush1.bf16.msra.mxu0 %v14769_v30  ;;  %v14853_v30 = vld [vmem:[#allocation5 + $0x850] ss:$24 sps:$4 sm:$0xff]  }
 0x22c   :  { %2621 = vmatprep.subr.bf16.mxu0 %v14774_v49  ;;  %v14861_v49 = vld [vmem:[#allocation5 + $0x884] ss:$24 sps:$4 sm:$0xff]  }
 0x22d   :  { %9186 = vmatpush1.bf16.msra.mxu1 %v14913_v61  ;;  %v14910_v61 = vld [vmem:[#allocation8 + $0x378] ss:$88 sps:$4 sm:$0xff]  }
 0x22e   :  { %9187 = vmatprep.subr.bf16.mxu1 %v14921_v5 }
 0x22f   :  { %2622 = vmatpush1.bf16.msra.mxu0 %v14772_v1  ;;  %v14865_v1 = vld [vmem:[#allocation5 + $0x8b0] ss:$24 sps:$4 sm:$0xff]  }
 0x230   :  { %2623 = vmatprep.subr.bf16.mxu0 %v14777_v37  ;;  %v14873_v37 = vld [vmem:[#allocation5 + $0x8e4] ss:$24 sps:$4 sm:$0xff]  }
 0x231   :  { %9188 = vmatpush1.bf16.msra.mxu1 %v14919_v6  ;;  %v14918_v6 = vld [vmem:[#allocation8 + $0x42c] ss:$88 sps:$4 sm:$0xff]  }
 0x232   :  { %9189 = vmatprep.subr.bf16.mxu1 %v14927_v0  ;;  %v14916_v0 = vld [vmem:[#allocation8 + $0x428] ss:$88 sps:$4 sm:$0xff]  }
 0x233   :  { %2624 = vmatpush1.bf16.msra.mxu0 %v14775_v7  ;;  %v14880_v7 = vld [vmem:[#allocation8 + $0x8] ss:$88 sps:$4 sm:$0xff]  }
 0x234   :  { %2625 = vmatprep.subr.bf16.mxu0 %v14780_v38  ;;  %v14888_v38 = vld [vmem:[#allocation8 + $0xbc] ss:$88 sps:$4 sm:$0xff]  }
 0x235   :  { %9190 = vmatpush1.bf16.msra.mxu1 %v14925_v23 }
 0x236   :  { %9200 = vmatprep.subr.bf16.mxu1 %v14933_v25 }
 0x237   :  { %2626 = vmatpush1.bf16.msra.mxu0 %v14778_v51  ;;  %v14886_v51 = vld [vmem:[#allocation8 + $0xb8] ss:$88 sps:$4 sm:$0xff]  }
 0x238   :  { %2627 = vmatprep.subr.bf16.mxu0 %v14783_v22  ;;  %v14894_v22 = vld [vmem:[#allocation8 + $0x16c] ss:$88 sps:$4 sm:$0xff]  }
 0x23b   :  { %2628 = vmatpush1.bf16.msra.mxu0 %v14781_v55  ;;  %v14892_v55 = vld [vmem:[#allocation8 + $0x168] ss:$88 sps:$4 sm:$0xff]  }
 0x23c   :  { %2629 = vmatprep.subr.bf16.mxu0 %v14786_v47  ;;  %v775_v47 = vlaneseq }
 0x23f   :  { %2630 = vmatpush1.bf16.msra.mxu0 %v14784_v41  ;;  %v14900_v41 = vld [vmem:[#allocation8 + $0x21c] ss:$88 sps:$4 sm:$0xff]  }
 0x240   :  { %2631 = vmatprep.subr.bf16.mxu0 %v14789_v50  ;;  %v14898_v50 = vld [vmem:[#allocation8 + $0x218] ss:$88 sps:$4 sm:$0xff]  }
 0x243   :  { %2632 = vmatpush1.bf16.msra.mxu0 %v14787_v3  ;;  %v17240_v3 = vshrl.u32 %v775_v47, 7  ;;  %v14967_v47 = vld [vmem:[#allocation8 + $0xf20] ss:$88 sps:$4 sm:$0xff]  }
 0x244   :  { %2633 = vmatprep.subr.bf16.mxu0 %v14792_v53  ;;  %v14906_v53 = vld [vmem:[#allocation8 + $0x2cc] ss:$88 sps:$4 sm:$0xff]  }
 0x245   :  { %v17251_v54 = vsub.s32 3, %v17240_v3 }
 0x247   :  { %2634 = vmatpush1.bf16.msra.mxu0 %v14790_v20  ;;  %v17248_v20 = vsub.s32 1, %v17240_v3 }
 0x248   :  { %2635 = vmatprep.subr.bf16.mxu0 %v14795_v60  ;;  %v14912_v60 = vld [vmem:[#allocation8 + $0x37c] ss:$88 sps:$4 sm:$0xff]  }
 0x24b   :  { %2636 = vmatpush1.bf16.msra.mxu0 %v14793_v16  ;;  %v782_v16 = vrot.slane %v17242_v12, %v17248_v20 }
 0x24c   :  { %2637 = vmatprep.subr.bf16.mxu0 %v14798_v26  ;;  %v790_v26 = vrot.slane %v17242_v12, %v17251_v54 }
 0x24f   :  { %2638 = vmatpush1.bf16.msra.mxu0 %v14796_v10 }
 0x250   :  { %2639 = vmatprep.subr.bf16.mxu0 %v14801_v15 }
 0x253   :  { %2640 = vmatpush1.bf16.msra.mxu0 %v14799_v21 }
 0x254   :  { %2641 = vmatprep.subr.bf16.mxu0 %v14804_v24 }
 0x257   :  { %2642 = vmatpush1.bf16.msra.mxu0 %v14802_v58 }
 0x258   :  { %2643 = vmatprep.subr.bf16.mxu0 %v14807_v43 }
 0x25b   :  { %2644 = vmatpush1.bf16.msra.mxu0 %v14805_v42 }
 0x25c   :  { %2654 = vmatprep.subr.bf16.mxu0 %v14810_v27 }
 0x25e   :  { %2646 = vmatmul.mubr.bf16.vlgmr.msra.gmra.mrb[4].mxu0 %v17218_v31  ;;  %v14828_v31 = vld [vmem:[#allocation5 + $0x734] ss:$24 sps:$4 sm:$0xff]  }
 0x25f   :  { %2655 = vmatpush1.bf16.msra.mxu0 %v14808_v11  ;;  %2686 = vmatprep.mubr.bf16.mxu0 %v17222_v48  ;;  %v14826_v48 = vld [vmem:[#allocation5 + $0x730] ss:$24 sps:$4 sm:$0xff]   ;;  %v14924_v11 = vld [vmem:[#allocation8 + $0x4dc] ss:$88 sps:$4 sm:$0xff]  }
 0x260   :  { %2656 = vmatprep.subr.bf16.mxu0 %v14813_v19 }
 0x263   :  { %2657 = vmatpush1.bf16.msra.mxu0 %v14811_v56  ;;  %v14922_v56 = vld [vmem:[#allocation8 + $0x4d8] ss:$88 sps:$4 sm:$0xff]  }
 0x264   :  { %2658 = vmatprep.subr.bf16.mxu0 %v14816_v28  ;;  %v14930_v28 = vld [vmem:[#allocation8 + $0x58c] ss:$88 sps:$4 sm:$0xff]  }
 0x267   :  { %2659 = vmatpush1.bf16.msra.mxu0 %v14814_v13  ;;  %v14928_v13 = vld [vmem:[#allocation8 + $0x588] ss:$88 sps:$4 sm:$0xff]  }
 0x268   :  { %2660 = vmatprep.subr.bf16.mxu0 %v14819_v29  ;;  %v14936_v29 = vld [vmem:[#allocation8 + $0x63c] ss:$88 sps:$4 sm:$0xff]  }
 0x26b   :  { %2661 = vmatpush1.bf16.msra.mxu0 %v14817_v32 }
 0x26c   :  { %2662 = vmatprep.subr.bf16.mxu0 %v14822_v33 }
 0x26f   :  { %2663 = vmatpush1.bf16.msra.mxu0 %v14820_v52  ;;  %v14931_v52 = vld [vmem:[#allocation8 + $0xb00] ss:$88 sps:$4 sm:$0xff]  }
 0x270   :  { %2664 = vmatprep.subr.bf16.mxu0 %v14825_v34  ;;  %v14934_v34 = vld [vmem:[#allocation8 + $0x638] ss:$88 sps:$4 sm:$0xff]  }
 0x273   :  { %2665 = vmatpush1.bf16.msra.mxu0 %v14823_v40  ;;  %v14939_v40 = vld [vmem:[#allocation8 + $0xbb4] ss:$88 sps:$4 sm:$0xff]  }
 0x274   :  { %2666 = vmatprep.subr.bf16.mxu0 %v14828_v31 }
 0x277   :  { %2667 = vmatpush1.bf16.msra.mxu0 %v14826_v48 }
 0x278   :  { %2668 = vmatprep.subr.bf16.mxu0 %v14831_v18  ;;  %v14942_v18 = vld [vmem:[#allocation8 + $0x6ec] ss:$88 sps:$4 sm:$0xff]  }
 0x27b   :  { %2669 = vmatpush1.bf16.msra.mxu0 %v14829_v45 }
 0x27c   :  { %2670 = vmatprep.subr.bf16.mxu0 %v14834_v36 }
 0x27f   :  { %2671 = vmatpush1.bf16.msra.mxu0 %v14832_v35  ;;  %v14937_v35 = vld [vmem:[#allocation8 + $0xbb0] ss:$88 sps:$4 sm:$0xff]  }
 0x280   :  { %2672 = vmatprep.subr.bf16.mxu0 %v14837_v44  ;;  %v14940_v44 = vld [vmem:[#allocation8 + $0x6e8] ss:$88 sps:$4 sm:$0xff]  }
 0x283   :  { %2673 = vmatpush1.bf16.msra.mxu0 %v14835_v4  ;;  %v14945_v4 = vld [vmem:[#allocation8 + $0xc64] ss:$88 sps:$4 sm:$0xff]  }
 0x284   :  { %2674 = vmatprep.subr.bf16.mxu0 %v14843_v39  ;;  %v14948_v39 = vld [vmem:[#allocation8 + $0x79c] ss:$88 sps:$4 sm:$0xff]  }
 0x287   :  { %2675 = vmatpush1.bf16.msra.mxu0 %v14841_v46  ;;  %v14943_v46 = vld [vmem:[#allocation8 + $0xc60] ss:$88 sps:$4 sm:$0xff]  }
 0x288   :  { %2676 = vmatprep.subr.bf16.mxu0 %v14849_v17  ;;  %v14946_v17 = vld [vmem:[#allocation8 + $0x798] ss:$88 sps:$4 sm:$0xff]  }
 0x28b   :  { %2677 = vmatpush1.bf16.msra.mxu0 %v14847_v63  ;;  %v14951_v63 = vld [vmem:[#allocation8 + $0xd14] ss:$88 sps:$4 sm:$0xff]  }
 0x28c   :  { %2678 = vmatprep.subr.bf16.mxu0 %v14855_v9  ;;  %v14954_v9 = vld [vmem:[#allocation8 + $0x84c] ss:$88 sps:$4 sm:$0xff]  }
 0x28f   :  { %2679 = vmatpush1.bf16.msra.mxu0 %v14853_v30  ;;  %v14952_v30 = vld [vmem:[#allocation8 + $0x848] ss:$88 sps:$4 sm:$0xff]  }
 0x290   :  { %2680 = vmatprep.subr.bf16.mxu0 %v14861_v49  ;;  %v14949_v49 = vld [vmem:[#allocation8 + $0xd10] ss:$88 sps:$4 sm:$0xff]  }
 0x293   :  { %2681 = vmatpush1.bf16.msra.mxu0 %v14859_v62  ;;  %v14960_v62 = vld [vmem:[#allocation8 + $0x8fc] ss:$88 sps:$4 sm:$0xff]  }
 0x294   :  { %2682 = vmatprep.subr.bf16.mxu0 %v14867_v57  ;;  %v14957_v57 = vld [vmem:[#allocation8 + $0xdc4] ss:$88 sps:$4 sm:$0xff]  }
 0x297   :  { %2683 = vmatpush1.bf16.msra.mxu0 %v14865_v1  ;;  %v14958_v1 = vld [vmem:[#allocation8 + $0x8f8] ss:$88 sps:$4 sm:$0xff]  }
 0x298   :  { %2684 = vmatprep.subr.bf16.mxu0 %v14873_v37  ;;  %v14955_v37 = vld [vmem:[#allocation8 + $0xdc0] ss:$88 sps:$4 sm:$0xff]  }
 0x29b   :  { %2685 = vmatpush1.bf16.msra.mxu0 %v14871_v59  ;;  %v14966_v59 = vld [vmem:[#allocation8 + $0x9ac] ss:$88 sps:$4 sm:$0xff]  }
 0x29c   :  { %9282 = vmatprep.subr.bf16.mxu0 %v14882_v8  ;;  %v14963_v8 = vld [vmem:[#allocation8 + $0xe74] ss:$88 sps:$4 sm:$0xff]  }
 0x29e   :  { %2687 = vmatmul.mubr.bf16.vlgmr.msra.gmra.mrb[4].mxu0 %v17230_v2  ;;  %v17245_v2 = vsub.s32 0, %v17240_v3 }
 0x29f   :  { %9283 = vmatpush1.bf16.msra.mxu0 %v14880_v7  ;;  %v14964_v7 = vld [vmem:[#allocation8 + $0x9a8] ss:$88 sps:$4 sm:$0xff]  }
 0x2a0   :  { %9284 = vmatprep.subr.bf16.mxu0 %v14888_v38  ;;  %v778_v5 = vrot.slane %v17242_v12, %v17245_v2  ;;  %v14961_v38 = vld [vmem:[#allocation8 + $0xe70] ss:$88 sps:$4 sm:$0xff]  }
 0x2a3   :  { %9285 = vmatpush1.bf16.msra.mxu0 %v14886_v51  ;;  %v14972_v51 = vld [vmem:[#allocation8 + $0xa5c] ss:$88 sps:$4 sm:$0xff]  }
 0x2a4   :  { %9286 = vmatprep.subr.bf16.mxu0 %v14894_v22  ;;  %v14969_v22 = vld [vmem:[#allocation8 + $0xf24] ss:$88 sps:$4 sm:$0xff]  }
 0x2a7   :  { %9287 = vmatpush1.bf16.msra.mxu0 %v14892_v55  ;;  %v14970_v55 = vld [vmem:[#allocation8 + $0xa58] ss:$88 sps:$4 sm:$0xff]  }
 0x2a8   :  { %9288 = vmatprep.subr.bf16.mxu0 %v14900_v41  ;;  %v14978_v41 = vld [vmem:[#allocation8 + $0xb0c] ss:$88 sps:$4 sm:$0xff]  }
 0x2ab   :  { %9289 = vmatpush1.bf16.msra.mxu0 %v14898_v50  ;;  %v14975_v50 = vld [vmem:[#allocation8 + $0xfd4] ss:$88 sps:$4 sm:$0xff]  }
 0x2ac   :  { %9290 = vmatprep.subr.bf16.mxu0 %v14906_v53  ;;  %v14976_v53 = vld [vmem:[#allocation8 + $0xb08] ss:$88 sps:$4 sm:$0xff]  }
 0x2af   :  { %9291 = vmatpush1.bf16.msra.mxu0 %v14904_v14  ;;  %v14973_v14 = vld [vmem:[#allocation8 + $0xfd0] ss:$88 sps:$4 sm:$0xff]  }
 0x2b0   :  { %9292 = vmatprep.subr.bf16.mxu0 %v14912_v60  ;;  %v14984_v60 = vld [vmem:[#allocation8 + $0xbbc] ss:$88 sps:$4 sm:$0xff]  }
 0x2b1   :  { %v2442_v10 = vpop.f32.mrb[0].mxu0 }
 0x2b2   :  { %v14263_v15 = vadd.f32 %v2442_v10, %v778_v5  ;;  %v17259_v21 = vpop.f32.mrb[0].mxu1  ;;  %v2444_v23 = vpop.f32.mrb[1].mxu0  ;;  %v14982_v5 = vld [vmem:[#allocation8 + $0xbb8] ss:$88 sps:$4 sm:$0xff]   ;;  %v14988_v10 = vld [vmem:[#allocation8 + $0xc68] ss:$88 sps:$4 sm:$0xff]  }
 0x2b3   :  { %v14264_v24 = vadd.f32 %v2444_v23, %v782_v16  ;;  %v2567_v25 = vpop.f32.mrb[1].mxu1  ;;  %v2446_v58 = vpop.f32.mrb[2].mxu0  ;;  %9293 = vmatpush1.bf16.msra.mxu0 %v14910_v61  ;;  %v14981_v61 = vld [vmem:[#allocation8 + $0x1084] ss:$88 sps:$4 sm:$0xff]   ;;  %v14979_v16 = vld [vmem:[#allocation8 + $0x1080] ss:$88 sps:$4 sm:$0xff]  }
 0x2b4   :  { %v14266_v43 = vadd.f32 %v2567_v25, %v790_v26  ;;  %v2569_v42 = vpop.f32.mrb[2].mxu1  ;;  %v2447_v27 = vpop.f32.mrb[3].mxu0  ;;  %9294 = vmatprep.subr.bf16.mxu0 %v14918_v6  ;;  %16627 = vtanh.f32 %v14263_v15  ;;  %v14990_v26 = vld [vmem:[#allocation8 + $0xc6c] ss:$88 sps:$4 sm:$0xff]   ;;  %v14996_v15 = vld [vmem:[#allocation8 + $0xd1c] ss:$88 sps:$4 sm:$0xff]  }
 0x2b5   :  { %v2570_v19 = vpop.f32.mrb[3].mxu1  ;;  %16629 = vtanh.f32 %v14264_v24  ;;  %v14987_v6 = vld [vmem:[#allocation8 + $0x1134] ss:$88 sps:$4 sm:$0xff]   ;;  %v14993_v23 = vld [vmem:[#allocation8 + $0x11e4] ss:$88 sps:$4 sm:$0xff]   ;;  %v17274_v42 = vsub.s32 2, %v17240_v3 }
 0x2b6   :  { %16631 = vtanh.f32 %v14266_v43  ;;  %v14994_v24 = vld [vmem:[#allocation8 + $0xd18] ss:$88 sps:$4 sm:$0xff]   ;;  %v15002_v58 = vld [vmem:[#allocation8 + $0xdcc] ss:$88 sps:$4 sm:$0xff]   ;;  %v15000_v27 = vld [vmem:[#allocation8 + $0xdc8] ss:$88 sps:$4 sm:$0xff]  }
 0x2b7   :  { %9295 = vmatpush1.bf16.msra.mxu0 %v14916_v0  ;;  %v14985_v0 = vld [vmem:[#allocation8 + $0x1130] ss:$88 sps:$4 sm:$0xff]   ;;  %v14991_v25 = vld [vmem:[#allocation8 + $0x11e0] ss:$88 sps:$4 sm:$0xff]   ;;  %v14999_v43 = vld [vmem:[#allocation8 + $0x1294] ss:$88 sps:$4 sm:$0xff]  }
 0x2b8   :  { %9296 = vmatprep.subr.bf16.mxu0 %v14924_v11  ;;  %v14997_v11 = vld [vmem:[#allocation8 + $0x1290] ss:$88 sps:$4 sm:$0xff]   ;;  %v15008_v19 = vld [vmem:[#allocation8 + $0xe7c] ss:$88 sps:$4 sm:$0xff]  }
 0x2bb   :  { %9297 = vmatpush1.bf16.msra.mxu0 %v14922_v56  ;;  %v15005_v56 = vld [vmem:[#allocation8 + $0x1344] ss:$88 sps:$4 sm:$0xff]  }
 0x2bc   :  { %9298 = vmatprep.subr.bf16.mxu0 %v14930_v28  ;;  %v786_v28 = vrot.slane %v17242_v12, %v17274_v42  ;;  %v15018_v12 = vld [vmem:[#allocation8 + $0xfd8] ss:$88 sps:$4 sm:$0xff]  }
 0x2be   :  { %v16628_v32 = vpop.eup %16627 }
 0x2bf   :  { %9299 = vmatpush1.bf16.msra.mxu0 %v14928_v13  ;;  %v16630_v33 = vpop.eup %16629  ;;  %v17263_v45 = vpack.c.bf16 %v16628_v32, %v16628_v32  ;;  %v15006_v13 = vld [vmem:[#allocation8 + $0xe78] ss:$88 sps:$4 sm:$0xff]   ;;  %v15014_v32 = vld [vmem:[#allocation8 + $0xf2c] ss:$88 sps:$4 sm:$0xff]  }
 0x2c0   :  { %9300 = vmatprep.subr.bf16.mxu0 %v14936_v29  ;;  %v16632_v31 = vpop.eup %16631  ;;  %v17261_v48 = vpack.c.bf16 %v16630_v33, %v16630_v33  ;;  %v15003_v29 = vld [vmem:[#allocation8 + $0x1340] ss:$88 sps:$4 sm:$0xff]   ;;  %v15011_v33 = vld [vmem:[#allocation8 + $0x13f4] ss:$88 sps:$4 sm:$0xff]  }
 0x2c1   :  { %v17265_v36 = vpack.c.bf16 %v16632_v31, %v16632_v31  ;;  %v15020_v31 = vld [vmem:[#allocation8 + $0xfdc] ss:$88 sps:$4 sm:$0xff]  }
 0x2c2   :  { %9191 = vmatprep.mubr.bf16.mxu1 %v17261_v48  ;;  %9314 = vmatprep.mubr.bf16.mxu0 %v17261_v48 }
 0x2c3   :  { %9192 = vmatmul.mubr.bf16.vlgmr.msra.gmra.mrb[4].mxu1 %v17263_v45  ;;  %9301 = vmatpush1.bf16.msra.mxu0 %v14934_v34  ;;  %v15012_v34 = vld [vmem:[#allocation8 + $0xf28] ss:$88 sps:$4 sm:$0xff]  }
 0x2c4   :  { %9201 = vmatpush1.bf16.msra.mxu1 %v14931_v52  ;;  %9232 = vmatprep.mubr.bf16.mxu1 %v17265_v36  ;;  %v14265_v52 = vadd.f32 %v17259_v21, %v786_v28  ;;  %v15024_v21 = vld [vmem:[#allocation8 + $0x1088] ss:$88 sps:$4 sm:$0xff]  }
 0x2c5   :  { %9202 = vmatprep.subr.bf16.mxu1 %v14939_v40  ;;  %9302 = vmatprep.subr.bf16.mxu0 %v14942_v18  ;;  %v15009_v40 = vld [vmem:[#allocation8 + $0x13f0] ss:$88 sps:$4 sm:$0xff]   ;;  %v15017_v18 = vld [vmem:[#allocation8 + $0x14a4] ss:$88 sps:$4 sm:$0xff]  }
 0x2c6   :  { %16633 = vtanh.f32 %v14265_v52  ;;  %v15063_v28 = vld [vmem:[#allocation8 + $0x1768] ss:$88 sps:$4 sm:$0xff]   ;;  %v15077_v52 = vld [vmem:[#allocation8 + $0x18cc] ss:$88 sps:$4 sm:$0xff]  }
 0x2c7   :  { %9303 = vmatpush1.bf16.msra.mxu0 %v14940_v44  ;;  %v15026_v44 = vld [vmem:[#allocation8 + $0x108c] ss:$88 sps:$4 sm:$0xff]  }
 0x2c8   :  { %9203 = vmatpush1.bf16.msra.mxu1 %v14937_v35  ;;  %9304 = vmatprep.subr.bf16.mxu0 %v14948_v39  ;;  %v15015_v35 = vld [vmem:[#allocation8 + $0x14a0] ss:$88 sps:$4 sm:$0xff]   ;;  %v15021_v39 = vld [vmem:[#allocation8 + $0x1550] ss:$88 sps:$4 sm:$0xff]  }
 0x2c9   :  { %9204 = vmatprep.subr.bf16.mxu1 %v14945_v4  ;;  %v15023_v4 = vld [vmem:[#allocation8 + $0x1554] ss:$88 sps:$4 sm:$0xff]  }
 0x2cb   :  { %9305 = vmatpush1.bf16.msra.mxu0 %v14946_v17  ;;  %v15050_v17 = vld [vmem:[#allocation8 + $0x1604] ss:$88 sps:$4 sm:$0xff]  }
 0x2cc   :  { %9205 = vmatpush1.bf16.msra.mxu1 %v14943_v46  ;;  %9306 = vmatprep.subr.bf16.mxu0 %v14954_v9  ;;  %v15029_v46 = vld [vmem:[#allocation8 + $0x113c] ss:$88 sps:$4 sm:$0xff]   ;;  %v15027_v9 = vld [vmem:[#allocation8 + $0x1138] ss:$88 sps:$4 sm:$0xff]  }
 0x2cd   :  { %9206 = vmatprep.subr.bf16.mxu1 %v14951_v63 }
 0x2cf   :  { %9307 = vmatpush1.bf16.msra.mxu0 %v14952_v30  ;;  %v15032_v30 = vld [vmem:[#allocation8 + $0x11ec] ss:$88 sps:$4 sm:$0xff]  }
 0x2d0   :  { %9207 = vmatpush1.bf16.msra.mxu1 %v14949_v49  ;;  %9308 = vmatprep.subr.bf16.mxu0 %v14960_v62  ;;  %v16634_v63 = vpop.eup %16633  ;;  %v15048_v49 = vld [vmem:[#allocation8 + $0x1600] ss:$88 sps:$4 sm:$0xff]  }
 0x2d1   :  { %9208 = vmatprep.subr.bf16.mxu1 %v14957_v57  ;;  %v17279_v62 = vpack.c.bf16 %v16634_v63, %v16634_v63  ;;  %v15056_v57 = vld [vmem:[#allocation8 + $0x16b4] ss:$88 sps:$4 sm:$0xff]   ;;  %v15126_v63 = vld [vmem:[#allocation8 + $0x1ef0] ss:$88 sps:$4 sm:$0xff]  }
 0x2d3   :  { %9309 = vmatpush1.bf16.msra.mxu0 %v14958_v1  ;;  %v15030_v1 = vld [vmem:[#allocation8 + $0x11e8] ss:$88 sps:$4 sm:$0xff]  }
 0x2d4   :  { %9209 = vmatpush1.bf16.msra.mxu1 %v14955_v37  ;;  %9310 = vmatprep.subr.bf16.mxu0 %v14966_v59  ;;  %v15035_v37 = vld [vmem:[#allocation8 + $0x129c] ss:$88 sps:$4 sm:$0xff]   ;;  %v15054_v59 = vld [vmem:[#allocation8 + $0x16b0] ss:$88 sps:$4 sm:$0xff]  }
 0x2d5   :  { %9210 = vmatprep.subr.bf16.mxu1 %v14963_v8  ;;  %v15062_v8 = vld [vmem:[#allocation8 + $0x1764] ss:$88 sps:$4 sm:$0xff]  }
 0x2d7   :  { %9311 = vmatpush1.bf16.msra.mxu0 %v14964_v7  ;;  %v15033_v7 = vld [vmem:[#allocation8 + $0x1298] ss:$88 sps:$4 sm:$0xff]  }
 0x2d8   :  { %9211 = vmatpush1.bf16.msra.mxu1 %v14961_v38  ;;  %9312 = vmatprep.subr.bf16.mxu0 %v14972_v51  ;;  %v15038_v38 = vld [vmem:[#allocation8 + $0x134c] ss:$88 sps:$4 sm:$0xff]   ;;  %v15060_v51 = vld [vmem:[#allocation8 + $0x1760] ss:$88 sps:$4 sm:$0xff]  }
 0x2d9   :  { %9212 = vmatprep.subr.bf16.mxu1 %v14969_v22  ;;  %v15068_v22 = vld [vmem:[#allocation8 + $0x1814] ss:$88 sps:$4 sm:$0xff]  }
 0x2db   :  { %9313 = vmatpush1.bf16.msra.mxu0 %v14970_v55  ;;  %v15036_v55 = vld [vmem:[#allocation8 + $0x1348] ss:$88 sps:$4 sm:$0xff]  }
 0x2dc   :  { %9213 = vmatpush1.bf16.msra.mxu1 %v14967_v47  ;;  %9323 = vmatprep.subr.bf16.mxu0 %v14978_v41  ;;  %v15041_v47 = vld [vmem:[#allocation8 + $0x13fc] ss:$88 sps:$4 sm:$0xff]   ;;  %v15066_v41 = vld [vmem:[#allocation8 + $0x1810] ss:$88 sps:$4 sm:$0xff]  }
 0x2dd   :  { %9214 = vmatprep.subr.bf16.mxu1 %v14975_v50  ;;  %v15074_v50 = vld [vmem:[#allocation8 + $0x18c4] ss:$88 sps:$4 sm:$0xff]  }
 0x2de   :  { %9315 = vmatmul.mubr.bf16.vlgmr.msra.gmra.mrb[8].mxu0 %v17263_v45 }
 0x2df   :  { %9324 = vmatpush1.bf16.msra.mxu0 %v14976_v53  ;;  %9355 = vmatprep.mubr.bf16.mxu0 %v17265_v36  ;;  %v15039_v53 = vld [vmem:[#allocation8 + $0x13f8] ss:$88 sps:$4 sm:$0xff]  }
 0x2e0   :  { %9215 = vmatpush1.bf16.msra.mxu1 %v14973_v14  ;;  %9325 = vmatprep.subr.bf16.mxu0 %v14984_v60  ;;  %v15044_v14 = vld [vmem:[#allocation8 + $0x14ac] ss:$88 sps:$4 sm:$0xff]   ;;  %v15072_v60 = vld [vmem:[#allocation8 + $0x18c0] ss:$88 sps:$4 sm:$0xff]  }
 0x2e1   :  { %9216 = vmatprep.subr.bf16.mxu1 %v14981_v61  ;;  %v15080_v61 = vld [vmem:[#allocation8 + $0x1974] ss:$88 sps:$4 sm:$0xff]  }
 0x2e3   :  { %9326 = vmatpush1.bf16.msra.mxu0 %v14982_v5  ;;  %v15042_v5 = vld [vmem:[#allocation8 + $0x14a8] ss:$88 sps:$4 sm:$0xff]  }
 0x2e4   :  { %9217 = vmatpush1.bf16.msra.mxu1 %v14979_v16  ;;  %9327 = vmatprep.subr.bf16.mxu0 %v14990_v26  ;;  %v15047_v16 = vld [vmem:[#allocation8 + $0x155c] ss:$88 sps:$4 sm:$0xff]   ;;  %v15078_v26 = vld [vmem:[#allocation8 + $0x1970] ss:$88 sps:$4 sm:$0xff]  }
 0x2e5   :  { %9218 = vmatprep.subr.bf16.mxu1 %v14987_v6  ;;  %v15086_v6 = vld [vmem:[#allocation8 + $0x1a24] ss:$88 sps:$4 sm:$0xff]  }
 0x2e7   :  { %9328 = vmatpush1.bf16.msra.mxu0 %v14988_v10  ;;  %v15045_v10 = vld [vmem:[#allocation8 + $0x1558] ss:$88 sps:$4 sm:$0xff]  }
 0x2e8   :  { %9219 = vmatpush1.bf16.msra.mxu1 %v14985_v0  ;;  %9329 = vmatprep.subr.bf16.mxu0 %v14996_v15  ;;  %v15053_v0 = vld [vmem:[#allocation8 + $0x160c] ss:$88 sps:$4 sm:$0xff]   ;;  %v15084_v15 = vld [vmem:[#allocation8 + $0x1a20] ss:$88 sps:$4 sm:$0xff]  }
 0x2e9   :  { %9220 = vmatprep.subr.bf16.mxu1 %v14993_v23  ;;  %v15092_v23 = vld [vmem:[#allocation8 + $0x1ad4] ss:$88 sps:$4 sm:$0xff]  }
 0x2eb   :  { %9330 = vmatpush1.bf16.msra.mxu0 %v14994_v24  ;;  %v15051_v24 = vld [vmem:[#allocation8 + $0x1608] ss:$88 sps:$4 sm:$0xff]  }
 0x2ec   :  { %9221 = vmatpush1.bf16.msra.mxu1 %v14991_v25  ;;  %9331 = vmatprep.subr.bf16.mxu0 %v15002_v58  ;;  %v15059_v25 = vld [vmem:[#allocation8 + $0x16bc] ss:$88 sps:$4 sm:$0xff]   ;;  %v15090_v58 = vld [vmem:[#allocation8 + $0x1ad0] ss:$88 sps:$4 sm:$0xff]  }
 0x2ed   :  { %9222 = vmatprep.subr.bf16.mxu1 %v14999_v43  ;;  %v15098_v43 = vld [vmem:[#allocation8 + $0x1b84] ss:$88 sps:$4 sm:$0xff]  }
 0x2ef   :  { %9332 = vmatpush1.bf16.msra.mxu0 %v15000_v27  ;;  %v15057_v27 = vld [vmem:[#allocation8 + $0x16b8] ss:$88 sps:$4 sm:$0xff]  }
 0x2f0   :  { %9223 = vmatpush1.bf16.msra.mxu1 %v14997_v11  ;;  %9333 = vmatprep.subr.bf16.mxu0 %v15008_v19  ;;  %v15065_v11 = vld [vmem:[#allocation8 + $0x176c] ss:$88 sps:$4 sm:$0xff]   ;;  %v15096_v19 = vld [vmem:[#allocation8 + $0x1b80] ss:$88 sps:$4 sm:$0xff]  }
 0x2f1   :  { %9224 = vmatprep.subr.bf16.mxu1 %v15005_v56  ;;  %v15104_v56 = vld [vmem:[#allocation8 + $0x1c34] ss:$88 sps:$4 sm:$0xff]  }
 0x2f3   :  { %9334 = vmatpush1.bf16.msra.mxu0 %v15006_v13  ;;  %v15071_v13 = vld [vmem:[#allocation8 + $0x181c] ss:$88 sps:$4 sm:$0xff]  }
 0x2f4   :  { %9225 = vmatpush1.bf16.msra.mxu1 %v15003_v29  ;;  %9335 = vmatprep.subr.bf16.mxu0 %v15014_v32  ;;  %v15102_v29 = vld [vmem:[#allocation8 + $0x1c30] ss:$88 sps:$4 sm:$0xff]   ;;  %v15110_v32 = vld [vmem:[#allocation8 + $0x1ce4] ss:$88 sps:$4 sm:$0xff]  }
 0x2f5   :  { %9226 = vmatprep.subr.bf16.mxu1 %v15011_v33  ;;  %v15069_v33 = vld [vmem:[#allocation8 + $0x1818] ss:$88 sps:$4 sm:$0xff]  }
 0x2f7   :  { %9336 = vmatpush1.bf16.msra.mxu0 %v15012_v34  ;;  %v15108_v34 = vld [vmem:[#allocation8 + $0x1ce0] ss:$88 sps:$4 sm:$0xff]  }
 0x2f8   :  { %9227 = vmatpush1.bf16.msra.mxu1 %v15009_v40  ;;  %9337 = vmatprep.subr.bf16.mxu0 %v15020_v31  ;;  %v15116_v40 = vld [vmem:[#allocation8 + $0x1d94] ss:$88 sps:$4 sm:$0xff]   ;;  %v15075_v31 = vld [vmem:[#allocation8 + $0x18c8] ss:$88 sps:$4 sm:$0xff]  }
 0x2f9   :  { %9228 = vmatprep.subr.bf16.mxu1 %v15017_v18  ;;  %v15083_v18 = vld [vmem:[#allocation8 + $0x197c] ss:$88 sps:$4 sm:$0xff]  }
 0x2fb   :  { %9338 = vmatpush1.bf16.msra.mxu0 %v15018_v12  ;;  %v15114_v12 = vld [vmem:[#allocation8 + $0x1d90] ss:$88 sps:$4 sm:$0xff]  }
 0x2fc   :  { %9229 = vmatpush1.bf16.msra.mxu1 %v15015_v35  ;;  %9339 = vmatprep.subr.bf16.mxu0 %v15026_v44  ;;  %v15122_v35 = vld [vmem:[#allocation8 + $0x1e44] ss:$88 sps:$4 sm:$0xff]   ;;  %v15081_v44 = vld [vmem:[#allocation8 + $0x1978] ss:$88 sps:$4 sm:$0xff]  }
 0x2fd   :  { %9230 = vmatprep.subr.bf16.mxu1 %v15023_v4  ;;  %v15089_v4 = vld [vmem:[#allocation8 + $0x1a2c] ss:$88 sps:$4 sm:$0xff]  }
 0x2ff   :  { %9340 = vmatpush1.bf16.msra.mxu0 %v15024_v21  ;;  %v15120_v21 = vld [vmem:[#allocation8 + $0x1e40] ss:$88 sps:$4 sm:$0xff]  }
 0x300   :  { %9231 = vmatpush1.bf16.msra.mxu1 %v15021_v39  ;;  %9341 = vmatprep.subr.bf16.mxu0 %v15029_v46  ;;  %v15128_v39 = vld [vmem:[#allocation8 + $0x1ef4] ss:$88 sps:$4 sm:$0xff]   ;;  %v15087_v46 = vld [vmem:[#allocation8 + $0x1a28] ss:$88 sps:$4 sm:$0xff]  }
 0x301   :  { %9241 = vmatprep.subr.bf16.mxu1 %v15050_v17  ;;  %v15095_v17 = vld [vmem:[#allocation8 + $0x1adc] ss:$88 sps:$4 sm:$0xff]  }
 0x303   :  { %9233 = vmatmul.mubr.bf16.vlgmr.msra.gmra.mrb[4].mxu1 %v17279_v62  ;;  %9342 = vmatpush1.bf16.msra.mxu0 %v15027_v9  ;;  %v15134_v9 = vld [vmem:[#allocation8 + $0x1fa4] ss:$88 sps:$4 sm:$0xff]  }
 0x304   :  { %9343 = vmatprep.subr.bf16.mxu0 %v15032_v30  ;;  %9242 = vmatpush1.bf16.msra.mxu1 %v15048_v49  ;;  %v15093_v30 = vld [vmem:[#allocation8 + $0x1ad8] ss:$88 sps:$4 sm:$0xff]   ;;  %v15101_v49 = vld [vmem:[#allocation8 + $0x1b8c] ss:$88 sps:$4 sm:$0xff]  }
 0x305   :  { %9243 = vmatprep.subr.bf16.mxu1 %v15056_v57  ;;  %v15132_v57 = vld [vmem:[#allocation8 + $0x1fa0] ss:$88 sps:$4 sm:$0xff]  }
 0x307   :  { %9344 = vmatpush1.bf16.msra.mxu0 %v15030_v1  ;;  %v15140_v1 = vld [vmem:[#allocation8 + $0x2054] ss:$88 sps:$4 sm:$0xff]  }
 0x308   :  { %9345 = vmatprep.subr.bf16.mxu0 %v15035_v37  ;;  %9244 = vmatpush1.bf16.msra.mxu1 %v15054_v59  ;;  %v15099_v37 = vld [vmem:[#allocation8 + $0x1b88] ss:$88 sps:$4 sm:$0xff]   ;;  %v15107_v59 = vld [vmem:[#allocation8 + $0x1c3c] ss:$88 sps:$4 sm:$0xff]  }
 0x309   :  { %9245 = vmatprep.subr.bf16.mxu1 %v15062_v8  ;;  %v15138_v8 = vld [vmem:[#allocation8 + $0x2050] ss:$88 sps:$4 sm:$0xff]  }
 0x30b   :  { %9346 = vmatpush1.bf16.msra.mxu0 %v15033_v7  ;;  %v15146_v7 = vld [vmem:[#allocation8 + $0x14] ss:$88 sps:$4 sm:$0xff]  }
 0x30c   :  { %9347 = vmatprep.subr.bf16.mxu0 %v15038_v38  ;;  %9246 = vmatpush1.bf16.msra.mxu1 %v15060_v51  ;;  %v15105_v38 = vld [vmem:[#allocation8 + $0x1c38] ss:$88 sps:$4 sm:$0xff]   ;;  %v15113_v51 = vld [vmem:[#allocation8 + $0x1cec] ss:$88 sps:$4 sm:$0xff]  }
 0x30d   :  { %9247 = vmatprep.subr.bf16.mxu1 %v15068_v22  ;;  %v15111_v22 = vld [vmem:[#allocation8 + $0x1ce8] ss:$88 sps:$4 sm:$0xff]  }
 0x30f   :  { %9348 = vmatpush1.bf16.msra.mxu0 %v15036_v55  ;;  %v15119_v55 = vld [vmem:[#allocation8 + $0x1d9c] ss:$88 sps:$4 sm:$0xff]  }
 0x310   :  { %9349 = vmatprep.subr.bf16.mxu0 %v15041_v47  ;;  %9248 = vmatpush1.bf16.msra.mxu1 %v15066_v41  ;;  %v15117_v47 = vld [vmem:[#allocation8 + $0x1d98] ss:$88 sps:$4 sm:$0xff]   ;;  %v15125_v41 = vld [vmem:[#allocation8 + $0x1e4c] ss:$88 sps:$4 sm:$0xff]  }
 0x311   :  { %9249 = vmatprep.subr.bf16.mxu1 %v15074_v50  ;;  %v15123_v50 = vld [vmem:[#allocation8 + $0x1e48] ss:$88 sps:$4 sm:$0xff]  }
 0x313   :  { %9350 = vmatpush1.bf16.msra.mxu0 %v15039_v53  ;;  %v15131_v53 = vld [vmem:[#allocation8 + $0x1efc] ss:$88 sps:$4 sm:$0xff]  }
 0x314   :  { %9351 = vmatprep.subr.bf16.mxu0 %v15044_v14  ;;  %9250 = vmatpush1.bf16.msra.mxu1 %v15072_v60  ;;  %v15129_v14 = vld [vmem:[#allocation8 + $0x1ef8] ss:$88 sps:$4 sm:$0xff]   ;;  %v15137_v60 = vld [vmem:[#allocation8 + $0x1fac] ss:$88 sps:$4 sm:$0xff]  }
 0x315   :  { %9251 = vmatprep.subr.bf16.mxu1 %v15080_v61  ;;  %v15135_v61 = vld [vmem:[#allocation8 + $0x1fa8] ss:$88 sps:$4 sm:$0xff]  }
 0x317   :  { %9352 = vmatpush1.bf16.msra.mxu0 %v15042_v5  ;;  %v15143_v5 = vld [vmem:[#allocation8 + $0x205c] ss:$88 sps:$4 sm:$0xff]  }
 0x318   :  { %9353 = vmatprep.subr.bf16.mxu0 %v15047_v16  ;;  %9252 = vmatpush1.bf16.msra.mxu1 %v15078_v26  ;;  %v15141_v16 = vld [vmem:[#allocation8 + $0x2058] ss:$88 sps:$4 sm:$0xff]   ;;  %v15149_v26 = vld [vmem:[#allocation8 + $0x1c] ss:$88 sps:$4 sm:$0xff]  }
 0x319   :  { %9253 = vmatprep.subr.bf16.mxu1 %v15086_v6  ;;  %v17284_v6 = vsub.s32 4, %v17240_v3 }
 0x31b   :  { %9354 = vmatpush1.bf16.msra.mxu0 %v15045_v10  ;;  %v17287_v10 = vsub.s32 5, %v17240_v3 }
 0x31c   :  { %9364 = vmatprep.subr.bf16.mxu0 %v15053_v0  ;;  %9254 = vmatpush1.bf16.msra.mxu1 %v15084_v15  ;;  %v16639_v0 = vld [vmem:[#allocation7] sm:$0x3f] }
 0x31d   :  { %9255 = vmatprep.subr.bf16.mxu1 %v15092_v23  ;;  %v794_v15 = vrot.slane %v16639_v0, %v17284_v6  ;;  %v798_v23 = vrot.slane %v16639_v0, %v17287_v10  ;;  %v15204_v0 = vld [vmem:[#allocation8 + $0x6f0] ss:$88 sps:$4 sm:$0xff]  }
 0x31e   :  { %9356 = vmatmul.mubr.bf16.vlgmr.msra.gmra.mrb[8].mxu0 %v17279_v62 }
 0x31f   :  { %9365 = vmatpush1.bf16.msra.mxu0 %v15051_v24 }
 0x320   :  { %9366 = vmatprep.subr.bf16.mxu0 %v15059_v25  ;;  %9256 = vmatpush1.bf16.msra.mxu1 %v15090_v58 }
 0x321   :  { %9257 = vmatprep.subr.bf16.mxu1 %v15098_v43 }
 0x323   :  { %9367 = vmatpush1.bf16.msra.mxu0 %v15057_v27 }
 0x324   :  { %9368 = vmatprep.subr.bf16.mxu0 %v15065_v11  ;;  %9258 = vmatpush1.bf16.msra.mxu1 %v15096_v19 }
 0x325   :  { %9259 = vmatprep.subr.bf16.mxu1 %v15104_v56  ;;  %v15144_v56 = vld [vmem:[#allocation8 + $0x10] ss:$88 sps:$4 sm:$0xff]  }
 0x327   :  { %9369 = vmatpush1.bf16.msra.mxu0 %v15063_v28  ;;  %v15147_v28 = vld [vmem:[#allocation8 + $0x18] ss:$88 sps:$4 sm:$0xff]  }
 0x328   :  { %9370 = vmatprep.subr.bf16.mxu0 %v15071_v13  ;;  %9260 = vmatpush1.bf16.msra.mxu1 %v15102_v29 }
 0x329   :  { %9261 = vmatprep.subr.bf16.mxu1 %v15110_v32  ;;  %v15152_v32 = vld [vmem:[#allocation8 + $0xc4] ss:$88 sps:$4 sm:$0xff]  }
 0x32b   :  { %9371 = vmatpush1.bf16.msra.mxu0 %v15069_v33  ;;  %v15155_v33 = vld [vmem:[#allocation8 + $0xcc] ss:$88 sps:$4 sm:$0xff]  }
 0x32c   :  { %9372 = vmatprep.subr.bf16.mxu0 %v15077_v52  ;;  %9262 = vmatpush1.bf16.msra.mxu1 %v15108_v34  ;;  %v15150_v34 = vld [vmem:[#allocation8 + $0xc0] ss:$88 sps:$4 sm:$0xff]  }
 0x32d   :  { %9263 = vmatprep.subr.bf16.mxu1 %v15116_v40  ;;  %v15153_v40 = vld [vmem:[#allocation8 + $0xc8] ss:$88 sps:$4 sm:$0xff]  }
 0x32f   :  { %9373 = vmatpush1.bf16.msra.mxu0 %v15075_v31  ;;  %v15158_v31 = vld [vmem:[#allocation8 + $0x174] ss:$88 sps:$4 sm:$0xff]  }
 0x330   :  { %9374 = vmatprep.subr.bf16.mxu0 %v15083_v18  ;;  %9264 = vmatpush1.bf16.msra.mxu1 %v15114_v12  ;;  %v15161_v18 = vld [vmem:[#allocation8 + $0x17c] ss:$88 sps:$4 sm:$0xff]   ;;  %v15156_v12 = vld [vmem:[#allocation8 + $0x170] ss:$88 sps:$4 sm:$0xff]  }
 0x331   :  { %9265 = vmatprep.subr.bf16.mxu1 %v15122_v35  ;;  %v15159_v35 = vld [vmem:[#allocation8 + $0x178] ss:$88 sps:$4 sm:$0xff]  }
 0x333   :  { %9375 = vmatpush1.bf16.msra.mxu0 %v15081_v44  ;;  %v15164_v44 = vld [vmem:[#allocation8 + $0x224] ss:$88 sps:$4 sm:$0xff]  }
 0x334   :  { %9376 = vmatprep.subr.bf16.mxu0 %v15089_v4  ;;  %9266 = vmatpush1.bf16.msra.mxu1 %v15120_v21  ;;  %v15167_v4 = vld [vmem:[#allocation8 + $0x22c] ss:$88 sps:$4 sm:$0xff]   ;;  %v15162_v21 = vld [vmem:[#allocation8 + $0x220] ss:$88 sps:$4 sm:$0xff]  }
 0x335   :  { %9267 = vmatprep.subr.bf16.mxu1 %v15128_v39  ;;  %v15165_v39 = vld [vmem:[#allocation8 + $0x228] ss:$88 sps:$4 sm:$0xff]  }
 0x337   :  { %9377 = vmatpush1.bf16.msra.mxu0 %v15087_v46  ;;  %v15170_v46 = vld [vmem:[#allocation8 + $0x2d4] ss:$88 sps:$4 sm:$0xff]  }
 0x338   :  { %9378 = vmatprep.subr.bf16.mxu0 %v15095_v17  ;;  %9268 = vmatpush1.bf16.msra.mxu1 %v15126_v63  ;;  %v15173_v17 = vld [vmem:[#allocation8 + $0x2dc] ss:$88 sps:$4 sm:$0xff]   ;;  %v15168_v63 = vld [vmem:[#allocation8 + $0x2d0] ss:$88 sps:$4 sm:$0xff]  }
 0x339   :  { %9269 = vmatprep.subr.bf16.mxu1 %v15134_v9  ;;  %v15171_v9 = vld [vmem:[#allocation8 + $0x2d8] ss:$88 sps:$4 sm:$0xff]  }
 0x33b   :  { %9379 = vmatpush1.bf16.msra.mxu0 %v15093_v30  ;;  %v15176_v30 = vld [vmem:[#allocation8 + $0x384] ss:$88 sps:$4 sm:$0xff]  }
 0x33c   :  { %9380 = vmatprep.subr.bf16.mxu0 %v15101_v49  ;;  %9270 = vmatpush1.bf16.msra.mxu1 %v15132_v57  ;;  %v15179_v49 = vld [vmem:[#allocation8 + $0x38c] ss:$88 sps:$4 sm:$0xff]   ;;  %v15174_v57 = vld [vmem:[#allocation8 + $0x380] ss:$88 sps:$4 sm:$0xff]  }
 0x33d   :  { %9271 = vmatprep.subr.bf16.mxu1 %v15140_v1  ;;  %v15177_v1 = vld [vmem:[#allocation8 + $0x388] ss:$88 sps:$4 sm:$0xff]  }
 0x33f   :  { %9381 = vmatpush1.bf16.msra.mxu0 %v15099_v37  ;;  %v15182_v37 = vld [vmem:[#allocation8 + $0x434] ss:$88 sps:$4 sm:$0xff]  }
 0x340   :  { %9382 = vmatprep.subr.bf16.mxu0 %v15107_v59  ;;  %9272 = vmatpush1.bf16.msra.mxu1 %v15138_v8  ;;  %v15185_v59 = vld [vmem:[#allocation8 + $0x43c] ss:$88 sps:$4 sm:$0xff]   ;;  %v15180_v8 = vld [vmem:[#allocation8 + $0x430] ss:$88 sps:$4 sm:$0xff]  }
 0x341   :  { %9405 = vmatprep.subr.bf16.mxu1 %v15146_v7  ;;  %v15183_v7 = vld [vmem:[#allocation8 + $0x438] ss:$88 sps:$4 sm:$0xff]  }
 0x343   :  { %9383 = vmatpush1.bf16.msra.mxu0 %v15105_v38  ;;  %v15188_v38 = vld [vmem:[#allocation8 + $0x4e4] ss:$88 sps:$4 sm:$0xff]  }
 0x344   :  { %9384 = vmatprep.subr.bf16.mxu0 %v15113_v51  ;;  %v15191_v51 = vld [vmem:[#allocation8 + $0x4ec] ss:$88 sps:$4 sm:$0xff]  }
 0x347   :  { %9385 = vmatpush1.bf16.msra.mxu0 %v15111_v22  ;;  %v15186_v22 = vld [vmem:[#allocation8 + $0x4e0] ss:$88 sps:$4 sm:$0xff]  }
 0x348   :  { %9386 = vmatprep.subr.bf16.mxu0 %v15119_v55  ;;  %v15189_v55 = vld [vmem:[#allocation8 + $0x4e8] ss:$88 sps:$4 sm:$0xff]  }
 0x34b   :  { %9387 = vmatpush1.bf16.msra.mxu0 %v15117_v47  ;;  %v15194_v47 = vld [vmem:[#allocation8 + $0x594] ss:$88 sps:$4 sm:$0xff]  }
 0x34c   :  { %9388 = vmatprep.subr.bf16.mxu0 %v15125_v41  ;;  %v15197_v41 = vld [vmem:[#allocation8 + $0x59c] ss:$88 sps:$4 sm:$0xff]  }
 0x34f   :  { %9389 = vmatpush1.bf16.msra.mxu0 %v15123_v50  ;;  %v15192_v50 = vld [vmem:[#allocation8 + $0x590] ss:$88 sps:$4 sm:$0xff]  }
 0x350   :  { %9390 = vmatprep.subr.bf16.mxu0 %v15131_v53  ;;  %v15195_v53 = vld [vmem:[#allocation8 + $0x598] ss:$88 sps:$4 sm:$0xff]  }
 0x353   :  { %9391 = vmatpush1.bf16.msra.mxu0 %v15129_v14  ;;  %v15200_v14 = vld [vmem:[#allocation8 + $0x644] ss:$88 sps:$4 sm:$0xff]  }
 0x354   :  { %9392 = vmatprep.subr.bf16.mxu0 %v15137_v60  ;;  %v15203_v60 = vld [vmem:[#allocation8 + $0x64c] ss:$88 sps:$4 sm:$0xff]  }
 0x357   :  { %9393 = vmatpush1.bf16.msra.mxu0 %v15135_v61  ;;  %v15198_v61 = vld [vmem:[#allocation8 + $0x640] ss:$88 sps:$4 sm:$0xff]  }
 0x358   :  { %9394 = vmatprep.subr.bf16.mxu0 %v15143_v5  ;;  %v15201_v5 = vld [vmem:[#allocation8 + $0x648] ss:$88 sps:$4 sm:$0xff]  }
 0x35b   :  { %9395 = vmatpush1.bf16.msra.mxu0 %v15141_v16  ;;  %v15206_v16 = vld [vmem:[#allocation8 + $0x6f4] ss:$88 sps:$4 sm:$0xff]  }
 0x35c   :  { %9528 = vmatprep.subr.bf16.mxu0 %v15149_v26  ;;  %v15209_v26 = vld [vmem:[#allocation8 + $0x6fc] ss:$88 sps:$4 sm:$0xff]  }
 0x371   :  { %v2688_v24 = vpop.f32.mrb[4].mxu0 }
 0x372   :  { %v14267_v25 = vadd.f32 %v2688_v24, %v794_v15  ;;  %v2690_v58 = vpop.f32.mrb[5].mxu0  ;;  %v15207_v15 = vld [vmem:[#allocation8 + $0x6f8] ss:$88 sps:$4 sm:$0xff]   ;;  %v15215_v24 = vld [vmem:[#allocation8 + $0x7ac] ss:$88 sps:$4 sm:$0xff]  }
 0x373   :  { %v14268_v43 = vadd.f32 %v2690_v58, %v798_v23  ;;  %v2692_v27 = vpop.f32.mrb[6].mxu0  ;;  %v15212_v23 = vld [vmem:[#allocation8 + $0x7a4] ss:$88 sps:$4 sm:$0xff]   ;;  %v15213_v58 = vld [vmem:[#allocation8 + $0x7a8] ss:$88 sps:$4 sm:$0xff]  }
 0x374   :  { %16635 = vtanh.f32 %v14267_v25  ;;  %v2693_v11 = vpop.f32.mrb[7].mxu0  ;;  %v15210_v25 = vld [vmem:[#allocation8 + $0x7a0] ss:$88 sps:$4 sm:$0xff]   ;;  %v15221_v27 = vld [vmem:[#allocation8 + $0x85c] ss:$88 sps:$4 sm:$0xff]  }
 0x375   :  { %16637 = vtanh.f32 %v14268_v43  ;;  %v15218_v43 = vld [vmem:[#allocation8 + $0x854] ss:$88 sps:$4 sm:$0xff]   ;;  %v15216_v11 = vld [vmem:[#allocation8 + $0x850] ss:$88 sps:$4 sm:$0xff]  }
 0x37e   :  { %v16636_v19 = vpop.eup %16635 }
 0x37f   :  { %v16638_v13 = vpop.eup %16637  ;;  %v17293_v52 = vpack.c.bf16 %v16636_v19, %v16636_v19  ;;  %v15219_v19 = vld [vmem:[#allocation8 + $0x858] ss:$88 sps:$4 sm:$0xff]  }
 0x380   :  { %v17291_v29 = vpack.c.bf16 %v16638_v13, %v16638_v13  ;;  %v15222_v13 = vld [vmem:[#allocation8 + $0x900] ss:$88 sps:$4 sm:$0xff]  }
 0x382   :  { %9273 = vmatprep.mubr.bf16.mxu1 %v17291_v29  ;;  %9396 = vmatprep.mubr.bf16.mxu0 %v17291_v29 }
 0x383   :  { %9274 = vmatmul.mubr.bf16.vlgmr.msra.gmra.mrb[4].mxu1 %v17293_v52  ;;  %9397 = vmatmul.mubr.bf16.vlgmr.msra.gmra.mrb[8].mxu0 %v17293_v52 }
 0x384   :  { %9406 = vmatpush1.bf16.msra.mxu1 %v15144_v56  ;;  %9529 = vmatpush1.bf16.msra.mxu0 %v15147_v28  ;;  %v15224_v56 = vld [vmem:[#allocation8 + $0x904] ss:$88 sps:$4 sm:$0xff]  }
 0x385   :  { %9437 = vmatprep.mubr.bf16.mxu1 %v17261_v48  ;;  %9560 = vmatprep.mubr.bf16.mxu0 %v17261_v48  ;;  %v15227_v28 = vld [vmem:[#allocation8 + $0x90c] ss:$88 sps:$4 sm:$0xff]  }
 0x386   :  { %9407 = vmatprep.subr.bf16.mxu1 %v15152_v32  ;;  %9530 = vmatprep.subr.bf16.mxu0 %v15155_v33  ;;  %v15225_v32 = vld [vmem:[#allocation8 + $0x908] ss:$88 sps:$4 sm:$0xff]   ;;  %v15230_v33 = vld [vmem:[#allocation8 + $0x9b4] ss:$88 sps:$4 sm:$0xff]  }
 0x388   :  { %9408 = vmatpush1.bf16.msra.mxu1 %v15150_v34  ;;  %9531 = vmatpush1.bf16.msra.mxu0 %v15153_v40  ;;  %v15233_v34 = vld [vmem:[#allocation8 + $0x9bc] ss:$88 sps:$4 sm:$0xff]   ;;  %v15228_v40 = vld [vmem:[#allocation8 + $0x9b0] ss:$88 sps:$4 sm:$0xff]  }
 0x389   :  { %9409 = vmatprep.subr.bf16.mxu1 %v15158_v31  ;;  %9532 = vmatprep.subr.bf16.mxu0 %v15161_v18  ;;  %v15231_v31 = vld [vmem:[#allocation8 + $0x9b8] ss:$88 sps:$4 sm:$0xff]   ;;  %v15236_v18 = vld [vmem:[#allocation8 + $0xa64] ss:$88 sps:$4 sm:$0xff]  }
 0x38c   :  { %9410 = vmatpush1.bf16.msra.mxu1 %v15156_v12  ;;  %9533 = vmatpush1.bf16.msra.mxu0 %v15159_v35  ;;  %v15239_v12 = vld [vmem:[#allocation8 + $0xa6c] ss:$88 sps:$4 sm:$0xff]   ;;  %v15234_v35 = vld [vmem:[#allocation8 + $0xa60] ss:$88 sps:$4 sm:$0xff]  }
 0x38d   :  { %9411 = vmatprep.subr.bf16.mxu1 %v15164_v44  ;;  %9534 = vmatprep.subr.bf16.mxu0 %v15167_v4  ;;  %v15237_v44 = vld [vmem:[#allocation8 + $0xa68] ss:$88 sps:$4 sm:$0xff]   ;;  %v15242_v4 = vld [vmem:[#allocation8 + $0xb14] ss:$88 sps:$4 sm:$0xff]  }
 0x390   :  { %9412 = vmatpush1.bf16.msra.mxu1 %v15162_v21  ;;  %9535 = vmatpush1.bf16.msra.mxu0 %v15165_v39  ;;  %v15245_v21 = vld [vmem:[#allocation8 + $0xb1c] ss:$88 sps:$4 sm:$0xff]   ;;  %v15240_v39 = vld [vmem:[#allocation8 + $0xb10] ss:$88 sps:$4 sm:$0xff]  }
 0x391   :  { %9413 = vmatprep.subr.bf16.mxu1 %v15170_v46  ;;  %9536 = vmatprep.subr.bf16.mxu0 %v15173_v17  ;;  %v15243_v46 = vld [vmem:[#allocation8 + $0xb18] ss:$88 sps:$4 sm:$0xff]   ;;  %v15248_v17 = vld [vmem:[#allocation8 + $0xbc4] ss:$88 sps:$4 sm:$0xff]  }
 0x394   :  { %9414 = vmatpush1.bf16.msra.mxu1 %v15168_v63  ;;  %9537 = vmatpush1.bf16.msra.mxu0 %v15171_v9  ;;  %v15251_v63 = vld [vmem:[#allocation8 + $0xbcc] ss:$88 sps:$4 sm:$0xff]   ;;  %v15246_v9 = vld [vmem:[#allocation8 + $0xbc0] ss:$88 sps:$4 sm:$0xff]  }
 0x395   :  { %9415 = vmatprep.subr.bf16.mxu1 %v15176_v30  ;;  %9538 = vmatprep.subr.bf16.mxu0 %v15179_v49  ;;  %v15249_v30 = vld [vmem:[#allocation8 + $0xbc8] ss:$88 sps:$4 sm:$0xff]   ;;  %v15254_v49 = vld [vmem:[#allocation8 + $0xc74] ss:$88 sps:$4 sm:$0xff]  }
 0x398   :  { %9416 = vmatpush1.bf16.msra.mxu1 %v15174_v57  ;;  %9539 = vmatpush1.bf16.msra.mxu0 %v15177_v1  ;;  %v15257_v57 = vld [vmem:[#allocation8 + $0xc7c] ss:$88 sps:$4 sm:$0xff]   ;;  %v15252_v1 = vld [vmem:[#allocation8 + $0xc70] ss:$88 sps:$4 sm:$0xff]  }
 0x399   :  { %9417 = vmatprep.subr.bf16.mxu1 %v15182_v37  ;;  %9540 = vmatprep.subr.bf16.mxu0 %v15185_v59  ;;  %v15255_v37 = vld [vmem:[#allocation8 + $0xc78] ss:$88 sps:$4 sm:$0xff]   ;;  %v15260_v59 = vld [vmem:[#allocation8 + $0xd24] ss:$88 sps:$4 sm:$0xff]  }
 0x39c   :  { %9418 = vmatpush1.bf16.msra.mxu1 %v15180_v8  ;;  %9541 = vmatpush1.bf16.msra.mxu0 %v15183_v7  ;;  %v15258_v8 = vld [vmem:[#allocation8 + $0xd20] ss:$88 sps:$4 sm:$0xff]   ;;  %v15263_v7 = vld [vmem:[#allocation8 + $0xd2c] ss:$88 sps:$4 sm:$0xff]  }
 0x39d   :  { %9419 = vmatprep.subr.bf16.mxu1 %v15188_v38  ;;  %9542 = vmatprep.subr.bf16.mxu0 %v15191_v51  ;;  %v15261_v38 = vld [vmem:[#allocation8 + $0xd28] ss:$88 sps:$4 sm:$0xff]   ;;  %v15266_v51 = vld [vmem:[#allocation8 + $0xdd4] ss:$88 sps:$4 sm:$0xff]  }
 0x3a0   :  { %9420 = vmatpush1.bf16.msra.mxu1 %v15186_v22  ;;  %9543 = vmatpush1.bf16.msra.mxu0 %v15189_v55  ;;  %v15264_v22 = vld [vmem:[#allocation8 + $0xdd0] ss:$88 sps:$4 sm:$0xff]   ;;  %v15269_v55 = vld [vmem:[#allocation8 + $0xddc] ss:$88 sps:$4 sm:$0xff]  }
 0x3a1   :  { %9421 = vmatprep.subr.bf16.mxu1 %v15194_v47  ;;  %9544 = vmatprep.subr.bf16.mxu0 %v15197_v41  ;;  %v15267_v47 = vld [vmem:[#allocation8 + $0xdd8] ss:$88 sps:$4 sm:$0xff]   ;;  %v15272_v41 = vld [vmem:[#allocation8 + $0xe84] ss:$88 sps:$4 sm:$0xff]  }
 0x3a4   :  { %9422 = vmatpush1.bf16.msra.mxu1 %v15192_v50  ;;  %9545 = vmatpush1.bf16.msra.mxu0 %v15195_v53  ;;  %v15270_v50 = vld [vmem:[#allocation8 + $0xe80] ss:$88 sps:$4 sm:$0xff]   ;;  %v15275_v53 = vld [vmem:[#allocation8 + $0xe8c] ss:$88 sps:$4 sm:$0xff]  }
 0x3a5   :  { %9423 = vmatprep.subr.bf16.mxu1 %v15200_v14  ;;  %9546 = vmatprep.subr.bf16.mxu0 %v15203_v60  ;;  %v15273_v14 = vld [vmem:[#allocation8 + $0xe88] ss:$88 sps:$4 sm:$0xff]   ;;  %v15278_v60 = vld [vmem:[#allocation8 + $0xf34] ss:$88 sps:$4 sm:$0xff]  }
 0x3a8   :  { %9424 = vmatpush1.bf16.msra.mxu1 %v15198_v61  ;;  %9547 = vmatpush1.bf16.msra.mxu0 %v15201_v5  ;;  %v15281_v61 = vld [vmem:[#allocation8 + $0xf3c] ss:$88 sps:$4 sm:$0xff]   ;;  %v15276_v5 = vld [vmem:[#allocation8 + $0xf30] ss:$88 sps:$4 sm:$0xff]  }
 0x3a9   :  { %9425 = vmatprep.subr.bf16.mxu1 %v15206_v16  ;;  %9548 = vmatprep.subr.bf16.mxu0 %v15209_v26  ;;  %v15279_v16 = vld [vmem:[#allocation8 + $0xf38] ss:$88 sps:$4 sm:$0xff]   ;;  %v15284_v26 = vld [vmem:[#allocation8 + $0xfe4] ss:$88 sps:$4 sm:$0xff]  }
 0x3ac   :  { %9426 = vmatpush1.bf16.msra.mxu1 %v15204_v0  ;;  %9549 = vmatpush1.bf16.msra.mxu0 %v15207_v15  ;;  %v15287_v0 = vld [vmem:[#allocation8 + $0xfec] ss:$88 sps:$4 sm:$0xff]   ;;  %v15282_v15 = vld [vmem:[#allocation8 + $0xfe0] ss:$88 sps:$4 sm:$0xff]  }
 0x3ad   :  { %9427 = vmatprep.subr.bf16.mxu1 %v15212_v23  ;;  %9550 = vmatprep.subr.bf16.mxu0 %v15215_v24  ;;  %v15285_v23 = vld [vmem:[#allocation8 + $0xfe8] ss:$88 sps:$4 sm:$0xff]   ;;  %v15290_v24 = vld [vmem:[#allocation8 + $0x1094] ss:$88 sps:$4 sm:$0xff]  }
 0x3b0   :  { %9428 = vmatpush1.bf16.msra.mxu1 %v15210_v25  ;;  %9551 = vmatpush1.bf16.msra.mxu0 %v15213_v58  ;;  %v15293_v25 = vld [vmem:[#allocation8 + $0x109c] ss:$88 sps:$4 sm:$0xff]   ;;  %v15288_v58 = vld [vmem:[#allocation8 + $0x1090] ss:$88 sps:$4 sm:$0xff]  }
 0x3b1   :  { %9429 = vmatprep.subr.bf16.mxu1 %v15218_v43  ;;  %9552 = vmatprep.subr.bf16.mxu0 %v15221_v27  ;;  %v15291_v43 = vld [vmem:[#allocation8 + $0x1098] ss:$88 sps:$4 sm:$0xff]   ;;  %v15296_v27 = vld [vmem:[#allocation8 + $0x1144] ss:$88 sps:$4 sm:$0xff]  }
 0x3b4   :  { %9430 = vmatpush1.bf16.msra.mxu1 %v15216_v11  ;;  %9553 = vmatpush1.bf16.msra.mxu0 %v15219_v19  ;;  %v15299_v11 = vld [vmem:[#allocation8 + $0x114c] ss:$88 sps:$4 sm:$0xff]   ;;  %v15294_v19 = vld [vmem:[#allocation8 + $0x1140] ss:$88 sps:$4 sm:$0xff]  }
 0x3b5   :  { %9431 = vmatprep.subr.bf16.mxu1 %v15224_v56  ;;  %9554 = vmatprep.subr.bf16.mxu0 %v15227_v28  ;;  %v15297_v56 = vld [vmem:[#allocation8 + $0x1148] ss:$88 sps:$4 sm:$0xff]   ;;  %v15302_v28 = vld [vmem:[#allocation8 + $0x11f4] ss:$88 sps:$4 sm:$0xff]  }
 0x3b8   :  { %9432 = vmatpush1.bf16.msra.mxu1 %v15222_v13  ;;  %9555 = vmatpush1.bf16.msra.mxu0 %v15225_v32  ;;  %v15305_v13 = vld [vmem:[#allocation8 + $0x11fc] ss:$88 sps:$4 sm:$0xff]   ;;  %v15300_v32 = vld [vmem:[#allocation8 + $0x11f0] ss:$88 sps:$4 sm:$0xff]  }
 0x3b9   :  { %9433 = vmatprep.subr.bf16.mxu1 %v15230_v33  ;;  %9556 = vmatprep.subr.bf16.mxu0 %v15233_v34  ;;  %v15303_v33 = vld [vmem:[#allocation8 + $0x11f8] ss:$88 sps:$4 sm:$0xff]   ;;  %v15308_v34 = vld [vmem:[#allocation8 + $0x12a4] ss:$88 sps:$4 sm:$0xff]  }
 0x3bc   :  { %9434 = vmatpush1.bf16.msra.mxu1 %v15228_v40  ;;  %9557 = vmatpush1.bf16.msra.mxu0 %v15231_v31  ;;  %v15311_v40 = vld [vmem:[#allocation8 + $0x12ac] ss:$88 sps:$4 sm:$0xff]   ;;  %v15306_v31 = vld [vmem:[#allocation8 + $0x12a0] ss:$88 sps:$4 sm:$0xff]  }
 0x3bd   :  { %9435 = vmatprep.subr.bf16.mxu1 %v15236_v18  ;;  %9558 = vmatprep.subr.bf16.mxu0 %v15239_v12  ;;  %v15309_v18 = vld [vmem:[#allocation8 + $0x12a8] ss:$88 sps:$4 sm:$0xff]   ;;  %v15314_v12 = vld [vmem:[#allocation8 + $0x1354] ss:$88 sps:$4 sm:$0xff]  }
 0x3c0   :  { %9436 = vmatpush1.bf16.msra.mxu1 %v15234_v35  ;;  %9559 = vmatpush1.bf16.msra.mxu0 %v15237_v44  ;;  %v15317_v35 = vld [vmem:[#allocation8 + $0x135c] ss:$88 sps:$4 sm:$0xff]   ;;  %v15312_v44 = vld [vmem:[#allocation8 + $0x1350] ss:$88 sps:$4 sm:$0xff]  }
 0x3c1   :  { %9446 = vmatprep.subr.bf16.mxu1 %v15242_v4  ;;  %9569 = vmatprep.subr.bf16.mxu0 %v15245_v21  ;;  %v15315_v4 = vld [vmem:[#allocation8 + $0x1358] ss:$88 sps:$4 sm:$0xff]   ;;  %v15320_v21 = vld [vmem:[#allocation8 + $0x1404] ss:$88 sps:$4 sm:$0xff]  }
 0x3c3   :  { %9438 = vmatmul.mubr.bf16.vlgmr.msra.gmra.mrb[8].mxu1 %v17263_v45  ;;  %9561 = vmatmul.mubr.bf16.vlgmr.msra.gmra.mrb[12].mxu0 %v17263_v45 }
 0x3c4   :  { %9447 = vmatpush1.bf16.msra.mxu1 %v15240_v39  ;;  %9478 = vmatprep.mubr.bf16.mxu1 %v17265_v36  ;;  %v15323_v39 = vld [vmem:[#allocation8 + $0x140c] ss:$88 sps:$4 sm:$0xff]  }
 0x3c5   :  { %9570 = vmatpush1.bf16.msra.mxu0 %v15243_v46  ;;  %9601 = vmatprep.mubr.bf16.mxu0 %v17265_v36  ;;  %v15318_v46 = vld [vmem:[#allocation8 + $0x1400] ss:$88 sps:$4 sm:$0xff]  }
 0x3c6   :  { %9448 = vmatprep.subr.bf16.mxu1 %v15248_v17  ;;  %9571 = vmatprep.subr.bf16.mxu0 %v15251_v63  ;;  %v15321_v17 = vld [vmem:[#allocation8 + $0x1408] ss:$88 sps:$4 sm:$0xff]   ;;  %v15326_v63 = vld [vmem:[#allocation8 + $0x14b4] ss:$88 sps:$4 sm:$0xff]  }
 0x3c8   :  { %9449 = vmatpush1.bf16.msra.mxu1 %v15246_v9  ;;  %v15329_v9 = vld [vmem:[#allocation8 + $0x14bc] ss:$88 sps:$4 sm:$0xff]  }
 0x3c9   :  { %9572 = vmatpush1.bf16.msra.mxu0 %v15249_v30  ;;  %9450 = vmatprep.subr.bf16.mxu1 %v15254_v49  ;;  %v15324_v30 = vld [vmem:[#allocation8 + $0x14b0] ss:$88 sps:$4 sm:$0xff]  }
 0x3ca   :  { %9573 = vmatprep.subr.bf16.mxu0 %v15257_v57  ;;  %v15327_v49 = vld [vmem:[#allocation8 + $0x14b8] ss:$88 sps:$4 sm:$0xff]   ;;  %v15332_v57 = vld [vmem:[#allocation8 + $0x1564] ss:$88 sps:$4 sm:$0xff]  }
 0x3cc   :  { %9451 = vmatpush1.bf16.msra.mxu1 %v15252_v1  ;;  %v15335_v1 = vld [vmem:[#allocation8 + $0x156c] ss:$88 sps:$4 sm:$0xff]  }
 0x3cd   :  { %9574 = vmatpush1.bf16.msra.mxu0 %v15255_v37  ;;  %9452 = vmatprep.subr.bf16.mxu1 %v15260_v59  ;;  %v15330_v37 = vld [vmem:[#allocation8 + $0x1560] ss:$88 sps:$4 sm:$0xff]  }
 0x3ce   :  { %9575 = vmatprep.subr.bf16.mxu0 %v15263_v7  ;;  %v15333_v59 = vld [vmem:[#allocation8 + $0x1568] ss:$88 sps:$4 sm:$0xff]   ;;  %v15341_v7 = vld [vmem:[#allocation8 + $0x161c] ss:$88 sps:$4 sm:$0xff]  }
 0x3d0   :  { %9453 = vmatpush1.bf16.msra.mxu1 %v15258_v8  ;;  %v15338_v8 = vld [vmem:[#allocation8 + $0x1614] ss:$88 sps:$4 sm:$0xff]  }
 0x3d1   :  { %9576 = vmatpush1.bf16.msra.mxu0 %v15261_v38  ;;  %9454 = vmatprep.subr.bf16.mxu1 %v15266_v51  ;;  %v15336_v38 = vld [vmem:[#allocation8 + $0x1610] ss:$88 sps:$4 sm:$0xff]  }
 0x3d2   :  { %9577 = vmatprep.subr.bf16.mxu0 %v15269_v55  ;;  %v15339_v51 = vld [vmem:[#allocation8 + $0x1618] ss:$88 sps:$4 sm:$0xff]   ;;  %v15347_v55 = vld [vmem:[#allocation8 + $0x16cc] ss:$88 sps:$4 sm:$0xff]  }
 0x3d4   :  { %9455 = vmatpush1.bf16.msra.mxu1 %v15264_v22  ;;  %v15344_v22 = vld [vmem:[#allocation8 + $0x16c4] ss:$88 sps:$4 sm:$0xff]  }
 0x3d5   :  { %9578 = vmatpush1.bf16.msra.mxu0 %v15267_v47  ;;  %9456 = vmatprep.subr.bf16.mxu1 %v15272_v41  ;;  %v15342_v47 = vld [vmem:[#allocation8 + $0x16c0] ss:$88 sps:$4 sm:$0xff]  }
 0x3d6   :  { %9579 = vmatprep.subr.bf16.mxu0 %v15275_v53  ;;  %v15345_v41 = vld [vmem:[#allocation8 + $0x16c8] ss:$88 sps:$4 sm:$0xff]   ;;  %v15353_v53 = vld [vmem:[#allocation8 + $0x177c] ss:$88 sps:$4 sm:$0xff]  }
 0x3d8   :  { %9457 = vmatpush1.bf16.msra.mxu1 %v15270_v50  ;;  %v15350_v50 = vld [vmem:[#allocation8 + $0x1774] ss:$88 sps:$4 sm:$0xff]  }
 0x3d9   :  { %9580 = vmatpush1.bf16.msra.mxu0 %v15273_v14  ;;  %9458 = vmatprep.subr.bf16.mxu1 %v15278_v60  ;;  %v15348_v14 = vld [vmem:[#allocation8 + $0x1770] ss:$88 sps:$4 sm:$0xff]  }
 0x3da   :  { %9581 = vmatprep.subr.bf16.mxu0 %v15281_v61  ;;  %v15351_v60 = vld [vmem:[#allocation8 + $0x1778] ss:$88 sps:$4 sm:$0xff]   ;;  %v15356_v61 = vld [vmem:[#allocation8 + $0x1824] ss:$88 sps:$4 sm:$0xff]  }
 0x3dc   :  { %9459 = vmatpush1.bf16.msra.mxu1 %v15276_v5  ;;  %v15359_v5 = vld [vmem:[#allocation8 + $0x182c] ss:$88 sps:$4 sm:$0xff]  }
 0x3dd   :  { %9582 = vmatpush1.bf16.msra.mxu0 %v15279_v16  ;;  %9460 = vmatprep.subr.bf16.mxu1 %v15284_v26  ;;  %v15354_v16 = vld [vmem:[#allocation8 + $0x1820] ss:$88 sps:$4 sm:$0xff]  }
 0x3de   :  { %9583 = vmatprep.subr.bf16.mxu0 %v15287_v0  ;;  %v15357_v26 = vld [vmem:[#allocation8 + $0x1828] ss:$88 sps:$4 sm:$0xff]   ;;  %v15362_v0 = vld [vmem:[#allocation8 + $0x18d4] ss:$88 sps:$4 sm:$0xff]  }
 0x3e0   :  { %9461 = vmatpush1.bf16.msra.mxu1 %v15282_v15  ;;  %v15365_v15 = vld [vmem:[#allocation8 + $0x18dc] ss:$88 sps:$4 sm:$0xff]  }
 0x3e1   :  { %9584 = vmatpush1.bf16.msra.mxu0 %v15285_v23  ;;  %9462 = vmatprep.subr.bf16.mxu1 %v15290_v24  ;;  %v15360_v23 = vld [vmem:[#allocation8 + $0x18d0] ss:$88 sps:$4 sm:$0xff]  }
 0x3e2   :  { %9585 = vmatprep.subr.bf16.mxu0 %v15293_v25  ;;  %v15363_v24 = vld [vmem:[#allocation8 + $0x18d8] ss:$88 sps:$4 sm:$0xff]   ;;  %v15368_v25 = vld [vmem:[#allocation8 + $0x1984] ss:$88 sps:$4 sm:$0xff]  }
 0x3e4   :  { %9463 = vmatpush1.bf16.msra.mxu1 %v15288_v58  ;;  %v15371_v58 = vld [vmem:[#allocation8 + $0x198c] ss:$88 sps:$4 sm:$0xff]  }
 0x3e5   :  { %9586 = vmatpush1.bf16.msra.mxu0 %v15291_v43  ;;  %9464 = vmatprep.subr.bf16.mxu1 %v15296_v27  ;;  %v15366_v43 = vld [vmem:[#allocation8 + $0x1980] ss:$88 sps:$4 sm:$0xff]  }
 0x3e6   :  { %9587 = vmatprep.subr.bf16.mxu0 %v15299_v11  ;;  %v15369_v27 = vld [vmem:[#allocation8 + $0x1988] ss:$88 sps:$4 sm:$0xff]   ;;  %v15374_v11 = vld [vmem:[#allocation8 + $0x1a34] ss:$88 sps:$4 sm:$0xff]  }
 0x3e8   :  { %9465 = vmatpush1.bf16.msra.mxu1 %v15294_v19  ;;  %v15377_v19 = vld [vmem:[#allocation8 + $0x1a3c] ss:$88 sps:$4 sm:$0xff]  }
 0x3e9   :  { %9588 = vmatpush1.bf16.msra.mxu0 %v15297_v56  ;;  %9466 = vmatprep.subr.bf16.mxu1 %v15302_v28  ;;  %v15372_v56 = vld [vmem:[#allocation8 + $0x1a30] ss:$88 sps:$4 sm:$0xff]  }
 0x3ea   :  { %9589 = vmatprep.subr.bf16.mxu0 %v15305_v13  ;;  %v15375_v28 = vld [vmem:[#allocation8 + $0x1a38] ss:$88 sps:$4 sm:$0xff]   ;;  %v15380_v13 = vld [vmem:[#allocation8 + $0x1ae4] ss:$88 sps:$4 sm:$0xff]  }
 0x3ec   :  { %9467 = vmatpush1.bf16.msra.mxu1 %v15300_v32  ;;  %v15383_v32 = vld [vmem:[#allocation8 + $0x1aec] ss:$88 sps:$4 sm:$0xff]  }
 0x3ed   :  { %9590 = vmatpush1.bf16.msra.mxu0 %v15303_v33  ;;  %9468 = vmatprep.subr.bf16.mxu1 %v15308_v34  ;;  %v15378_v33 = vld [vmem:[#allocation8 + $0x1ae0] ss:$88 sps:$4 sm:$0xff]  }
 0x3ee   :  { %9591 = vmatprep.subr.bf16.mxu0 %v15311_v40  ;;  %v15381_v34 = vld [vmem:[#allocation8 + $0x1ae8] ss:$88 sps:$4 sm:$0xff]   ;;  %v15386_v40 = vld [vmem:[#allocation8 + $0x1b94] ss:$88 sps:$4 sm:$0xff]  }
 0x3f0   :  { %9469 = vmatpush1.bf16.msra.mxu1 %v15306_v31  ;;  %v15389_v31 = vld [vmem:[#allocation8 + $0x1b9c] ss:$88 sps:$4 sm:$0xff]  }
 0x3f1   :  { %9592 = vmatpush1.bf16.msra.mxu0 %v15309_v18  ;;  %9470 = vmatprep.subr.bf16.mxu1 %v15314_v12  ;;  %v15384_v18 = vld [vmem:[#allocation8 + $0x1b90] ss:$88 sps:$4 sm:$0xff]  }
 0x3f2   :  { %9593 = vmatprep.subr.bf16.mxu0 %v15317_v35  ;;  %v15387_v12 = vld [vmem:[#allocation8 + $0x1b98] ss:$88 sps:$4 sm:$0xff]   ;;  %v15392_v35 = vld [vmem:[#allocation8 + $0x1c44] ss:$88 sps:$4 sm:$0xff]  }
 0x3f4   :  { %9471 = vmatpush1.bf16.msra.mxu1 %v15312_v44  ;;  %v15395_v44 = vld [vmem:[#allocation8 + $0x1c4c] ss:$88 sps:$4 sm:$0xff]  }
 0x3f5   :  { %9594 = vmatpush1.bf16.msra.mxu0 %v15315_v4  ;;  %9472 = vmatprep.subr.bf16.mxu1 %v15320_v21  ;;  %v15390_v4 = vld [vmem:[#allocation8 + $0x1c40] ss:$88 sps:$4 sm:$0xff]  }
 0x3f6   :  { %9595 = vmatprep.subr.bf16.mxu0 %v15323_v39  ;;  %v15393_v21 = vld [vmem:[#allocation8 + $0x1c48] ss:$88 sps:$4 sm:$0xff]   ;;  %v15398_v39 = vld [vmem:[#allocation8 + $0x1cf4] ss:$88 sps:$4 sm:$0xff]  }
 0x3f8   :  { %9473 = vmatpush1.bf16.msra.mxu1 %v15318_v46  ;;  %v15401_v46 = vld [vmem:[#allocation8 + $0x1cfc] ss:$88 sps:$4 sm:$0xff]  }
 0x3f9   :  { %9596 = vmatpush1.bf16.msra.mxu0 %v15321_v17  ;;  %9474 = vmatprep.subr.bf16.mxu1 %v15326_v63  ;;  %v15396_v17 = vld [vmem:[#allocation8 + $0x1cf0] ss:$88 sps:$4 sm:$0xff]  }
 0x3fa   :  { %9597 = vmatprep.subr.bf16.mxu0 %v15329_v9  ;;  %v15399_v63 = vld [vmem:[#allocation8 + $0x1cf8] ss:$88 sps:$4 sm:$0xff]   ;;  %v15404_v9 = vld [vmem:[#allocation8 + $0x1da4] ss:$88 sps:$4 sm:$0xff]  }
 0x3fc   :  { %9475 = vmatpush1.bf16.msra.mxu1 %v15324_v30  ;;  %v15407_v30 = vld [vmem:[#allocation8 + $0x1dac] ss:$88 sps:$4 sm:$0xff]  }
 0x3fd   :  { %9598 = vmatpush1.bf16.msra.mxu0 %v15327_v49  ;;  %9476 = vmatprep.subr.bf16.mxu1 %v15332_v57  ;;  %v15402_v49 = vld [vmem:[#allocation8 + $0x1da0] ss:$88 sps:$4 sm:$0xff]  }
 0x3fe   :  { %9599 = vmatprep.subr.bf16.mxu0 %v15335_v1  ;;  %v15405_v57 = vld [vmem:[#allocation8 + $0x1da8] ss:$88 sps:$4 sm:$0xff]   ;;  %v15410_v1 = vld [vmem:[#allocation8 + $0x1e54] ss:$88 sps:$4 sm:$0xff]  }
 0x400   :  { %9477 = vmatpush1.bf16.msra.mxu1 %v15330_v37  ;;  %v15413_v37 = vld [vmem:[#allocation8 + $0x1e5c] ss:$88 sps:$4 sm:$0xff]  }
 0x401   :  { %9600 = vmatpush1.bf16.msra.mxu0 %v15333_v59  ;;  %9487 = vmatprep.subr.bf16.mxu1 %v15338_v8  ;;  %v15408_v59 = vld [vmem:[#allocation8 + $0x1e50] ss:$88 sps:$4 sm:$0xff]  }
 0x402   :  { %9610 = vmatprep.subr.bf16.mxu0 %v15341_v7  ;;  %v15411_v8 = vld [vmem:[#allocation8 + $0x1e58] ss:$88 sps:$4 sm:$0xff]   ;;  %v15416_v7 = vld [vmem:[#allocation8 + $0x1f04] ss:$88 sps:$4 sm:$0xff]  }
 0x403   :  { %9479 = vmatmul.mubr.bf16.vlgmr.msra.gmra.mrb[8].mxu1 %v17279_v62 }
 0x404   :  { %9602 = vmatmul.mubr.bf16.vlgmr.msra.gmra.mrb[12].mxu0 %v17279_v62  ;;  %9488 = vmatpush1.bf16.msra.mxu1 %v15336_v38  ;;  %v15419_v38 = vld [vmem:[#allocation8 + $0x1f0c] ss:$88 sps:$4 sm:$0xff]  }
 0x405   :  { %9519 = vmatprep.mubr.bf16.mxu1 %v17291_v29  ;;  %9611 = vmatpush1.bf16.msra.mxu0 %v15339_v51  ;;  %v15414_v51 = vld [vmem:[#allocation8 + $0x1f00] ss:$88 sps:$4 sm:$0xff]  }
 0x406   :  { %9642 = vmatprep.mubr.bf16.mxu0 %v17291_v29  ;;  %9489 = vmatprep.subr.bf16.mxu1 %v15344_v22  ;;  %v15417_v22 = vld [vmem:[#allocation8 + $0x1f08] ss:$88 sps:$4 sm:$0xff]  }
 0x407   :  { %9612 = vmatprep.subr.bf16.mxu0 %v15347_v55  ;;  %v15422_v55 = vld [vmem:[#allocation8 + $0x1fb4] ss:$88 sps:$4 sm:$0xff]  }
 0x408   :  { %9490 = vmatpush1.bf16.msra.mxu1 %v15342_v47  ;;  %v15425_v47 = vld [vmem:[#allocation8 + $0x1fbc] ss:$88 sps:$4 sm:$0xff]  }
 0x409   :  { %9613 = vmatpush1.bf16.msra.mxu0 %v15345_v41  ;;  %9491 = vmatprep.subr.bf16.mxu1 %v15350_v50  ;;  %v15420_v41 = vld [vmem:[#allocation8 + $0x1fb0] ss:$88 sps:$4 sm:$0xff]  }
 0x40a   :  { %9614 = vmatprep.subr.bf16.mxu0 %v15353_v53  ;;  %v15423_v50 = vld [vmem:[#allocation8 + $0x1fb8] ss:$88 sps:$4 sm:$0xff]   ;;  %v15428_v53 = vld [vmem:[#allocation8 + $0x2064] ss:$88 sps:$4 sm:$0xff]  }
 0x40c   :  { %9492 = vmatpush1.bf16.msra.mxu1 %v15348_v14  ;;  %v15431_v14 = vld [vmem:[#allocation8 + $0x206c] ss:$88 sps:$4 sm:$0xff]  }
 0x40d   :  { %9615 = vmatpush1.bf16.msra.mxu0 %v15351_v60  ;;  %9493 = vmatprep.subr.bf16.mxu1 %v15356_v61  ;;  %v15426_v60 = vld [vmem:[#allocation8 + $0x2060] ss:$88 sps:$4 sm:$0xff]  }
 0x40e   :  { %9616 = vmatprep.subr.bf16.mxu0 %v15359_v5  ;;  %v15429_v61 = vld [vmem:[#allocation8 + $0x2068] ss:$88 sps:$4 sm:$0xff]   ;;  %v15434_v5 = vld [vmem:[#allocation8 + $0x24] ss:$88 sps:$4 sm:$0xff]  }
 0x410   :  { %9494 = vmatpush1.bf16.msra.mxu1 %v15354_v16  ;;  %v15437_v16 = vld [vmem:[#allocation8 + $0x2c] ss:$88 sps:$4 sm:$0xff]  }
 0x411   :  { %9617 = vmatpush1.bf16.msra.mxu0 %v15357_v26  ;;  %9495 = vmatprep.subr.bf16.mxu1 %v15362_v0  ;;  %v15432_v26 = vld [vmem:[#allocation8 + $0x20] ss:$88 sps:$4 sm:$0xff]  }
 0x412   :  { %9618 = vmatprep.subr.bf16.mxu0 %v15365_v15  ;;  %v15435_v0 = vld [vmem:[#allocation8 + $0x28] ss:$88 sps:$4 sm:$0xff]   ;;  %v15440_v15 = vld [vmem:[#allocation8 + $0xd4] ss:$88 sps:$4 sm:$0xff]  }
 0x414   :  { %9496 = vmatpush1.bf16.msra.mxu1 %v15360_v23  ;;  %v15443_v23 = vld [vmem:[#allocation8 + $0xdc] ss:$88 sps:$4 sm:$0xff]  }
 0x415   :  { %9619 = vmatpush1.bf16.msra.mxu0 %v15363_v24  ;;  %9497 = vmatprep.subr.bf16.mxu1 %v15368_v25  ;;  %v15438_v24 = vld [vmem:[#allocation8 + $0xd0] ss:$88 sps:$4 sm:$0xff]  }
 0x416   :  { %9620 = vmatprep.subr.bf16.mxu0 %v15371_v58  ;;  %v15441_v25 = vld [vmem:[#allocation8 + $0xd8] ss:$88 sps:$4 sm:$0xff]   ;;  %v15446_v58 = vld [vmem:[#allocation8 + $0x184] ss:$88 sps:$4 sm:$0xff]  }
 0x418   :  { %9498 = vmatpush1.bf16.msra.mxu1 %v15366_v43  ;;  %v15449_v43 = vld [vmem:[#allocation8 + $0x18c] ss:$88 sps:$4 sm:$0xff]  }
 0x419   :  { %9621 = vmatpush1.bf16.msra.mxu0 %v15369_v27  ;;  %9499 = vmatprep.subr.bf16.mxu1 %v15374_v11  ;;  %v15444_v27 = vld [vmem:[#allocation8 + $0x180] ss:$88 sps:$4 sm:$0xff]  }
 0x41a   :  { %9622 = vmatprep.subr.bf16.mxu0 %v15377_v19  ;;  %v15447_v11 = vld [vmem:[#allocation8 + $0x188] ss:$88 sps:$4 sm:$0xff]   ;;  %v15452_v19 = vld [vmem:[#allocation8 + $0x234] ss:$88 sps:$4 sm:$0xff]  }
 0x41c   :  { %9500 = vmatpush1.bf16.msra.mxu1 %v15372_v56  ;;  %v15455_v56 = vld [vmem:[#allocation8 + $0x23c] ss:$88 sps:$4 sm:$0xff]  }
 0x41d   :  { %9623 = vmatpush1.bf16.msra.mxu0 %v15375_v28  ;;  %9501 = vmatprep.subr.bf16.mxu1 %v15380_v13  ;;  %v15450_v28 = vld [vmem:[#allocation8 + $0x230] ss:$88 sps:$4 sm:$0xff]  }
 0x41e   :  { %9624 = vmatprep.subr.bf16.mxu0 %v15383_v32  ;;  %v15453_v13 = vld [vmem:[#allocation8 + $0x238] ss:$88 sps:$4 sm:$0xff]   ;;  %v15458_v32 = vld [vmem:[#allocation8 + $0x2e4] ss:$88 sps:$4 sm:$0xff]  }
 0x420   :  { %9502 = vmatpush1.bf16.msra.mxu1 %v15378_v33  ;;  %v15461_v33 = vld [vmem:[#allocation8 + $0x2ec] ss:$88 sps:$4 sm:$0xff]  }
 0x421   :  { %9625 = vmatpush1.bf16.msra.mxu0 %v15381_v34  ;;  %9503 = vmatprep.subr.bf16.mxu1 %v15386_v40  ;;  %v15456_v34 = vld [vmem:[#allocation8 + $0x2e0] ss:$88 sps:$4 sm:$0xff]  }
 0x422   :  { %9626 = vmatprep.subr.bf16.mxu0 %v15389_v31  ;;  %v15459_v40 = vld [vmem:[#allocation8 + $0x2e8] ss:$88 sps:$4 sm:$0xff]   ;;  %v15464_v31 = vld [vmem:[#allocation8 + $0x394] ss:$88 sps:$4 sm:$0xff]  }
 0x424   :  { %9504 = vmatpush1.bf16.msra.mxu1 %v15384_v18  ;;  %v15467_v18 = vld [vmem:[#allocation8 + $0x39c] ss:$88 sps:$4 sm:$0xff]  }
 0x425   :  { %9627 = vmatpush1.bf16.msra.mxu0 %v15387_v12  ;;  %9505 = vmatprep.subr.bf16.mxu1 %v15392_v35  ;;  %v15462_v12 = vld [vmem:[#allocation8 + $0x390] ss:$88 sps:$4 sm:$0xff]  }
 0x426   :  { %9628 = vmatprep.subr.bf16.mxu0 %v15395_v44  ;;  %v15465_v35 = vld [vmem:[#allocation8 + $0x398] ss:$88 sps:$4 sm:$0xff]   ;;  %v15472_v44 = vld [vmem:[#allocation8 + $0x444] ss:$88 sps:$4 sm:$0xff]  }
 0x428   :  { %9506 = vmatpush1.bf16.msra.mxu1 %v15390_v4 }
 0x429   :  { %9629 = vmatpush1.bf16.msra.mxu0 %v15393_v21  ;;  %9507 = vmatprep.subr.bf16.mxu1 %v15398_v39  ;;  %v15475_v39 = vld [vmem:[#allocation8 + $0x44c] ss:$88 sps:$4 sm:$0xff]  }
 0x42a   :  { %9630 = vmatprep.subr.bf16.mxu0 %v15401_v46 }
 0x42c   :  { %9508 = vmatpush1.bf16.msra.mxu1 %v15396_v17 }
 0x42d   :  { %9631 = vmatpush1.bf16.msra.mxu0 %v15399_v63  ;;  %9509 = vmatprep.subr.bf16.mxu1 %v15404_v9 }
 0x42e   :  { %9632 = vmatprep.subr.bf16.mxu0 %v15407_v30  ;;  %v15470_v30 = vld [vmem:[#allocation8 + $0x440] ss:$88 sps:$4 sm:$0xff]  }
 0x430   :  { %9510 = vmatpush1.bf16.msra.mxu1 %v15402_v49 }
 0x431   :  { %9633 = vmatpush1.bf16.msra.mxu0 %v15405_v57  ;;  %9511 = vmatprep.subr.bf16.mxu1 %v15410_v1  ;;  %v15473_v1 = vld [vmem:[#allocation8 + $0x448] ss:$88 sps:$4 sm:$0xff]  }
 0x432   :  { %9634 = vmatprep.subr.bf16.mxu0 %v15413_v37  ;;  %v15478_v37 = vld [vmem:[#allocation8 + $0x4f4] ss:$88 sps:$4 sm:$0xff]  }
 0x434   :  { %9512 = vmatpush1.bf16.msra.mxu1 %v15408_v59  ;;  %v15481_v59 = vld [vmem:[#allocation8 + $0x4fc] ss:$88 sps:$4 sm:$0xff]  }
 0x435   :  { %9635 = vmatpush1.bf16.msra.mxu0 %v15411_v8  ;;  %9513 = vmatprep.subr.bf16.mxu1 %v15416_v7  ;;  %v15476_v8 = vld [vmem:[#allocation8 + $0x4f0] ss:$88 sps:$4 sm:$0xff]  }
 0x436   :  { %9636 = vmatprep.subr.bf16.mxu0 %v15419_v38  ;;  %v15479_v7 = vld [vmem:[#allocation8 + $0x4f8] ss:$88 sps:$4 sm:$0xff]   ;;  %v15484_v38 = vld [vmem:[#allocation8 + $0x5a4] ss:$88 sps:$4 sm:$0xff]  }
 0x438   :  { %9514 = vmatpush1.bf16.msra.mxu1 %v15414_v51  ;;  %v15487_v51 = vld [vmem:[#allocation8 + $0x5ac] ss:$88 sps:$4 sm:$0xff]  }
 0x439   :  { %9637 = vmatpush1.bf16.msra.mxu0 %v15417_v22  ;;  %9515 = vmatprep.subr.bf16.mxu1 %v15422_v55  ;;  %v15482_v22 = vld [vmem:[#allocation8 + $0x5a0] ss:$88 sps:$4 sm:$0xff]  }
 0x43a   :  { %9638 = vmatprep.subr.bf16.mxu0 %v15425_v47  ;;  %v15485_v55 = vld [vmem:[#allocation8 + $0x5a8] ss:$88 sps:$4 sm:$0xff]   ;;  %v15490_v47 = vld [vmem:[#allocation8 + $0x654] ss:$88 sps:$4 sm:$0xff]  }
 0x43c   :  { %9516 = vmatpush1.bf16.msra.mxu1 %v15420_v41  ;;  %v15493_v41 = vld [vmem:[#allocation8 + $0x65c] ss:$88 sps:$4 sm:$0xff]  }
 0x43d   :  { %9639 = vmatpush1.bf16.msra.mxu0 %v15423_v50  ;;  %9517 = vmatprep.subr.bf16.mxu1 %v15428_v53  ;;  %v15488_v50 = vld [vmem:[#allocation8 + $0x650] ss:$88 sps:$4 sm:$0xff]  }
 0x43e   :  { %9640 = vmatprep.subr.bf16.mxu0 %v15431_v14  ;;  %v15491_v53 = vld [vmem:[#allocation8 + $0x658] ss:$88 sps:$4 sm:$0xff]   ;;  %v15496_v14 = vld [vmem:[#allocation8 + $0x704] ss:$88 sps:$4 sm:$0xff]  }
 0x440   :  { %9518 = vmatpush1.bf16.msra.mxu1 %v15426_v60  ;;  %v15499_v60 = vld [vmem:[#allocation8 + $0x70c] ss:$88 sps:$4 sm:$0xff]  }
 0x441   :  { %9641 = vmatpush1.bf16.msra.mxu0 %v15429_v61  ;;  %9651 = vmatprep.subr.bf16.mxu1 %v15434_v5  ;;  %v15494_v61 = vld [vmem:[#allocation8 + $0x700] ss:$88 sps:$4 sm:$0xff]  }
 0x442   :  { %9774 = vmatprep.subr.bf16.mxu0 %v15437_v16  ;;  %v15497_v5 = vld [vmem:[#allocation8 + $0x708] ss:$88 sps:$4 sm:$0xff]   ;;  %v15502_v16 = vld [vmem:[#allocation8 + $0x7b4] ss:$88 sps:$4 sm:$0xff]  }
 0x443   :  { %9520 = vmatmul.mubr.bf16.vlgmr.msra.gmra.mrb[8].mxu1 %v17293_v52 }
 0x444   :  { %9643 = vmatmul.mubr.bf16.vlgmr.msra.gmra.mrb[12].mxu0 %v17293_v52  ;;  %9652 = vmatpush1.bf16.msra.mxu1 %v15432_v26  ;;  %v15505_v26 = vld [vmem:[#allocation8 + $0x7bc] ss:$88 sps:$4 sm:$0xff]  }
 0x445   :  { %9683 = vmatprep.mubr.bf16.mxu1 %v17261_v48  ;;  %9775 = vmatpush1.bf16.msra.mxu0 %v15435_v0  ;;  %v15500_v0 = vld [vmem:[#allocation8 + $0x7b0] ss:$88 sps:$4 sm:$0xff]  }
 0x446   :  { %9806 = vmatprep.mubr.bf16.mxu0 %v17261_v48  ;;  %9653 = vmatprep.subr.bf16.mxu1 %v15440_v15  ;;  %v15503_v15 = vld [vmem:[#allocation8 + $0x7b8] ss:$88 sps:$4 sm:$0xff]  }
 0x447   :  { %9776 = vmatprep.subr.bf16.mxu0 %v15443_v23  ;;  %v15508_v23 = vld [vmem:[#allocation8 + $0x864] ss:$88 sps:$4 sm:$0xff]  }
 0x448   :  { %9654 = vmatpush1.bf16.msra.mxu1 %v15438_v24  ;;  %v15511_v24 = vld [vmem:[#allocation8 + $0x86c] ss:$88 sps:$4 sm:$0xff]  }
 0x449   :  { %9777 = vmatpush1.bf16.msra.mxu0 %v15441_v25  ;;  %9655 = vmatprep.subr.bf16.mxu1 %v15446_v58  ;;  %v15506_v25 = vld [vmem:[#allocation8 + $0x860] ss:$88 sps:$4 sm:$0xff]  }
 0x44a   :  { %9778 = vmatprep.subr.bf16.mxu0 %v15449_v43  ;;  %v15509_v58 = vld [vmem:[#allocation8 + $0x868] ss:$88 sps:$4 sm:$0xff]   ;;  %v15514_v43 = vld [vmem:[#allocation8 + $0x914] ss:$88 sps:$4 sm:$0xff]  }
 0x44c   :  { %9656 = vmatpush1.bf16.msra.mxu1 %v15444_v27  ;;  %v15517_v27 = vld [vmem:[#allocation8 + $0x91c] ss:$88 sps:$4 sm:$0xff]  }
 0x44d   :  { %9779 = vmatpush1.bf16.msra.mxu0 %v15447_v11  ;;  %9657 = vmatprep.subr.bf16.mxu1 %v15452_v19  ;;  %v15512_v11 = vld [vmem:[#allocation8 + $0x910] ss:$88 sps:$4 sm:$0xff]  }
 0x44e   :  { %9780 = vmatprep.subr.bf16.mxu0 %v15455_v56  ;;  %v15515_v19 = vld [vmem:[#allocation8 + $0x918] ss:$88 sps:$4 sm:$0xff]   ;;  %v15520_v56 = vld [vmem:[#allocation8 + $0x9c4] ss:$88 sps:$4 sm:$0xff]  }
 0x450   :  { %9658 = vmatpush1.bf16.msra.mxu1 %v15450_v28  ;;  %v15523_v28 = vld [vmem:[#allocation8 + $0x9cc] ss:$88 sps:$4 sm:$0xff]  }
 0x451   :  { %9781 = vmatpush1.bf16.msra.mxu0 %v15453_v13  ;;  %9659 = vmatprep.subr.bf16.mxu1 %v15458_v32  ;;  %v15518_v13 = vld [vmem:[#allocation8 + $0x9c0] ss:$88 sps:$4 sm:$0xff]  }
 0x452   :  { %9782 = vmatprep.subr.bf16.mxu0 %v15461_v33  ;;  %v15521_v32 = vld [vmem:[#allocation8 + $0x9c8] ss:$88 sps:$4 sm:$0xff]   ;;  %v15526_v33 = vld [vmem:[#allocation8 + $0xa74] ss:$88 sps:$4 sm:$0xff]  }
 0x454   :  { %9660 = vmatpush1.bf16.msra.mxu1 %v15456_v34  ;;  %v15529_v34 = vld [vmem:[#allocation8 + $0xa7c] ss:$88 sps:$4 sm:$0xff]  }
 0x455   :  { %9783 = vmatpush1.bf16.msra.mxu0 %v15459_v40  ;;  %9661 = vmatprep.subr.bf16.mxu1 %v15464_v31  ;;  %v15524_v40 = vld [vmem:[#allocation8 + $0xa70] ss:$88 sps:$4 sm:$0xff]  }
 0x456   :  { %v17313_v4 = vpop.f32.mrb[4].mxu1  ;;  %v17315_v21 = vpop.f32.mrb[8].mxu0  ;;  %9784 = vmatprep.subr.bf16.mxu0 %v15467_v18  ;;  %v15527_v31 = vld [vmem:[#allocation8 + $0xa78] ss:$88 sps:$4 sm:$0xff]   ;;  %v15532_v18 = vld [vmem:[#allocation8 + $0xb24] ss:$88 sps:$4 sm:$0xff]  }
 0x457   :  { %v17317_v46 = vpop.f32.mrb[5].mxu1  ;;  %v17319_v17 = vpop.f32.mrb[9].mxu0 }
 0x458   :  { %9662 = vmatpush1.bf16.msra.mxu1 %v15462_v12  ;;  %v9279_v63 = vpop.f32.mrb[6].mxu1  ;;  %v9402_v9 = vpop.f32.mrb[10].mxu0  ;;  %v15535_v12 = vld [vmem:[#allocation8 + $0xb2c] ss:$88 sps:$4 sm:$0xff]  }
 0x459   :  { %9785 = vmatpush1.bf16.msra.mxu0 %v15465_v35  ;;  %v9280_v49 = vpop.f32.mrb[7].mxu1  ;;  %v9403_v57 = vpop.f32.mrb[11].mxu0  ;;  %9663 = vmatprep.subr.bf16.mxu1 %v15472_v44  ;;  %v15530_v35 = vld [vmem:[#allocation8 + $0xb20] ss:$88 sps:$4 sm:$0xff]   ;;  %v15541_v63 = vld [vmem:[#allocation8 + $0xbdc] ss:$88 sps:$4 sm:$0xff]  }
 0x45a   :  { %9786 = vmatprep.subr.bf16.mxu0 %v15475_v39  ;;  %v15533_v44 = vld [vmem:[#allocation8 + $0xb28] ss:$88 sps:$4 sm:$0xff]   ;;  %v15538_v39 = vld [vmem:[#allocation8 + $0xbd4] ss:$88 sps:$4 sm:$0xff]   ;;  %v15544_v49 = vld [vmem:[#allocation8 + $0xc84] ss:$88 sps:$4 sm:$0xff]  }
 0x45b   :  { %v15536_v9 = vld [vmem:[#allocation8 + $0xbd0] ss:$88 sps:$4 sm:$0xff]   ;;  %v15547_v57 = vld [vmem:[#allocation8 + $0xc8c] ss:$88 sps:$4 sm:$0xff]  }
 0x45c   :  { %9664 = vmatpush1.bf16.msra.mxu1 %v15470_v30  ;;  %v15539_v30 = vld [vmem:[#allocation8 + $0xbd8] ss:$88 sps:$4 sm:$0xff]  }
 0x45d   :  { %9787 = vmatpush1.bf16.msra.mxu0 %v15473_v1  ;;  %9665 = vmatprep.subr.bf16.mxu1 %v15478_v37  ;;  %v15542_v1 = vld [vmem:[#allocation8 + $0xc80] ss:$88 sps:$4 sm:$0xff]  }
 0x45e   :  { %9788 = vmatprep.subr.bf16.mxu0 %v15481_v59  ;;  %v15545_v37 = vld [vmem:[#allocation8 + $0xc88] ss:$88 sps:$4 sm:$0xff]   ;;  %v15550_v59 = vld [vmem:[#allocation8 + $0xd34] ss:$88 sps:$4 sm:$0xff]  }
 0x460   :  { %9666 = vmatpush1.bf16.msra.mxu1 %v15476_v8  ;;  %v15553_v8 = vld [vmem:[#allocation8 + $0xd3c] ss:$88 sps:$4 sm:$0xff]  }
 0x461   :  { %9789 = vmatpush1.bf16.msra.mxu0 %v15479_v7  ;;  %9667 = vmatprep.subr.bf16.mxu1 %v15484_v38  ;;  %v15548_v7 = vld [vmem:[#allocation8 + $0xd30] ss:$88 sps:$4 sm:$0xff]  }
 0x462   :  { %9790 = vmatprep.subr.bf16.mxu0 %v15487_v51  ;;  %v15551_v38 = vld [vmem:[#allocation8 + $0xd38] ss:$88 sps:$4 sm:$0xff]   ;;  %v15556_v51 = vld [vmem:[#allocation8 + $0xde4] ss:$88 sps:$4 sm:$0xff]  }
 0x464   :  { %9668 = vmatpush1.bf16.msra.mxu1 %v15482_v22  ;;  %v15559_v22 = vld [vmem:[#allocation8 + $0xdec] ss:$88 sps:$4 sm:$0xff]  }
 0x465   :  { %9791 = vmatpush1.bf16.msra.mxu0 %v15485_v55  ;;  %9669 = vmatprep.subr.bf16.mxu1 %v15490_v47  ;;  %v15554_v55 = vld [vmem:[#allocation8 + $0xde0] ss:$88 sps:$4 sm:$0xff]  }
 0x466   :  { %9792 = vmatprep.subr.bf16.mxu0 %v15493_v41  ;;  %v15557_v47 = vld [vmem:[#allocation8 + $0xde8] ss:$88 sps:$4 sm:$0xff]   ;;  %v15562_v41 = vld [vmem:[#allocation8 + $0xe94] ss:$88 sps:$4 sm:$0xff]  }
 0x468   :  { %9670 = vmatpush1.bf16.msra.mxu1 %v15488_v50  ;;  %v15565_v50 = vld [vmem:[#allocation8 + $0xe9c] ss:$88 sps:$4 sm:$0xff]  }
 0x469   :  { %9793 = vmatpush1.bf16.msra.mxu0 %v15491_v53  ;;  %9671 = vmatprep.subr.bf16.mxu1 %v15496_v14  ;;  %v15560_v53 = vld [vmem:[#allocation8 + $0xe90] ss:$88 sps:$4 sm:$0xff]  }
 0x46a   :  { %9794 = vmatprep.subr.bf16.mxu0 %v15499_v60  ;;  %v15563_v14 = vld [vmem:[#allocation8 + $0xe98] ss:$88 sps:$4 sm:$0xff]   ;;  %v15568_v60 = vld [vmem:[#allocation8 + $0xf44] ss:$88 sps:$4 sm:$0xff]  }
 0x46c   :  { %9672 = vmatpush1.bf16.msra.mxu1 %v15494_v61  ;;  %v15571_v61 = vld [vmem:[#allocation8 + $0xf4c] ss:$88 sps:$4 sm:$0xff]  }
 0x46d   :  { %9795 = vmatpush1.bf16.msra.mxu0 %v15497_v5  ;;  %9673 = vmatprep.subr.bf16.mxu1 %v15502_v16  ;;  %v15566_v5 = vld [vmem:[#allocation8 + $0xf40] ss:$88 sps:$4 sm:$0xff]  }
 0x46e   :  { %9796 = vmatprep.subr.bf16.mxu0 %v15505_v26  ;;  %v15569_v16 = vld [vmem:[#allocation8 + $0xf48] ss:$88 sps:$4 sm:$0xff]   ;;  %v15574_v26 = vld [vmem:[#allocation8 + $0xff4] ss:$88 sps:$4 sm:$0xff]  }
 0x470   :  { %9674 = vmatpush1.bf16.msra.mxu1 %v15500_v0  ;;  %v15577_v0 = vld [vmem:[#allocation8 + $0xffc] ss:$88 sps:$4 sm:$0xff]  }
 0x471   :  { %9797 = vmatpush1.bf16.msra.mxu0 %v15503_v15  ;;  %9675 = vmatprep.subr.bf16.mxu1 %v15508_v23  ;;  %v15572_v15 = vld [vmem:[#allocation8 + $0xff0] ss:$88 sps:$4 sm:$0xff]  }
 0x472   :  { %9798 = vmatprep.subr.bf16.mxu0 %v15511_v24  ;;  %v15575_v23 = vld [vmem:[#allocation8 + $0xff8] ss:$88 sps:$4 sm:$0xff]   ;;  %v15580_v24 = vld [vmem:[#allocation8 + $0x10a4] ss:$88 sps:$4 sm:$0xff]  }
 0x474   :  { %9676 = vmatpush1.bf16.msra.mxu1 %v15506_v25  ;;  %v15583_v25 = vld [vmem:[#allocation8 + $0x10ac] ss:$88 sps:$4 sm:$0xff]  }
 0x475   :  { %9799 = vmatpush1.bf16.msra.mxu0 %v15509_v58  ;;  %9677 = vmatprep.subr.bf16.mxu1 %v15514_v43  ;;  %v15578_v58 = vld [vmem:[#allocation8 + $0x10a0] ss:$88 sps:$4 sm:$0xff]  }
 0x476   :  { %9800 = vmatprep.subr.bf16.mxu0 %v15517_v27  ;;  %v15581_v43 = vld [vmem:[#allocation8 + $0x10a8] ss:$88 sps:$4 sm:$0xff]   ;;  %v15586_v27 = vld [vmem:[#allocation8 + $0x1154] ss:$88 sps:$4 sm:$0xff]  }
 0x478   :  { %9678 = vmatpush1.bf16.msra.mxu1 %v15512_v11  ;;  %v15589_v11 = vld [vmem:[#allocation8 + $0x115c] ss:$88 sps:$4 sm:$0xff]  }
 0x479   :  { %9801 = vmatpush1.bf16.msra.mxu0 %v15515_v19  ;;  %9679 = vmatprep.subr.bf16.mxu1 %v15520_v56  ;;  %v15584_v19 = vld [vmem:[#allocation8 + $0x1150] ss:$88 sps:$4 sm:$0xff]  }
 0x47a   :  { %9802 = vmatprep.subr.bf16.mxu0 %v15523_v28  ;;  %v15587_v56 = vld [vmem:[#allocation8 + $0x1158] ss:$88 sps:$4 sm:$0xff]   ;;  %v15592_v28 = vld [vmem:[#allocation8 + $0x1204] ss:$88 sps:$4 sm:$0xff]  }
 0x47c   :  { %9680 = vmatpush1.bf16.msra.mxu1 %v15518_v13  ;;  %v15595_v13 = vld [vmem:[#allocation8 + $0x120c] ss:$88 sps:$4 sm:$0xff]  }
 0x47d   :  { %9803 = vmatpush1.bf16.msra.mxu0 %v15521_v32  ;;  %9681 = vmatprep.subr.bf16.mxu1 %v15526_v33  ;;  %v15590_v32 = vld [vmem:[#allocation8 + $0x1200] ss:$88 sps:$4 sm:$0xff]  }
 0x47e   :  { %9804 = vmatprep.subr.bf16.mxu0 %v15529_v34  ;;  %v15593_v33 = vld [vmem:[#allocation8 + $0x1208] ss:$88 sps:$4 sm:$0xff]   ;;  %v15598_v34 = vld [vmem:[#allocation8 + $0x12b4] ss:$88 sps:$4 sm:$0xff]  }
 0x480   :  { %9682 = vmatpush1.bf16.msra.mxu1 %v15524_v40  ;;  %v15601_v40 = vld [vmem:[#allocation8 + $0x12bc] ss:$88 sps:$4 sm:$0xff]  }
 0x481   :  { %9805 = vmatpush1.bf16.msra.mxu0 %v15527_v31  ;;  %9692 = vmatprep.subr.bf16.mxu1 %v15532_v18  ;;  %v15596_v31 = vld [vmem:[#allocation8 + $0x12b0] ss:$88 sps:$4 sm:$0xff]  }
 0x482   :  { %9815 = vmatprep.subr.bf16.mxu0 %v15535_v12  ;;  %v15599_v18 = vld [vmem:[#allocation8 + $0x12b8] ss:$88 sps:$4 sm:$0xff]   ;;  %v15604_v12 = vld [vmem:[#allocation8 + $0x1364] ss:$88 sps:$4 sm:$0xff]  }
 0x483   :  { %9684 = vmatmul.mubr.bf16.vlgmr.msra.gmra.mrb[12].mxu1 %v17263_v45 }
 0x484   :  { %9807 = vmatmul.mubr.bf16.vlgmr.msra.gmra.mrb[16].mxu0 %v17263_v45  ;;  %9693 = vmatpush1.bf16.msra.mxu1 %v15530_v35  ;;  %v15607_v35 = vld [vmem:[#allocation8 + $0x136c] ss:$88 sps:$4 sm:$0xff]  }
 0x485   :  { %9724 = vmatprep.mubr.bf16.mxu1 %v17265_v36  ;;  %9816 = vmatpush1.bf16.msra.mxu0 %v15533_v44  ;;  %v15602_v44 = vld [vmem:[#allocation8 + $0x1360] ss:$88 sps:$4 sm:$0xff]  }
 0x486   :  { %9847 = vmatprep.mubr.bf16.mxu0 %v17265_v36  ;;  %9694 = vmatprep.subr.bf16.mxu1 %v15538_v39  ;;  %v15605_v39 = vld [vmem:[#allocation8 + $0x1368] ss:$88 sps:$4 sm:$0xff]  }
 0x487   :  { %9817 = vmatprep.subr.bf16.mxu0 %v15541_v63  ;;  %v15610_v63 = vld [vmem:[#allocation8 + $0x1414] ss:$88 sps:$4 sm:$0xff]  }
 0x488   :  { %9695 = vmatpush1.bf16.msra.mxu1 %v15536_v9  ;;  %v15613_v9 = vld [vmem:[#allocation8 + $0x141c] ss:$88 sps:$4 sm:$0xff]  }
 0x489   :  { %9818 = vmatpush1.bf16.msra.mxu0 %v15539_v30  ;;  %9696 = vmatprep.subr.bf16.mxu1 %v15544_v49  ;;  %v15608_v30 = vld [vmem:[#allocation8 + $0x1410] ss:$88 sps:$4 sm:$0xff]  }
 0x48a   :  { %9819 = vmatprep.subr.bf16.mxu0 %v15547_v57  ;;  %v15611_v49 = vld [vmem:[#allocation8 + $0x1418] ss:$88 sps:$4 sm:$0xff]   ;;  %v15616_v57 = vld [vmem:[#allocation8 + $0x14c4] ss:$88 sps:$4 sm:$0xff]  }
 0x48c   :  { %9697 = vmatpush1.bf16.msra.mxu1 %v15542_v1  ;;  %v15619_v1 = vld [vmem:[#allocation8 + $0x14cc] ss:$88 sps:$4 sm:$0xff]  }
 0x48d   :  { %9820 = vmatpush1.bf16.msra.mxu0 %v15545_v37  ;;  %9698 = vmatprep.subr.bf16.mxu1 %v15550_v59  ;;  %v15614_v37 = vld [vmem:[#allocation8 + $0x14c0] ss:$88 sps:$4 sm:$0xff]  }
 0x48e   :  { %9821 = vmatprep.subr.bf16.mxu0 %v15553_v8  ;;  %v15617_v59 = vld [vmem:[#allocation8 + $0x14c8] ss:$88 sps:$4 sm:$0xff]   ;;  %v15622_v8 = vld [vmem:[#allocation8 + $0x1574] ss:$88 sps:$4 sm:$0xff]  }
 0x490   :  { %9699 = vmatpush1.bf16.msra.mxu1 %v15548_v7  ;;  %v15625_v7 = vld [vmem:[#allocation8 + $0x157c] ss:$88 sps:$4 sm:$0xff]  }
 0x491   :  { %9822 = vmatpush1.bf16.msra.mxu0 %v15551_v38  ;;  %9700 = vmatprep.subr.bf16.mxu1 %v15556_v51  ;;  %v15620_v38 = vld [vmem:[#allocation8 + $0x1570] ss:$88 sps:$4 sm:$0xff]  }
 0x492   :  { %9823 = vmatprep.subr.bf16.mxu0 %v15559_v22  ;;  %v15623_v51 = vld [vmem:[#allocation8 + $0x1578] ss:$88 sps:$4 sm:$0xff]   ;;  %v15628_v22 = vld [vmem:[#allocation8 + $0x1624] ss:$88 sps:$4 sm:$0xff]  }
 0x494   :  { %9701 = vmatpush1.bf16.msra.mxu1 %v15554_v55  ;;  %v15631_v55 = vld [vmem:[#allocation8 + $0x162c] ss:$88 sps:$4 sm:$0xff]  }
 0x495   :  { %9824 = vmatpush1.bf16.msra.mxu0 %v15557_v47  ;;  %9702 = vmatprep.subr.bf16.mxu1 %v15562_v41  ;;  %v15626_v47 = vld [vmem:[#allocation8 + $0x1620] ss:$88 sps:$4 sm:$0xff]  }
 0x496   :  { %9825 = vmatprep.subr.bf16.mxu0 %v15565_v50  ;;  %v15629_v41 = vld [vmem:[#allocation8 + $0x1628] ss:$88 sps:$4 sm:$0xff]   ;;  %v15634_v50 = vld [vmem:[#allocation8 + $0x16d4] ss:$88 sps:$4 sm:$0xff]  }
 0x498   :  { %9703 = vmatpush1.bf16.msra.mxu1 %v15560_v53  ;;  %v15637_v53 = vld [vmem:[#allocation8 + $0x16dc] ss:$88 sps:$4 sm:$0xff]  }
 0x499   :  { %9826 = vmatpush1.bf16.msra.mxu0 %v15563_v14  ;;  %9704 = vmatprep.subr.bf16.mxu1 %v15568_v60  ;;  %v15632_v14 = vld [vmem:[#allocation8 + $0x16d0] ss:$88 sps:$4 sm:$0xff]  }
 0x49a   :  { %9827 = vmatprep.subr.bf16.mxu0 %v15571_v61  ;;  %v15635_v60 = vld [vmem:[#allocation8 + $0x16d8] ss:$88 sps:$4 sm:$0xff]   ;;  %v15640_v61 = vld [vmem:[#allocation8 + $0x1784] ss:$88 sps:$4 sm:$0xff]  }
 0x49c   :  { %9705 = vmatpush1.bf16.msra.mxu1 %v15566_v5  ;;  %v15643_v5 = vld [vmem:[#allocation8 + $0x178c] ss:$88 sps:$4 sm:$0xff]  }
 0x49d   :  { %9828 = vmatpush1.bf16.msra.mxu0 %v15569_v16  ;;  %9706 = vmatprep.subr.bf16.mxu1 %v15574_v26  ;;  %v15638_v16 = vld [vmem:[#allocation8 + $0x1780] ss:$88 sps:$4 sm:$0xff]  }
 0x49e   :  { %9829 = vmatprep.subr.bf16.mxu0 %v15577_v0  ;;  %v15641_v26 = vld [vmem:[#allocation8 + $0x1788] ss:$88 sps:$4 sm:$0xff]   ;;  %v15646_v0 = vld [vmem:[#allocation8 + $0x1834] ss:$88 sps:$4 sm:$0xff]  }
 0x4a0   :  { %9707 = vmatpush1.bf16.msra.mxu1 %v15572_v15  ;;  %v15649_v15 = vld [vmem:[#allocation8 + $0x183c] ss:$88 sps:$4 sm:$0xff]  }
 0x4a1   :  { %9830 = vmatpush1.bf16.msra.mxu0 %v15575_v23  ;;  %9708 = vmatprep.subr.bf16.mxu1 %v15580_v24  ;;  %v15644_v23 = vld [vmem:[#allocation8 + $0x1830] ss:$88 sps:$4 sm:$0xff]  }
 0x4a2   :  { %9831 = vmatprep.subr.bf16.mxu0 %v15583_v25  ;;  %v15647_v24 = vld [vmem:[#allocation8 + $0x1838] ss:$88 sps:$4 sm:$0xff]   ;;  %v15652_v25 = vld [vmem:[#allocation8 + $0x18e4] ss:$88 sps:$4 sm:$0xff]  }
 0x4a4   :  { %9709 = vmatpush1.bf16.msra.mxu1 %v15578_v58  ;;  %v15655_v58 = vld [vmem:[#allocation8 + $0x18ec] ss:$88 sps:$4 sm:$0xff]  }
 0x4a5   :  { %9832 = vmatpush1.bf16.msra.mxu0 %v15581_v43  ;;  %9710 = vmatprep.subr.bf16.mxu1 %v15586_v27  ;;  %v15650_v43 = vld [vmem:[#allocation8 + $0x18e0] ss:$88 sps:$4 sm:$0xff]  }
 0x4a6   :  { %9833 = vmatprep.subr.bf16.mxu0 %v15589_v11  ;;  %v15653_v27 = vld [vmem:[#allocation8 + $0x18e8] ss:$88 sps:$4 sm:$0xff]   ;;  %v15658_v11 = vld [vmem:[#allocation8 + $0x1994] ss:$88 sps:$4 sm:$0xff]  }
 0x4a8   :  { %9711 = vmatpush1.bf16.msra.mxu1 %v15584_v19  ;;  %v15661_v19 = vld [vmem:[#allocation8 + $0x199c] ss:$88 sps:$4 sm:$0xff]  }
 0x4a9   :  { %9834 = vmatpush1.bf16.msra.mxu0 %v15587_v56  ;;  %9712 = vmatprep.subr.bf16.mxu1 %v15592_v28  ;;  %v15656_v56 = vld [vmem:[#allocation8 + $0x1990] ss:$88 sps:$4 sm:$0xff]  }
 0x4aa   :  { %9835 = vmatprep.subr.bf16.mxu0 %v15595_v13  ;;  %v15659_v28 = vld [vmem:[#allocation8 + $0x1998] ss:$88 sps:$4 sm:$0xff]   ;;  %v15664_v13 = vld [vmem:[#allocation8 + $0x1a44] ss:$88 sps:$4 sm:$0xff]  }
 0x4ac   :  { %9713 = vmatpush1.bf16.msra.mxu1 %v15590_v32  ;;  %v15667_v32 = vld [vmem:[#allocation8 + $0x1a4c] ss:$88 sps:$4 sm:$0xff]  }
 0x4ad   :  { %9836 = vmatpush1.bf16.msra.mxu0 %v15593_v33  ;;  %9714 = vmatprep.subr.bf16.mxu1 %v15598_v34  ;;  %v15662_v33 = vld [vmem:[#allocation8 + $0x1a40] ss:$88 sps:$4 sm:$0xff]  }
 0x4ae   :  { %9837 = vmatprep.subr.bf16.mxu0 %v15601_v40  ;;  %v15665_v34 = vld [vmem:[#allocation8 + $0x1a48] ss:$88 sps:$4 sm:$0xff]   ;;  %v15670_v40 = vld [vmem:[#allocation8 + $0x1af4] ss:$88 sps:$4 sm:$0xff]  }
 0x4b0   :  { %9715 = vmatpush1.bf16.msra.mxu1 %v15596_v31  ;;  %v15673_v31 = vld [vmem:[#allocation8 + $0x1afc] ss:$88 sps:$4 sm:$0xff]  }
 0x4b1   :  { %9838 = vmatpush1.bf16.msra.mxu0 %v15599_v18  ;;  %9716 = vmatprep.subr.bf16.mxu1 %v15604_v12  ;;  %v15668_v18 = vld [vmem:[#allocation8 + $0x1af0] ss:$88 sps:$4 sm:$0xff]  }
 0x4b2   :  { %9839 = vmatprep.subr.bf16.mxu0 %v15607_v35  ;;  %v15671_v12 = vld [vmem:[#allocation8 + $0x1af8] ss:$88 sps:$4 sm:$0xff]   ;;  %v15676_v35 = vld [vmem:[#allocation8 + $0x1ba4] ss:$88 sps:$4 sm:$0xff]  }
 0x4b4   :  { %9717 = vmatpush1.bf16.msra.mxu1 %v15602_v44  ;;  %v15679_v44 = vld [vmem:[#allocation8 + $0x1bac] ss:$88 sps:$4 sm:$0xff]  }
 0x4b5   :  { %9840 = vmatpush1.bf16.msra.mxu0 %v15605_v39  ;;  %9718 = vmatprep.subr.bf16.mxu1 %v15610_v63  ;;  %v15674_v39 = vld [vmem:[#allocation8 + $0x1ba0] ss:$88 sps:$4 sm:$0xff]  }
 0x4b6   :  { %9841 = vmatprep.subr.bf16.mxu0 %v15613_v9  ;;  %v15677_v63 = vld [vmem:[#allocation8 + $0x1ba8] ss:$88 sps:$4 sm:$0xff]   ;;  %v15682_v9 = vld [vmem:[#allocation8 + $0x1c54] ss:$88 sps:$4 sm:$0xff]  }
 0x4b8   :  { %9719 = vmatpush1.bf16.msra.mxu1 %v15608_v30  ;;  %v15685_v30 = vld [vmem:[#allocation8 + $0x1c5c] ss:$88 sps:$4 sm:$0xff]  }
 0x4b9   :  { %9842 = vmatpush1.bf16.msra.mxu0 %v15611_v49  ;;  %9720 = vmatprep.subr.bf16.mxu1 %v15616_v57  ;;  %v15680_v49 = vld [vmem:[#allocation8 + $0x1c50] ss:$88 sps:$4 sm:$0xff]  }
 0x4ba   :  { %9843 = vmatprep.subr.bf16.mxu0 %v15619_v1  ;;  %v15683_v57 = vld [vmem:[#allocation8 + $0x1c58] ss:$88 sps:$4 sm:$0xff]   ;;  %v15688_v1 = vld [vmem:[#allocation8 + $0x1d04] ss:$88 sps:$4 sm:$0xff]  }
 0x4bc   :  { %9721 = vmatpush1.bf16.msra.mxu1 %v15614_v37  ;;  %v15691_v37 = vld [vmem:[#allocation8 + $0x1d0c] ss:$88 sps:$4 sm:$0xff]  }
 0x4bd   :  { %9844 = vmatpush1.bf16.msra.mxu0 %v15617_v59  ;;  %9722 = vmatprep.subr.bf16.mxu1 %v15622_v8  ;;  %v15686_v59 = vld [vmem:[#allocation8 + $0x1d00] ss:$88 sps:$4 sm:$0xff]  }
 0x4be   :  { %9845 = vmatprep.subr.bf16.mxu0 %v15625_v7  ;;  %v15689_v8 = vld [vmem:[#allocation8 + $0x1d08] ss:$88 sps:$4 sm:$0xff]   ;;  %v15694_v7 = vld [vmem:[#allocation8 + $0x1db4] ss:$88 sps:$4 sm:$0xff]  }
 0x4c0   :  { %9723 = vmatpush1.bf16.msra.mxu1 %v15620_v38  ;;  %v15697_v38 = vld [vmem:[#allocation8 + $0x1dbc] ss:$88 sps:$4 sm:$0xff]  }
 0x4c1   :  { %9846 = vmatpush1.bf16.msra.mxu0 %v15623_v51  ;;  %9733 = vmatprep.subr.bf16.mxu1 %v15628_v22  ;;  %v15692_v51 = vld [vmem:[#allocation8 + $0x1db0] ss:$88 sps:$4 sm:$0xff]  }
 0x4c2   :  { %9856 = vmatprep.subr.bf16.mxu0 %v15631_v55  ;;  %v15695_v22 = vld [vmem:[#allocation8 + $0x1db8] ss:$88 sps:$4 sm:$0xff]   ;;  %v15700_v55 = vld [vmem:[#allocation8 + $0x1e64] ss:$88 sps:$4 sm:$0xff]  }
 0x4c3   :  { %9725 = vmatmul.mubr.bf16.vlgmr.msra.gmra.mrb[12].mxu1 %v17279_v62 }
 0x4c4   :  { %9848 = vmatmul.mubr.bf16.vlgmr.msra.gmra.mrb[16].mxu0 %v17279_v62  ;;  %9734 = vmatpush1.bf16.msra.mxu1 %v15626_v47  ;;  %v15703_v47 = vld [vmem:[#allocation8 + $0x1e6c] ss:$88 sps:$4 sm:$0xff]  }
 0x4c5   :  { %9765 = vmatprep.mubr.bf16.mxu1 %v17291_v29  ;;  %9857 = vmatpush1.bf16.msra.mxu0 %v15629_v41  ;;  %v15698_v41 = vld [vmem:[#allocation8 + $0x1e60] ss:$88 sps:$4 sm:$0xff]  }
 0x4c6   :  { %9888 = vmatprep.mubr.bf16.mxu0 %v17291_v29  ;;  %9735 = vmatprep.subr.bf16.mxu1 %v15634_v50  ;;  %v15701_v50 = vld [vmem:[#allocation8 + $0x1e68] ss:$88 sps:$4 sm:$0xff]  }
 0x4c7   :  { %9858 = vmatprep.subr.bf16.mxu0 %v15637_v53  ;;  %v15706_v53 = vld [vmem:[#allocation8 + $0x1f14] ss:$88 sps:$4 sm:$0xff]  }
 0x4c8   :  { %9736 = vmatpush1.bf16.msra.mxu1 %v15632_v14  ;;  %v15709_v14 = vld [vmem:[#allocation8 + $0x1f1c] ss:$88 sps:$4 sm:$0xff]  }
 0x4c9   :  { %9859 = vmatpush1.bf16.msra.mxu0 %v15635_v60  ;;  %9737 = vmatprep.subr.bf16.mxu1 %v15640_v61  ;;  %v15704_v60 = vld [vmem:[#allocation8 + $0x1f10] ss:$88 sps:$4 sm:$0xff]  }
 0x4ca   :  { %9860 = vmatprep.subr.bf16.mxu0 %v15643_v5  ;;  %v15707_v61 = vld [vmem:[#allocation8 + $0x1f18] ss:$88 sps:$4 sm:$0xff]   ;;  %v15712_v5 = vld [vmem:[#allocation8 + $0x1fc4] ss:$88 sps:$4 sm:$0xff]  }
 0x4cc   :  { %9738 = vmatpush1.bf16.msra.mxu1 %v15638_v16  ;;  %v15715_v16 = vld [vmem:[#allocation8 + $0x1fcc] ss:$88 sps:$4 sm:$0xff]  }
 0x4cd   :  { %9861 = vmatpush1.bf16.msra.mxu0 %v15641_v26  ;;  %9739 = vmatprep.subr.bf16.mxu1 %v15646_v0  ;;  %v15710_v26 = vld [vmem:[#allocation8 + $0x1fc0] ss:$88 sps:$4 sm:$0xff]  }
 0x4ce   :  { %9862 = vmatprep.subr.bf16.mxu0 %v15649_v15  ;;  %v15713_v0 = vld [vmem:[#allocation8 + $0x1fc8] ss:$88 sps:$4 sm:$0xff]   ;;  %v15718_v15 = vld [vmem:[#allocation8 + $0x2074] ss:$88 sps:$4 sm:$0xff]  }
 0x4d0   :  { %9740 = vmatpush1.bf16.msra.mxu1 %v15644_v23  ;;  %v15721_v23 = vld [vmem:[#allocation8 + $0x207c] ss:$88 sps:$4 sm:$0xff]  }
 0x4d1   :  { %9863 = vmatpush1.bf16.msra.mxu0 %v15647_v24  ;;  %9741 = vmatprep.subr.bf16.mxu1 %v15652_v25  ;;  %v15716_v24 = vld [vmem:[#allocation8 + $0x2070] ss:$88 sps:$4 sm:$0xff]  }
 0x4d2   :  { %9864 = vmatprep.subr.bf16.mxu0 %v15655_v58  ;;  %v15719_v25 = vld [vmem:[#allocation8 + $0x2078] ss:$88 sps:$4 sm:$0xff]   ;;  %v15724_v58 = vld [vmem:[#allocation8 + $0x34] ss:$88 sps:$4 sm:$0xff]  }
 0x4d4   :  { %9742 = vmatpush1.bf16.msra.mxu1 %v15650_v43  ;;  %v15727_v43 = vld [vmem:[#allocation8 + $0x3c] ss:$88 sps:$4 sm:$0xff]  }
 0x4d5   :  { %9865 = vmatpush1.bf16.msra.mxu0 %v15653_v27  ;;  %9743 = vmatprep.subr.bf16.mxu1 %v15658_v11  ;;  %v15722_v27 = vld [vmem:[#allocation8 + $0x30] ss:$88 sps:$4 sm:$0xff]  }
 0x4d6   :  { %9866 = vmatprep.subr.bf16.mxu0 %v15661_v19  ;;  %v15725_v11 = vld [vmem:[#allocation8 + $0x38] ss:$88 sps:$4 sm:$0xff]   ;;  %v15730_v19 = vld [vmem:[#allocation8 + $0xe4] ss:$88 sps:$4 sm:$0xff]  }
 0x4d8   :  { %9744 = vmatpush1.bf16.msra.mxu1 %v15656_v56  ;;  %v15733_v56 = vld [vmem:[#allocation8 + $0xec] ss:$88 sps:$4 sm:$0xff]  }
 0x4d9   :  { %9867 = vmatpush1.bf16.msra.mxu0 %v15659_v28  ;;  %9745 = vmatprep.subr.bf16.mxu1 %v15664_v13  ;;  %v15728_v28 = vld [vmem:[#allocation8 + $0xe0] ss:$88 sps:$4 sm:$0xff]  }
 0x4da   :  { %9868 = vmatprep.subr.bf16.mxu0 %v15667_v32  ;;  %v15731_v13 = vld [vmem:[#allocation8 + $0xe8] ss:$88 sps:$4 sm:$0xff]   ;;  %v15736_v32 = vld [vmem:[#allocation8 + $0x194] ss:$88 sps:$4 sm:$0xff]  }
 0x4dc   :  { %9746 = vmatpush1.bf16.msra.mxu1 %v15662_v33  ;;  %v15739_v33 = vld [vmem:[#allocation8 + $0x19c] ss:$88 sps:$4 sm:$0xff]  }
 0x4dd   :  { %9869 = vmatpush1.bf16.msra.mxu0 %v15665_v34  ;;  %9747 = vmatprep.subr.bf16.mxu1 %v15670_v40  ;;  %v15734_v34 = vld [vmem:[#allocation8 + $0x190] ss:$88 sps:$4 sm:$0xff]  }
 0x4de   :  { %9870 = vmatprep.subr.bf16.mxu0 %v15673_v31  ;;  %v15737_v40 = vld [vmem:[#allocation8 + $0x198] ss:$88 sps:$4 sm:$0xff]   ;;  %v15742_v31 = vld [vmem:[#allocation8 + $0x244] ss:$88 sps:$4 sm:$0xff]  }
 0x4e0   :  { %9748 = vmatpush1.bf16.msra.mxu1 %v15668_v18  ;;  %v15745_v18 = vld [vmem:[#allocation8 + $0x24c] ss:$88 sps:$4 sm:$0xff]  }
 0x4e1   :  { %9871 = vmatpush1.bf16.msra.mxu0 %v15671_v12  ;;  %9749 = vmatprep.subr.bf16.mxu1 %v15676_v35  ;;  %v15740_v12 = vld [vmem:[#allocation8 + $0x240] ss:$88 sps:$4 sm:$0xff]  }
 0x4e2   :  { %9872 = vmatprep.subr.bf16.mxu0 %v15679_v44  ;;  %v15743_v35 = vld [vmem:[#allocation8 + $0x248] ss:$88 sps:$4 sm:$0xff]   ;;  %v15748_v44 = vld [vmem:[#allocation8 + $0x2f4] ss:$88 sps:$4 sm:$0xff]  }
 0x4e4   :  { %9750 = vmatpush1.bf16.msra.mxu1 %v15674_v39  ;;  %v15751_v39 = vld [vmem:[#allocation8 + $0x2fc] ss:$88 sps:$4 sm:$0xff]  }
 0x4e5   :  { %9873 = vmatpush1.bf16.msra.mxu0 %v15677_v63  ;;  %9751 = vmatprep.subr.bf16.mxu1 %v15682_v9  ;;  %v15746_v63 = vld [vmem:[#allocation8 + $0x2f0] ss:$88 sps:$4 sm:$0xff]  }
 0x4e6   :  { %9874 = vmatprep.subr.bf16.mxu0 %v15685_v30  ;;  %v15749_v9 = vld [vmem:[#allocation8 + $0x2f8] ss:$88 sps:$4 sm:$0xff]   ;;  %v15756_v30 = vld [vmem:[#allocation8 + $0x3a4] ss:$88 sps:$4 sm:$0xff]  }
 0x4e8   :  { %9752 = vmatpush1.bf16.msra.mxu1 %v15680_v49  ;;  %v15759_v49 = vld [vmem:[#allocation8 + $0x3ac] ss:$88 sps:$4 sm:$0xff]  }
 0x4e9   :  { %9875 = vmatpush1.bf16.msra.mxu0 %v15683_v57  ;;  %9753 = vmatprep.subr.bf16.mxu1 %v15688_v1  ;;  %v15754_v57 = vld [vmem:[#allocation8 + $0x3a0] ss:$88 sps:$4 sm:$0xff]  }
 0x4ea   :  { %9876 = vmatprep.subr.bf16.mxu0 %v15691_v37  ;;  %v15757_v1 = vld [vmem:[#allocation8 + $0x3a8] ss:$88 sps:$4 sm:$0xff]   ;;  %v15762_v37 = vld [vmem:[#allocation8 + $0x454] ss:$88 sps:$4 sm:$0xff]  }
 0x4ec   :  { %9754 = vmatpush1.bf16.msra.mxu1 %v15686_v59 }
 0x4ed   :  { %9877 = vmatpush1.bf16.msra.mxu0 %v15689_v8  ;;  %9755 = vmatprep.subr.bf16.mxu1 %v15694_v7  ;;  %v15765_v8 = vld [vmem:[#allocation8 + $0x45c] ss:$88 sps:$4 sm:$0xff]  }
 0x4ee   :  { %9878 = vmatprep.subr.bf16.mxu0 %v15697_v38 }
 0x4f0   :  { %9756 = vmatpush1.bf16.msra.mxu1 %v15692_v51 }
 0x4f1   :  { %9879 = vmatpush1.bf16.msra.mxu0 %v15695_v22  ;;  %9757 = vmatprep.subr.bf16.mxu1 %v15700_v55  ;;  %v15760_v55 = vld [vmem:[#allocation8 + $0x450] ss:$88 sps:$4 sm:$0xff]  }
 0x4f2   :  { %9880 = vmatprep.subr.bf16.mxu0 %v15703_v47 }
 0x4f4   :  { %9758 = vmatpush1.bf16.msra.mxu1 %v15698_v41 }
 0x4f5   :  { %9881 = vmatpush1.bf16.msra.mxu0 %v15701_v50  ;;  %9759 = vmatprep.subr.bf16.mxu1 %v15706_v53  ;;  %v15763_v50 = vld [vmem:[#allocation8 + $0x458] ss:$88 sps:$4 sm:$0xff]   ;;  %v15768_v53 = vld [vmem:[#allocation8 + $0x504] ss:$88 sps:$4 sm:$0xff]  }
 0x4f6   :  { %9882 = vmatprep.subr.bf16.mxu0 %v15709_v14 }
 0x4f8   :  { %9760 = vmatpush1.bf16.msra.mxu1 %v15704_v60  ;;  %v15771_v60 = vld [vmem:[#allocation8 + $0x50c] ss:$88 sps:$4 sm:$0xff]  }
 0x4f9   :  { %9883 = vmatpush1.bf16.msra.mxu0 %v15707_v61  ;;  %9761 = vmatprep.subr.bf16.mxu1 %v15712_v5  ;;  %v15766_v61 = vld [vmem:[#allocation8 + $0x500] ss:$88 sps:$4 sm:$0xff]  }
 0x4fa   :  { %9884 = vmatprep.subr.bf16.mxu0 %v15715_v16  ;;  %v15769_v5 = vld [vmem:[#allocation8 + $0x508] ss:$88 sps:$4 sm:$0xff]   ;;  %v15774_v16 = vld [vmem:[#allocation8 + $0x5b4] ss:$88 sps:$4 sm:$0xff]  }
 0x4fc   :  { %9762 = vmatpush1.bf16.msra.mxu1 %v15710_v26  ;;  %v15777_v26 = vld [vmem:[#allocation8 + $0x5bc] ss:$88 sps:$4 sm:$0xff]  }
 0x4fd   :  { %9885 = vmatpush1.bf16.msra.mxu0 %v15713_v0  ;;  %9763 = vmatprep.subr.bf16.mxu1 %v15718_v15  ;;  %v15772_v0 = vld [vmem:[#allocation8 + $0x5b0] ss:$88 sps:$4 sm:$0xff]  }
 0x4fe   :  { %9886 = vmatprep.subr.bf16.mxu0 %v15721_v23  ;;  %v15775_v15 = vld [vmem:[#allocation8 + $0x5b8] ss:$88 sps:$4 sm:$0xff]   ;;  %v15780_v23 = vld [vmem:[#allocation8 + $0x664] ss:$88 sps:$4 sm:$0xff]  }
 0x500   :  { %9764 = vmatpush1.bf16.msra.mxu1 %v15716_v24  ;;  %v15783_v24 = vld [vmem:[#allocation8 + $0x66c] ss:$88 sps:$4 sm:$0xff]  }
 0x501   :  { %9887 = vmatpush1.bf16.msra.mxu0 %v15719_v25  ;;  %9897 = vmatprep.subr.bf16.mxu1 %v15724_v58  ;;  %v15778_v25 = vld [vmem:[#allocation8 + $0x660] ss:$88 sps:$4 sm:$0xff]  }
 0x502   :  { %10020 = vmatprep.subr.bf16.mxu0 %v15727_v43  ;;  %v15781_v58 = vld [vmem:[#allocation8 + $0x668] ss:$88 sps:$4 sm:$0xff]   ;;  %v15786_v43 = vld [vmem:[#allocation8 + $0x714] ss:$88 sps:$4 sm:$0xff]  }
 0x503   :  { %9766 = vmatmul.mubr.bf16.vlgmr.msra.gmra.mrb[12].mxu1 %v17293_v52 }
 0x504   :  { %9889 = vmatmul.mubr.bf16.vlgmr.msra.gmra.mrb[16].mxu0 %v17293_v52  ;;  %9898 = vmatpush1.bf16.msra.mxu1 %v15722_v27  ;;  %v15789_v27 = vld [vmem:[#allocation8 + $0x71c] ss:$88 sps:$4 sm:$0xff]  }
 0x505   :  { %9929 = vmatprep.mubr.bf16.mxu1 %v17261_v48  ;;  %10021 = vmatpush1.bf16.msra.mxu0 %v15725_v11  ;;  %v15784_v11 = vld [vmem:[#allocation8 + $0x710] ss:$88 sps:$4 sm:$0xff]  }
 0x506   :  { %10052 = vmatprep.mubr.bf16.mxu0 %v17261_v48  ;;  %9899 = vmatprep.subr.bf16.mxu1 %v15730_v19  ;;  %v15787_v19 = vld [vmem:[#allocation8 + $0x718] ss:$88 sps:$4 sm:$0xff]  }
 0x507   :  { %10022 = vmatprep.subr.bf16.mxu0 %v15733_v56  ;;  %v15792_v56 = vld [vmem:[#allocation8 + $0x7c4] ss:$88 sps:$4 sm:$0xff]  }
 0x508   :  { %9900 = vmatpush1.bf16.msra.mxu1 %v15728_v28  ;;  %v15795_v28 = vld [vmem:[#allocation8 + $0x7cc] ss:$88 sps:$4 sm:$0xff]  }
 0x509   :  { %10023 = vmatpush1.bf16.msra.mxu0 %v15731_v13  ;;  %9901 = vmatprep.subr.bf16.mxu1 %v15736_v32  ;;  %v15790_v13 = vld [vmem:[#allocation8 + $0x7c0] ss:$88 sps:$4 sm:$0xff]  }
 0x50a   :  { %10024 = vmatprep.subr.bf16.mxu0 %v15739_v33  ;;  %v15793_v32 = vld [vmem:[#allocation8 + $0x7c8] ss:$88 sps:$4 sm:$0xff]   ;;  %v15798_v33 = vld [vmem:[#allocation8 + $0x874] ss:$88 sps:$4 sm:$0xff]  }
 0x50c   :  { %9902 = vmatpush1.bf16.msra.mxu1 %v15734_v34  ;;  %v15801_v34 = vld [vmem:[#allocation8 + $0x87c] ss:$88 sps:$4 sm:$0xff]  }
 0x50d   :  { %10025 = vmatpush1.bf16.msra.mxu0 %v15737_v40  ;;  %9903 = vmatprep.subr.bf16.mxu1 %v15742_v31  ;;  %v15796_v40 = vld [vmem:[#allocation8 + $0x870] ss:$88 sps:$4 sm:$0xff]  }
 0x50e   :  { %10026 = vmatprep.subr.bf16.mxu0 %v15745_v18  ;;  %v15799_v31 = vld [vmem:[#allocation8 + $0x878] ss:$88 sps:$4 sm:$0xff]   ;;  %v15804_v18 = vld [vmem:[#allocation8 + $0x924] ss:$88 sps:$4 sm:$0xff]  }
 0x510   :  { %9904 = vmatpush1.bf16.msra.mxu1 %v15740_v12  ;;  %v15807_v12 = vld [vmem:[#allocation8 + $0x92c] ss:$88 sps:$4 sm:$0xff]  }
 0x511   :  { %10027 = vmatpush1.bf16.msra.mxu0 %v15743_v35  ;;  %9905 = vmatprep.subr.bf16.mxu1 %v15748_v44  ;;  %v15802_v35 = vld [vmem:[#allocation8 + $0x920] ss:$88 sps:$4 sm:$0xff]  }
 0x512   :  { %10028 = vmatprep.subr.bf16.mxu0 %v15751_v39  ;;  %v15805_v44 = vld [vmem:[#allocation8 + $0x928] ss:$88 sps:$4 sm:$0xff]   ;;  %v15810_v39 = vld [vmem:[#allocation8 + $0x9d4] ss:$88 sps:$4 sm:$0xff]  }
 0x514   :  { %9906 = vmatpush1.bf16.msra.mxu1 %v15746_v63  ;;  %v15813_v63 = vld [vmem:[#allocation8 + $0x9dc] ss:$88 sps:$4 sm:$0xff]  }
 0x515   :  { %10029 = vmatpush1.bf16.msra.mxu0 %v15749_v9  ;;  %9907 = vmatprep.subr.bf16.mxu1 %v15756_v30  ;;  %v15808_v9 = vld [vmem:[#allocation8 + $0x9d0] ss:$88 sps:$4 sm:$0xff]  }
 0x516   :  { %v17333_v59 = vpop.f32.mrb[8].mxu1  ;;  %10030 = vmatprep.subr.bf16.mxu0 %v15759_v49  ;;  %v15811_v30 = vld [vmem:[#allocation8 + $0x9d8] ss:$88 sps:$4 sm:$0xff]   ;;  %v15816_v49 = vld [vmem:[#allocation8 + $0xa84] ss:$88 sps:$4 sm:$0xff]  }
 0x517   :  { %v17335_v7 = vpop.f32.mrb[12].mxu0  ;;  %v17337_v38 = vpop.f32.mrb[9].mxu1 }
 0x518   :  { %v17339_v51 = vpop.f32.mrb[13].mxu0  ;;  %v9525_v22 = vpop.f32.mrb[10].mxu1  ;;  %9908 = vmatpush1.bf16.msra.mxu1 %v15754_v57  ;;  %v15819_v57 = vld [vmem:[#allocation8 + $0xa8c] ss:$88 sps:$4 sm:$0xff]  }
 0x519   :  { %v9648_v47 = vpop.f32.mrb[14].mxu0  ;;  %10031 = vmatpush1.bf16.msra.mxu0 %v15757_v1  ;;  %v9526_v41 = vpop.f32.mrb[11].mxu1  ;;  %9909 = vmatprep.subr.bf16.mxu1 %v15762_v37  ;;  %v15814_v1 = vld [vmem:[#allocation8 + $0xa80] ss:$88 sps:$4 sm:$0xff]   ;;  %v15825_v22 = vld [vmem:[#allocation8 + $0xb3c] ss:$88 sps:$4 sm:$0xff]  }
 0x51a   :  { %v9649_v14 = vpop.f32.mrb[15].mxu0  ;;  %10032 = vmatprep.subr.bf16.mxu0 %v15765_v8  ;;  %v15817_v37 = vld [vmem:[#allocation8 + $0xa88] ss:$88 sps:$4 sm:$0xff]   ;;  %v15822_v8 = vld [vmem:[#allocation8 + $0xb34] ss:$88 sps:$4 sm:$0xff]  }
 0x51b   :  { %v15823_v47 = vld [vmem:[#allocation8 + $0xb38] ss:$88 sps:$4 sm:$0xff]   ;;  %v15828_v41 = vld [vmem:[#allocation8 + $0xbe4] ss:$88 sps:$4 sm:$0xff]   ;;  %v15829_v14 = vld [vmem:[#allocation8 + $0xbe8] ss:$88 sps:$4 sm:$0xff]  }
 0x51c   :  { %9910 = vmatpush1.bf16.msra.mxu1 %v15760_v55  ;;  %v15820_v55 = vld [vmem:[#allocation8 + $0xb30] ss:$88 sps:$4 sm:$0xff]  }
 0x51d   :  { %10033 = vmatpush1.bf16.msra.mxu0 %v15763_v50  ;;  %9911 = vmatprep.subr.bf16.mxu1 %v15768_v53  ;;  %v15831_v50 = vld [vmem:[#allocation8 + $0xbec] ss:$88 sps:$4 sm:$0xff]   ;;  %v15826_v53 = vld [vmem:[#allocation8 + $0xbe0] ss:$88 sps:$4 sm:$0xff]  }
 0x51e   :  { %10034 = vmatprep.subr.bf16.mxu0 %v15771_v60  ;;  %v15834_v60 = vld [vmem:[#allocation8 + $0xc94] ss:$88 sps:$4 sm:$0xff]  }
 0x520   :  { %9912 = vmatpush1.bf16.msra.mxu1 %v15766_v61  ;;  %v15837_v61 = vld [vmem:[#allocation8 + $0xc9c] ss:$88 sps:$4 sm:$0xff]  }
 0x521   :  { %10035 = vmatpush1.bf16.msra.mxu0 %v15769_v5  ;;  %9913 = vmatprep.subr.bf16.mxu1 %v15774_v16  ;;  %v15832_v5 = vld [vmem:[#allocation8 + $0xc90] ss:$88 sps:$4 sm:$0xff]  }
 0x522   :  { %10036 = vmatprep.subr.bf16.mxu0 %v15777_v26  ;;  %v15835_v16 = vld [vmem:[#allocation8 + $0xc98] ss:$88 sps:$4 sm:$0xff]   ;;  %v15840_v26 = vld [vmem:[#allocation8 + $0xd44] ss:$88 sps:$4 sm:$0xff]  }
 0x524   :  { %9914 = vmatpush1.bf16.msra.mxu1 %v15772_v0  ;;  %v15843_v0 = vld [vmem:[#allocation8 + $0xd4c] ss:$88 sps:$4 sm:$0xff]  }
 0x525   :  { %10037 = vmatpush1.bf16.msra.mxu0 %v15775_v15  ;;  %9915 = vmatprep.subr.bf16.mxu1 %v15780_v23  ;;  %v15838_v15 = vld [vmem:[#allocation8 + $0xd40] ss:$88 sps:$4 sm:$0xff]  }
 0x526   :  { %10038 = vmatprep.subr.bf16.mxu0 %v15783_v24  ;;  %v15841_v23 = vld [vmem:[#allocation8 + $0xd48] ss:$88 sps:$4 sm:$0xff]   ;;  %v15846_v24 = vld [vmem:[#allocation8 + $0xdf4] ss:$88 sps:$4 sm:$0xff]  }
 0x528   :  { %9916 = vmatpush1.bf16.msra.mxu1 %v15778_v25  ;;  %v15849_v25 = vld [vmem:[#allocation8 + $0xdfc] ss:$88 sps:$4 sm:$0xff]  }
 0x529   :  { %10039 = vmatpush1.bf16.msra.mxu0 %v15781_v58  ;;  %9917 = vmatprep.subr.bf16.mxu1 %v15786_v43  ;;  %v15844_v58 = vld [vmem:[#allocation8 + $0xdf0] ss:$88 sps:$4 sm:$0xff]  }
 0x52a   :  { %10040 = vmatprep.subr.bf16.mxu0 %v15789_v27  ;;  %v15847_v43 = vld [vmem:[#allocation8 + $0xdf8] ss:$88 sps:$4 sm:$0xff]   ;;  %v15852_v27 = vld [vmem:[#allocation8 + $0xea4] ss:$88 sps:$4 sm:$0xff]  }
 0x52c   :  { %9918 = vmatpush1.bf16.msra.mxu1 %v15784_v11  ;;  %v15855_v11 = vld [vmem:[#allocation8 + $0xeac] ss:$88 sps:$4 sm:$0xff]  }
 0x52d   :  { %10041 = vmatpush1.bf16.msra.mxu0 %v15787_v19  ;;  %9919 = vmatprep.subr.bf16.mxu1 %v15792_v56  ;;  %v15850_v19 = vld [vmem:[#allocation8 + $0xea0] ss:$88 sps:$4 sm:$0xff]  }
 0x52e   :  { %10042 = vmatprep.subr.bf16.mxu0 %v15795_v28  ;;  %v15853_v56 = vld [vmem:[#allocation8 + $0xea8] ss:$88 sps:$4 sm:$0xff]   ;;  %v15858_v28 = vld [vmem:[#allocation8 + $0xf54] ss:$88 sps:$4 sm:$0xff]  }
 0x530   :  { %9920 = vmatpush1.bf16.msra.mxu1 %v15790_v13  ;;  %v15861_v13 = vld [vmem:[#allocation8 + $0xf5c] ss:$88 sps:$4 sm:$0xff]  }
 0x531   :  { %10043 = vmatpush1.bf16.msra.mxu0 %v15793_v32  ;;  %9921 = vmatprep.subr.bf16.mxu1 %v15798_v33  ;;  %v15856_v32 = vld [vmem:[#allocation8 + $0xf50] ss:$88 sps:$4 sm:$0xff]  }
 0x532   :  { %10044 = vmatprep.subr.bf16.mxu0 %v15801_v34  ;;  %v15859_v33 = vld [vmem:[#allocation8 + $0xf58] ss:$88 sps:$4 sm:$0xff]   ;;  %v15864_v34 = vld [vmem:[#allocation8 + $0x1004] ss:$88 sps:$4 sm:$0xff]  }
 0x534   :  { %9922 = vmatpush1.bf16.msra.mxu1 %v15796_v40  ;;  %v15867_v40 = vld [vmem:[#allocation8 + $0x100c] ss:$88 sps:$4 sm:$0xff]  }
 0x535   :  { %10045 = vmatpush1.bf16.msra.mxu0 %v15799_v31  ;;  %9923 = vmatprep.subr.bf16.mxu1 %v15804_v18  ;;  %v15862_v31 = vld [vmem:[#allocation8 + $0x1000] ss:$88 sps:$4 sm:$0xff]  }
 0x536   :  { %10046 = vmatprep.subr.bf16.mxu0 %v15807_v12  ;;  %v15865_v18 = vld [vmem:[#allocation8 + $0x1008] ss:$88 sps:$4 sm:$0xff]   ;;  %v15870_v12 = vld [vmem:[#allocation8 + $0x10b4] ss:$88 sps:$4 sm:$0xff]  }
 0x538   :  { %9924 = vmatpush1.bf16.msra.mxu1 %v15802_v35  ;;  %v15873_v35 = vld [vmem:[#allocation8 + $0x10bc] ss:$88 sps:$4 sm:$0xff]  }
 0x539   :  { %10047 = vmatpush1.bf16.msra.mxu0 %v15805_v44  ;;  %9925 = vmatprep.subr.bf16.mxu1 %v15810_v39  ;;  %v15868_v44 = vld [vmem:[#allocation8 + $0x10b0] ss:$88 sps:$4 sm:$0xff]  }
 0x53a   :  { %10048 = vmatprep.subr.bf16.mxu0 %v15813_v63  ;;  %v15871_v39 = vld [vmem:[#allocation8 + $0x10b8] ss:$88 sps:$4 sm:$0xff]   ;;  %v15876_v63 = vld [vmem:[#allocation8 + $0x1164] ss:$88 sps:$4 sm:$0xff]  }
 0x53c   :  { %9926 = vmatpush1.bf16.msra.mxu1 %v15808_v9  ;;  %v15879_v9 = vld [vmem:[#allocation8 + $0x116c] ss:$88 sps:$4 sm:$0xff]  }
 0x53d   :  { %10049 = vmatpush1.bf16.msra.mxu0 %v15811_v30  ;;  %9927 = vmatprep.subr.bf16.mxu1 %v15816_v49  ;;  %v15874_v30 = vld [vmem:[#allocation8 + $0x1160] ss:$88 sps:$4 sm:$0xff]  }
 0x53e   :  { %10050 = vmatprep.subr.bf16.mxu0 %v15819_v57  ;;  %v15877_v49 = vld [vmem:[#allocation8 + $0x1168] ss:$88 sps:$4 sm:$0xff]   ;;  %v15882_v57 = vld [vmem:[#allocation8 + $0x1214] ss:$88 sps:$4 sm:$0xff]  }
 0x540   :  { %9928 = vmatpush1.bf16.msra.mxu1 %v15814_v1  ;;  %v15885_v1 = vld [vmem:[#allocation8 + $0x121c] ss:$88 sps:$4 sm:$0xff]  }
 0x541   :  { %10051 = vmatpush1.bf16.msra.mxu0 %v15817_v37  ;;  %9938 = vmatprep.subr.bf16.mxu1 %v15822_v8  ;;  %v15880_v37 = vld [vmem:[#allocation8 + $0x1210] ss:$88 sps:$4 sm:$0xff]  }
 0x542   :  { %10061 = vmatprep.subr.bf16.mxu0 %v15825_v22  ;;  %v15883_v8 = vld [vmem:[#allocation8 + $0x1218] ss:$88 sps:$4 sm:$0xff]   ;;  %v15888_v22 = vld [vmem:[#allocation8 + $0x12c4] ss:$88 sps:$4 sm:$0xff]  }
 0x543   :  { %9930 = vmatmul.mubr.bf16.vlgmr.msra.gmra.mrb[16].mxu1 %v17263_v45 }
 0x544   :  { %10053 = vmatmul.mubr.bf16.vlgmr.msra.gmra.mrb[20].mxu0 %v17263_v45  ;;  %9939 = vmatpush1.bf16.msra.mxu1 %v15820_v55  ;;  %v15891_v55 = vld [vmem:[#allocation8 + $0x12cc] ss:$88 sps:$4 sm:$0xff]  }
 0x545   :  { %9970 = vmatprep.mubr.bf16.mxu1 %v17265_v36  ;;  %10062 = vmatpush1.bf16.msra.mxu0 %v15823_v47  ;;  %v15886_v47 = vld [vmem:[#allocation8 + $0x12c0] ss:$88 sps:$4 sm:$0xff]  }
 0x546   :  { %10093 = vmatprep.mubr.bf16.mxu0 %v17265_v36  ;;  %9940 = vmatprep.subr.bf16.mxu1 %v15828_v41  ;;  %v15889_v41 = vld [vmem:[#allocation8 + $0x12c8] ss:$88 sps:$4 sm:$0xff]  }
 0x547   :  { %10063 = vmatprep.subr.bf16.mxu0 %v15831_v50  ;;  %v15894_v50 = vld [vmem:[#allocation8 + $0x1374] ss:$88 sps:$4 sm:$0xff]  }
 0x548   :  { %9941 = vmatpush1.bf16.msra.mxu1 %v15826_v53  ;;  %v15897_v53 = vld [vmem:[#allocation8 + $0x137c] ss:$88 sps:$4 sm:$0xff]  }
 0x549   :  { %10064 = vmatpush1.bf16.msra.mxu0 %v15829_v14  ;;  %9942 = vmatprep.subr.bf16.mxu1 %v15834_v60  ;;  %v15892_v14 = vld [vmem:[#allocation8 + $0x1370] ss:$88 sps:$4 sm:$0xff]  }
 0x54a   :  { %10065 = vmatprep.subr.bf16.mxu0 %v15837_v61  ;;  %v15895_v60 = vld [vmem:[#allocation8 + $0x1378] ss:$88 sps:$4 sm:$0xff]   ;;  %v15900_v61 = vld [vmem:[#allocation8 + $0x1424] ss:$88 sps:$4 sm:$0xff]  }
 0x54c   :  { %9943 = vmatpush1.bf16.msra.mxu1 %v15832_v5  ;;  %v15903_v5 = vld [vmem:[#allocation8 + $0x142c] ss:$88 sps:$4 sm:$0xff]  }
 0x54d   :  { %10066 = vmatpush1.bf16.msra.mxu0 %v15835_v16  ;;  %9944 = vmatprep.subr.bf16.mxu1 %v15840_v26  ;;  %v15898_v16 = vld [vmem:[#allocation8 + $0x1420] ss:$88 sps:$4 sm:$0xff]  }
 0x54e   :  { %10067 = vmatprep.subr.bf16.mxu0 %v15843_v0  ;;  %v15901_v26 = vld [vmem:[#allocation8 + $0x1428] ss:$88 sps:$4 sm:$0xff]   ;;  %v15906_v0 = vld [vmem:[#allocation8 + $0x14d4] ss:$88 sps:$4 sm:$0xff]  }
 0x550   :  { %9945 = vmatpush1.bf16.msra.mxu1 %v15838_v15  ;;  %v15909_v15 = vld [vmem:[#allocation8 + $0x14dc] ss:$88 sps:$4 sm:$0xff]  }
 0x551   :  { %10068 = vmatpush1.bf16.msra.mxu0 %v15841_v23  ;;  %9946 = vmatprep.subr.bf16.mxu1 %v15846_v24  ;;  %v15904_v23 = vld [vmem:[#allocation8 + $0x14d0] ss:$88 sps:$4 sm:$0xff]  }
 0x552   :  { %10069 = vmatprep.subr.bf16.mxu0 %v15849_v25  ;;  %v15907_v24 = vld [vmem:[#allocation8 + $0x14d8] ss:$88 sps:$4 sm:$0xff]   ;;  %v15912_v25 = vld [vmem:[#allocation8 + $0x1584] ss:$88 sps:$4 sm:$0xff]  }
 0x554   :  { %9947 = vmatpush1.bf16.msra.mxu1 %v15844_v58  ;;  %v15915_v58 = vld [vmem:[#allocation8 + $0x158c] ss:$88 sps:$4 sm:$0xff]  }
 0x555   :  { %10070 = vmatpush1.bf16.msra.mxu0 %v15847_v43  ;;  %9948 = vmatprep.subr.bf16.mxu1 %v15852_v27  ;;  %v15910_v43 = vld [vmem:[#allocation8 + $0x1580] ss:$88 sps:$4 sm:$0xff]  }
 0x556   :  { %10071 = vmatprep.subr.bf16.mxu0 %v15855_v11  ;;  %v15913_v27 = vld [vmem:[#allocation8 + $0x1588] ss:$88 sps:$4 sm:$0xff]   ;;  %v15918_v11 = vld [vmem:[#allocation8 + $0x1634] ss:$88 sps:$4 sm:$0xff]  }
 0x558   :  { %9949 = vmatpush1.bf16.msra.mxu1 %v15850_v19  ;;  %v15921_v19 = vld [vmem:[#allocation8 + $0x163c] ss:$88 sps:$4 sm:$0xff]  }
 0x559   :  { %10072 = vmatpush1.bf16.msra.mxu0 %v15853_v56  ;;  %9950 = vmatprep.subr.bf16.mxu1 %v15858_v28  ;;  %v15916_v56 = vld [vmem:[#allocation8 + $0x1630] ss:$88 sps:$4 sm:$0xff]  }
 0x55a   :  { %10073 = vmatprep.subr.bf16.mxu0 %v15861_v13  ;;  %v15919_v28 = vld [vmem:[#allocation8 + $0x1638] ss:$88 sps:$4 sm:$0xff]   ;;  %v15924_v13 = vld [vmem:[#allocation8 + $0x16e4] ss:$88 sps:$4 sm:$0xff]  }
 0x55c   :  { %9951 = vmatpush1.bf16.msra.mxu1 %v15856_v32  ;;  %v15927_v32 = vld [vmem:[#allocation8 + $0x16ec] ss:$88 sps:$4 sm:$0xff]  }
 0x55d   :  { %10074 = vmatpush1.bf16.msra.mxu0 %v15859_v33  ;;  %9952 = vmatprep.subr.bf16.mxu1 %v15864_v34  ;;  %v15922_v33 = vld [vmem:[#allocation8 + $0x16e0] ss:$88 sps:$4 sm:$0xff]  }
 0x55e   :  { %10075 = vmatprep.subr.bf16.mxu0 %v15867_v40  ;;  %v15925_v34 = vld [vmem:[#allocation8 + $0x16e8] ss:$88 sps:$4 sm:$0xff]   ;;  %v15930_v40 = vld [vmem:[#allocation8 + $0x1794] ss:$88 sps:$4 sm:$0xff]  }
 0x560   :  { %9953 = vmatpush1.bf16.msra.mxu1 %v15862_v31  ;;  %v15933_v31 = vld [vmem:[#allocation8 + $0x179c] ss:$88 sps:$4 sm:$0xff]  }
 0x561   :  { %10076 = vmatpush1.bf16.msra.mxu0 %v15865_v18  ;;  %9954 = vmatprep.subr.bf16.mxu1 %v15870_v12  ;;  %v15928_v18 = vld [vmem:[#allocation8 + $0x1790] ss:$88 sps:$4 sm:$0xff]  }
 0x562   :  { %10077 = vmatprep.subr.bf16.mxu0 %v15873_v35  ;;  %v15931_v12 = vld [vmem:[#allocation8 + $0x1798] ss:$88 sps:$4 sm:$0xff]   ;;  %v15936_v35 = vld [vmem:[#allocation8 + $0x1844] ss:$88 sps:$4 sm:$0xff]  }
 0x564   :  { %9955 = vmatpush1.bf16.msra.mxu1 %v15868_v44  ;;  %v15939_v44 = vld [vmem:[#allocation8 + $0x184c] ss:$88 sps:$4 sm:$0xff]  }
 0x565   :  { %10078 = vmatpush1.bf16.msra.mxu0 %v15871_v39  ;;  %9956 = vmatprep.subr.bf16.mxu1 %v15876_v63  ;;  %v15934_v39 = vld [vmem:[#allocation8 + $0x1840] ss:$88 sps:$4 sm:$0xff]  }
 0x566   :  { %10079 = vmatprep.subr.bf16.mxu0 %v15879_v9  ;;  %v15937_v63 = vld [vmem:[#allocation8 + $0x1848] ss:$88 sps:$4 sm:$0xff]   ;;  %v15942_v9 = vld [vmem:[#allocation8 + $0x18f4] ss:$88 sps:$4 sm:$0xff]  }
 0x568   :  { %9957 = vmatpush1.bf16.msra.mxu1 %v15874_v30  ;;  %v15945_v30 = vld [vmem:[#allocation8 + $0x18fc] ss:$88 sps:$4 sm:$0xff]  }
 0x569   :  { %10080 = vmatpush1.bf16.msra.mxu0 %v15877_v49  ;;  %9958 = vmatprep.subr.bf16.mxu1 %v15882_v57  ;;  %v15940_v49 = vld [vmem:[#allocation8 + $0x18f0] ss:$88 sps:$4 sm:$0xff]  }
 0x56a   :  { %10081 = vmatprep.subr.bf16.mxu0 %v15885_v1  ;;  %v15943_v57 = vld [vmem:[#allocation8 + $0x18f8] ss:$88 sps:$4 sm:$0xff]   ;;  %v15948_v1 = vld [vmem:[#allocation8 + $0x19a4] ss:$88 sps:$4 sm:$0xff]  }
 0x56c   :  { %9959 = vmatpush1.bf16.msra.mxu1 %v15880_v37  ;;  %v15951_v37 = vld [vmem:[#allocation8 + $0x19ac] ss:$88 sps:$4 sm:$0xff]  }
 0x56d   :  { %10082 = vmatpush1.bf16.msra.mxu0 %v15883_v8  ;;  %9960 = vmatprep.subr.bf16.mxu1 %v15888_v22  ;;  %v15946_v8 = vld [vmem:[#allocation8 + $0x19a0] ss:$88 sps:$4 sm:$0xff]  }
 0x56e   :  { %10083 = vmatprep.subr.bf16.mxu0 %v15891_v55  ;;  %v15949_v22 = vld [vmem:[#allocation8 + $0x19a8] ss:$88 sps:$4 sm:$0xff]   ;;  %v15954_v55 = vld [vmem:[#allocation8 + $0x1a54] ss:$88 sps:$4 sm:$0xff]  }
 0x570   :  { %9961 = vmatpush1.bf16.msra.mxu1 %v15886_v47  ;;  %v15957_v47 = vld [vmem:[#allocation8 + $0x1a5c] ss:$88 sps:$4 sm:$0xff]  }
 0x571   :  { %10084 = vmatpush1.bf16.msra.mxu0 %v15889_v41  ;;  %9962 = vmatprep.subr.bf16.mxu1 %v15894_v50  ;;  %v15952_v41 = vld [vmem:[#allocation8 + $0x1a50] ss:$88 sps:$4 sm:$0xff]  }
 0x572   :  { %10085 = vmatprep.subr.bf16.mxu0 %v15897_v53  ;;  %v15955_v50 = vld [vmem:[#allocation8 + $0x1a58] ss:$88 sps:$4 sm:$0xff]   ;;  %v15960_v53 = vld [vmem:[#allocation8 + $0x1b04] ss:$88 sps:$4 sm:$0xff]  }
 0x574   :  { %9963 = vmatpush1.bf16.msra.mxu1 %v15892_v14  ;;  %v15963_v14 = vld [vmem:[#allocation8 + $0x1b0c] ss:$88 sps:$4 sm:$0xff]  }
 0x575   :  { %10086 = vmatpush1.bf16.msra.mxu0 %v15895_v60  ;;  %9964 = vmatprep.subr.bf16.mxu1 %v15900_v61  ;;  %v15958_v60 = vld [vmem:[#allocation8 + $0x1b00] ss:$88 sps:$4 sm:$0xff]  }
 0x576   :  { %10087 = vmatprep.subr.bf16.mxu0 %v15903_v5  ;;  %v15961_v61 = vld [vmem:[#allocation8 + $0x1b08] ss:$88 sps:$4 sm:$0xff]   ;;  %v15966_v5 = vld [vmem:[#allocation8 + $0x1bb4] ss:$88 sps:$4 sm:$0xff]  }
 0x578   :  { %9965 = vmatpush1.bf16.msra.mxu1 %v15898_v16  ;;  %v15969_v16 = vld [vmem:[#allocation8 + $0x1bbc] ss:$88 sps:$4 sm:$0xff]  }
 0x579   :  { %10088 = vmatpush1.bf16.msra.mxu0 %v15901_v26  ;;  %9966 = vmatprep.subr.bf16.mxu1 %v15906_v0  ;;  %v15964_v26 = vld [vmem:[#allocation8 + $0x1bb0] ss:$88 sps:$4 sm:$0xff]  }
 0x57a   :  { %10089 = vmatprep.subr.bf16.mxu0 %v15909_v15  ;;  %v15967_v0 = vld [vmem:[#allocation8 + $0x1bb8] ss:$88 sps:$4 sm:$0xff]   ;;  %v15972_v15 = vld [vmem:[#allocation8 + $0x1c64] ss:$88 sps:$4 sm:$0xff]  }
 0x57c   :  { %9967 = vmatpush1.bf16.msra.mxu1 %v15904_v23  ;;  %v15975_v23 = vld [vmem:[#allocation8 + $0x1c6c] ss:$88 sps:$4 sm:$0xff]  }
 0x57d   :  { %10090 = vmatpush1.bf16.msra.mxu0 %v15907_v24  ;;  %9968 = vmatprep.subr.bf16.mxu1 %v15912_v25  ;;  %v15970_v24 = vld [vmem:[#allocation8 + $0x1c60] ss:$88 sps:$4 sm:$0xff]  }
 0x57e   :  { %10091 = vmatprep.subr.bf16.mxu0 %v15915_v58  ;;  %v15973_v25 = vld [vmem:[#allocation8 + $0x1c68] ss:$88 sps:$4 sm:$0xff]   ;;  %v15978_v58 = vld [vmem:[#allocation8 + $0x1d14] ss:$88 sps:$4 sm:$0xff]  }
 0x580   :  { %9969 = vmatpush1.bf16.msra.mxu1 %v15910_v43  ;;  %v15981_v43 = vld [vmem:[#allocation8 + $0x1d1c] ss:$88 sps:$4 sm:$0xff]  }
 0x581   :  { %10092 = vmatpush1.bf16.msra.mxu0 %v15913_v27  ;;  %9979 = vmatprep.subr.bf16.mxu1 %v15918_v11  ;;  %v15976_v27 = vld [vmem:[#allocation8 + $0x1d10] ss:$88 sps:$4 sm:$0xff]  }
 0x582   :  { %10102 = vmatprep.subr.bf16.mxu0 %v15921_v19  ;;  %v15979_v11 = vld [vmem:[#allocation8 + $0x1d18] ss:$88 sps:$4 sm:$0xff]   ;;  %v15984_v19 = vld [vmem:[#allocation8 + $0x1dc4] ss:$88 sps:$4 sm:$0xff]  }
 0x583   :  { %9971 = vmatmul.mubr.bf16.vlgmr.msra.gmra.mrb[16].mxu1 %v17279_v62 }
 0x584   :  { %10094 = vmatmul.mubr.bf16.vlgmr.msra.gmra.mrb[20].mxu0 %v17279_v62  ;;  %9980 = vmatpush1.bf16.msra.mxu1 %v15916_v56  ;;  %v15987_v56 = vld [vmem:[#allocation8 + $0x1dcc] ss:$88 sps:$4 sm:$0xff]  }
 0x585   :  { %10011 = vmatprep.mubr.bf16.mxu1 %v17291_v29  ;;  %10103 = vmatpush1.bf16.msra.mxu0 %v15919_v28  ;;  %v15982_v28 = vld [vmem:[#allocation8 + $0x1dc0] ss:$88 sps:$4 sm:$0xff]  }
 0x586   :  { %10134 = vmatprep.mubr.bf16.mxu0 %v17291_v29  ;;  %9981 = vmatprep.subr.bf16.mxu1 %v15924_v13  ;;  %v15985_v13 = vld [vmem:[#allocation8 + $0x1dc8] ss:$88 sps:$4 sm:$0xff]  }
 0x587   :  { %10104 = vmatprep.subr.bf16.mxu0 %v15927_v32  ;;  %v15990_v32 = vld [vmem:[#allocation8 + $0x1e74] ss:$88 sps:$4 sm:$0xff]  }
 0x588   :  { %9982 = vmatpush1.bf16.msra.mxu1 %v15922_v33  ;;  %v15993_v33 = vld [vmem:[#allocation8 + $0x1e7c] ss:$88 sps:$4 sm:$0xff]  }
 0x589   :  { %10105 = vmatpush1.bf16.msra.mxu0 %v15925_v34  ;;  %9983 = vmatprep.subr.bf16.mxu1 %v15930_v40  ;;  %v15988_v34 = vld [vmem:[#allocation8 + $0x1e70] ss:$88 sps:$4 sm:$0xff]  }
 0x58a   :  { %10106 = vmatprep.subr.bf16.mxu0 %v15933_v31  ;;  %v15991_v40 = vld [vmem:[#allocation8 + $0x1e78] ss:$88 sps:$4 sm:$0xff]   ;;  %v15996_v31 = vld [vmem:[#allocation8 + $0x1f24] ss:$88 sps:$4 sm:$0xff]  }
 0x58c   :  { %9984 = vmatpush1.bf16.msra.mxu1 %v15928_v18  ;;  %v15999_v18 = vld [vmem:[#allocation8 + $0x1f2c] ss:$88 sps:$4 sm:$0xff]  }
 0x58d   :  { %10107 = vmatpush1.bf16.msra.mxu0 %v15931_v12  ;;  %9985 = vmatprep.subr.bf16.mxu1 %v15936_v35  ;;  %v15994_v12 = vld [vmem:[#allocation8 + $0x1f20] ss:$88 sps:$4 sm:$0xff]  }
 0x58e   :  { %10108 = vmatprep.subr.bf16.mxu0 %v15939_v44  ;;  %v15997_v35 = vld [vmem:[#allocation8 + $0x1f28] ss:$88 sps:$4 sm:$0xff]   ;;  %v16002_v44 = vld [vmem:[#allocation8 + $0x1fd4] ss:$88 sps:$4 sm:$0xff]  }
 0x590   :  { %9986 = vmatpush1.bf16.msra.mxu1 %v15934_v39  ;;  %v16005_v39 = vld [vmem:[#allocation8 + $0x1fdc] ss:$88 sps:$4 sm:$0xff]  }
 0x591   :  { %10109 = vmatpush1.bf16.msra.mxu0 %v15937_v63  ;;  %9987 = vmatprep.subr.bf16.mxu1 %v15942_v9  ;;  %v16000_v63 = vld [vmem:[#allocation8 + $0x1fd0] ss:$88 sps:$4 sm:$0xff]  }
 0x592   :  { %10110 = vmatprep.subr.bf16.mxu0 %v15945_v30  ;;  %v16003_v9 = vld [vmem:[#allocation8 + $0x1fd8] ss:$88 sps:$4 sm:$0xff]   ;;  %v16008_v30 = vld [vmem:[#allocation8 + $0x2084] ss:$88 sps:$4 sm:$0xff]  }
 0x594   :  { %9988 = vmatpush1.bf16.msra.mxu1 %v15940_v49  ;;  %v16011_v49 = vld [vmem:[#allocation8 + $0x208c] ss:$88 sps:$4 sm:$0xff]  }
 0x595   :  { %10111 = vmatpush1.bf16.msra.mxu0 %v15943_v57  ;;  %9989 = vmatprep.subr.bf16.mxu1 %v15948_v1  ;;  %v16006_v57 = vld [vmem:[#allocation8 + $0x2080] ss:$88 sps:$4 sm:$0xff]  }
 0x596   :  { %10112 = vmatprep.subr.bf16.mxu0 %v15951_v37  ;;  %v16009_v1 = vld [vmem:[#allocation8 + $0x2088] ss:$88 sps:$4 sm:$0xff]   ;;  %v16014_v37 = vld [vmem:[#allocation8 + $0x44] ss:$88 sps:$4 sm:$0xff]  }
 0x598   :  { %9990 = vmatpush1.bf16.msra.mxu1 %v15946_v8  ;;  %v16017_v8 = vld [vmem:[#allocation8 + $0x4c] ss:$88 sps:$4 sm:$0xff]  }
 0x599   :  { %10113 = vmatpush1.bf16.msra.mxu0 %v15949_v22  ;;  %9991 = vmatprep.subr.bf16.mxu1 %v15954_v55  ;;  %v16012_v22 = vld [vmem:[#allocation8 + $0x40] ss:$88 sps:$4 sm:$0xff]  }
 0x59a   :  { %10114 = vmatprep.subr.bf16.mxu0 %v15957_v47  ;;  %v16015_v55 = vld [vmem:[#allocation8 + $0x48] ss:$88 sps:$4 sm:$0xff]   ;;  %v16020_v47 = vld [vmem:[#allocation8 + $0xf4] ss:$88 sps:$4 sm:$0xff]  }
 0x59c   :  { %9992 = vmatpush1.bf16.msra.mxu1 %v15952_v41  ;;  %v16023_v41 = vld [vmem:[#allocation8 + $0xfc] ss:$88 sps:$4 sm:$0xff]  }
 0x59d   :  { %10115 = vmatpush1.bf16.msra.mxu0 %v15955_v50  ;;  %9993 = vmatprep.subr.bf16.mxu1 %v15960_v53  ;;  %v16018_v50 = vld [vmem:[#allocation8 + $0xf0] ss:$88 sps:$4 sm:$0xff]  }
 0x59e   :  { %10116 = vmatprep.subr.bf16.mxu0 %v15963_v14  ;;  %v16021_v53 = vld [vmem:[#allocation8 + $0xf8] ss:$88 sps:$4 sm:$0xff]   ;;  %v16026_v14 = vld [vmem:[#allocation8 + $0x1a4] ss:$88 sps:$4 sm:$0xff]  }
 0x5a0   :  { %9994 = vmatpush1.bf16.msra.mxu1 %v15958_v60  ;;  %v16029_v60 = vld [vmem:[#allocation8 + $0x1ac] ss:$88 sps:$4 sm:$0xff]  }
 0x5a1   :  { %10117 = vmatpush1.bf16.msra.mxu0 %v15961_v61  ;;  %9995 = vmatprep.subr.bf16.mxu1 %v15966_v5  ;;  %v16024_v61 = vld [vmem:[#allocation8 + $0x1a0] ss:$88 sps:$4 sm:$0xff]  }
 0x5a2   :  { %10118 = vmatprep.subr.bf16.mxu0 %v15969_v16  ;;  %v16027_v5 = vld [vmem:[#allocation8 + $0x1a8] ss:$88 sps:$4 sm:$0xff]   ;;  %v16032_v16 = vld [vmem:[#allocation8 + $0x254] ss:$88 sps:$4 sm:$0xff]  }
 0x5a4   :  { %9996 = vmatpush1.bf16.msra.mxu1 %v15964_v26  ;;  %v16035_v26 = vld [vmem:[#allocation8 + $0x25c] ss:$88 sps:$4 sm:$0xff]  }
 0x5a5   :  { %10119 = vmatpush1.bf16.msra.mxu0 %v15967_v0  ;;  %9997 = vmatprep.subr.bf16.mxu1 %v15972_v15  ;;  %v16030_v0 = vld [vmem:[#allocation8 + $0x250] ss:$88 sps:$4 sm:$0xff]  }
 0x5a6   :  { %10120 = vmatprep.subr.bf16.mxu0 %v15975_v23  ;;  %v16033_v15 = vld [vmem:[#allocation8 + $0x258] ss:$88 sps:$4 sm:$0xff]   ;;  %v16038_v23 = vld [vmem:[#allocation8 + $0x304] ss:$88 sps:$4 sm:$0xff]  }
 0x5a8   :  { %9998 = vmatpush1.bf16.msra.mxu1 %v15970_v24  ;;  %v16041_v24 = vld [vmem:[#allocation8 + $0x30c] ss:$88 sps:$4 sm:$0xff]  }
 0x5a9   :  { %10121 = vmatpush1.bf16.msra.mxu0 %v15973_v25  ;;  %9999 = vmatprep.subr.bf16.mxu1 %v15978_v58  ;;  %v16036_v25 = vld [vmem:[#allocation8 + $0x300] ss:$88 sps:$4 sm:$0xff]  }
 0x5aa   :  { %10122 = vmatprep.subr.bf16.mxu0 %v15981_v43  ;;  %v16039_v58 = vld [vmem:[#allocation8 + $0x308] ss:$88 sps:$4 sm:$0xff]   ;;  %v16046_v43 = vld [vmem:[#allocation8 + $0x3b4] ss:$88 sps:$4 sm:$0xff]  }
 0x5ac   :  { %10000 = vmatpush1.bf16.msra.mxu1 %v15976_v27  ;;  %v16049_v27 = vld [vmem:[#allocation8 + $0x3bc] ss:$88 sps:$4 sm:$0xff]  }
 0x5ad   :  { %10123 = vmatpush1.bf16.msra.mxu0 %v15979_v11  ;;  %10001 = vmatprep.subr.bf16.mxu1 %v15984_v19  ;;  %v16044_v11 = vld [vmem:[#allocation8 + $0x3b0] ss:$88 sps:$4 sm:$0xff]  }
 0x5ae   :  { %10124 = vmatprep.subr.bf16.mxu0 %v15987_v56  ;;  %v16047_v19 = vld [vmem:[#allocation8 + $0x3b8] ss:$88 sps:$4 sm:$0xff]   ;;  %v16052_v56 = vld [vmem:[#allocation8 + $0x464] ss:$88 sps:$4 sm:$0xff]  }
 0x5b0   :  { %10002 = vmatpush1.bf16.msra.mxu1 %v15982_v28 }
 0x5b1   :  { %10125 = vmatpush1.bf16.msra.mxu0 %v15985_v13  ;;  %10003 = vmatprep.subr.bf16.mxu1 %v15990_v32  ;;  %v16055_v13 = vld [vmem:[#allocation8 + $0x46c] ss:$88 sps:$4 sm:$0xff]  }
 0x5b2   :  { %10126 = vmatprep.subr.bf16.mxu0 %v15993_v33 }
 0x5b4   :  { %10004 = vmatpush1.bf16.msra.mxu1 %v15988_v34 }
 0x5b5   :  { %10127 = vmatpush1.bf16.msra.mxu0 %v15991_v40  ;;  %10005 = vmatprep.subr.bf16.mxu1 %v15996_v31  ;;  %v16050_v31 = vld [vmem:[#allocation8 + $0x460] ss:$88 sps:$4 sm:$0xff]  }
 0x5b6   :  { %10128 = vmatprep.subr.bf16.mxu0 %v15999_v18 }
 0x5b8   :  { %10006 = vmatpush1.bf16.msra.mxu1 %v15994_v12 }
 0x5b9   :  { %10129 = vmatpush1.bf16.msra.mxu0 %v15997_v35  ;;  %10007 = vmatprep.subr.bf16.mxu1 %v16002_v44  ;;  %v16053_v35 = vld [vmem:[#allocation8 + $0x468] ss:$88 sps:$4 sm:$0xff]   ;;  %v16058_v44 = vld [vmem:[#allocation8 + $0x514] ss:$88 sps:$4 sm:$0xff]  }
 0x5ba   :  { %10130 = vmatprep.subr.bf16.mxu0 %v16005_v39 }
 0x5bc   :  { %10008 = vmatpush1.bf16.msra.mxu1 %v16000_v63  ;;  %v16061_v63 = vld [vmem:[#allocation8 + $0x51c] ss:$88 sps:$4 sm:$0xff]  }
 0x5bd   :  { %10131 = vmatpush1.bf16.msra.mxu0 %v16003_v9  ;;  %10009 = vmatprep.subr.bf16.mxu1 %v16008_v30  ;;  %v16056_v9 = vld [vmem:[#allocation8 + $0x510] ss:$88 sps:$4 sm:$0xff]  }
 0x5be   :  { %10132 = vmatprep.subr.bf16.mxu0 %v16011_v49  ;;  %v16059_v30 = vld [vmem:[#allocation8 + $0x518] ss:$88 sps:$4 sm:$0xff]   ;;  %v16064_v49 = vld [vmem:[#allocation8 + $0x5c4] ss:$88 sps:$4 sm:$0xff]  }
 0x5c0   :  { %10010 = vmatpush1.bf16.msra.mxu1 %v16006_v57  ;;  %v16067_v57 = vld [vmem:[#allocation8 + $0x5cc] ss:$88 sps:$4 sm:$0xff]  }
 0x5c1   :  { %10133 = vmatpush1.bf16.msra.mxu0 %v16009_v1  ;;  %10143 = vmatprep.subr.bf16.mxu1 %v16014_v37  ;;  %v16062_v1 = vld [vmem:[#allocation8 + $0x5c0] ss:$88 sps:$4 sm:$0xff]  }
 0x5c2   :  { %10266 = vmatprep.subr.bf16.mxu0 %v16017_v8  ;;  %v16065_v37 = vld [vmem:[#allocation8 + $0x5c8] ss:$88 sps:$4 sm:$0xff]   ;;  %v16070_v8 = vld [vmem:[#allocation8 + $0x674] ss:$88 sps:$4 sm:$0xff]  }
 0x5c3   :  { %10012 = vmatmul.mubr.bf16.vlgmr.msra.gmra.mrb[16].mxu1 %v17293_v52 }
 0x5c4   :  { %10135 = vmatmul.mubr.bf16.vlgmr.msra.gmra.mrb[20].mxu0 %v17293_v52  ;;  %10144 = vmatpush1.bf16.msra.mxu1 %v16012_v22  ;;  %v16073_v22 = vld [vmem:[#allocation8 + $0x67c] ss:$88 sps:$4 sm:$0xff]  }
 0x5c5   :  { %10175 = vmatprep.mubr.bf16.mxu1 %v17261_v48  ;;  %10267 = vmatpush1.bf16.msra.mxu0 %v16015_v55  ;;  %v16068_v55 = vld [vmem:[#allocation8 + $0x670] ss:$88 sps:$4 sm:$0xff]  }
 0x5c6   :  { %10298 = vmatprep.mubr.bf16.mxu0 %v17261_v48  ;;  %10145 = vmatprep.subr.bf16.mxu1 %v16020_v47  ;;  %v16071_v47 = vld [vmem:[#allocation8 + $0x678] ss:$88 sps:$4 sm:$0xff]  }
 0x5c7   :  { %10268 = vmatprep.subr.bf16.mxu0 %v16023_v41  ;;  %v16076_v41 = vld [vmem:[#allocation8 + $0x724] ss:$88 sps:$4 sm:$0xff]  }
 0x5c8   :  { %10146 = vmatpush1.bf16.msra.mxu1 %v16018_v50  ;;  %v16079_v50 = vld [vmem:[#allocation8 + $0x72c] ss:$88 sps:$4 sm:$0xff]  }
 0x5c9   :  { %10269 = vmatpush1.bf16.msra.mxu0 %v16021_v53  ;;  %10147 = vmatprep.subr.bf16.mxu1 %v16026_v14  ;;  %v16074_v53 = vld [vmem:[#allocation8 + $0x720] ss:$88 sps:$4 sm:$0xff]  }
 0x5ca   :  { %10270 = vmatprep.subr.bf16.mxu0 %v16029_v60  ;;  %v16077_v14 = vld [vmem:[#allocation8 + $0x728] ss:$88 sps:$4 sm:$0xff]   ;;  %v16082_v60 = vld [vmem:[#allocation8 + $0x7d4] ss:$88 sps:$4 sm:$0xff]  }
 0x5cc   :  { %10148 = vmatpush1.bf16.msra.mxu1 %v16024_v61  ;;  %v16085_v61 = vld [vmem:[#allocation8 + $0x7dc] ss:$88 sps:$4 sm:$0xff]  }
 0x5cd   :  { %10271 = vmatpush1.bf16.msra.mxu0 %v16027_v5  ;;  %10149 = vmatprep.subr.bf16.mxu1 %v16032_v16  ;;  %v16080_v5 = vld [vmem:[#allocation8 + $0x7d0] ss:$88 sps:$4 sm:$0xff]  }
 0x5ce   :  { %10272 = vmatprep.subr.bf16.mxu0 %v16035_v26  ;;  %v16083_v16 = vld [vmem:[#allocation8 + $0x7d8] ss:$88 sps:$4 sm:$0xff]   ;;  %v16088_v26 = vld [vmem:[#allocation8 + $0x884] ss:$88 sps:$4 sm:$0xff]  }
 0x5d0   :  { %10150 = vmatpush1.bf16.msra.mxu1 %v16030_v0  ;;  %v16091_v0 = vld [vmem:[#allocation8 + $0x88c] ss:$88 sps:$4 sm:$0xff]  }
 0x5d1   :  { %10273 = vmatpush1.bf16.msra.mxu0 %v16033_v15  ;;  %10151 = vmatprep.subr.bf16.mxu1 %v16038_v23  ;;  %v16086_v15 = vld [vmem:[#allocation8 + $0x880] ss:$88 sps:$4 sm:$0xff]  }
 0x5d2   :  { %10274 = vmatprep.subr.bf16.mxu0 %v16041_v24  ;;  %v16089_v23 = vld [vmem:[#allocation8 + $0x888] ss:$88 sps:$4 sm:$0xff]   ;;  %v16094_v24 = vld [vmem:[#allocation8 + $0x934] ss:$88 sps:$4 sm:$0xff]  }
 0x5d4   :  { %10152 = vmatpush1.bf16.msra.mxu1 %v16036_v25  ;;  %v16097_v25 = vld [vmem:[#allocation8 + $0x93c] ss:$88 sps:$4 sm:$0xff]  }
 0x5d5   :  { %10275 = vmatpush1.bf16.msra.mxu0 %v16039_v58  ;;  %10153 = vmatprep.subr.bf16.mxu1 %v16046_v43  ;;  %v16092_v58 = vld [vmem:[#allocation8 + $0x930] ss:$88 sps:$4 sm:$0xff]  }
 0x5d6   :  { %v17353_v28 = vpop.f32.mrb[12].mxu1  ;;  %10276 = vmatprep.subr.bf16.mxu0 %v16049_v27  ;;  %v16095_v43 = vld [vmem:[#allocation8 + $0x938] ss:$88 sps:$4 sm:$0xff]   ;;  %v16100_v27 = vld [vmem:[#allocation8 + $0x9e4] ss:$88 sps:$4 sm:$0xff]  }
 0x5d7   :  { %v17355_v32 = vpop.f32.mrb[16].mxu0  ;;  %v17357_v33 = vpop.f32.mrb[13].mxu1 }
 0x5d8   :  { %v17359_v34 = vpop.f32.mrb[17].mxu0  ;;  %v9771_v40 = vpop.f32.mrb[14].mxu1  ;;  %10154 = vmatpush1.bf16.msra.mxu1 %v16044_v11  ;;  %v16103_v11 = vld [vmem:[#allocation8 + $0x9ec] ss:$88 sps:$4 sm:$0xff]  }
 0x5d9   :  { %v9894_v18 = vpop.f32.mrb[18].mxu0  ;;  %10277 = vmatpush1.bf16.msra.mxu0 %v16047_v19  ;;  %v9772_v12 = vpop.f32.mrb[15].mxu1  ;;  %10155 = vmatprep.subr.bf16.mxu1 %v16052_v56  ;;  %v16098_v19 = vld [vmem:[#allocation8 + $0x9e0] ss:$88 sps:$4 sm:$0xff]   ;;  %v16109_v40 = vld [vmem:[#allocation8 + $0xa9c] ss:$88 sps:$4 sm:$0xff]  }
 0x5da   :  { %v9895_v39 = vpop.f32.mrb[19].mxu0  ;;  %10278 = vmatprep.subr.bf16.mxu0 %v16055_v13  ;;  %v16101_v56 = vld [vmem:[#allocation8 + $0x9e8] ss:$88 sps:$4 sm:$0xff]   ;;  %v16106_v13 = vld [vmem:[#allocation8 + $0xa94] ss:$88 sps:$4 sm:$0xff]  }
 0x5db   :  { %v16107_v18 = vld [vmem:[#allocation8 + $0xa98] ss:$88 sps:$4 sm:$0xff]   ;;  %v16112_v12 = vld [vmem:[#allocation8 + $0xb44] ss:$88 sps:$4 sm:$0xff]   ;;  %v16113_v39 = vld [vmem:[#allocation8 + $0xb48] ss:$88 sps:$4 sm:$0xff]  }
 0x5dc   :  { %10156 = vmatpush1.bf16.msra.mxu1 %v16050_v31  ;;  %v16104_v31 = vld [vmem:[#allocation8 + $0xa90] ss:$88 sps:$4 sm:$0xff]  }
 0x5dd   :  { %10279 = vmatpush1.bf16.msra.mxu0 %v16053_v35  ;;  %10157 = vmatprep.subr.bf16.mxu1 %v16058_v44  ;;  %v16115_v35 = vld [vmem:[#allocation8 + $0xb4c] ss:$88 sps:$4 sm:$0xff]   ;;  %v16110_v44 = vld [vmem:[#allocation8 + $0xb40] ss:$88 sps:$4 sm:$0xff]  }
 0x5de   :  { %10280 = vmatprep.subr.bf16.mxu0 %v16061_v63  ;;  %v16118_v63 = vld [vmem:[#allocation8 + $0xbf4] ss:$88 sps:$4 sm:$0xff]  }
 0x5e0   :  { %10158 = vmatpush1.bf16.msra.mxu1 %v16056_v9  ;;  %v16121_v9 = vld [vmem:[#allocation8 + $0xbfc] ss:$88 sps:$4 sm:$0xff]  }
 0x5e1   :  { %10281 = vmatpush1.bf16.msra.mxu0 %v16059_v30  ;;  %10159 = vmatprep.subr.bf16.mxu1 %v16064_v49  ;;  %v16116_v30 = vld [vmem:[#allocation8 + $0xbf0] ss:$88 sps:$4 sm:$0xff]  }
 0x5e2   :  { %10282 = vmatprep.subr.bf16.mxu0 %v16067_v57  ;;  %v16119_v49 = vld [vmem:[#allocation8 + $0xbf8] ss:$88 sps:$4 sm:$0xff]   ;;  %v16124_v57 = vld [vmem:[#allocation8 + $0xca4] ss:$88 sps:$4 sm:$0xff]  }
 0x5e4   :  { %10160 = vmatpush1.bf16.msra.mxu1 %v16062_v1  ;;  %v16127_v1 = vld [vmem:[#allocation8 + $0xcac] ss:$88 sps:$4 sm:$0xff]  }
 0x5e5   :  { %10283 = vmatpush1.bf16.msra.mxu0 %v16065_v37  ;;  %10161 = vmatprep.subr.bf16.mxu1 %v16070_v8  ;;  %v16122_v37 = vld [vmem:[#allocation8 + $0xca0] ss:$88 sps:$4 sm:$0xff]  }
 0x5e6   :  { %10284 = vmatprep.subr.bf16.mxu0 %v16073_v22  ;;  %v16125_v8 = vld [vmem:[#allocation8 + $0xca8] ss:$88 sps:$4 sm:$0xff]   ;;  %v16130_v22 = vld [vmem:[#allocation8 + $0xd54] ss:$88 sps:$4 sm:$0xff]  }
 0x5e8   :  { %10162 = vmatpush1.bf16.msra.mxu1 %v16068_v55  ;;  %v16133_v55 = vld [vmem:[#allocation8 + $0xd5c] ss:$88 sps:$4 sm:$0xff]  }
 0x5e9   :  { %10285 = vmatpush1.bf16.msra.mxu0 %v16071_v47  ;;  %10163 = vmatprep.subr.bf16.mxu1 %v16076_v41  ;;  %v16128_v47 = vld [vmem:[#allocation8 + $0xd50] ss:$88 sps:$4 sm:$0xff]  }
 0x5ea   :  { %10286 = vmatprep.subr.bf16.mxu0 %v16079_v50  ;;  %v16131_v41 = vld [vmem:[#allocation8 + $0xd58] ss:$88 sps:$4 sm:$0xff]   ;;  %v16136_v50 = vld [vmem:[#allocation8 + $0xe04] ss:$88 sps:$4 sm:$0xff]  }
 0x5ec   :  { %10164 = vmatpush1.bf16.msra.mxu1 %v16074_v53  ;;  %v16139_v53 = vld [vmem:[#allocation8 + $0xe0c] ss:$88 sps:$4 sm:$0xff]  }
 0x5ed   :  { %10287 = vmatpush1.bf16.msra.mxu0 %v16077_v14  ;;  %10165 = vmatprep.subr.bf16.mxu1 %v16082_v60  ;;  %v16134_v14 = vld [vmem:[#allocation8 + $0xe00] ss:$88 sps:$4 sm:$0xff]  }
 0x5ee   :  { %10288 = vmatprep.subr.bf16.mxu0 %v16085_v61  ;;  %v16137_v60 = vld [vmem:[#allocation8 + $0xe08] ss:$88 sps:$4 sm:$0xff]   ;;  %v16142_v61 = vld [vmem:[#allocation8 + $0xeb4] ss:$88 sps:$4 sm:$0xff]  }
 0x5f0   :  { %10166 = vmatpush1.bf16.msra.mxu1 %v16080_v5  ;;  %v16145_v5 = vld [vmem:[#allocation8 + $0xebc] ss:$88 sps:$4 sm:$0xff]  }
 0x5f1   :  { %10289 = vmatpush1.bf16.msra.mxu0 %v16083_v16  ;;  %10167 = vmatprep.subr.bf16.mxu1 %v16088_v26  ;;  %v16140_v16 = vld [vmem:[#allocation8 + $0xeb0] ss:$88 sps:$4 sm:$0xff]  }
 0x5f2   :  { %10290 = vmatprep.subr.bf16.mxu0 %v16091_v0  ;;  %v16143_v26 = vld [vmem:[#allocation8 + $0xeb8] ss:$88 sps:$4 sm:$0xff]   ;;  %v16148_v0 = vld [vmem:[#allocation8 + $0xf64] ss:$88 sps:$4 sm:$0xff]  }
 0x5f4   :  { %10168 = vmatpush1.bf16.msra.mxu1 %v16086_v15  ;;  %v16151_v15 = vld [vmem:[#allocation8 + $0xf6c] ss:$88 sps:$4 sm:$0xff]  }
 0x5f5   :  { %10291 = vmatpush1.bf16.msra.mxu0 %v16089_v23  ;;  %10169 = vmatprep.subr.bf16.mxu1 %v16094_v24  ;;  %v16146_v23 = vld [vmem:[#allocation8 + $0xf60] ss:$88 sps:$4 sm:$0xff]  }
 0x5f6   :  { %10292 = vmatprep.subr.bf16.mxu0 %v16097_v25  ;;  %v16149_v24 = vld [vmem:[#allocation8 + $0xf68] ss:$88 sps:$4 sm:$0xff]   ;;  %v16154_v25 = vld [vmem:[#allocation8 + $0x1014] ss:$88 sps:$4 sm:$0xff]  }
 0x5f8   :  { %10170 = vmatpush1.bf16.msra.mxu1 %v16092_v58  ;;  %v16157_v58 = vld [vmem:[#allocation8 + $0x101c] ss:$88 sps:$4 sm:$0xff]  }
 0x5f9   :  { %10293 = vmatpush1.bf16.msra.mxu0 %v16095_v43  ;;  %10171 = vmatprep.subr.bf16.mxu1 %v16100_v27  ;;  %v16152_v43 = vld [vmem:[#allocation8 + $0x1010] ss:$88 sps:$4 sm:$0xff]  }
 0x5fa   :  { %10294 = vmatprep.subr.bf16.mxu0 %v16103_v11  ;;  %v16155_v27 = vld [vmem:[#allocation8 + $0x1018] ss:$88 sps:$4 sm:$0xff]   ;;  %v16160_v11 = vld [vmem:[#allocation8 + $0x10c4] ss:$88 sps:$4 sm:$0xff]  }
 0x5fc   :  { %10172 = vmatpush1.bf16.msra.mxu1 %v16098_v19  ;;  %v16163_v19 = vld [vmem:[#allocation8 + $0x10cc] ss:$88 sps:$4 sm:$0xff]  }
 0x5fd   :  { %10295 = vmatpush1.bf16.msra.mxu0 %v16101_v56  ;;  %10173 = vmatprep.subr.bf16.mxu1 %v16106_v13  ;;  %v16158_v56 = vld [vmem:[#allocation8 + $0x10c0] ss:$88 sps:$4 sm:$0xff]  }
 0x5fe   :  { %10296 = vmatprep.subr.bf16.mxu0 %v16109_v40  ;;  %v16161_v13 = vld [vmem:[#allocation8 + $0x10c8] ss:$88 sps:$4 sm:$0xff]   ;;  %v16166_v40 = vld [vmem:[#allocation8 + $0x1174] ss:$88 sps:$4 sm:$0xff]  }
 0x600   :  { %10174 = vmatpush1.bf16.msra.mxu1 %v16104_v31  ;;  %v16169_v31 = vld [vmem:[#allocation8 + $0x117c] ss:$88 sps:$4 sm:$0xff]  }
 0x601   :  { %10297 = vmatpush1.bf16.msra.mxu0 %v16107_v18  ;;  %10184 = vmatprep.subr.bf16.mxu1 %v16112_v12  ;;  %v16164_v18 = vld [vmem:[#allocation8 + $0x1170] ss:$88 sps:$4 sm:$0xff]  }
 0x602   :  { %10307 = vmatprep.subr.bf16.mxu0 %v16115_v35  ;;  %v16167_v12 = vld [vmem:[#allocation8 + $0x1178] ss:$88 sps:$4 sm:$0xff]   ;;  %v16172_v35 = vld [vmem:[#allocation8 + $0x1224] ss:$88 sps:$4 sm:$0xff]  }
 0x603   :  { %10176 = vmatmul.mubr.bf16.vlgmr.msra.gmra.mrb[20].mxu1 %v17263_v45 }
 0x604   :  { %10299 = vmatmul.mubr.bf16.vlgmr.msra.gmra.mrb[24].mxu0 %v17263_v45  ;;  %10185 = vmatpush1.bf16.msra.mxu1 %v16110_v44  ;;  %v16175_v44 = vld [vmem:[#allocation8 + $0x122c] ss:$88 sps:$4 sm:$0xff]  }
 0x605   :  { %10216 = vmatprep.mubr.bf16.mxu1 %v17265_v36  ;;  %10308 = vmatpush1.bf16.msra.mxu0 %v16113_v39  ;;  %v16170_v39 = vld [vmem:[#allocation8 + $0x1220] ss:$88 sps:$4 sm:$0xff]  }
 0x606   :  { %10339 = vmatprep.mubr.bf16.mxu0 %v17265_v36  ;;  %10186 = vmatprep.subr.bf16.mxu1 %v16118_v63  ;;  %v16173_v63 = vld [vmem:[#allocation8 + $0x1228] ss:$88 sps:$4 sm:$0xff]  }
 0x607   :  { %10309 = vmatprep.subr.bf16.mxu0 %v16121_v9  ;;  %v16178_v9 = vld [vmem:[#allocation8 + $0x12d4] ss:$88 sps:$4 sm:$0xff]  }
 0x608   :  { %10187 = vmatpush1.bf16.msra.mxu1 %v16116_v30  ;;  %v16181_v30 = vld [vmem:[#allocation8 + $0x12dc] ss:$88 sps:$4 sm:$0xff]  }
 0x609   :  { %10310 = vmatpush1.bf16.msra.mxu0 %v16119_v49  ;;  %10188 = vmatprep.subr.bf16.mxu1 %v16124_v57  ;;  %v16176_v49 = vld [vmem:[#allocation8 + $0x12d0] ss:$88 sps:$4 sm:$0xff]  }
 0x60a   :  { %10311 = vmatprep.subr.bf16.mxu0 %v16127_v1  ;;  %v16179_v57 = vld [vmem:[#allocation8 + $0x12d8] ss:$88 sps:$4 sm:$0xff]   ;;  %v16184_v1 = vld [vmem:[#allocation8 + $0x1384] ss:$88 sps:$4 sm:$0xff]  }
 0x60c   :  { %10189 = vmatpush1.bf16.msra.mxu1 %v16122_v37  ;;  %v16187_v37 = vld [vmem:[#allocation8 + $0x138c] ss:$88 sps:$4 sm:$0xff]  }
 0x60d   :  { %10312 = vmatpush1.bf16.msra.mxu0 %v16125_v8  ;;  %10190 = vmatprep.subr.bf16.mxu1 %v16130_v22  ;;  %v16182_v8 = vld [vmem:[#allocation8 + $0x1380] ss:$88 sps:$4 sm:$0xff]  }
 0x60e   :  { %10313 = vmatprep.subr.bf16.mxu0 %v16133_v55  ;;  %v16185_v22 = vld [vmem:[#allocation8 + $0x1388] ss:$88 sps:$4 sm:$0xff]   ;;  %v16190_v55 = vld [vmem:[#allocation8 + $0x1434] ss:$88 sps:$4 sm:$0xff]  }
 0x610   :  { %10191 = vmatpush1.bf16.msra.mxu1 %v16128_v47  ;;  %v16193_v47 = vld [vmem:[#allocation8 + $0x143c] ss:$88 sps:$4 sm:$0xff]  }
 0x611   :  { %10314 = vmatpush1.bf16.msra.mxu0 %v16131_v41  ;;  %10192 = vmatprep.subr.bf16.mxu1 %v16136_v50  ;;  %v16188_v41 = vld [vmem:[#allocation8 + $0x1430] ss:$88 sps:$4 sm:$0xff]  }
 0x612   :  { %10315 = vmatprep.subr.bf16.mxu0 %v16139_v53  ;;  %v16191_v50 = vld [vmem:[#allocation8 + $0x1438] ss:$88 sps:$4 sm:$0xff]   ;;  %v16196_v53 = vld [vmem:[#allocation8 + $0x14e4] ss:$88 sps:$4 sm:$0xff]  }
 0x614   :  { %10193 = vmatpush1.bf16.msra.mxu1 %v16134_v14  ;;  %v16199_v14 = vld [vmem:[#allocation8 + $0x14ec] ss:$88 sps:$4 sm:$0xff]  }
 0x615   :  { %10316 = vmatpush1.bf16.msra.mxu0 %v16137_v60  ;;  %10194 = vmatprep.subr.bf16.mxu1 %v16142_v61  ;;  %v16194_v60 = vld [vmem:[#allocation8 + $0x14e0] ss:$88 sps:$4 sm:$0xff]  }
 0x616   :  { %10317 = vmatprep.subr.bf16.mxu0 %v16145_v5  ;;  %v16197_v61 = vld [vmem:[#allocation8 + $0x14e8] ss:$88 sps:$4 sm:$0xff]   ;;  %v16202_v5 = vld [vmem:[#allocation8 + $0x1594] ss:$88 sps:$4 sm:$0xff]  }
 0x618   :  { %10195 = vmatpush1.bf16.msra.mxu1 %v16140_v16  ;;  %v16205_v16 = vld [vmem:[#allocation8 + $0x159c] ss:$88 sps:$4 sm:$0xff]  }
 0x619   :  { %10318 = vmatpush1.bf16.msra.mxu0 %v16143_v26  ;;  %10196 = vmatprep.subr.bf16.mxu1 %v16148_v0  ;;  %v16200_v26 = vld [vmem:[#allocation8 + $0x1590] ss:$88 sps:$4 sm:$0xff]  }
 0x61a   :  { %10319 = vmatprep.subr.bf16.mxu0 %v16151_v15  ;;  %v16203_v0 = vld [vmem:[#allocation8 + $0x1598] ss:$88 sps:$4 sm:$0xff]   ;;  %v16208_v15 = vld [vmem:[#allocation8 + $0x1644] ss:$88 sps:$4 sm:$0xff]  }
 0x61c   :  { %10197 = vmatpush1.bf16.msra.mxu1 %v16146_v23  ;;  %v16211_v23 = vld [vmem:[#allocation8 + $0x164c] ss:$88 sps:$4 sm:$0xff]  }
 0x61d   :  { %10320 = vmatpush1.bf16.msra.mxu0 %v16149_v24  ;;  %10198 = vmatprep.subr.bf16.mxu1 %v16154_v25  ;;  %v16206_v24 = vld [vmem:[#allocation8 + $0x1640] ss:$88 sps:$4 sm:$0xff]  }
 0x61e   :  { %10321 = vmatprep.subr.bf16.mxu0 %v16157_v58  ;;  %v16209_v25 = vld [vmem:[#allocation8 + $0x1648] ss:$88 sps:$4 sm:$0xff]   ;;  %v16214_v58 = vld [vmem:[#allocation8 + $0x16f4] ss:$88 sps:$4 sm:$0xff]  }
 0x620   :  { %10199 = vmatpush1.bf16.msra.mxu1 %v16152_v43  ;;  %v16217_v43 = vld [vmem:[#allocation8 + $0x16fc] ss:$88 sps:$4 sm:$0xff]  }
 0x621   :  { %10322 = vmatpush1.bf16.msra.mxu0 %v16155_v27  ;;  %10200 = vmatprep.subr.bf16.mxu1 %v16160_v11  ;;  %v16212_v27 = vld [vmem:[#allocation8 + $0x16f0] ss:$88 sps:$4 sm:$0xff]  }
 0x622   :  { %10323 = vmatprep.subr.bf16.mxu0 %v16163_v19  ;;  %v16215_v11 = vld [vmem:[#allocation8 + $0x16f8] ss:$88 sps:$4 sm:$0xff]   ;;  %v16220_v19 = vld [vmem:[#allocation8 + $0x17a4] ss:$88 sps:$4 sm:$0xff]  }
 0x624   :  { %10201 = vmatpush1.bf16.msra.mxu1 %v16158_v56  ;;  %v16223_v56 = vld [vmem:[#allocation8 + $0x17ac] ss:$88 sps:$4 sm:$0xff]  }
 0x625   :  { %10324 = vmatpush1.bf16.msra.mxu0 %v16161_v13  ;;  %10202 = vmatprep.subr.bf16.mxu1 %v16166_v40  ;;  %v16218_v13 = vld [vmem:[#allocation8 + $0x17a0] ss:$88 sps:$4 sm:$0xff]  }
 0x626   :  { %10325 = vmatprep.subr.bf16.mxu0 %v16169_v31  ;;  %v16221_v40 = vld [vmem:[#allocation8 + $0x17a8] ss:$88 sps:$4 sm:$0xff]   ;;  %v16226_v31 = vld [vmem:[#allocation8 + $0x1854] ss:$88 sps:$4 sm:$0xff]  }
 0x628   :  { %10203 = vmatpush1.bf16.msra.mxu1 %v16164_v18  ;;  %v16229_v18 = vld [vmem:[#allocation8 + $0x185c] ss:$88 sps:$4 sm:$0xff]  }
 0x629   :  { %10326 = vmatpush1.bf16.msra.mxu0 %v16167_v12  ;;  %10204 = vmatprep.subr.bf16.mxu1 %v16172_v35  ;;  %v16224_v12 = vld [vmem:[#allocation8 + $0x1850] ss:$88 sps:$4 sm:$0xff]  }
 0x62a   :  { %10327 = vmatprep.subr.bf16.mxu0 %v16175_v44  ;;  %v16227_v35 = vld [vmem:[#allocation8 + $0x1858] ss:$88 sps:$4 sm:$0xff]   ;;  %v16232_v44 = vld [vmem:[#allocation8 + $0x1904] ss:$88 sps:$4 sm:$0xff]  }
 0x62c   :  { %10205 = vmatpush1.bf16.msra.mxu1 %v16170_v39  ;;  %v16235_v39 = vld [vmem:[#allocation8 + $0x190c] ss:$88 sps:$4 sm:$0xff]  }
 0x62d   :  { %10328 = vmatpush1.bf16.msra.mxu0 %v16173_v63  ;;  %10206 = vmatprep.subr.bf16.mxu1 %v16178_v9  ;;  %v16230_v63 = vld [vmem:[#allocation8 + $0x1900] ss:$88 sps:$4 sm:$0xff]  }
 0x62e   :  { %10329 = vmatprep.subr.bf16.mxu0 %v16181_v30  ;;  %v16233_v9 = vld [vmem:[#allocation8 + $0x1908] ss:$88 sps:$4 sm:$0xff]   ;;  %v16238_v30 = vld [vmem:[#allocation8 + $0x19b4] ss:$88 sps:$4 sm:$0xff]  }
 0x630   :  { %10207 = vmatpush1.bf16.msra.mxu1 %v16176_v49  ;;  %v16241_v49 = vld [vmem:[#allocation8 + $0x19bc] ss:$88 sps:$4 sm:$0xff]  }
 0x631   :  { %10330 = vmatpush1.bf16.msra.mxu0 %v16179_v57  ;;  %10208 = vmatprep.subr.bf16.mxu1 %v16184_v1  ;;  %v16236_v57 = vld [vmem:[#allocation8 + $0x19b0] ss:$88 sps:$4 sm:$0xff]  }
 0x632   :  { %10331 = vmatprep.subr.bf16.mxu0 %v16187_v37  ;;  %v16239_v1 = vld [vmem:[#allocation8 + $0x19b8] ss:$88 sps:$4 sm:$0xff]   ;;  %v16244_v37 = vld [vmem:[#allocation8 + $0x1a64] ss:$88 sps:$4 sm:$0xff]  }
 0x634   :  { %10209 = vmatpush1.bf16.msra.mxu1 %v16182_v8  ;;  %v16247_v8 = vld [vmem:[#allocation8 + $0x1a6c] ss:$88 sps:$4 sm:$0xff]  }
 0x635   :  { %10332 = vmatpush1.bf16.msra.mxu0 %v16185_v22  ;;  %10210 = vmatprep.subr.bf16.mxu1 %v16190_v55  ;;  %v16242_v22 = vld [vmem:[#allocation8 + $0x1a60] ss:$88 sps:$4 sm:$0xff]  }
 0x636   :  { %10333 = vmatprep.subr.bf16.mxu0 %v16193_v47  ;;  %v16245_v55 = vld [vmem:[#allocation8 + $0x1a68] ss:$88 sps:$4 sm:$0xff]   ;;  %v16250_v47 = vld [vmem:[#allocation8 + $0x1b14] ss:$88 sps:$4 sm:$0xff]  }
 0x638   :  { %10211 = vmatpush1.bf16.msra.mxu1 %v16188_v41  ;;  %v16253_v41 = vld [vmem:[#allocation8 + $0x1b1c] ss:$88 sps:$4 sm:$0xff]  }
 0x639   :  { %10334 = vmatpush1.bf16.msra.mxu0 %v16191_v50  ;;  %10212 = vmatprep.subr.bf16.mxu1 %v16196_v53  ;;  %v16248_v50 = vld [vmem:[#allocation8 + $0x1b10] ss:$88 sps:$4 sm:$0xff]  }
 0x63a   :  { %10335 = vmatprep.subr.bf16.mxu0 %v16199_v14  ;;  %v16251_v53 = vld [vmem:[#allocation8 + $0x1b18] ss:$88 sps:$4 sm:$0xff]   ;;  %v16256_v14 = vld [vmem:[#allocation8 + $0x1bc4] ss:$88 sps:$4 sm:$0xff]  }
 0x63c   :  { %10213 = vmatpush1.bf16.msra.mxu1 %v16194_v60  ;;  %v16259_v60 = vld [vmem:[#allocation8 + $0x1bcc] ss:$88 sps:$4 sm:$0xff]  }
 0x63d   :  { %10336 = vmatpush1.bf16.msra.mxu0 %v16197_v61  ;;  %10214 = vmatprep.subr.bf16.mxu1 %v16202_v5  ;;  %v16254_v61 = vld [vmem:[#allocation8 + $0x1bc0] ss:$88 sps:$4 sm:$0xff]  }
 0x63e   :  { %10337 = vmatprep.subr.bf16.mxu0 %v16205_v16  ;;  %v16257_v5 = vld [vmem:[#allocation8 + $0x1bc8] ss:$88 sps:$4 sm:$0xff]   ;;  %v16262_v16 = vld [vmem:[#allocation8 + $0x1c74] ss:$88 sps:$4 sm:$0xff]  }
 0x640   :  { %10215 = vmatpush1.bf16.msra.mxu1 %v16200_v26  ;;  %v16265_v26 = vld [vmem:[#allocation8 + $0x1c7c] ss:$88 sps:$4 sm:$0xff]  }
 0x641   :  { %10338 = vmatpush1.bf16.msra.mxu0 %v16203_v0  ;;  %10225 = vmatprep.subr.bf16.mxu1 %v16208_v15  ;;  %v16260_v0 = vld [vmem:[#allocation8 + $0x1c70] ss:$88 sps:$4 sm:$0xff]  }
 0x642   :  { %10348 = vmatprep.subr.bf16.mxu0 %v16211_v23  ;;  %v16263_v15 = vld [vmem:[#allocation8 + $0x1c78] ss:$88 sps:$4 sm:$0xff]   ;;  %v16268_v23 = vld [vmem:[#allocation8 + $0x1d24] ss:$88 sps:$4 sm:$0xff]  }
 0x643   :  { %10217 = vmatmul.mubr.bf16.vlgmr.msra.gmra.mrb[20].mxu1 %v17279_v62 }
 0x644   :  { %10340 = vmatmul.mubr.bf16.vlgmr.msra.gmra.mrb[24].mxu0 %v17279_v62  ;;  %10226 = vmatpush1.bf16.msra.mxu1 %v16206_v24  ;;  %v16271_v24 = vld [vmem:[#allocation8 + $0x1d2c] ss:$88 sps:$4 sm:$0xff]  }
 0x645   :  { %10257 = vmatprep.mubr.bf16.mxu1 %v17291_v29  ;;  %10349 = vmatpush1.bf16.msra.mxu0 %v16209_v25  ;;  %v16266_v25 = vld [vmem:[#allocation8 + $0x1d20] ss:$88 sps:$4 sm:$0xff]  }
 0x646   :  { %10380 = vmatprep.mubr.bf16.mxu0 %v17291_v29  ;;  %10227 = vmatprep.subr.bf16.mxu1 %v16214_v58  ;;  %v16269_v58 = vld [vmem:[#allocation8 + $0x1d28] ss:$88 sps:$4 sm:$0xff]  }
 0x647   :  { %10350 = vmatprep.subr.bf16.mxu0 %v16217_v43  ;;  %v16274_v43 = vld [vmem:[#allocation8 + $0x1dd4] ss:$88 sps:$4 sm:$0xff]  }
 0x648   :  { %10228 = vmatpush1.bf16.msra.mxu1 %v16212_v27  ;;  %v16277_v27 = vld [vmem:[#allocation8 + $0x1ddc] ss:$88 sps:$4 sm:$0xff]  }
 0x649   :  { %10351 = vmatpush1.bf16.msra.mxu0 %v16215_v11  ;;  %10229 = vmatprep.subr.bf16.mxu1 %v16220_v19  ;;  %v16272_v11 = vld [vmem:[#allocation8 + $0x1dd0] ss:$88 sps:$4 sm:$0xff]  }
 0x64a   :  { %10352 = vmatprep.subr.bf16.mxu0 %v16223_v56  ;;  %v16275_v19 = vld [vmem:[#allocation8 + $0x1dd8] ss:$88 sps:$4 sm:$0xff]   ;;  %v16280_v56 = vld [vmem:[#allocation8 + $0x1e84] ss:$88 sps:$4 sm:$0xff]  }
 0x64c   :  { %10230 = vmatpush1.bf16.msra.mxu1 %v16218_v13  ;;  %v16283_v13 = vld [vmem:[#allocation8 + $0x1e8c] ss:$88 sps:$4 sm:$0xff]  }
 0x64d   :  { %10353 = vmatpush1.bf16.msra.mxu0 %v16221_v40  ;;  %10231 = vmatprep.subr.bf16.mxu1 %v16226_v31  ;;  %v16278_v40 = vld [vmem:[#allocation8 + $0x1e80] ss:$88 sps:$4 sm:$0xff]  }
 0x64e   :  { %10354 = vmatprep.subr.bf16.mxu0 %v16229_v18  ;;  %v17369_v31 = vld [vmem:[#allocation10] sm:$0xff] }
 0x64f   :  { %v16281_v18 = vld [vmem:[#allocation8 + $0x1e88] ss:$88 sps:$4 sm:$0xff]  }
 0x650   :  { %10232 = vmatpush1.bf16.msra.mxu1 %v16224_v12  ;;  %v16286_v12 = vld [vmem:[#allocation8 + $0x1f34] ss:$88 sps:$4 sm:$0xff]  }
 0x651   :  { %10355 = vmatpush1.bf16.msra.mxu0 %v16227_v35  ;;  %10233 = vmatprep.subr.bf16.mxu1 %v16232_v44  ;;  %v16289_v35 = vld [vmem:[#allocation8 + $0x1f3c] ss:$88 sps:$4 sm:$0xff]   ;;  %v3776_v44 = vrot.slane %v17369_v31, %v17248_v20 }
 0x652   :  { %10356 = vmatprep.subr.bf16.mxu0 %v16235_v39  ;;  %v16284_v39 = vld [vmem:[#allocation8 + $0x1f30] ss:$88 sps:$4 sm:$0xff]  }
 0x654   :  { %10234 = vmatpush1.bf16.msra.mxu1 %v16230_v63  ;;  %v16287_v63 = vld [vmem:[#allocation8 + $0x1f38] ss:$88 sps:$4 sm:$0xff]  }
 0x655   :  { %10357 = vmatpush1.bf16.msra.mxu0 %v16233_v9  ;;  %10235 = vmatprep.subr.bf16.mxu1 %v16238_v30  ;;  %v16292_v9 = vld [vmem:[#allocation8 + $0x1fe4] ss:$88 sps:$4 sm:$0xff]  }
 0x656   :  { %10358 = vmatprep.subr.bf16.mxu0 %v16241_v49  ;;  %v16295_v30 = vld [vmem:[#allocation8 + $0x1fec] ss:$88 sps:$4 sm:$0xff]   ;;  %v14270_v49 = vadd.f32 %v17317_v46, %v3776_v44 }
 0x657   :  { %v16304_v46 = vld [vmem:[#allocation8 + $0x54] ss:$88 sps:$4 sm:$0xff]   ;;  %v16332_v44 = vld [vmem:[#allocation11 + $0x68] sm:$0xff]  }
 0x658   :  { %10236 = vmatpush1.bf16.msra.mxu1 %v16236_v57  ;;  %v16290_v57 = vld [vmem:[#allocation8 + $0x1fe0] ss:$88 sps:$4 sm:$0xff]  }
 0x659   :  { %10359 = vmatpush1.bf16.msra.mxu0 %v16239_v1  ;;  %10237 = vmatprep.subr.bf16.mxu1 %v16244_v37  ;;  %v17374_v1 = vld [vmem:[#allocation14] sm:$0xff]  ;;  %v16293_v37 = vld [vmem:[#allocation8 + $0x1fe8] ss:$88 sps:$4 sm:$0xff]  }
 0x65a   :  { %10360 = vmatprep.subr.bf16.mxu0 %v16247_v8  ;;  %v16298_v8 = vld [vmem:[#allocation8 + $0x2094] ss:$88 sps:$4 sm:$0xff]  }
 0x65c   :  { %10238 = vmatpush1.bf16.msra.mxu1 %v16242_v22  ;;  %v16301_v22 = vld [vmem:[#allocation8 + $0x209c] ss:$88 sps:$4 sm:$0xff]  }
 0x65d   :  { %10361 = vmatpush1.bf16.msra.mxu0 %v16245_v55  ;;  %10239 = vmatprep.subr.bf16.mxu1 %v16250_v47  ;;  %v10513_v55 = vmax.f32 %v14270_v49, 0.0  ;;  %v10556_v47 = vcombine.high %v17374_v1, %v17374_v1  ;;  %v16329_v49 = vld [vmem:[#allocation8 + $0x3c0] ss:$88 sps:$4 sm:$0xff]  }
 0x65e   :  { %10362 = vmatprep.subr.bf16.mxu0 %v16253_v41  ;;  %v16296_v41 = vld [vmem:[#allocation8 + $0x2090] ss:$88 sps:$4 sm:$0xff]  }
 0x660   :  { %10240 = vmatpush1.bf16.msra.mxu1 %v16248_v50  ;;  %v16299_v50 = vld [vmem:[#allocation8 + $0x2098] ss:$88 sps:$4 sm:$0xff]  }
 0x661   :  { %10363 = vmatpush1.bf16.msra.mxu0 %v16251_v53  ;;  %10241 = vmatprep.subr.bf16.mxu1 %v16256_v14  ;;  %v16305_v53 = vld [vmem:[#allocation11 + $0x40] sm:$0xff]   ;;  %v10579_v14 = vmul.f32 %v10556_v47, %v10513_v55  ;;  %v16337_v47 = vld [vmem:[#allocation11 + $0x70] sm:$0xff]  }
 0x662   :  { %10364 = vmatprep.subr.bf16.mxu0 %v16259_v60  ;;  %v16302_v60 = vld [vmem:[#allocation8 + $0x50] ss:$88 sps:$4 sm:$0xff]  }
 0x664   :  { %10242 = vmatpush1.bf16.msra.mxu1 %v16254_v61  ;;  %v16306_v61 = vld [vmem:[#allocation11] sm:$0xff]  }
 0x665   :  { %10365 = vmatpush1.bf16.msra.mxu0 %v16257_v5  ;;  %10243 = vmatprep.subr.bf16.mxu1 %v16262_v16  ;;  %v16309_v5 = vld [vmem:[#allocation8 + $0x104] ss:$88 sps:$4 sm:$0xff]  }
 0x666   :  { %10366 = vmatprep.subr.bf16.mxu0 %v16265_v26  ;;  %v16310_v16 = vld [vmem:[#allocation11 + $0x48] sm:$0xff]   ;;  %v10601_v26 = vpack.c.bf16 %v10579_v14, %v10579_v14 }
 0x668   :  { %10244 = vmatpush1.bf16.msra.mxu1 %v16260_v0  ;;  %v16307_v0 = vld [vmem:[#allocation8 + $0x100] ss:$88 sps:$4 sm:$0xff]  }
 0x669   :  { %10367 = vmatpush1.bf16.msra.mxu0 %v16263_v15  ;;  %10245 = vmatprep.subr.bf16.mxu1 %v16268_v23  ;;  %v16311_v15 = vld [vmem:[#allocation11 + $0x8] sm:$0xff]   ;;  %v16314_v23 = vld [vmem:[#allocation8 + $0x1b4] ss:$88 sps:$4 sm:$0xff]  }
 0x66a   :  { %10368 = vmatprep.subr.bf16.mxu0 %v16271_v24  ;;  %v16315_v24 = vld [vmem:[#allocation11 + $0x50] sm:$0xff]  }
 0x66c   :  { %10246 = vmatpush1.bf16.msra.mxu1 %v16266_v25  ;;  %v16312_v25 = vld [vmem:[#allocation8 + $0x1b0] ss:$88 sps:$4 sm:$0xff]  }
 0x66d   :  { %10369 = vmatpush1.bf16.msra.mxu0 %v16269_v58  ;;  %10247 = vmatprep.subr.bf16.mxu1 %v16274_v43  ;;  %v16316_v58 = vld [vmem:[#allocation11 + $0x10] sm:$0xff]  }
 0x66e   :  { %10370 = vmatprep.subr.bf16.mxu0 %v16277_v27  ;;  %v16319_v43 = vld [vmem:[#allocation8 + $0x264] ss:$88 sps:$4 sm:$0xff]   ;;  %v16320_v27 = vld [vmem:[#allocation11 + $0x58] sm:$0xff]  }
 0x670   :  { %10248 = vmatpush1.bf16.msra.mxu1 %v16272_v11  ;;  %v16317_v11 = vld [vmem:[#allocation8 + $0x260] ss:$88 sps:$4 sm:$0xff]  }
 0x671   :  { %10371 = vmatpush1.bf16.msra.mxu0 %v16275_v19  ;;  %10249 = vmatprep.subr.bf16.mxu1 %v16280_v56  ;;  %v16324_v19 = vld [vmem:[#allocation8 + $0x314] ss:$88 sps:$4 sm:$0xff]  }
 0x672   :  { %10372 = vmatprep.subr.bf16.mxu0 %v16283_v13  ;;  %v16325_v56 = vld [vmem:[#allocation11 + $0x60] sm:$0xff]   ;;  %v16322_v13 = vld [vmem:[#allocation8 + $0x310] ss:$88 sps:$4 sm:$0xff]  }
 0x674   :  { %10250 = vmatpush1.bf16.msra.mxu1 %v16278_v40  ;;  %v16326_v40 = vld [vmem:[#allocation11 + $0x20] sm:$0xff]  }
 0x675   :  { %10373 = vmatpush1.bf16.msra.mxu0 %v16281_v18  ;;  %10251 = vmatprep.subr.bf16.mxu1 %v16286_v12  ;;  %v16331_v18 = vld [vmem:[#allocation8 + $0x3c4] ss:$88 sps:$4 sm:$0xff]   ;;  %v3772_v12 = vrot.slane %v17369_v31, %v17245_v2 }
 0x676   :  { %10374 = vmatprep.subr.bf16.mxu0 %v16289_v35  ;;  %v3795_v35 = vsub.s32 6, %v17240_v3 }
 0x678   :  { %10252 = vmatpush1.bf16.msra.mxu1 %v16284_v39  ;;  %v3792_v39 = vrot.slane %v17369_v31, %v17287_v10 }
 0x679   :  { %10375 = vmatpush1.bf16.msra.mxu0 %v16287_v63  ;;  %10253 = vmatprep.subr.bf16.mxu1 %v16292_v9  ;;  %v3799_v63 = vsub.s32 7, %v17240_v3  ;;  %v17387_v9 = vld [vmem:[#allocation10 + $0x8] sm:$0xff]  ;;  %v17476_v3 = vld [vmem:[#allocation14 + $0x28] sm:$0xff] }
 0x67a   :  { %10376 = vmatprep.subr.bf16.mxu0 %v16295_v30  ;;  %v3828_v30 = vrot.slane %v17387_v9, %v3795_v35 }
 0x67c   :  { %10254 = vmatpush1.bf16.msra.mxu1 %v16290_v57  ;;  %v3832_v57 = vrot.slane %v17387_v9, %v3799_v63 }
 0x67d   :  { %10377 = vmatpush1.bf16.msra.mxu0 %v16293_v37  ;;  %10255 = vmatprep.subr.bf16.mxu1 %v16298_v8  ;;  %v16333_v37 = vld [vmem:[#allocation11 + $0x28] sm:$0xff]   ;;  %v16336_v8 = vld [vmem:[#allocation8 + $0x474] ss:$88 sps:$4 sm:$0xff]  }
 0x67e   :  { %10378 = vmatprep.subr.bf16.mxu0 %v16301_v22  ;;  %v14269_v22 = vadd.f32 %v17313_v4, %v3772_v12  ;;  %v16351_v12 = vld [vmem:[#allocation8 + $0x684] ss:$88 sps:$4 sm:$0xff]  }
 0x680   :  { %10256 = vmatpush1.bf16.msra.mxu1 %v16296_v41  ;;  %v14274_v41 = vadd.f32 %v17337_v38, %v3792_v39  ;;  %v10512_v38 = vmax.f32 %v14269_v22, 0.0  ;;  %v16361_v22 = vld [vmem:[#allocation8 + $0x7e4] ss:$88 sps:$4 sm:$0xff]  }
 0x681   :  { %10379 = vmatpush1.bf16.msra.mxu0 %v16299_v50  ;;  %10389 = vmatprep.subr.bf16.mxu1 %v16304_v46 }
 0x682   :  { %14021 = vmatprep.subr.bf16.mxu0 %v16305_v53  ;;  %v17401_v53 = vld [vmem:[#allocation14 + $0x10] sm:$0xff] }
 0x683   :  { %10258 = vmatmul.mubr.bf16.vlgmr.msra.gmra.mrb[20].mxu1 %v17293_v52 }
 0x684   :  { %10381 = vmatmul.mubr.bf16.vlgmr.msra.gmra.mrb[24].mxu0 %v17293_v52  ;;  %10390 = vmatpush1.bf16.msra.mxu1 %v16302_v60 }
 0x685   :  { %10421 = vmatprep.mubr.bf16.mxu1 %v17261_v48  ;;  %14022 = vmatpush3.bf16.msra.mxu0 %v16306_v61  ;;  %v16321_v48 = vld [vmem:[#allocation11 + $0x18] sm:$0xff]  }
 0x686   :  { %12069 = vmatprep.mubr.bf16.mxu0 %v10601_v26  ;;  %10391 = vmatprep.subr.bf16.mxu1 %v16309_v5  ;;  %v16334_v5 = vld [vmem:[#allocation8 + $0x470] ss:$88 sps:$4 sm:$0xff]  }
 0x687   :  { %14023 = vmatprep.subr.bf16.mxu0 %v16310_v16 }
 0x688   :  { %10392 = vmatpush1.bf16.msra.mxu1 %v16307_v0  ;;  %v16338_v0 = vld [vmem:[#allocation11 + $0x30] sm:$0xff]  }
 0x689   :  { %14024 = vmatpush3.bf16.msra.mxu0 %v16311_v15  ;;  %10393 = vmatprep.subr.bf16.mxu1 %v16314_v23  ;;  %v16341_v15 = vld [vmem:[#allocation8 + $0x524] ss:$88 sps:$4 sm:$0xff]  }
 0x68a   :  { %14025 = vmatprep.subr.bf16.mxu0 %v16315_v24  ;;  %v16342_v24 = vld [vmem:[#allocation11 + $0x78] sm:$0xff]  }
 0x68c   :  { %10394 = vmatpush1.bf16.msra.mxu1 %v16312_v25  ;;  %v10517_v25 = vmax.f32 %v14274_v41, 0.0  ;;  %v16359_v41 = vld [vmem:[#allocation8 + $0x7e0] ss:$88 sps:$4 sm:$0xff]  }
 0x68d   :  { %14026 = vmatpush3.bf16.msra.mxu0 %v16316_v58  ;;  %10395 = vmatprep.subr.bf16.mxu1 %v16319_v43  ;;  %v10558_v58 = vcombine.high %v17401_v53, %v17401_v53  ;;  %v16339_v43 = vld [vmem:[#allocation8 + $0x520] ss:$88 sps:$4 sm:$0xff]  }
 0x68e   :  { %14027 = vmatprep.subr.bf16.mxu0 %v16320_v27  ;;  %v16343_v27 = vld [vmem:[#allocation11 + $0x38] sm:$0xff]  }
 0x690   :  { %10396 = vmatpush1.bf16.msra.mxu1 %v16317_v11  ;;  %v16346_v11 = vld [vmem:[#allocation8 + $0x5d4] ss:$88 sps:$4 sm:$0xff]  }
 0x691   :  { %14028 = vmatpush3.bf16.msra.mxu0 %v16321_v48  ;;  %10397 = vmatprep.subr.bf16.mxu1 %v16324_v19  ;;  %v10578_v48 = vmul.f32 %v17374_v1, %v10512_v38  ;;  %v16347_v19 = vld [vmem:[#allocation11 + $0x140] sm:$0xff]   ;;  %v3808_v38 = vrot.slane %v17387_v9, %v17248_v20 }
 0x692   :  { %14029 = vmatprep.subr.bf16.mxu0 %v16325_v56  ;;  %v10583_v56 = vmul.f32 %v10558_v58, %v10517_v25  ;;  %v16356_v1 = vld [vmem:[#allocation8 + $0x734] ss:$88 sps:$4 sm:$0xff]  }
 0x693   :  { %v16376_v25 = vld [vmem:[#allocation8 + $0x9f4] ss:$88 sps:$4 sm:$0xff]  }
 0x694   :  { %10398 = vmatpush1.bf16.msra.mxu1 %v16322_v13  ;;  %v16344_v13 = vld [vmem:[#allocation8 + $0x5d0] ss:$88 sps:$4 sm:$0xff]   ;;  %v10605_v39 = vpack.c.bf16 %v10583_v56, %v10583_v56  ;;  %v16381_v56 = vld [vmem:[#allocation8 + $0xaa4] ss:$88 sps:$4 sm:$0xff]  }
 0x695   :  { %14030 = vmatpush3.bf16.msra.mxu0 %v16326_v40  ;;  %10399 = vmatprep.subr.bf16.mxu1 %v16331_v18  ;;  %v16348_v40 = vld [vmem:[#allocation11 + $0x100] sm:$0xff]   ;;  %v10600_v18 = vpack.c.bf16 %v10578_v48, %v10578_v48 }
 0x696   :  { %v17396_v55 = vpop.f32.mrb[16].mxu1  ;;  %14031 = vmatprep.subr.bf16.mxu0 %v16332_v44  ;;  %v16352_v44 = vld [vmem:[#allocation11 + $0x148] sm:$0xff]  }
 0x697   :  { %v10136_v50 = vpop.f32.mrb[20].mxu0  ;;  %v17399_v46 = vpop.f32.mrb[17].mxu1  ;;  %v17416_v48 = vld [vmem:[#allocation14 + $0x20] sm:$0xff] }
 0x698   :  { %v17403_v14 = vadd.f32 %v10136_v50, %v3828_v30  ;;  %v10138_v60 = vpop.f32.mrb[21].mxu0  ;;  %v10017_v61 = vpop.f32.mrb[18].mxu1  ;;  %10400 = vmatpush1.bf16.msra.mxu1 %v16329_v49  ;;  %v16349_v30 = vld [vmem:[#allocation8 + $0x680] ss:$88 sps:$4 sm:$0xff]   ;;  %v16363_v50 = vld [vmem:[#allocation11 + $0x118] sm:$0xff]  }
 0x699   :  { %v17405_v16 = vadd.f32 %v10138_v60, %v3832_v57  ;;  %v10140_v4 = vpop.f32.mrb[22].mxu0  ;;  %14032 = vmatpush3.bf16.msra.mxu0 %v16333_v37  ;;  %v10018_v26 = vpop.f32.mrb[19].mxu1  ;;  %10401 = vmatprep.subr.bf16.mxu1 %v16336_v8  ;;  %v16353_v49 = vld [vmem:[#allocation11 + $0x108] sm:$0xff]   ;;  %v16357_v57 = vld [vmem:[#allocation11 + $0x150] sm:$0xff]   ;;  %v16367_v61 = vld [vmem:[#allocation11 + $0x160] sm:$0xff]  }
 0x69a   :  { %v10141_v23 = vpop.f32.mrb[23].mxu0  ;;  %14033 = vmatprep.subr.bf16.mxu0 %v16337_v47  ;;  %v16354_v37 = vld [vmem:[#allocation8 + $0x730] ss:$88 sps:$4 sm:$0xff]   ;;  %v16366_v60 = vld [vmem:[#allocation8 + $0x894] ss:$88 sps:$4 sm:$0xff]  }
 0x69b   :  { %v16358_v8 = vld [vmem:[#allocation11 + $0x110] sm:$0xff]   ;;  %v16362_v47 = vld [vmem:[#allocation11 + $0x158] sm:$0xff]   ;;  %v16368_v4 = vld [vmem:[#allocation11 + $0x120] sm:$0xff]  }
 0x69c   :  { %10402 = vmatpush1.bf16.msra.mxu1 %v16334_v5  ;;  %v16364_v5 = vld [vmem:[#allocation8 + $0x890] ss:$88 sps:$4 sm:$0xff]   ;;  %v16371_v26 = vld [vmem:[#allocation8 + $0x944] ss:$88 sps:$4 sm:$0xff]   ;;  %v16369_v23 = vld [vmem:[#allocation8 + $0x940] ss:$88 sps:$4 sm:$0xff]  }
 0x69d   :  { %14034 = vmatpush3.bf16.msra.mxu0 %v16338_v0  ;;  %10403 = vmatprep.subr.bf16.mxu1 %v16341_v15  ;;  %v3788_v0 = vrot.slane %v17369_v31, %v17284_v6  ;;  %v16372_v15 = vld [vmem:[#allocation11 + $0x168] sm:$0xff]  }
 0x69e   :  { %14035 = vmatprep.subr.bf16.mxu0 %v16342_v24  ;;  %v16373_v24 = vld [vmem:[#allocation11 + $0x128] sm:$0xff]  }
 0x69f   :  { %v14273_v58 = vadd.f32 %v17333_v59, %v3788_v0  ;;  %v16379_v59 = vld [vmem:[#allocation8 + $0xaa0] ss:$88 sps:$4 sm:$0xff]   ;;  %v16406_v0 = vld [vmem:[#allocation8 + $0xe14] ss:$88 sps:$4 sm:$0xff]  }
 0x6a0   :  { %10404 = vmatpush1.bf16.msra.mxu1 %v16339_v43  ;;  %v16377_v43 = vld [vmem:[#allocation11 + $0x170] sm:$0xff]  }
 0x6a1   :  { %14036 = vmatpush3.bf16.msra.mxu0 %v16343_v27  ;;  %10405 = vmatprep.subr.bf16.mxu1 %v16346_v11  ;;  %v14278_v27 = vadd.f32 %v17357_v33, %v3808_v38  ;;  %v16374_v11 = vld [vmem:[#allocation8 + $0x9f0] ss:$88 sps:$4 sm:$0xff]  }
 0x6a2   :  { %14065 = vmatprep.subr.bf16.mxu0 %v16347_v19  ;;  %v16378_v19 = vld [vmem:[#allocation11 + $0x130] sm:$0xff]   ;;  %v16383_v33 = vld [vmem:[#allocation11 + $0x138] sm:$0xff]  }
 0x6a3   :  { %v16404_v38 = vld [vmem:[#allocation8 + $0xe10] ss:$88 sps:$4 sm:$0xff]  }
 0x6a4   :  { %12070 = vmatmul.mubr.bf16.vlgmr.msra.gmra.mrb[28].mxu0 %v10600_v18  ;;  %10406 = vmatpush1.bf16.msra.mxu1 %v16344_v13  ;;  %v10516_v13 = vmax.f32 %v14273_v58, 0.0  ;;  %v10521_v18 = vmax.f32 %v14278_v27, 0.0  ;;  %v16412_v58 = vld [vmem:[#allocation11 + $0x268] sm:$0xff]  }
 0x6a5   :  { %14066 = vmatpush3.bf16.msra.mxu0 %v16348_v40  ;;  %12149 = vmatprep.mubr.bf16.mxu0 %v10605_v39  ;;  %v16382_v40 = vld [vmem:[#allocation11 + $0x178] sm:$0xff]   ;;  %v16409_v27 = vld [vmem:[#allocation8 + $0xec0] ss:$88 sps:$4 sm:$0xff]  }
 0x6a6   :  { %10407 = vmatprep.subr.bf16.mxu1 %v16351_v12  ;;  %14067 = vmatprep.subr.bf16.mxu0 %v16352_v44  ;;  %v10560_v12 = vcombine.high %v17416_v48, %v17416_v48  ;;  %v16386_v44 = vld [vmem:[#allocation8 + $0xb54] ss:$88 sps:$4 sm:$0xff]   ;;  %v10582_v39 = vmul.f32 %v17401_v53, %v10516_v13  ;;  %v16393_v53 = vld [vmem:[#allocation11 + $0x208] sm:$0xff]  }
 0x6a7   :  { %v16417_v13 = vld [vmem:[#allocation11 + $0x270] sm:$0xff]  }
 0x6a8   :  { %10408 = vmatpush1.bf16.msra.mxu1 %v16349_v30  ;;  %v16387_v30 = vld [vmem:[#allocation11 + $0x240] sm:$0xff]  }
 0x6a9   :  { %14068 = vmatpush3.bf16.msra.mxu0 %v16353_v49  ;;  %10409 = vmatprep.subr.bf16.mxu1 %v16356_v1  ;;  %v10587_v49 = vmul.f32 %v10560_v12, %v10521_v18  ;;  %v16384_v1 = vld [vmem:[#allocation8 + $0xb50] ss:$88 sps:$4 sm:$0xff]  }
 0x6aa   :  { %14069 = vmatprep.subr.bf16.mxu0 %v16357_v57  ;;  %v16388_v57 = vld [vmem:[#allocation11 + $0x200] sm:$0xff]   ;;  %v17429_v18 = vld [vmem:[#allocation14 + $0x30] sm:$0xff] }
 0x6ab   :  { %v16414_v12 = vld [vmem:[#allocation8 + $0xf70] ss:$88 sps:$4 sm:$0xff]  }
 0x6ac   :  { %10410 = vmatpush1.bf16.msra.mxu1 %v16354_v37  ;;  %v10604_v37 = vpack.c.bf16 %v10582_v39, %v10582_v39  ;;  %v16422_v39 = vld [vmem:[#allocation11 + $0x278] sm:$0xff]  }
 0x6ad   :  { %14070 = vmatpush3.bf16.msra.mxu0 %v16358_v8  ;;  %10411 = vmatprep.subr.bf16.mxu1 %v16361_v22  ;;  %v16391_v8 = vld [vmem:[#allocation8 + $0xc04] ss:$88 sps:$4 sm:$0xff]  }
 0x6ae   :  { %14071 = vmatprep.subr.bf16.mxu0 %v16362_v47  ;;  %v16392_v22 = vld [vmem:[#allocation11 + $0x248] sm:$0xff]   ;;  %v10609_v47 = vpack.c.bf16 %v10587_v49, %v10587_v49  ;;  %v10562_v49 = vcombine.high %v17429_v18, %v17429_v18 }
 0x6b0   :  { %10412 = vmatpush1.bf16.msra.mxu1 %v16359_v41  ;;  %v16389_v41 = vld [vmem:[#allocation8 + $0xc00] ss:$88 sps:$4 sm:$0xff]  }
 0x6b1   :  { %14072 = vmatpush3.bf16.msra.mxu0 %v16363_v50  ;;  %10413 = vmatprep.subr.bf16.mxu1 %v16366_v60  ;;  %v16396_v50 = vld [vmem:[#allocation8 + $0xcb4] ss:$88 sps:$4 sm:$0xff]  }
 0x6b2   :  { %14073 = vmatprep.subr.bf16.mxu0 %v16367_v61  ;;  %v16397_v60 = vld [vmem:[#allocation11 + $0x250] sm:$0xff]  }
 0x6b3   :  { %v16394_v61 = vld [vmem:[#allocation8 + $0xcb0] ss:$88 sps:$4 sm:$0xff]  }
 0x6b4   :  { %10414 = vmatpush1.bf16.msra.mxu1 %v16364_v5  ;;  %v16398_v5 = vld [vmem:[#allocation11 + $0x210] sm:$0xff]  }
 0x6b5   :  { %14074 = vmatpush3.bf16.msra.mxu0 %v16368_v4  ;;  %10415 = vmatprep.subr.bf16.mxu1 %v16371_v26  ;;  %v16402_v4 = vld [vmem:[#allocation11 + $0x258] sm:$0xff]   ;;  %v16399_v26 = vld [vmem:[#allocation8 + $0xd60] ss:$88 sps:$4 sm:$0xff]  }
 0x6b6   :  { %14075 = vmatprep.subr.bf16.mxu0 %v16372_v15  ;;  %v16407_v15 = vld [vmem:[#allocation11 + $0x260] sm:$0xff]  }
 0x6b8   :  { %10416 = vmatpush1.bf16.msra.mxu1 %v16369_v23  ;;  %v16408_v23 = vld [vmem:[#allocation11 + $0x220] sm:$0xff]  }
 0x6b9   :  { %14076 = vmatpush3.bf16.msra.mxu0 %v16373_v24  ;;  %10417 = vmatprep.subr.bf16.mxu1 %v16376_v25  ;;  %v16411_v24 = vld [vmem:[#allocation8 + $0xec4] ss:$88 sps:$4 sm:$0xff]   ;;  %v3804_v25 = vrot.slane %v17387_v9, %v17245_v2 }
 0x6ba   :  { %14077 = vmatprep.subr.bf16.mxu0 %v16377_v43  ;;  %v3824_v43 = vrot.slane %v17387_v9, %v17287_v10 }
 0x6bc   :  { %10418 = vmatpush1.bf16.msra.mxu1 %v16374_v11  ;;  %v16413_v11 = vld [vmem:[#allocation11 + $0x228] sm:$0xff]  }
 0x6bd   :  { %14078 = vmatpush3.bf16.msra.mxu0 %v16378_v19  ;;  %10419 = vmatprep.subr.bf16.mxu1 %v16381_v56  ;;  %v16416_v19 = vld [vmem:[#allocation8 + $0xf74] ss:$88 sps:$4 sm:$0xff]   ;;  %v14277_v56 = vadd.f32 %v17353_v28, %v3804_v25  ;;  %v16419_v28 = vld [vmem:[#allocation8 + $0x1020] ss:$88 sps:$4 sm:$0xff]   ;;  %v16444_v25 = vld [vmem:[#allocation8 + $0x1390] ss:$88 sps:$4 sm:$0xff]  }
 0x6be   :  { %14079 = vmatprep.subr.bf16.mxu0 %v16382_v40  ;;  %v14282_v40 = vadd.f32 %v17399_v46, %v3824_v43  ;;  %v16423_v46 = vld [vmem:[#allocation11 + $0x238] sm:$0xff]   ;;  %v16451_v43 = vld [vmem:[#allocation8 + $0x1444] ss:$88 sps:$4 sm:$0xff]  }
 0x6c0   :  { %10420 = vmatpush1.bf16.msra.mxu1 %v16379_v59  ;;  %v16418_v59 = vld [vmem:[#allocation11 + $0x230] sm:$0xff]  }
 0x6c1   :  { %14080 = vmatpush3.bf16.msra.mxu0 %v16383_v33  ;;  %10430 = vmatprep.subr.bf16.mxu1 %v16386_v44  ;;  %v16421_v33 = vld [vmem:[#allocation8 + $0x1024] ss:$88 sps:$4 sm:$0xff]   ;;  %v10520_v44 = vmax.f32 %v14277_v56, 0.0 }
 0x6c2   :  { %14109 = vmatprep.subr.bf16.mxu0 %v16387_v30  ;;  %v10525_v30 = vmax.f32 %v14282_v40, 0.0  ;;  %v16453_v56 = vld [vmem:[#allocation11 + $0x328] sm:$0xff]  }
 0x6c3   :  { %10422 = vmatmul.mubr.bf16.vlgmr.msra.gmra.mrb[24].mxu1 %v17263_v45  ;;  %v16401_v45 = vld [vmem:[#allocation8 + $0xd64] ss:$88 sps:$4 sm:$0xff]  }
 0x6c4   :  { %12150 = vmatmul.mubr.bf16.vlgmr.msra.gmra.mrb[32].mxu0 %v10604_v37  ;;  %10431 = vmatpush1.bf16.msra.mxu1 %v16384_v1  ;;  %v16426_v1 = vld [vmem:[#allocation8 + $0x10d4] ss:$88 sps:$4 sm:$0xff]  }
 0x6c5   :  { %10462 = vmatprep.mubr.bf16.mxu1 %v17265_v36  ;;  %14110 = vmatpush3.bf16.msra.mxu0 %v16388_v57  ;;  %v16403_v36 = vld [vmem:[#allocation11 + $0x218] sm:$0xff]   ;;  %v10586_v57 = vmul.f32 %v17416_v48, %v10520_v44  ;;  %v16427_v37 = vld [vmem:[#allocation11 + $0x340] sm:$0xff]  }
 0x6c6   :  { %12229 = vmatprep.mubr.bf16.mxu0 %v10609_v47  ;;  %10432 = vmatprep.subr.bf16.mxu1 %v16391_v8  ;;  %v10591_v8 = vmul.f32 %v10562_v49, %v10525_v30  ;;  %v16428_v47 = vld [vmem:[#allocation11 + $0x300] sm:$0xff]   ;;  %v16462_v30 = vld [vmem:[#allocation11 + $0x378] sm:$0xff]  }
 0x6c7   :  { %14111 = vmatprep.subr.bf16.mxu0 %v16392_v22  ;;  %v16424_v22 = vld [vmem:[#allocation8 + $0x10d0] ss:$88 sps:$4 sm:$0xff]   ;;  %v16436_v48 = vld [vmem:[#allocation8 + $0x1234] ss:$88 sps:$4 sm:$0xff]   ;;  %v16461_v44 = vld [vmem:[#allocation8 + $0x15a4] ss:$88 sps:$4 sm:$0xff]  }
 0x6c8   :  { %10433 = vmatpush1.bf16.msra.mxu1 %v16389_v41  ;;  %v10608_v41 = vpack.c.bf16 %v10586_v57, %v10586_v57  ;;  %v16459_v49 = vld [vmem:[#allocation8 + $0x15a0] ss:$88 sps:$4 sm:$0xff]   ;;  %v16464_v57 = vld [vmem:[#allocation8 + $0x1650] ss:$88 sps:$4 sm:$0xff]  }
 0x6c9   :  { %14112 = vmatpush3.bf16.msra.mxu0 %v16393_v53  ;;  %10434 = vmatprep.subr.bf16.mxu1 %v16396_v50  ;;  %v16431_v53 = vld [vmem:[#allocation8 + $0x1184] ss:$88 sps:$4 sm:$0xff]  }
 0x6ca   :  { %14113 = vmatprep.subr.bf16.mxu0 %v16397_v60  ;;  %v16432_v50 = vld [vmem:[#allocation11 + $0x348] sm:$0xff]   ;;  %v10613_v60 = vpack.c.bf16 %v10591_v8, %v10591_v8 }
 0x6cc   :  { %10435 = vmatpush1.bf16.msra.mxu1 %v16394_v61  ;;  %v16429_v61 = vld [vmem:[#allocation8 + $0x1180] ss:$88 sps:$4 sm:$0xff]  }
 0x6cd   :  { %14114 = vmatpush3.bf16.msra.mxu0 %v16398_v5  ;;  %10436 = vmatprep.subr.bf16.mxu1 %v16401_v45  ;;  %v16433_v5 = vld [vmem:[#allocation11 + $0x308] sm:$0xff]   ;;  %v16437_v45 = vld [vmem:[#allocation11 + $0x350] sm:$0xff]  }
 0x6ce   :  { %14115 = vmatprep.subr.bf16.mxu0 %v16402_v4  ;;  %v16434_v4 = vld [vmem:[#allocation8 + $0x1230] ss:$88 sps:$4 sm:$0xff]  }
 0x6d0   :  { %10437 = vmatpush1.bf16.msra.mxu1 %v16399_v26  ;;  %v16438_v26 = vld [vmem:[#allocation11 + $0x310] sm:$0xff]  }
 0x6d1   :  { %14116 = vmatpush3.bf16.msra.mxu0 %v16403_v36  ;;  %10438 = vmatprep.subr.bf16.mxu1 %v16406_v0  ;;  %v16441_v36 = vld [vmem:[#allocation8 + $0x12e4] ss:$88 sps:$4 sm:$0xff]   ;;  %v16442_v0 = vld [vmem:[#allocation11 + $0x358] sm:$0xff]  }
 0x6d2   :  { %14117 = vmatprep.subr.bf16.mxu0 %v16407_v15  ;;  %v16439_v15 = vld [vmem:[#allocation8 + $0x12e0] ss:$88 sps:$4 sm:$0xff]  }
 0x6d4   :  { %10439 = vmatpush1.bf16.msra.mxu1 %v16404_v38  ;;  %v16443_v38 = vld [vmem:[#allocation11 + $0x318] sm:$0xff]  }
 0x6d5   :  { %14118 = vmatpush3.bf16.msra.mxu0 %v16408_v23  ;;  %10440 = vmatprep.subr.bf16.mxu1 %v16411_v24  ;;  %v16446_v23 = vld [vmem:[#allocation8 + $0x1394] ss:$88 sps:$4 sm:$0xff]  }
 0x6d6   :  { %14119 = vmatprep.subr.bf16.mxu0 %v16412_v58  ;;  %v16447_v24 = vld [vmem:[#allocation11 + $0x360] sm:$0xff]  }
 0x6d7   :  { %v16448_v58 = vld [vmem:[#allocation11 + $0x320] sm:$0xff]  }
 0x6d8   :  { %10441 = vmatpush1.bf16.msra.mxu1 %v16409_v27  ;;  %v3820_v27 = vrot.slane %v17387_v9, %v17284_v6 }
 0x6d9   :  { %14120 = vmatpush3.bf16.msra.mxu0 %v16413_v11  ;;  %10442 = vmatprep.subr.bf16.mxu1 %v16416_v19  ;;  %v16452_v11 = vld [vmem:[#allocation11 + $0x368] sm:$0xff]  }
 0x6da   :  { %14121 = vmatprep.subr.bf16.mxu0 %v16417_v13  ;;  %v16449_v19 = vld [vmem:[#allocation8 + $0x1440] ss:$88 sps:$4 sm:$0xff]   ;;  %v16456_v13 = vld [vmem:[#allocation8 + $0x14f4] ss:$88 sps:$4 sm:$0xff]   ;;  %v14281_v40 = vadd.f32 %v17396_v55, %v3820_v27 }
 0x6db   :  { %v16512_v55 = vld [vmem:[#allocation11 + $0x440] sm:$0xff]   ;;  %v16539_v27 = vld [vmem:[#allocation11 + $0x430] sm:$0xff]  }
 0x6dc   :  { %10443 = vmatpush1.bf16.msra.mxu1 %v16414_v12  ;;  %v16457_v12 = vld [vmem:[#allocation11 + $0x370] sm:$0xff]  }
 0x6dd   :  { %14122 = vmatpush3.bf16.msra.mxu0 %v16418_v59  ;;  %10444 = vmatprep.subr.bf16.mxu1 %v16421_v33  ;;  %v16454_v59 = vld [vmem:[#allocation8 + $0x14f0] ss:$88 sps:$4 sm:$0xff]  }
 0x6de   :  { %14123 = vmatprep.subr.bf16.mxu0 %v16422_v39  ;;  %v16458_v33 = vld [vmem:[#allocation11 + $0x330] sm:$0xff]   ;;  %v10524_v39 = vmax.f32 %v14281_v40, 0.0 }
 0x6df   :  { %v16488_v40 = vld [vmem:[#allocation8 + $0x1bd0] ss:$88 sps:$4 sm:$0xff]  }
 0x6e0   :  { %10445 = vmatpush1.bf16.msra.mxu1 %v16419_v28  ;;  %v16463_v28 = vld [vmem:[#allocation11 + $0x338] sm:$0xff]  }
 0x6e1   :  { %14124 = vmatpush3.bf16.msra.mxu0 %v16423_v46  ;;  %10446 = vmatprep.subr.bf16.mxu1 %v16426_v1  ;;  %v16466_v46 = vld [vmem:[#allocation8 + $0x1654] ss:$88 sps:$4 sm:$0xff]   ;;  %v10590_v1 = vmul.f32 %v17429_v18, %v10524_v39  ;;  %v16499_v39 = vld [vmem:[#allocation8 + $0x1de4] ss:$88 sps:$4 sm:$0xff]  }
 0x6e2   :  { %14153 = vmatprep.subr.bf16.mxu0 %v16427_v37  ;;  %v16469_v37 = vld [vmem:[#allocation8 + $0x1704] ss:$88 sps:$4 sm:$0xff]   ;;  %v16472_v18 = vld [vmem:[#allocation8 + $0x17b4] ss:$88 sps:$4 sm:$0xff]  }
 0x6e3   :  { %v10612_v8 = vpack.c.bf16 %v10590_v1, %v10590_v1  ;;  %v3784_v1 = vrot.slane %v17369_v31, %v17251_v54 }
 0x6e4   :  { %12230 = vmatmul.mubr.bf16.vlgmr.msra.gmra.mrb[36].mxu0 %v10608_v41  ;;  %10447 = vmatpush1.bf16.msra.mxu1 %v16424_v22  ;;  %v16513_v22 = vld [vmem:[#allocation11 + $0x400] sm:$0xff]  }
 0x6e5   :  { %14154 = vmatpush3.bf16.msra.mxu0 %v16428_v47  ;;  %12309 = vmatprep.mubr.bf16.mxu0 %v10613_v60  ;;  %v16516_v47 = vld [vmem:[#allocation11 + $0x448] sm:$0xff]   ;;  %v16470_v60 = vld [vmem:[#allocation8 + $0x17b0] ss:$88 sps:$4 sm:$0xff]  }
 0x6e6   :  { %10448 = vmatprep.subr.bf16.mxu1 %v16431_v53  ;;  %14155 = vmatprep.subr.bf16.mxu0 %v16432_v50  ;;  %v16467_v41 = vld [vmem:[#allocation8 + $0x1700] ss:$88 sps:$4 sm:$0xff]   ;;  %v16520_v50 = vld [vmem:[#allocation11 + $0x450] sm:$0xff]  }
 0x6e7   :  { %v16517_v53 = vld [vmem:[#allocation11 + $0x408] sm:$0xff]  }
 0x6e8   :  { %10449 = vmatpush1.bf16.msra.mxu1 %v16429_v61  ;;  %v16475_v61 = vld [vmem:[#allocation8 + $0x1864] ss:$88 sps:$4 sm:$0xff]  }
 0x6e9   :  { %14156 = vmatpush3.bf16.msra.mxu0 %v16433_v5  ;;  %10450 = vmatprep.subr.bf16.mxu1 %v16436_v48  ;;  %v16521_v5 = vld [vmem:[#allocation11 + $0x410] sm:$0xff]   ;;  %v16473_v48 = vld [vmem:[#allocation8 + $0x1860] ss:$88 sps:$4 sm:$0xff]  }
 0x6ea   :  { %14157 = vmatprep.subr.bf16.mxu0 %v16437_v45  ;;  %v16478_v45 = vld [vmem:[#allocation8 + $0x1914] ss:$88 sps:$4 sm:$0xff]  }
 0x6ec   :  { %10451 = vmatpush1.bf16.msra.mxu1 %v16434_v4  ;;  %v16528_v4 = vld [vmem:[#allocation11 + $0x460] sm:$0xff]  }
 0x6ed   :  { %14158 = vmatpush3.bf16.msra.mxu0 %v16438_v26  ;;  %10452 = vmatprep.subr.bf16.mxu1 %v16441_v36  ;;  %v16476_v26 = vld [vmem:[#allocation8 + $0x1910] ss:$88 sps:$4 sm:$0xff]   ;;  %v16481_v36 = vld [vmem:[#allocation8 + $0x19c4] ss:$88 sps:$4 sm:$0xff]  }
 0x6ee   :  { %14159 = vmatprep.subr.bf16.mxu0 %v16442_v0  ;;  %v16529_v0 = vld [vmem:[#allocation11 + $0x420] sm:$0xff]  }
 0x6f0   :  { %10453 = vmatpush1.bf16.msra.mxu1 %v16439_v15  ;;  %v16532_v15 = vld [vmem:[#allocation11 + $0x468] sm:$0xff]  }
 0x6f1   :  { %14160 = vmatpush3.bf16.msra.mxu0 %v16443_v38  ;;  %10454 = vmatprep.subr.bf16.mxu1 %v16446_v23  ;;  %v16479_v38 = vld [vmem:[#allocation8 + $0x19c0] ss:$88 sps:$4 sm:$0xff]   ;;  %v16484_v23 = vld [vmem:[#allocation8 + $0x1a74] ss:$88 sps:$4 sm:$0xff]  }
 0x6f2   :  { %14161 = vmatprep.subr.bf16.mxu0 %v16447_v24  ;;  %v16533_v24 = vld [vmem:[#allocation11 + $0x428] sm:$0xff]  }
 0x6f4   :  { %10455 = vmatpush1.bf16.msra.mxu1 %v16444_v25  ;;  %v16538_v25 = vld [vmem:[#allocation11 + $0x470] sm:$0xff]  }
 0x6f5   :  { %14162 = vmatpush3.bf16.msra.mxu0 %v16448_v58  ;;  %10456 = vmatprep.subr.bf16.mxu1 %v16451_v43  ;;  %v16482_v58 = vld [vmem:[#allocation8 + $0x1a70] ss:$88 sps:$4 sm:$0xff]   ;;  %v16487_v43 = vld [vmem:[#allocation8 + $0x1b24] ss:$88 sps:$4 sm:$0xff]  }
 0x6f6   :  { %14163 = vmatprep.subr.bf16.mxu0 %v16452_v11  ;;  %v16542_v11 = vld [vmem:[#allocation11 + $0x478] sm:$0xff]  }
 0x6f8   :  { %10457 = vmatpush1.bf16.msra.mxu1 %v16449_v19  ;;  %v16485_v19 = vld [vmem:[#allocation8 + $0x1b20] ss:$88 sps:$4 sm:$0xff]  }
 0x6f9   :  { %14164 = vmatpush3.bf16.msra.mxu0 %v16453_v56  ;;  %10458 = vmatprep.subr.bf16.mxu1 %v16456_v13  ;;  %v16490_v56 = vld [vmem:[#allocation8 + $0x1bd4] ss:$88 sps:$4 sm:$0xff]  }
 0x6fa   :  { %14165 = vmatprep.subr.bf16.mxu0 %v16457_v12  ;;  %v16543_v13 = vld [vmem:[#allocation11 + $0x438] sm:$0xff]   ;;  %v16493_v12 = vld [vmem:[#allocation8 + $0x1c84] ss:$88 sps:$4 sm:$0xff]  }
 0x6fc   :  { %10459 = vmatpush1.bf16.msra.mxu1 %v16454_v59  ;;  %v16491_v59 = vld [vmem:[#allocation8 + $0x1c80] ss:$88 sps:$4 sm:$0xff]  }
 0x6fd   :  { %14166 = vmatpush3.bf16.msra.mxu0 %v16458_v33  ;;  %10460 = vmatprep.subr.bf16.mxu1 %v16461_v44  ;;  %v16496_v33 = vld [vmem:[#allocation8 + $0x1d34] ss:$88 sps:$4 sm:$0xff]   ;;  %v16494_v44 = vld [vmem:[#allocation8 + $0x1d30] ss:$88 sps:$4 sm:$0xff]  }
 0x6fe   :  { %14167 = vmatprep.subr.bf16.mxu0 %v16462_v30  ;;  %v16497_v30 = vld [vmem:[#allocation8 + $0x1de0] ss:$88 sps:$4 sm:$0xff]  }
 0x700   :  { %10461 = vmatpush1.bf16.msra.mxu1 %v16459_v49  ;;  %v16502_v49 = vld [vmem:[#allocation8 + $0x1e94] ss:$88 sps:$4 sm:$0xff]  }
 0x701   :  { %14168 = vmatpush3.bf16.msra.mxu0 %v16463_v28  ;;  %10471 = vmatprep.subr.bf16.mxu1 %v16466_v46  ;;  %v16500_v28 = vld [vmem:[#allocation8 + $0x1e90] ss:$88 sps:$4 sm:$0xff]   ;;  %v16505_v46 = vld [vmem:[#allocation8 + $0x1f44] ss:$88 sps:$4 sm:$0xff]  }
 0x702   :  { %14197 = vmatprep.subr.bf16.mxu0 %v16512_v55  ;;  %v16503_v55 = vld [vmem:[#allocation8 + $0x1f40] ss:$88 sps:$4 sm:$0xff]  }
 0x703   :  { %10463 = vmatmul.mubr.bf16.vlgmr.msra.gmra.mrb[24].mxu1 %v17279_v62  ;;  %v16524_v62 = vld [vmem:[#allocation11 + $0x458] sm:$0xff]  }
 0x704   :  { %12310 = vmatmul.mubr.bf16.vlgmr.msra.gmra.mrb[40].mxu0 %v10612_v8  ;;  %10472 = vmatpush1.bf16.msra.mxu1 %v16464_v57  ;;  %v16508_v57 = vld [vmem:[#allocation8 + $0x1ff4] ss:$88 sps:$4 sm:$0xff]   ;;  %v17443_v8 = vld [vmem:[#allocation14 + $0x8] sm:$0xff] }
 0x705   :  { %10503 = vmatprep.mubr.bf16.mxu1 %v17291_v29  ;;  %10473 = vmatprep.subr.bf16.mxu1 %v16469_v37  ;;  %v16525_v29 = vld [vmem:[#allocation11 + $0x418] sm:$0xff]   ;;  %v14272_v37 = vadd.f32 %v17319_v17, %v3784_v1 }
 0x706   :  { %14198 = vmatpush3.bf16.msra.mxu0 %v16513_v22  ;;  %v16506_v22 = vld [vmem:[#allocation8 + $0x1ff0] ss:$88 sps:$4 sm:$0xff]  }
 0x707   :  { %14199 = vmatprep.subr.bf16.mxu0 %v16516_v47  ;;  %v16511_v47 = vld [vmem:[#allocation8 + $0x20a4] ss:$88 sps:$4 sm:$0xff]  }
 0x708   :  { %10474 = vmatpush1.bf16.msra.mxu1 %v16467_v41  ;;  %v10515_v41 = vmax.f32 %v14272_v37, 0.0 }
 0x709   :  { %10475 = vmatprep.subr.bf16.mxu1 %v16472_v18  ;;  %v10557_v18 = vcombine.high %v17443_v8, %v17443_v8 }
 0x70a   :  { %14200 = vmatpush3.bf16.msra.mxu0 %v16517_v53  ;;  %v16509_v53 = vld [vmem:[#allocation8 + $0x20a0] ss:$88 sps:$4 sm:$0xff]  }
 0x70b   :  { %14201 = vmatprep.subr.bf16.mxu0 %v16520_v50  ;;  %v16514_v50 = vld [vmem:[#allocation11 + $0xc0] sm:$0xff]  }
 0x70c   :  { %10476 = vmatpush1.bf16.msra.mxu1 %v16470_v60  ;;  %v10581_v60 = vmul.f32 %v10557_v18, %v10515_v41 }
 0x70d   :  { %10477 = vmatprep.subr.bf16.mxu1 %v16475_v61  ;;  %v16515_v61 = vld [vmem:[#allocation11 + $0x80] sm:$0xff]  }
 0x70e   :  { %14202 = vmatpush3.bf16.msra.mxu0 %v16521_v5  ;;  %v16518_v5 = vld [vmem:[#allocation11 + $0xc8] sm:$0xff]   ;;  %v10603_v17 = vpack.c.bf16 %v10581_v60, %v10581_v60 }
 0x70f   :  { %14203 = vmatprep.subr.bf16.mxu0 %v16524_v62  ;;  %v16519_v62 = vld [vmem:[#allocation11 + $0x88] sm:$0xff]  }
 0x710   :  { %10478 = vmatpush1.bf16.msra.mxu1 %v16473_v48  ;;  %v16522_v48 = vld [vmem:[#allocation11 + $0xd0] sm:$0xff]   ;;  %v16548_v60 = vld [vmem:[#allocation11 + $0x1c8] sm:$0xff]  }
 0x711   :  { %10479 = vmatprep.subr.bf16.mxu1 %v16478_v45  ;;  %v16523_v45 = vld [vmem:[#allocation11 + $0x90] sm:$0xff]  }
 0x712   :  { %14204 = vmatpush3.bf16.msra.mxu0 %v16525_v29  ;;  %v16526_v29 = vld [vmem:[#allocation11 + $0xd8] sm:$0xff]  }
 0x713   :  { %14205 = vmatprep.subr.bf16.mxu0 %v16528_v4  ;;  %v16527_v4 = vld [vmem:[#allocation11 + $0x98] sm:$0xff]  }
 0x714   :  { %10480 = vmatpush1.bf16.msra.mxu1 %v16476_v26  ;;  %v16530_v26 = vld [vmem:[#allocation11 + $0xe0] sm:$0xff]  }
 0x715   :  { %10481 = vmatprep.subr.bf16.mxu1 %v16481_v36  ;;  %v16531_v36 = vld [vmem:[#allocation11 + $0xa0] sm:$0xff]  }
 0x716   :  { %14206 = vmatpush3.bf16.msra.mxu0 %v16529_v0  ;;  %v17448_v0 = vld [vmem:[#allocation10 + $0x10] sm:$0x3f] }
 0x717   :  { %14207 = vmatprep.subr.bf16.mxu0 %v16532_v15  ;;  %v16536_v15 = vld [vmem:[#allocation11 + $0xe8] sm:$0xff]  }
 0x718   :  { %10482 = vmatpush1.bf16.msra.mxu1 %v16479_v38  ;;  %v3800_v38 = vrot.slane %v17369_v31, %v3799_v63 }
 0x719   :  { %10483 = vmatprep.subr.bf16.mxu1 %v16484_v23  ;;  %v3836_v23 = vrot.slane %v17448_v0, %v17245_v2 }
 0x71a   :  { %14208 = vmatpush3.bf16.msra.mxu0 %v16533_v24  ;;  %v3840_v24 = vrot.slane %v17448_v0, %v17248_v20 }
 0x71b   :  { %14209 = vmatprep.subr.bf16.mxu0 %v16538_v25  ;;  %v16537_v25 = vld [vmem:[#allocation11 + $0xa8] sm:$0xff]  }
 0x71c   :  { %10484 = vmatpush1.bf16.msra.mxu1 %v16482_v58 }
 0x71d   :  { %10485 = vmatprep.subr.bf16.mxu1 %v16487_v43  ;;  %v10542_v43 = vld [vmem:[#allocation14 + $0x40] sm:$0xff] }
 0x71e   :  { %14210 = vmatpush3.bf16.msra.mxu0 %v16539_v27  ;;  %v16540_v27 = vld [vmem:[#allocation11 + $0xf0] sm:$0xff]  }
 0x71f   :  { %14211 = vmatprep.subr.bf16.mxu0 %v16542_v11  ;;  %v14276_v11 = vadd.f32 %v17339_v51, %v3800_v38  ;;  %v16544_v51 = vld [vmem:[#allocation11 + $0xf8] sm:$0xff]   ;;  %v16554_v38 = vld [vmem:[#allocation11 + $0x1e0] sm:$0xff]  }
 0x720   :  { %10486 = vmatpush1.bf16.msra.mxu1 %v16485_v19 }
 0x721   :  { %10487 = vmatprep.subr.bf16.mxu1 %v16490_v56  ;;  %v17461_v56 = vld [vmem:[#allocation14 + $0x18] sm:$0xff] }
 0x722   :  { %14212 = vmatpush3.bf16.msra.mxu0 %v16543_v13 }
 0x724   :  { %10488 = vmatpush1.bf16.msra.mxu1 %v16488_v40  ;;  %v10564_v40 = vcombine.high %v10542_v43, %v10542_v43 }
 0x725   :  { %10489 = vmatprep.subr.bf16.mxu1 %v16493_v12 }
 0x728   :  { %10490 = vmatpush1.bf16.msra.mxu1 %v16491_v59  ;;  %v16541_v59 = vld [vmem:[#allocation11 + $0xb0] sm:$0xff]  }
 0x729   :  { %10491 = vmatprep.subr.bf16.mxu1 %v16496_v33 }
 0x72c   :  { %10492 = vmatpush1.bf16.msra.mxu1 %v16494_v44 }
 0x72d   :  { %10493 = vmatprep.subr.bf16.mxu1 %v16499_v39 }
 0x730   :  { %10494 = vmatpush1.bf16.msra.mxu1 %v16497_v30  ;;  %v10519_v30 = vmax.f32 %v14276_v11, 0.0  ;;  %v3816_v11 = vrot.slane %v17387_v9, %v17251_v54  ;;  %v16559_v9 = vld [vmem:[#allocation11 + $0x1b0] sm:$0xff]  }
 0x731   :  { %10495 = vmatprep.subr.bf16.mxu1 %v16502_v49  ;;  %v10559_v49 = vcombine.high %v17461_v56, %v17461_v56 }
 0x734   :  { %10496 = vmatpush1.bf16.msra.mxu1 %v16500_v28 }
 0x735   :  { %10497 = vmatprep.subr.bf16.mxu1 %v16505_v46 }
 0x738   :  { %10498 = vmatpush1.bf16.msra.mxu1 %v16503_v55 }
 0x739   :  { %10499 = vmatprep.subr.bf16.mxu1 %v16508_v57  ;;  %v16545_v57 = vld [vmem:[#allocation11 + $0xb8] sm:$0xff]  }
 0x73c   :  { %10500 = vmatpush1.bf16.msra.mxu1 %v16506_v22  ;;  %v16546_v22 = vld [vmem:[#allocation11 + $0x1c0] sm:$0xff]  }
 0x73d   :  { %10501 = vmatprep.subr.bf16.mxu1 %v16511_v47  ;;  %v10585_v47 = vmul.f32 %v10559_v49, %v10519_v30 }
 0x740   :  { %10502 = vmatpush1.bf16.msra.mxu1 %v16509_v53  ;;  %v16547_v53 = vld [vmem:[#allocation11 + $0x180] sm:$0xff]  }
 0x741   :  { %14043 = vmatprep.subr.bf16.mxu1 %v16514_v50 }
 0x743   :  { %10504 = vmatmul.mubr.bf16.vlgmr.msra.gmra.mrb[24].mxu1 %v17293_v52  ;;  %v3780_v52 = vrot.slane %v17369_v31, %v17274_v42 }
 0x744   :  { %14044 = vmatpush3.bf16.msra.mxu1 %v16515_v61  ;;  %12109 = vmatprep.mubr.bf16.mxu1 %v10603_v17  ;;  %v10607_v61 = vpack.c.bf16 %v10585_v47, %v10585_v47  ;;  %v16611_v17 = vld [vmem:[#allocation11 + $0x500] sm:$0xff]   ;;  %v16566_v47 = vld [vmem:[#allocation11 + $0x2d0] sm:$0xff]  }
 0x745   :  { %14045 = vmatprep.subr.bf16.mxu1 %v16518_v5  ;;  %v14271_v58 = vadd.f32 %v17315_v21, %v3780_v52  ;;  %v16610_v5 = vld [vmem:[#allocation11 + $0x540] sm:$0xff]   ;;  %v16616_v52 = vld [vmem:[#allocation11 + $0x558] sm:$0xff]  }
 0x746   :  { %14241 = vmatprep.subr.bf16.mxu0 %v16610_v5  ;;  %v16572_v5 = vld [vmem:[#allocation11 + $0x2e8] sm:$0xff]  }
 0x747   :  { %v10514_v21 = vmax.f32 %v14271_v58, 0.0  ;;  %v16640_v58 = vld [vmem:[#allocation10] sm:$0xff] }
 0x748   :  { %14046 = vmatpush3.bf16.msra.mxu1 %v16519_v62  ;;  %v16612_v62 = vld [vmem:[#allocation11 + $0x548] sm:$0xff]  }
 0x749   :  { %14047 = vmatprep.subr.bf16.mxu1 %v16522_v48  ;;  %v10580_v37 = vmul.f32 %v17443_v8, %v10514_v21  ;;  %v16549_v8 = vld [vmem:[#allocation11 + $0x188] sm:$0xff]   ;;  %v16550_v48 = vld [vmem:[#allocation11 + $0x1d0] sm:$0xff]  }
 0x74b   :  { %v10602_v50 = vpack.c.bf16 %v10580_v37, %v10580_v37 }
 0x74c   :  { %14048 = vmatpush3.bf16.msra.mxu1 %v16523_v45  ;;  %v16613_v45 = vld [vmem:[#allocation11 + $0x508] sm:$0xff]  }
 0x74d   :  { %14049 = vmatprep.subr.bf16.mxu1 %v16526_v29  ;;  %v16614_v29 = vld [vmem:[#allocation11 + $0x550] sm:$0xff]  }
 0x750   :  { %14050 = vmatpush3.bf16.msra.mxu1 %v16527_v4  ;;  %v16551_v4 = vld [vmem:[#allocation11 + $0x190] sm:$0xff]  }
 0x751   :  { %14051 = vmatprep.subr.bf16.mxu1 %v16530_v26  ;;  %v16552_v26 = vld [vmem:[#allocation11 + $0x1d8] sm:$0xff]  }
 0x754   :  { %14052 = vmatpush3.bf16.msra.mxu1 %v16531_v36  ;;  %v16615_v36 = vld [vmem:[#allocation11 + $0x510] sm:$0xff]  }
 0x755   :  { %14053 = vmatprep.subr.bf16.mxu1 %v16536_v15  ;;  %v16553_v15 = vld [vmem:[#allocation11 + $0x198] sm:$0xff]  }
 0x756   :  { %v10259_v19 = vpop.f32.mrb[20].mxu1 }
 0x757   :  { %v14285_v13 = vadd.f32 %v10259_v19, %v3836_v23  ;;  %v17463_v31 = vpop.f32.mrb[24].mxu0  ;;  %v10261_v63 = vpop.f32.mrb[21].mxu1  ;;  %v16617_v23 = vld [vmem:[#allocation11 + $0x518] sm:$0xff]   ;;  %v16619_v19 = vld [vmem:[#allocation11 + $0x520] sm:$0xff]  }
 0x758   :  { %v14286_v2 = vadd.f32 %v10261_v63, %v3840_v24  ;;  %v17465_v12 = vpop.f32.mrb[25].mxu0  ;;  %v10263_v20 = vpop.f32.mrb[22].mxu1  ;;  %14054 = vmatpush3.bf16.msra.mxu1 %v16537_v25  ;;  %v16618_v24 = vld [vmem:[#allocation11 + $0x560] sm:$0xff]   ;;  %v16557_v63 = vld [vmem:[#allocation11 + $0x1a8] sm:$0xff]  }
 0x759   :  { %v10528_v33 = vmax.f32 %v14285_v13, 0.0  ;;  %v10386_v44 = vpop.f32.mrb[26].mxu0  ;;  %v10264_v39 = vpop.f32.mrb[23].mxu1  ;;  %14055 = vmatprep.subr.bf16.mxu1 %v16540_v27  ;;  %v16555_v25 = vld [vmem:[#allocation11 + $0x1a0] sm:$0xff]   ;;  %v16556_v27 = vld [vmem:[#allocation11 + $0x1e8] sm:$0xff]   ;;  %v14280_v20 = vadd.f32 %v17359_v34, %v3816_v11  ;;  %v16561_v34 = vld [vmem:[#allocation11 + $0x1b8] sm:$0xff]  }
 0x75a   :  { %v10529_v28 = vmax.f32 %v14286_v2, 0.0  ;;  %v10387_v46 = vpop.f32.mrb[27].mxu0  ;;  %v16620_v13 = vld [vmem:[#allocation11 + $0x568] sm:$0xff]   ;;  %v16560_v39 = vld [vmem:[#allocation11 + $0x1f8] sm:$0xff]   ;;  %v16623_v11 = vld [vmem:[#allocation11 + $0x570] sm:$0xff]  }
 0x75b   :  { %v10594_v1 = vmul.f32 %v10542_v43, %v10528_v33  ;;  %v3796_v43 = vrot.slane %v16640_v58, %v3795_v35  ;;  %v16578_v58 = vld [vmem:[#allocation11 + $0x3c0] sm:$0xff]  }
 0x75c   :  { %v10595_v55 = vmul.f32 %v10564_v40, %v10529_v28  ;;  %14056 = vmatpush3.bf16.msra.mxu1 %v16541_v59  ;;  %v16558_v40 = vld [vmem:[#allocation11 + $0x1f0] sm:$0xff]   ;;  %v16562_v28 = vld [vmem:[#allocation11 + $0x2c0] sm:$0xff]  }
 0x75d   :  { %14057 = vmatprep.subr.bf16.mxu1 %v16544_v51  ;;  %v10616_v18 = vpack.c.bf16 %v10594_v1, %v10594_v1  ;;  %v14275_v2 = vadd.f32 %v17335_v7, %v3796_v43  ;;  %v10523_v51 = vmax.f32 %v14280_v20, 0.0  ;;  %v10561_v7 = vcombine.high %v17476_v3, %v17476_v3  ;;  %v16563_v1 = vld [vmem:[#allocation11 + $0x280] sm:$0xff]   ;;  %v16621_v43 = vld [vmem:[#allocation11 + $0x528] sm:$0xff]   ;;  %v16626_v20 = vld [vmem:[#allocation11 + $0x538] sm:$0xff]  }
 0x75e   :  { %v10617_v41 = vpack.c.bf16 %v10595_v55, %v10595_v55 }
 0x75f   :  { %v10518_v21 = vmax.f32 %v14275_v2, 0.0  ;;  %v10589_v46 = vmul.f32 %v10561_v7, %v10523_v51  ;;  %v16625_v2 = vld [vmem:[#allocation11 + $0x578] sm:$0xff]   ;;  %v16588_v51 = vld [vmem:[#allocation11 + $0x3e8] sm:$0xff]   ;;  %v3848_v7 = vrot.slane %v17448_v0, %v17251_v54 }
 0x760   :  { %14058 = vmatpush3.bf16.msra.mxu1 %v16545_v57  ;;  %12389 = vmatprep.mubr.bf16.mxu0 %v10617_v41  ;;  %v16564_v57 = vld [vmem:[#allocation11 + $0x2c8] sm:$0xff]   ;;  %v16567_v41 = vld [vmem:[#allocation11 + $0x290] sm:$0xff]  }
 0x761   :  { %12390 = vmatmul.mubr.bf16.vlgmr.msra.gmra.mrb[44].mxu0 %v10616_v18  ;;  %14087 = vmatprep.subr.bf16.mxu1 %v16546_v22  ;;  %v10584_v49 = vmul.f32 %v17461_v56, %v10518_v21  ;;  %v10611_v37 = vpack.c.bf16 %v10589_v46, %v10589_v46  ;;  %v16565_v22 = vld [vmem:[#allocation11 + $0x288] sm:$0xff]   ;;  %v16568_v18 = vld [vmem:[#allocation11 + $0x2d8] sm:$0xff]  }
 0x762   :  { %14242 = vmatpush3.bf16.msra.mxu0 %v16611_v17  ;;  %v16569_v56 = vld [vmem:[#allocation11 + $0x298] sm:$0xff]   ;;  %v16573_v17 = vld [vmem:[#allocation11 + $0x2a8] sm:$0xff]  }
 0x763   :  { %12110 = vmatmul.mubr.bf16.vlgmr.msra.gmra.mrb[28].mxu1 %v10602_v50  ;;  %14243 = vmatprep.subr.bf16.mxu0 %v16612_v62  ;;  %v10606_v55 = vpack.c.bf16 %v10584_v49, %v10584_v49  ;;  %v16571_v50 = vld [vmem:[#allocation11 + $0x2a0] sm:$0xff]   ;;  %v16585_v21 = vld [vmem:[#allocation11 + $0x398] sm:$0xff]   ;;  %v14288_v49 = vadd.f32 %v17465_v12, %v3848_v7 }
 0x764   :  { %14088 = vmatpush3.bf16.msra.mxu1 %v16547_v53  ;;  %12189 = vmatprep.mubr.bf16.mxu1 %v10607_v61  ;;  %v16570_v53 = vld [vmem:[#allocation11 + $0x2e0] sm:$0xff]  }
 0x765   :  { %14089 = vmatprep.subr.bf16.mxu1 %v16548_v60  ;;  %v16641_v60 = vld [vmem:[#allocation10 + $0x8] sm:$0xff]  ;;  %v16594_v12 = vld [vmem:[#allocation11 + $0x4c0] sm:$0xff]  }
 0x766   :  { %14244 = vmatpush3.bf16.msra.mxu0 %v16613_v45  ;;  %v3812_v61 = vrot.slane %v16641_v60, %v17274_v42  ;;  %v16595_v60 = vld [vmem:[#allocation11 + $0x480] sm:$0xff]  }
 0x767   :  { %14245 = vmatprep.subr.bf16.mxu0 %v16614_v29 }
 0x768   :  { %14090 = vmatpush3.bf16.msra.mxu1 %v16549_v8  ;;  %v14279_v62 = vadd.f32 %v17355_v32, %v3812_v61  ;;  %v16574_v8 = vld [vmem:[#allocation11 + $0x2f0] sm:$0xff]  }
 0x769   :  { %14091 = vmatprep.subr.bf16.mxu1 %v16550_v48  ;;  %v17485_v48 = vld [vmem:[#allocation14 + $0x38] sm:$0xff] }
 0x76a   :  { %14246 = vmatpush3.bf16.msra.mxu0 %v16615_v36 }
 0x76b   :  { %14247 = vmatprep.subr.bf16.mxu0 %v16616_v52 }
 0x76c   :  { %14092 = vmatpush3.bf16.msra.mxu1 %v16551_v4  ;;  %v16575_v4 = vld [vmem:[#allocation11 + $0x2b0] sm:$0xff]  }
 0x76d   :  { %14093 = vmatprep.subr.bf16.mxu1 %v16552_v26  ;;  %v10522_v26 = vmax.f32 %v14279_v62, 0.0  ;;  %v16598_v62 = vld [vmem:[#allocation11 + $0x4d0] sm:$0xff]  }
 0x76e   :  { %14248 = vmatpush3.bf16.msra.mxu0 %v16617_v23  ;;  %v10563_v23 = vcombine.high %v17485_v48, %v17485_v48 }
 0x76f   :  { %14249 = vmatprep.subr.bf16.mxu0 %v16618_v24  ;;  %v16577_v24 = vld [vmem:[#allocation11 + $0x2b8] sm:$0xff]  }
 0x770   :  { %14094 = vmatpush3.bf16.msra.mxu1 %v16553_v15  ;;  %v16576_v15 = vld [vmem:[#allocation11 + $0x2f8] sm:$0xff]  }
 0x771   :  { %14095 = vmatprep.subr.bf16.mxu1 %v16554_v38  ;;  %v10527_v38 = vmax.f32 %v17405_v16, 0.0  ;;  %v16580_v16 = vld [vmem:[#allocation11 + $0x3c8] sm:$0xff]  }
 0x772   :  { %14250 = vmatpush3.bf16.msra.mxu0 %v16619_v19  ;;  %v16624_v19 = vld [vmem:[#allocation11 + $0x530] sm:$0xff]  }
 0x773   :  { %14251 = vmatprep.subr.bf16.mxu0 %v16620_v13  ;;  %v16579_v13 = vld [vmem:[#allocation11 + $0x380] sm:$0xff]  }
 0x774   :  { %14096 = vmatpush3.bf16.msra.mxu1 %v16555_v25  ;;  %v10588_v25 = vmul.f32 %v17476_v3, %v10522_v26  ;;  %v16581_v3 = vld [vmem:[#allocation11 + $0x388] sm:$0xff]   ;;  %v3844_v26 = vrot.slane %v17448_v0, %v17274_v42  ;;  %v16609_v42 = vld [vmem:[#allocation11 + $0x4b8] sm:$0xff]  }
 0x775   :  { %14097 = vmatprep.subr.bf16.mxu1 %v16556_v27  ;;  %v10593_v27 = vmul.f32 %v10563_v23, %v10527_v38  ;;  %v16606_v23 = vld [vmem:[#allocation11 + $0x4f0] sm:$0xff]  }
 0x776   :  { %14252 = vmatpush3.bf16.msra.mxu0 %v16621_v43  ;;  %v14287_v38 = vadd.f32 %v17463_v31, %v3844_v26  ;;  %v3852_v31 = vrot.slane %v17448_v0, %v17284_v6 }
 0x777   :  { %v14037_v35 = vpop.f32.mrb[28].mxu0  ;;  %14253 = vmatprep.subr.bf16.mxu0 %v16623_v11  ;;  %v16608_v11 = vld [vmem:[#allocation11 + $0x4f8] sm:$0xff]  }
 0x778   :  { %v14038_v59 = vpop.f32.mrb[29].mxu0  ;;  %14098 = vmatpush3.bf16.msra.mxu1 %v16557_v63  ;;  %v10610_v63 = vpack.c.bf16 %v10588_v25, %v10588_v25  ;;  %v16607_v25 = vld [vmem:[#allocation11 + $0x4b0] sm:$0xff]  }
 0x779   :  { %v17478_v33 = vadd.f32 %v14038_v59, %v14037_v35  ;;  %v14040_v44 = vpop.f32.mrb[30].mxu0  ;;  %14099 = vmatprep.subr.bf16.mxu1 %v16558_v40  ;;  %v10615_v40 = vpack.c.bf16 %v10593_v27, %v10593_v27  ;;  %v16582_v35 = vld [vmem:[#allocation11 + $0x3d0] sm:$0xff]  }
 0x77a   :  { %v14041_v30 = vpop.f32.mrb[31].mxu0  ;;  %14254 = vmatpush3.bf16.msra.mxu0 %v16624_v19  ;;  %v16583_v59 = vld [vmem:[#allocation11 + $0x390] sm:$0xff]   ;;  %v16586_v44 = vld [vmem:[#allocation11 + $0x3e0] sm:$0xff]  }
 0x77b   :  { %14255 = vmatprep.subr.bf16.mxu0 %v16625_v2  ;;  %v16589_v30 = vld [vmem:[#allocation11 + $0x3a8] sm:$0xff]   ;;  %v10544_v2 = vld [vmem:[#allocation14 + $0x50] sm:$0xff] }
 0x77c   :  { %14100 = vmatpush3.bf16.msra.mxu1 %v16559_v9  ;;  %v16584_v9 = vld [vmem:[#allocation11 + $0x3d8] sm:$0xff]  }
 0x77d   :  { %14101 = vmatprep.subr.bf16.mxu1 %v16560_v39  ;;  %v16587_v39 = vld [vmem:[#allocation11 + $0x3a0] sm:$0xff]  }
 0x77e   :  { %14256 = vmatpush3.bf16.msra.mxu0 %v16626_v20 }
 0x780   :  { %14102 = vmatpush3.bf16.msra.mxu1 %v16561_v34  ;;  %v16590_v34 = vld [vmem:[#allocation11 + $0x3f0] sm:$0xff]  }
 0x781   :  { %14131 = vmatprep.subr.bf16.mxu1 %v16562_v28  ;;  %v10543_v28 = vld [vmem:[#allocation14 + $0x48] sm:$0xff] }
 0x782   :  { %v10565_v54 = vcombine.high %v10543_v28, %v10543_v28 }
 0x783   :  { %12190 = vmatmul.mubr.bf16.vlgmr.msra.gmra.mrb[32].mxu1 %v10606_v55  ;;  %v16591_v55 = vld [vmem:[#allocation11 + $0x3b0] sm:$0xff]  }
 0x784   :  { %14132 = vmatpush3.bf16.msra.mxu1 %v16563_v1  ;;  %12269 = vmatprep.mubr.bf16.mxu1 %v10611_v37 }
 0x785   :  { %14133 = vmatprep.subr.bf16.mxu1 %v16564_v57  ;;  %v10526_v57 = vmax.f32 %v17403_v14, 0.0  ;;  %v16596_v14 = vld [vmem:[#allocation11 + $0x4c8] sm:$0xff]  }
 0x788   :  { %14134 = vmatpush3.bf16.msra.mxu1 %v16565_v22 }
 0x789   :  { %14135 = vmatprep.subr.bf16.mxu1 %v16566_v47  ;;  %v16592_v47 = vld [vmem:[#allocation11 + $0x3f8] sm:$0xff]  }
 0x78c   :  { %14136 = vmatpush3.bf16.msra.mxu1 %v16567_v41  ;;  %v10531_v41 = vmax.f32 %v14288_v49, 0.0  ;;  %v13844_v49 = vld [vmem:[#allocation13] ss:$0 sm:$0xff] }
 0x78d   :  { %14137 = vmatprep.subr.bf16.mxu1 %v16568_v18 }
 0x790   :  { %14138 = vmatpush3.bf16.msra.mxu1 %v16569_v56  ;;  %v16593_v56 = vld [vmem:[#allocation11 + $0x3b8] sm:$0xff]  }
 0x791   :  { %14139 = vmatprep.subr.bf16.mxu1 %v16570_v53  ;;  %v10592_v53 = vmul.f32 %v17485_v48, %v10526_v57  ;;  %v16601_v48 = vld [vmem:[#allocation11 + $0x498] sm:$0xff]   ;;  %v12072_v57 = vadd.f32 %v17478_v33, %v13844_v49 }
 0x793   :  { %v10614_v61 = vpack.c.bf16 %v10592_v53, %v10592_v53 }
 0x794   :  { %14140 = vmatpush3.bf16.msra.mxu1 %v16571_v50  ;;  %v10597_v50 = vmul.f32 %v10565_v54, %v10531_v41 }
 0x795   :  { %14141 = vmatprep.subr.bf16.mxu1 %v16572_v5 }
 0x796   :  { %v10619_v5 = vpack.c.bf16 %v10597_v50, %v10597_v50 }
 0x797   :  { %v14081_v45 = vpop.f32.mrb[32].mxu0 }
 0x798   :  { %v14082_v29 = vpop.f32.mrb[33].mxu0  ;;  %14142 = vmatpush3.bf16.msra.mxu1 %v16573_v17  ;;  %v16597_v17 = vld [vmem:[#allocation11 + $0x488] sm:$0xff]  }
 0x799   :  { %v17487_v36 = vadd.f32 %v14082_v29, %v14081_v45  ;;  %v14084_v52 = vpop.f32.mrb[34].mxu0  ;;  %14143 = vmatprep.subr.bf16.mxu1 %v16574_v8  ;;  %v16599_v8 = vld [vmem:[#allocation11 + $0x490] sm:$0xff]   ;;  %v16600_v45 = vld [vmem:[#allocation11 + $0x4d8] sm:$0xff]   ;;  %v16602_v29 = vld [vmem:[#allocation11 + $0x4e0] sm:$0xff]  }
 0x79a   :  { %v14085_v32 = vpop.f32.mrb[35].mxu0  ;;  %v16604_v52 = vld [vmem:[#allocation11 + $0x4e8] sm:$0xff]  }
 0x79c   :  { %14144 = vmatpush3.bf16.msra.mxu1 %v16575_v4  ;;  %v16603_v4 = vld [vmem:[#allocation11 + $0x4a0] sm:$0xff]  }
 0x79d   :  { %14145 = vmatprep.subr.bf16.mxu1 %v16576_v15  ;;  %v16605_v15 = vld [vmem:[#allocation11 + $0x4a8] sm:$0xff]  }
 0x7a0   :  { %14146 = vmatpush3.bf16.msra.mxu1 %v16577_v24 }
 0x7a1   :  { %14175 = vmatprep.subr.bf16.mxu1 %v16578_v58  ;;  %v10530_v58 = vmax.f32 %v14287_v38, 0.0 }
 0x7a3   :  { %12270 = vmatmul.mubr.bf16.vlgmr.msra.gmra.mrb[36].mxu1 %v10610_v63 }
 0x7a4   :  { %14176 = vmatpush3.bf16.msra.mxu1 %v16579_v13  ;;  %12349 = vmatprep.mubr.bf16.mxu1 %v10615_v40  ;;  %v10596_v13 = vmul.f32 %v10543_v28, %v10530_v58 }
 0x7a5   :  { %14177 = vmatprep.subr.bf16.mxu1 %v16580_v16  ;;  %v3856_v16 = vrot.slane %v17448_v0, %v17287_v10 }
 0x7a6   :  { %v10618_v63 = vpack.c.bf16 %v10596_v13, %v10596_v13 }
 0x7a8   :  { %14178 = vmatpush3.bf16.msra.mxu1 %v16581_v3 }
 0x7a9   :  { %14179 = vmatprep.subr.bf16.mxu1 %v16582_v35 }
 0x7ac   :  { %14180 = vmatpush3.bf16.msra.mxu1 %v16583_v59  ;;  %v10566_v59 = vcombine.high %v10544_v2, %v10544_v2 }
 0x7ad   :  { %14181 = vmatprep.subr.bf16.mxu1 %v16584_v9 }
 0x7b0   :  { %14182 = vmatpush3.bf16.msra.mxu1 %v16585_v21 }
 0x7b1   :  { %14183 = vmatprep.subr.bf16.mxu1 %v16586_v44 }
 0x7b4   :  { %14184 = vmatpush3.bf16.msra.mxu1 %v16587_v39 }
 0x7b5   :  { %14185 = vmatprep.subr.bf16.mxu1 %v16588_v51 }
 0x7b7   :  { %v14125_v46 = vpop.f32.mrb[36].mxu0 }
 0x7b8   :  { %v14126_v1 = vpop.f32.mrb[37].mxu0  ;;  %14186 = vmatpush3.bf16.msra.mxu1 %v16589_v30 }
 0x7b9   :  { %v17497_v37 = vadd.f32 %v14126_v1, %v14125_v46  ;;  %v14128_v22 = vpop.f32.mrb[38].mxu0  ;;  %14187 = vmatprep.subr.bf16.mxu1 %v16590_v34 }
 0x7ba   :  { %v14129_v18 = vpop.f32.mrb[39].mxu0 }
 0x7bc   :  { %14188 = vmatpush3.bf16.msra.mxu1 %v16591_v55 }
 0x7bd   :  { %14189 = vmatprep.subr.bf16.mxu1 %v16592_v47 }
 0x7c0   :  { %14190 = vmatpush3.bf16.msra.mxu1 %v16593_v56 }
 0x7c1   :  { %14219 = vmatprep.subr.bf16.mxu1 %v16594_v12 }
 0x7c3   :  { %12350 = vmatmul.mubr.bf16.vlgmr.msra.gmra.mrb[40].mxu1 %v10614_v61 }
 0x7c4   :  { %14220 = vmatpush3.bf16.msra.mxu1 %v16595_v60  ;;  %12429 = vmatprep.mubr.bf16.mxu1 %v10619_v5 }
 0x7c5   :  { %14221 = vmatprep.subr.bf16.mxu1 %v16596_v14 }
 0x7c8   :  { %14222 = vmatpush3.bf16.msra.mxu1 %v16597_v17 }
 0x7c9   :  { %14223 = vmatprep.subr.bf16.mxu1 %v16598_v62 }
 0x7cc   :  { %14224 = vmatpush3.bf16.msra.mxu1 %v16599_v8 }
 0x7cd   :  { %14225 = vmatprep.subr.bf16.mxu1 %v16600_v45 }
 0x7d0   :  { %14226 = vmatpush3.bf16.msra.mxu1 %v16601_v48 }
 0x7d1   :  { %14227 = vmatprep.subr.bf16.mxu1 %v16602_v29 }
 0x7d4   :  { %14228 = vmatpush3.bf16.msra.mxu1 %v16603_v4 }
 0x7d5   :  { %14229 = vmatprep.subr.bf16.mxu1 %v16604_v52 }
 0x7d7   :  { %v14169_v32 = vpop.f32.mrb[40].mxu0 }
 0x7d8   :  { %v14170_v24 = vpop.f32.mrb[41].mxu0  ;;  %14230 = vmatpush3.bf16.msra.mxu1 %v16605_v15 }
 0x7d9   :  { %v14171_v43 = vadd.f32 %v14170_v24, %v14169_v32  ;;  %v14172_v27 = vpop.f32.mrb[42].mxu0  ;;  %14231 = vmatprep.subr.bf16.mxu1 %v16606_v23 }
 0x7da   :  { %v14173_v19 = vpop.f32.mrb[43].mxu0 }
 0x7dc   :  { %14232 = vmatpush3.bf16.msra.mxu1 %v16607_v25 }
 0x7dd   :  { %14233 = vmatprep.subr.bf16.mxu1 %v16608_v11 }
 0x7e0   :  { %14234 = vmatpush3.bf16.msra.mxu1 %v16609_v42 }
 0x7e3   :  { %12430 = vmatmul.mubr.bf16.vlgmr.msra.gmra.mrb[44].mxu1 %v10618_v63 }
 0x816   :  { %v10505_v40 = vpop.f32.mrb[24].mxu1 }
 0x817   :  { %v14289_v20 = vadd.f32 %v10505_v40, %v3852_v31  ;;  %v10507_v3 = vpop.f32.mrb[25].mxu1 }
 0x818   :  { %v14290_v35 = vadd.f32 %v10507_v3, %v3856_v16  ;;  %v10509_v9 = vpop.f32.mrb[26].mxu1 }
 0x819   :  { %v10532_v21 = vmax.f32 %v14289_v20, 0.0  ;;  %v10510_v44 = vpop.f32.mrb[27].mxu1 }
 0x81a   :  { %v10533_v39 = vmax.f32 %v14290_v35, 0.0 }
 0x81b   :  { %v10598_v51 = vmul.f32 %v10544_v2, %v10532_v21 }
 0x81c   :  { %v10599_v7 = vmul.f32 %v10566_v59, %v10533_v39 }
 0x81d   :  { %v10620_v34 = vpack.c.bf16 %v10598_v51, %v10598_v51 }
 0x81e   :  { %v10621_v30 = vpack.c.bf16 %v10599_v7, %v10599_v7 }
 0x820   :  { %12469 = vmatprep.mubr.bf16.mxu0 %v10621_v30 }
 0x821   :  { %12470 = vmatmul.mubr.bf16.vlgmr.msra.gmra.mrb[48].mxu0 %v10620_v34 }
 0x834   :  { %v14213_v6 = vpop.f32.mrb[44].mxu0 }
 0x835   :  { %v14214_v28 = vpop.f32.mrb[45].mxu0 }
 0x836   :  { %v14215_v10 = vadd.f32 %v14214_v28, %v14213_v6  ;;  %v14059_v0 = vpop.f32.mrb[28].mxu1  ;;  %v14216_v46 = vpop.f32.mrb[46].mxu0 }
 0x837   :  { %v14060_v1 = vpop.f32.mrb[29].mxu1  ;;  %v14217_v55 = vpop.f32.mrb[47].mxu0 }
 0x838   :  { %v14061_v22 = vadd.f32 %v14060_v1, %v14059_v0  ;;  %v14062_v47 = vpop.f32.mrb[30].mxu1 }
 0x839   :  { %v14063_v41 = vpop.f32.mrb[31].mxu1 }
 0x83a   :  { %v12112_v54 = vadd.f32 %v14061_v22, %v12072_v57 }
 0x83c   :  { %v12152_v18 = vadd.f32 %v17487_v36, %v12112_v54 }
 0x856   :  { %v14103_v56 = vpop.f32.mrb[32].mxu1 }
 0x857   :  { %v14104_v53 = vpop.f32.mrb[33].mxu1 }
 0x858   :  { %v14105_v12 = vadd.f32 %v14104_v53, %v14103_v56  ;;  %v14106_v50 = vpop.f32.mrb[34].mxu1 }
 0x859   :  { %v14107_v60 = vpop.f32.mrb[35].mxu1 }
 0x85a   :  { %v12192_v61 = vadd.f32 %v14105_v12, %v12152_v18 }
 0x85c   :  { %v12232_v14 = vadd.f32 %v17497_v37, %v12192_v61 }
 0x876   :  { %v14147_v5 = vpop.f32.mrb[36].mxu1 }
 0x877   :  { %v14148_v17 = vpop.f32.mrb[37].mxu1 }
 0x878   :  { %v14149_v62 = vadd.f32 %v14148_v17, %v14147_v5  ;;  %v14150_v8 = vpop.f32.mrb[38].mxu1 }
 0x879   :  { %v14151_v45 = vpop.f32.mrb[39].mxu1 }
 0x87a   :  { %v12272_v33 = vadd.f32 %v14149_v62, %v12232_v14 }
 0x87c   :  { %v12312_v48 = vadd.f32 %v14171_v43, %v12272_v33  ;;  %v12478_v43 = vld [vmem:[#allocation16] sm:$0xf] }
 0x896   :  { %v14191_v29 = vpop.f32.mrb[40].mxu1 }
 0x897   :  { %v14192_v4 = vpop.f32.mrb[41].mxu1 }
 0x898   :  { %v14193_v26 = vadd.f32 %v14192_v4, %v14191_v29  ;;  %v14194_v52 = vpop.f32.mrb[42].mxu1 }
 0x899   :  { %v14195_v36 = vpop.f32.mrb[43].mxu1 }
 0x89a   :  { %v12352_v15 = vadd.f32 %v14193_v26, %v12312_v48 }
 0x89c   :  { %v12392_v38 = vadd.f32 %v14215_v10, %v12352_v15 }
 0x8b6   :  { %v14235_v23 = vpop.f32.mrb[44].mxu1 }
 0x8b7   :  { %v14236_v32 = vpop.f32.mrb[45].mxu1 }
 0x8b8   :  { %v14237_v24 = vadd.f32 %v14236_v32, %v14235_v23  ;;  %v14238_v25 = vpop.f32.mrb[46].mxu1 }
 0x8b9   :  { %v14239_v58 = vpop.f32.mrb[47].mxu1 }
 0x8ba   :  { %v12432_v37 = vadd.f32 %v14237_v24, %v12392_v38 }
 0x8f4   :  { %v14257_v27 = vpop.f32.mrb[48].mxu0 }
 0x8f5   :  { %v14258_v11 = vpop.f32.mrb[49].mxu0 }
 0x8f6   :  { %v14259_v19 = vadd.f32 %v14258_v11, %v14257_v27  ;;  %v14260_v42 = vpop.f32.mrb[50].mxu0 }
 0x8f7   :  { %v14261_v13 = vpop.f32.mrb[51].mxu0 }
 0x8f8   :  { %v12472_v63 = vadd.f32 %v14259_v19, %v12432_v37 }
 0x8fa   :  { %v12477_v31 = vmax.f32 %v12472_v63, 0.0 }
 0x8fc   :  { %v12479_v16 = vmul.f32 %v12478_v43, %v12477_v31 }
 0x8fe   :  { %12480 = vst [vmem:[#allocation17] sm:$0xf] %v12479_v16 }
 0x8ff   :  { %16851 = shalt.err (!%p16848_p6)
}
 0x900   :  { %s16852_s25 = scalar_lea.hbm %s17532_s10, 64 }
 0x901   :  { %p16853_p7 = scmp.ne.s32.totalorder %s17532_s10, %s16852_s25  ;;  %p16856_p8 = scmp.lt.u32.totalorder %s16852_s25, %s17532_s10 }
 0x903   :  { %p16858_p9 = pnand %p16856_p8, %p16853_p7 }
 0x905   :  { %16861 = shalt.err (!%p16858_p9)
}
 0x906   :  { %12490 = dma.vmem_to_hbm [thread:$0]  %s12488_s18, 64, %s17532_s10, [#allocation4]  }
 0x907   :  { %16872 = dma.done.wait [#allocation4], 64  }
 0x908   :  { %16873 = vsyncadd [#allocation4], 4294967232 }
 0x909   :  { %12494 = vsyncpa [#allocation3], 1 }
 0x90a   :  { %12495 = vsyncpa [#allocation6], 1 }
 0x90b   :  { %12496 = vsyncpa [#allocation9], 1 }
 0x90c   :  { %12497 = vsyncpa [#allocation12], 1 }
 0x90d   :  { %12498 = vsyncpa [#allocation15], 1 }
 0x90e   :  { %12499 = vsyncpa [#allocation4], 1 }

</bundles_post_ra>
